<compile_context>
chip_gen: v5e
topology: v5e:2x2
jax: 0.10.0
libtpu: 0.0.40
codegen_flags: <defaults>
</compile_context>

<pallas_src>
import functools

import jax
import jax.numpy as jnp
from jax.experimental import pallas as pl
from jax.experimental.pallas import tpu as pltpu

C1 = 32              # conv1 out channels
C2 = 48              # conv2 out channels
KW = 5               # kernel width (both convs)
POOL = 16            # pool window / stride (both pools)
NPH = POOL           # pool-window phases evaluated per output position
SLAB = NPH * POOL    # 256: per-sample lane slab (>= T1, == width of phase-major conv2 layout)
NTAP = NPH + KW - 1  # 20: taps needed per pool window incl. conv1 halo


def _feature_extractor_kernel(xr_ref, w1s_ref, b1_ref, s5_ref, w2_ref, b2_ref,
                              o_ref, p1s_ref, g_ref):
    nb = o_ref.shape[0]        # samples handled per grid step
    t1 = p1s_ref.shape[-1]     # sequence length after pool1

    # ---- stage 1: conv1 for all 16 pool phases of all nb samples in ONE matmul ----
    # h1[i*C1+c, n*SLAB+j] = conv1(x_n)[c, 16*j+i]          (bias added after the max)
    h1 = jnp.dot(w1s_ref[...], xr_ref[0],
                 preferred_element_type=jnp.float32)                      # [NPH*C1, nb*SLAB]

    # maxpool1(16) = max over the 16 phase row blocks; bias+ReLU commute with the max
    m1 = h1[0:C1, :]
    for i in range(1, NPH):
        m1 = jnp.maximum(m1, h1[i * C1:(i + 1) * C1, :])
    p1 = jnp.maximum(m1 + b1_ref[...], 0.0).astype(jnp.bfloat16)          # [C1, nb*SLAB]

    # repack: batch moves from lane slabs (columns) to rows -> gather sees M = nb*C1
    for n in range(nb):
        p1s_ref[n * C1:(n + 1) * C1, :] = p1[:, n * SLAB:n * SLAB + t1]

    # ---- stage 2a: one-hot tap/phase gather, all 5 taps + all samples in ONE matmul ----
    # gall[n*C1+c, k*SLAB + i2*16 + j] = p1_n[c, 16*j + i2 + k - 2]  (0 at conv2 pad / j>=T2)
    gall = jnp.dot(p1s_ref[...], s5_ref[...],
                   preferred_element_type=jnp.float32)                    # [nb*C1, KW*SLAB]
    gall = gall.astype(jnp.bfloat16)                                      # exact (one-hot routing)

    # regroup rows (n,c) x cols (k,.) -> rows (k,c) x cols (n,.) so a single matmul
    # can contract taps+channels together (all slices sublane/lane aligned)
    for k in range(KW):
        for n in range(nb):
            g_ref[k * C1:(k + 1) * C1, n * SLAB:(n + 1) * SLAB] = (
                gall[n * C1:(n + 1) * C1, k * SLAB:(k + 1) * SLAB])

    # ---- stage 2b: conv2 as ONE channel+tap mix matmul (K = KW*C1 = 160) + bias + ReLU ----
    h2 = jnp.dot(w2_ref[...], g_ref[...],
                 preferred_element_type=jnp.float32)                      # [C2, nb*SLAB]
    h2 = jnp.maximum(h2 + b2_ref[...], 0.0)

    # ---- stage 2c: maxpool2(16) = max over the 16 phase slabs via cyclic lane rolls ----
    for n in range(nb):
        t = h2[:, n * SLAB:(n + 1) * SLAB]                                # [C2, SLAB]
        for shift in (128, 64, 32, 16):
            t = jnp.maximum(t, pltpu.roll(t, shift, axis=1))
        o_ref[n] = t    # full 256-lane (lane-dense, unmasked) store; wrapper slices :T2


def feature_extractor(x, w1, b1, w2, b2, *, batch_block=8):
    """x: [B, 1, L] with L % 256 == 0 and L <= 4096; weights in PyTorch Conv1d layout.

    Keep B // batch_block >= 2 where possible so both v7x TensorCores get a grid step.
    """
    B, cin, L = x.shape
    assert cin == 1
    assert L % (POOL * POOL) == 0 and L // (POOL * POOL) <= POOL
    nb = min(batch_block, B)
    assert B % nb == 0
    T1 = L // POOL            # length after pool1
    T2 = T1 // POOL           # length after pool2
    G = B // nb
    f32, bf16 = jnp.float32, jnp.bfloat16

    # ---------- wrapper-side layout plumbing (no conv/pool math) ----------
    xpad = jnp.pad(x[:, 0, :].astype(f32), ((0, 0), (2, 2)))                       # [B, L+4]
    # phase decomposition: xr[b, m, j] = xpad[b, 16*j + m]
    xr = jnp.stack(
        [xpad[:, m:m + POOL * (T1 - 1) + 1:POOL] for m in range(NTAP)], axis=1)    # [B, NTAP, T1]
    # per-sample 256-wide lane slab (zero padded), batch folded into the lane axis
    xr = jnp.pad(xr, ((0, 0), (0, 0), (0, SLAB - T1)))                             # [B, NTAP, SLAB]
    xr = xr.reshape(G, nb, NTAP, SLAB).transpose(0, 2, 1, 3).reshape(G, NTAP, nb * SLAB)
    xr = xr.astype(bf16)

    # conv1 weights replicated once per pool phase: h1[i*C1+c, j] = conv1(x)[c, 16*j+i]
    w1sq = w1[:, 0, :].astype(f32)                                                 # [C1, KW]
    w1s = jnp.zeros((NPH * C1, NTAP), f32)
    for i in range(NPH):
        w1s = w1s.at[i * C1:(i + 1) * C1, i:i + KW].set(w1sq)
    w1s = w1s.astype(bf16)
    b1c = b1.astype(f32)[:, None]                                                  # [C1, 1]

    # conv2 weights with taps and channels merged: w2big[c2, k*C1+c] = w2[c2, c, k]
    w2big = jnp.transpose(w2.astype(f32), (0, 2, 1)).reshape(C2, KW * C1).astype(bf16)
    b2c = b2.astype(f32)[:, None]                                                  # [C2, 1]

    # one-hot gather (exact in bf16):
    # s5all[s, k*SLAB + i2*16 + j] = 1 iff s == 16*j + i2 + k - 2  (and j < T2)
    s_idx = jnp.arange(T1)[:, None]
    col = jnp.arange(SLAB)[None, :]
    i2 = col // POOL
    jj = col % POOL
    s5all = jnp.concatenate(
        [((s_idx == (POOL * jj + i2 + k - 2)) & (jj < T2)).astype(f32) for k in range(KW)],
        axis=1).astype(bf16)                                                       # [T1, KW*SLAB]

    flops = 2 * B * SLAB * (NPH * C1 * NTAP + C1 * T1 * KW + C2 * KW * C1)
    bytes_accessed = (B * NTAP * SLAB * 2 + T1 * KW * SLAB * 2
                      + NPH * C1 * NTAP * 2 + C2 * KW * C1 * 2 + (C1 + C2) * 4
                      + B * C2 * SLAB * 4)

    out = pl.pallas_call(
        _feature_extractor_kernel,
        out_shape=jax.ShapeDtypeStruct((B, C2, SLAB), f32),
        grid=(G,),
        in_specs=[
            pl.BlockSpec((1, NTAP, nb * SLAB), lambda g: (g, 0, 0)),   # xr (per grid step)
            pl.BlockSpec((NPH * C1, NTAP), lambda g: (0, 0)),          # w1s   (VMEM resident)
            pl.BlockSpec((C1, 1), lambda g: (0, 0)),                   # b1
            pl.BlockSpec((T1, KW * SLAB), lambda g: (0, 0)),           # s5all (VMEM resident)
            pl.BlockSpec((C2, KW * C1), lambda g: (0, 0)),             # w2big
            pl.BlockSpec((C2, 1), lambda g: (0, 0)),                   # b2
        ],
        out_specs=pl.BlockSpec((nb, C2, SLAB), lambda g: (g, 0, 0)),
        scratch_shapes=[
            pltpu.VMEM((nb * C1, T1), bf16),         # p1 stacked: (sample, channel) x T1
            pltpu.VMEM((KW * C1, nb * SLAB), bf16),  # gathered taps: (tap, channel) x (sample, 256)
        ],
        compiler_params=pltpu.CompilerParams(
            dimension_semantics=("parallel",),
            vmem_limit_bytes=32 * 1024 * 1024,
        ),
        cost_estimate=pl.CostEstimate(
            flops=flops, transcendentals=0, bytes_accessed=bytes_accessed),
    )(xr, w1s, b1c, s5all, w2big, b2c)

    return out[:, :, :T2].reshape(B, C2 * T2)        # == torch.flatten(x, 1)


def ref_forward(x, w1, b1, w2, b2):
    """Plain-JAX reference (independent of the kernel's formulation)."""
    dn = ("NCH", "OIH", "NCH")
    y = jax.lax.conv_general_dilated(x, w1, (1,), [(2, 2)], dimension_numbers=dn)
    y = jnp.maximum(y + b1[None, :, None], 0.0)
    b_, c_, t_ = y.shape
    y = y.reshape(b_, c_, t_ // POOL, POOL).max(axis=-1)
    y = jax.lax.conv_general_dilated(y, w2, (1,), [(2, 2)], dimension_numbers=dn)
    y = jnp.maximum(y + b2[None, :, None], 0.0)
    b_, c_, t_ = y.shape
    y = y.reshape(b_, c_, t_ // POOL, POOL).max(axis=-1)
    return y.reshape(b_, -1)


def init_params(key):
    """Mimics nn.Conv1d default init: U(-1/sqrt(fan_in), 1/sqrt(fan_in))."""
    ks = jax.random.split(key, 4)

    def conv_init(kw_, kb_, cout, cin, ksz):
        bound = (cin * ksz) ** -0.5
        w = jax.random.uniform(kw_, (cout, cin, ksz), jnp.float32, -bound, bound)
        b = jax.random.uniform(kb_, (cout,), jnp.float32, -bound, bound)
        return w, b

    w1, b1 = conv_init(ks[0], ks[1], C1, 1, KW)
    w2, b2 = conv_init(ks[2], ks[3], C2, C1, KW)
    return w1, b1, w2, b2


if __name__ == "__main__":
    key = jax.random.PRNGKey(0)
    k_x, k_p = jax.random.split(key)

    B = 16
    L = 3584            # 256 * 14 -> flattened features = 48 * 14 = 672 (qso model's length)
    x = jax.random.normal(k_x, (B, 1, L), jnp.float32)
    w1, b1, w2, b2 = init_params(k_p)

    # batch_block=8 -> grid=(2,): >= 2 parallel grid steps so both v7x TCs are busy.
    fwd = jax.jit(functools.partial(feature_extractor, batch_block=8))
    out = jax.block_until_ready(fwd(x, w1, b1, w2, b2))

    ref = ref_forward(x, w1, b1, w2, b2)

    assert out.shape == (B, C2 * (L // (POOL * POOL))), out.shape
    max_err = float(jnp.max(jnp.abs(out - ref)))
    # bf16 MXU operands with f32 accumulation: expected max abs err ~1e-2.
    assert jnp.allclose(out, ref, atol=5e-2, rtol=5e-2), \
        f"mismatch vs reference (max abs err {max_err})"
    print("KERNEL_OK")
</pallas_src>

<mosaic_0001>
module attributes {stable_mosaic.version = 11 : i64} {
  func.func @_feature_extractor_kernel(%arg0: i32, %arg1: memref<1x20x2048xbf16, #tpu.memory_space<vmem>>, %arg2: memref<512x20xbf16, #tpu.memory_space<vmem>>, %arg3: memref<32x1xf32, #tpu.memory_space<vmem>>, %arg4: memref<224x1280xbf16, #tpu.memory_space<vmem>>, %arg5: memref<48x160xbf16, #tpu.memory_space<vmem>>, %arg6: memref<48x1xf32, #tpu.memory_space<vmem>>, %arg7: memref<8x48x256xf32, #tpu.memory_space<vmem>>, %arg8: memref<256x224xbf16, #tpu.memory_space<vmem>>, %arg9: memref<160x2048xbf16, #tpu.memory_space<vmem>>) attributes {dimension_semantics = [#tpu.dimension_semantics<parallel>], iteration_bounds = array<i64: 2>, scalar_prefetch = 0 : i64, scratch_operands = 2 : i64, tpu.core_type = #tpu.core_type<tc>, window_params = [{transform_indices = @transform_0, window_bounds = array<i64: 1, 20, 2048>}, {pipeline_mode = #tpu.pipeline_mode<synchronous>, transform_indices = @transform_1, window_bounds = array<i64: 512, 20>}, {pipeline_mode = #tpu.pipeline_mode<synchronous>, transform_indices = @transform_2, window_bounds = array<i64: 32, 1>}, {pipeline_mode = #tpu.pipeline_mode<synchronous>, transform_indices = @transform_3, window_bounds = array<i64: 224, 1280>}, {pipeline_mode = #tpu.pipeline_mode<synchronous>, transform_indices = @transform_4, window_bounds = array<i64: 48, 160>}, {pipeline_mode = #tpu.pipeline_mode<synchronous>, transform_indices = @transform_5, window_bounds = array<i64: 48, 1>}, {transform_indices = @transform_6, window_bounds = array<i64: 8, 48, 256>}]} {
    %c0 = arith.constant 0 : index
    %c0_0 = arith.constant 0 : index
    %0 = vector.load %arg2[%c0, %c0_0] : memref<512x20xbf16, #tpu.memory_space<vmem>>, vector<512x20xbf16>
    %c0_1 = arith.constant 0 : index
    %c0_2 = arith.constant 0 : index
    %c0_3 = arith.constant 0 : index
    %1 = vector.load %arg1[%c0_1, %c0_2, %c0_3] : memref<1x20x2048xbf16, #tpu.memory_space<vmem>>, vector<1x20x2048xbf16>
    %2 = vector.shape_cast %1 : vector<1x20x2048xbf16> to vector<20x2048xbf16>
    %cst = arith.constant dense<0.000000e+00> : vector<512x2048xf32>
    %3 = tpu.matmul %0, %2, %cst {dimension_numbers = #tpu.dot_dimension_numbers<[1], [0], [0], [1], [0, 0, 1, 1], [], []>} : vector<512x20xbf16>, vector<20x2048xbf16>, vector<512x2048xf32> -> vector<512x2048xf32>
    %4 = vector.extract_strided_slice %3 {offsets = [0, 0], sizes = [32, 2048], strides = [1, 1]} : vector<512x2048xf32> to vector<32x2048xf32>
    %5 = vector.extract_strided_slice %3 {offsets = [32, 0], sizes = [32, 2048], strides = [1, 1]} : vector<512x2048xf32> to vector<32x2048xf32>
    %6 = arith.maximumf %4, %5 : vector<32x2048xf32>
    %7 = vector.extract_strided_slice %3 {offsets = [64, 0], sizes = [32, 2048], strides = [1, 1]} : vector<512x2048xf32> to vector<32x2048xf32>
    %8 = arith.maximumf %6, %7 : vector<32x2048xf32>
    %9 = vector.extract_strided_slice %3 {offsets = [96, 0], sizes = [32, 2048], strides = [1, 1]} : vector<512x2048xf32> to vector<32x2048xf32>
    %10 = arith.maximumf %8, %9 : vector<32x2048xf32>
    %11 = vector.extract_strided_slice %3 {offsets = [128, 0], sizes = [32, 2048], strides = [1, 1]} : vector<512x2048xf32> to vector<32x2048xf32>
    %12 = arith.maximumf %10, %11 : vector<32x2048xf32>
    %13 = vector.extract_strided_slice %3 {offsets = [160, 0], sizes = [32, 2048], strides = [1, 1]} : vector<512x2048xf32> to vector<32x2048xf32>
    %14 = arith.maximumf %12, %13 : vector<32x2048xf32>
    %15 = vector.extract_strided_slice %3 {offsets = [192, 0], sizes = [32, 2048], strides = [1, 1]} : vector<512x2048xf32> to vector<32x2048xf32>
    %16 = arith.maximumf %14, %15 : vector<32x2048xf32>
    %17 = vector.extract_strided_slice %3 {offsets = [224, 0], sizes = [32, 2048], strides = [1, 1]} : vector<512x2048xf32> to vector<32x2048xf32>
    %18 = arith.maximumf %16, %17 : vector<32x2048xf32>
    %19 = vector.extract_strided_slice %3 {offsets = [256, 0], sizes = [32, 2048], strides = [1, 1]} : vector<512x2048xf32> to vector<32x2048xf32>
    %20 = arith.maximumf %18, %19 : vector<32x2048xf32>
    %21 = vector.extract_strided_slice %3 {offsets = [288, 0], sizes = [32, 2048], strides = [1, 1]} : vector<512x2048xf32> to vector<32x2048xf32>
    %22 = arith.maximumf %20, %21 : vector<32x2048xf32>
    %23 = vector.extract_strided_slice %3 {offsets = [320, 0], sizes = [32, 2048], strides = [1, 1]} : vector<512x2048xf32> to vector<32x2048xf32>
    %24 = arith.maximumf %22, %23 : vector<32x2048xf32>
    %25 = vector.extract_strided_slice %3 {offsets = [352, 0], sizes = [32, 2048], strides = [1, 1]} : vector<512x2048xf32> to vector<32x2048xf32>
    %26 = arith.maximumf %24, %25 : vector<32x2048xf32>
    %27 = vector.extract_strided_slice %3 {offsets = [384, 0], sizes = [32, 2048], strides = [1, 1]} : vector<512x2048xf32> to vector<32x2048xf32>
    %28 = arith.maximumf %26, %27 : vector<32x2048xf32>
    %29 = vector.extract_strided_slice %3 {offsets = [416, 0], sizes = [32, 2048], strides = [1, 1]} : vector<512x2048xf32> to vector<32x2048xf32>
    %30 = arith.maximumf %28, %29 : vector<32x2048xf32>
    %31 = vector.extract_strided_slice %3 {offsets = [448, 0], sizes = [32, 2048], strides = [1, 1]} : vector<512x2048xf32> to vector<32x2048xf32>
    %32 = arith.maximumf %30, %31 : vector<32x2048xf32>
    %33 = vector.extract_strided_slice %3 {offsets = [480, 0], sizes = [32, 2048], strides = [1, 1]} : vector<512x2048xf32> to vector<32x2048xf32>
    %34 = arith.maximumf %32, %33 : vector<32x2048xf32>
    %c0_4 = arith.constant 0 : index
    %c0_5 = arith.constant 0 : index
    %35 = vector.load %arg3[%c0_4, %c0_5] : memref<32x1xf32, #tpu.memory_space<vmem>>, vector<32x1xf32>
    %36 = vector.broadcast %35 : vector<32x1xf32> to vector<32x2048xf32>
    %37 = arith.addf %34, %36 : vector<32x2048xf32>
    %cst_6 = arith.constant 0.000000e+00 : f32
    %38 = vector.broadcast %cst_6 : f32 to vector<32x2048xf32>
    %39 = arith.maximumf %37, %38 : vector<32x2048xf32>
    %40 = arith.truncf %39 : vector<32x2048xf32> to vector<32x2048xbf16>
    %41 = vector.extract_strided_slice %40 {offsets = [0, 0], sizes = [32, 224], strides = [1, 1]} : vector<32x2048xbf16> to vector<32x224xbf16>
    %c0_7 = arith.constant 0 : index
    %c0_8 = arith.constant 0 : index
    %42 = vector.load %arg8[%c0_7, %c0_8] : memref<256x224xbf16, #tpu.memory_space<vmem>>, vector<32x224xbf16>
    tpu.vector_store %arg8[%c0_7, %c0_8], %41 {strides = array<i32>} : memref<256x224xbf16, #tpu.memory_space<vmem>>, vector<32x224xbf16>,
    %43 = vector.extract_strided_slice %40 {offsets = [0, 256], sizes = [32, 224], strides = [1, 1]} : vector<32x2048xbf16> to vector<32x224xbf16>
    %c32 = arith.constant 32 : index
    %c0_9 = arith.constant 0 : index
    %44 = vector.load %arg8[%c32, %c0_9] : memref<256x224xbf16, #tpu.memory_space<vmem>>, vector<32x224xbf16>
    tpu.vector_store %arg8[%c32, %c0_9], %43 {strides = array<i32>} : memref<256x224xbf16, #tpu.memory_space<vmem>>, vector<32x224xbf16>,
    %45 = vector.extract_strided_slice %40 {offsets = [0, 512], sizes = [32, 224], strides = [1, 1]} : vector<32x2048xbf16> to vector<32x224xbf16>
    %c64 = arith.constant 64 : index
    %c0_10 = arith.constant 0 : index
    %46 = vector.load %arg8[%c64, %c0_10] : memref<256x224xbf16, #tpu.memory_space<vmem>>, vector<32x224xbf16>
    tpu.vector_store %arg8[%c64, %c0_10], %45 {strides = array<i32>} : memref<256x224xbf16, #tpu.memory_space<vmem>>, vector<32x224xbf16>,
    %47 = vector.extract_strided_slice %40 {offsets = [0, 768], sizes = [32, 224], strides = [1, 1]} : vector<32x2048xbf16> to vector<32x224xbf16>
    %c96 = arith.constant 96 : index
    %c0_11 = arith.constant 0 : index
    %48 = vector.load %arg8[%c96, %c0_11] : memref<256x224xbf16, #tpu.memory_space<vmem>>, vector<32x224xbf16>
    tpu.vector_store %arg8[%c96, %c0_11], %47 {strides = array<i32>} : memref<256x224xbf16, #tpu.memory_space<vmem>>, vector<32x224xbf16>,
    %49 = vector.extract_strided_slice %40 {offsets = [0, 1024], sizes = [32, 224], strides = [1, 1]} : vector<32x2048xbf16> to vector<32x224xbf16>
    %c128 = arith.constant 128 : index
    %c0_12 = arith.constant 0 : index
    %50 = vector.load %arg8[%c128, %c0_12] : memref<256x224xbf16, #tpu.memory_space<vmem>>, vector<32x224xbf16>
    tpu.vector_store %arg8[%c128, %c0_12], %49 {strides = array<i32>} : memref<256x224xbf16, #tpu.memory_space<vmem>>, vector<32x224xbf16>,
    %51 = vector.extract_strided_slice %40 {offsets = [0, 1280], sizes = [32, 224], strides = [1, 1]} : vector<32x2048xbf16> to vector<32x224xbf16>
    %c160 = arith.constant 160 : index
    %c0_13 = arith.constant 0 : index
    %52 = vector.load %arg8[%c160, %c0_13] : memref<256x224xbf16, #tpu.memory_space<vmem>>, vector<32x224xbf16>
    tpu.vector_store %arg8[%c160, %c0_13], %51 {strides = array<i32>} : memref<256x224xbf16, #tpu.memory_space<vmem>>, vector<32x224xbf16>,
    %53 = vector.extract_strided_slice %40 {offsets = [0, 1536], sizes = [32, 224], strides = [1, 1]} : vector<32x2048xbf16> to vector<32x224xbf16>
    %c192 = arith.constant 192 : index
    %c0_14 = arith.constant 0 : index
    %54 = vector.load %arg8[%c192, %c0_14] : memref<256x224xbf16, #tpu.memory_space<vmem>>, vector<32x224xbf16>
    tpu.vector_store %arg8[%c192, %c0_14], %53 {strides = array<i32>} : memref<256x224xbf16, #tpu.memory_space<vmem>>, vector<32x224xbf16>,
    %55 = vector.extract_strided_slice %40 {offsets = [0, 1792], sizes = [32, 224], strides = [1, 1]} : vector<32x2048xbf16> to vector<32x224xbf16>
    %c224 = arith.constant 224 : index
    %c0_15 = arith.constant 0 : index
    %56 = vector.load %arg8[%c224, %c0_15] : memref<256x224xbf16, #tpu.memory_space<vmem>>, vector<32x224xbf16>
    tpu.vector_store %arg8[%c224, %c0_15], %55 {strides = array<i32>} : memref<256x224xbf16, #tpu.memory_space<vmem>>, vector<32x224xbf16>,
    %c0_16 = arith.constant 0 : index
    %c0_17 = arith.constant 0 : index
    %57 = vector.load %arg8[%c0_16, %c0_17] : memref<256x224xbf16, #tpu.memory_space<vmem>>, vector<256x224xbf16>
    %c0_18 = arith.constant 0 : index
    %c0_19 = arith.constant 0 : index
    %58 = vector.load %arg4[%c0_18, %c0_19] : memref<224x1280xbf16, #tpu.memory_space<vmem>>, vector<224x1280xbf16>
    %cst_20 = arith.constant dense<0.000000e+00> : vector<256x1280xf32>
    %59 = tpu.matmul %57, %58, %cst_20 {dimension_numbers = #tpu.dot_dimension_numbers<[1], [0], [0], [1], [0, 0, 1, 1], [], []>} : vector<256x224xbf16>, vector<224x1280xbf16>, vector<256x1280xf32> -> vector<256x1280xf32>
    %60 = arith.truncf %59 : vector<256x1280xf32> to vector<256x1280xbf16>
    %61 = vector.extract_strided_slice %60 {offsets = [0, 0], sizes = [32, 256], strides = [1, 1]} : vector<256x1280xbf16> to vector<32x256xbf16>
    %c0_21 = arith.constant 0 : index
    %c0_22 = arith.constant 0 : index
    %62 = vector.load %arg9[%c0_21, %c0_22] : memref<160x2048xbf16, #tpu.memory_space<vmem>>, vector<32x256xbf16>
    tpu.vector_store %arg9[%c0_21, %c0_22], %61 {strides = array<i32>} : memref<160x2048xbf16, #tpu.memory_space<vmem>>, vector<32x256xbf16>,
    %63 = vector.extract_strided_slice %60 {offsets = [32, 0], sizes = [32, 256], strides = [1, 1]} : vector<256x1280xbf16> to vector<32x256xbf16>
    %c0_23 = arith.constant 0 : index
    %c256 = arith.constant 256 : index
    %64 = vector.load %arg9[%c0_23, %c256] : memref<160x2048xbf16, #tpu.memory_space<vmem>>, vector<32x256xbf16>
    tpu.vector_store %arg9[%c0_23, %c256], %63 {strides = array<i32>} : memref<160x2048xbf16, #tpu.memory_space<vmem>>, vector<32x256xbf16>,
    %65 = vector.extract_strided_slice %60 {offsets = [64, 0], sizes = [32, 256], strides = [1, 1]} : vector<256x1280xbf16> to vector<32x256xbf16>
    %c0_24 = arith.constant 0 : index
    %c512 = arith.constant 512 : index
    %66 = vector.load %arg9[%c0_24, %c512] : memref<160x2048xbf16, #tpu.memory_space<vmem>>, vector<32x256xbf16>
    tpu.vector_store %arg9[%c0_24, %c512], %65 {strides = array<i32>} : memref<160x2048xbf16, #tpu.memory_space<vmem>>, vector<32x256xbf16>,
    %67 = vector.extract_strided_slice %60 {offsets = [96, 0], sizes = [32, 256], strides = [1, 1]} : vector<256x1280xbf16> to vector<32x256xbf16>
    %c0_25 = arith.constant 0 : index
    %c768 = arith.constant 768 : index
    %68 = vector.load %arg9[%c0_25, %c768] : memref<160x2048xbf16, #tpu.memory_space<vmem>>, vector<32x256xbf16>
    tpu.vector_store %arg9[%c0_25, %c768], %67 {strides = array<i32>} : memref<160x2048xbf16, #tpu.memory_space<vmem>>, vector<32x256xbf16>,
    %69 = vector.extract_strided_slice %60 {offsets = [128, 0], sizes = [32, 256], strides = [1, 1]} : vector<256x1280xbf16> to vector<32x256xbf16>
    %c0_26 = arith.constant 0 : index
    %c1024 = arith.constant 1024 : index
    %70 = vector.load %arg9[%c0_26, %c1024] : memref<160x2048xbf16, #tpu.memory_space<vmem>>, vector<32x256xbf16>
    tpu.vector_store %arg9[%c0_26, %c1024], %69 {strides = array<i32>} : memref<160x2048xbf16, #tpu.memory_space<vmem>>, vector<32x256xbf16>,
    %71 = vector.extract_strided_slice %60 {offsets = [160, 0], sizes = [32, 256], strides = [1, 1]} : vector<256x1280xbf16> to vector<32x256xbf16>
    %c0_27 = arith.constant 0 : index
    %c1280 = arith.constant 1280 : index
    %72 = vector.load %arg9[%c0_27, %c1280] : memref<160x2048xbf16, #tpu.memory_space<vmem>>, vector<32x256xbf16>
    tpu.vector_store %arg9[%c0_27, %c1280], %71 {strides = array<i32>} : memref<160x2048xbf16, #tpu.memory_space<vmem>>, vector<32x256xbf16>,
    %73 = vector.extract_strided_slice %60 {offsets = [192, 0], sizes = [32, 256], strides = [1, 1]} : vector<256x1280xbf16> to vector<32x256xbf16>
    %c0_28 = arith.constant 0 : index
    %c1536 = arith.constant 1536 : index
    %74 = vector.load %arg9[%c0_28, %c1536] : memref<160x2048xbf16, #tpu.memory_space<vmem>>, vector<32x256xbf16>
    tpu.vector_store %arg9[%c0_28, %c1536], %73 {strides = array<i32>} : memref<160x2048xbf16, #tpu.memory_space<vmem>>, vector<32x256xbf16>,
    %75 = vector.extract_strided_slice %60 {offsets = [224, 0], sizes = [32, 256], strides = [1, 1]} : vector<256x1280xbf16> to vector<32x256xbf16>
    %c0_29 = arith.constant 0 : index
    %c1792 = arith.constant 1792 : index
    %76 = vector.load %arg9[%c0_29, %c1792] : memref<160x2048xbf16, #tpu.memory_space<vmem>>, vector<32x256xbf16>
    tpu.vector_store %arg9[%c0_29, %c1792], %75 {strides = array<i32>} : memref<160x2048xbf16, #tpu.memory_space<vmem>>, vector<32x256xbf16>,
    %77 = vector.extract_strided_slice %60 {offsets = [0, 256], sizes = [32, 256], strides = [1, 1]} : vector<256x1280xbf16> to vector<32x256xbf16>
    %c32_30 = arith.constant 32 : index
    %c0_31 = arith.constant 0 : index
    %78 = vector.load %arg9[%c32_30, %c0_31] : memref<160x2048xbf16, #tpu.memory_space<vmem>>, vector<32x256xbf16>
    tpu.vector_store %arg9[%c32_30, %c0_31], %77 {strides = array<i32>} : memref<160x2048xbf16, #tpu.memory_space<vmem>>, vector<32x256xbf16>,
    %79 = vector.extract_strided_slice %60 {offsets = [32, 256], sizes = [32, 256], strides = [1, 1]} : vector<256x1280xbf16> to vector<32x256xbf16>
    %c32_32 = arith.constant 32 : index
    %c256_33 = arith.constant 256 : index
    %80 = vector.load %arg9[%c32_32, %c256_33] : memref<160x2048xbf16, #tpu.memory_space<vmem>>, vector<32x256xbf16>
    tpu.vector_store %arg9[%c32_32, %c256_33], %79 {strides = array<i32>} : memref<160x2048xbf16, #tpu.memory_space<vmem>>, vector<32x256xbf16>,
    %81 = vector.extract_strided_slice %60 {offsets = [64, 256], sizes = [32, 256], strides = [1, 1]} : vector<256x1280xbf16> to vector<32x256xbf16>
    %c32_34 = arith.constant 32 : index
    %c512_35 = arith.constant 512 : index
    %82 = vector.load %arg9[%c32_34, %c512_35] : memref<160x2048xbf16, #tpu.memory_space<vmem>>, vector<32x256xbf16>
    tpu.vector_store %arg9[%c32_34, %c512_35], %81 {strides = array<i32>} : memref<160x2048xbf16, #tpu.memory_space<vmem>>, vector<32x256xbf16>,
    %83 = vector.extract_strided_slice %60 {offsets = [96, 256], sizes = [32, 256], strides = [1, 1]} : vector<256x1280xbf16> to vector<32x256xbf16>
    %c32_36 = arith.constant 32 : index
    %c768_37 = arith.constant 768 : index
    %84 = vector.load %arg9[%c32_36, %c768_37] : memref<160x2048xbf16, #tpu.memory_space<vmem>>, vector<32x256xbf16>
    tpu.vector_store %arg9[%c32_36, %c768_37], %83 {strides = array<i32>} : memref<160x2048xbf16, #tpu.memory_space<vmem>>, vector<32x256xbf16>,
    %85 = vector.extract_strided_slice %60 {offsets = [128, 256], sizes = [32, 256], strides = [1, 1]} : vector<256x1280xbf16> to vector<32x256xbf16>
    %c32_38 = arith.constant 32 : index
    %c1024_39 = arith.constant 1024 : index
    %86 = vector.load %arg9[%c32_38, %c1024_39] : memref<160x2048xbf16, #tpu.memory_space<vmem>>, vector<32x256xbf16>
    tpu.vector_store %arg9[%c32_38, %c1024_39], %85 {strides = array<i32>} : memref<160x2048xbf16, #tpu.memory_space<vmem>>, vector<32x256xbf16>,
    %87 = vector.extract_strided_slice %60 {offsets = [160, 256], sizes = [32, 256], strides = [1, 1]} : vector<256x1280xbf16> to vector<32x256xbf16>
    %c32_40 = arith.constant 32 : index
    %c1280_41 = arith.constant 1280 : index
    %88 = vector.load %arg9[%c32_40, %c1280_41] : memref<160x2048xbf16, #tpu.memory_space<vmem>>, vector<32x256xbf16>
    tpu.vector_store %arg9[%c32_40, %c1280_41], %87 {strides = array<i32>} : memref<160x2048xbf16, #tpu.memory_space<vmem>>, vector<32x256xbf16>,
    %89 = vector.extract_strided_slice %60 {offsets = [192, 256], sizes = [32, 256], strides = [1, 1]} : vector<256x1280xbf16> to vector<32x256xbf16>
    %c32_42 = arith.constant 32 : index
    %c1536_43 = arith.constant 1536 : index
    %90 = vector.load %arg9[%c32_42, %c1536_43] : memref<160x2048xbf16, #tpu.memory_space<vmem>>, vector<32x256xbf16>
    tpu.vector_store %arg9[%c32_42, %c1536_43], %89 {strides = array<i32>} : memref<160x2048xbf16, #tpu.memory_space<vmem>>, vector<32x256xbf16>,
    %91 = vector.extract_strided_slice %60 {offsets = [224, 256], sizes = [32, 256], strides = [1, 1]} : vector<256x1280xbf16> to vector<32x256xbf16>
    %c32_44 = arith.constant 32 : index
    %c1792_45 = arith.constant 1792 : index
    %92 = vector.load %arg9[%c32_44, %c1792_45] : memref<160x2048xbf16, #tpu.memory_space<vmem>>, vector<32x256xbf16>
    tpu.vector_store %arg9[%c32_44, %c1792_45], %91 {strides = array<i32>} : memref<160x2048xbf16, #tpu.memory_space<vmem>>, vector<32x256xbf16>,
    %93 = vector.extract_strided_slice %60 {offsets = [0, 512], sizes = [32, 256], strides = [1, 1]} : vector<256x1280xbf16> to vector<32x256xbf16>
    %c64_46 = arith.constant 64 : index
    %c0_47 = arith.constant 0 : index
    %94 = vector.load %arg9[%c64_46, %c0_47] : memref<160x2048xbf16, #tpu.memory_space<vmem>>, vector<32x256xbf16>
    tpu.vector_store %arg9[%c64_46, %c0_47], %93 {strides = array<i32>} : memref<160x2048xbf16, #tpu.memory_space<vmem>>, vector<32x256xbf16>,
    %95 = vector.extract_strided_slice %60 {offsets = [32, 512], sizes = [32, 256], strides = [1, 1]} : vector<256x1280xbf16> to vector<32x256xbf16>
    %c64_48 = arith.constant 64 : index
    %c256_49 = arith.constant 256 : index
    %96 = vector.load %arg9[%c64_48, %c256_49] : memref<160x2048xbf16, #tpu.memory_space<vmem>>, vector<32x256xbf16>
    tpu.vector_store %arg9[%c64_48, %c256_49], %95 {strides = array<i32>} : memref<160x2048xbf16, #tpu.memory_space<vmem>>, vector<32x256xbf16>,
    %97 = vector.extract_strided_slice %60 {offsets = [64, 512], sizes = [32, 256], strides = [1, 1]} : vector<256x1280xbf16> to vector<32x256xbf16>
    %c64_50 = arith.constant 64 : index
    %c512_51 = arith.constant 512 : index
    %98 = vector.load %arg9[%c64_50, %c512_51] : memref<160x2048xbf16, #tpu.memory_space<vmem>>, vector<32x256xbf16>
    tpu.vector_store %arg9[%c64_50, %c512_51], %97 {strides = array<i32>} : memref<160x2048xbf16, #tpu.memory_space<vmem>>, vector<32x256xbf16>,
    %99 = vector.extract_strided_slice %60 {offsets = [96, 512], sizes = [32, 256], strides = [1, 1]} : vector<256x1280xbf16> to vector<32x256xbf16>
    %c64_52 = arith.constant 64 : index
    %c768_53 = arith.constant 768 : index
    %100 = vector.load %arg9[%c64_52, %c768_53] : memref<160x2048xbf16, #tpu.memory_space<vmem>>, vector<32x256xbf16>
    tpu.vector_store %arg9[%c64_52, %c768_53], %99 {strides = array<i32>} : memref<160x2048xbf16, #tpu.memory_space<vmem>>, vector<32x256xbf16>,
    %101 = vector.extract_strided_slice %60 {offsets = [128, 512], sizes = [32, 256], strides = [1, 1]} : vector<256x1280xbf16> to vector<32x256xbf16>
    %c64_54 = arith.constant 64 : index
    %c1024_55 = arith.constant 1024 : index
    %102 = vector.load %arg9[%c64_54, %c1024_55] : memref<160x2048xbf16, #tpu.memory_space<vmem>>, vector<32x256xbf16>
    tpu.vector_store %arg9[%c64_54, %c1024_55], %101 {strides = array<i32>} : memref<160x2048xbf16, #tpu.memory_space<vmem>>, vector<32x256xbf16>,
    %103 = vector.extract_strided_slice %60 {offsets = [160, 512], sizes = [32, 256], strides = [1, 1]} : vector<256x1280xbf16> to vector<32x256xbf16>
    %c64_56 = arith.constant 64 : index
    %c1280_57 = arith.constant 1280 : index
    %104 = vector.load %arg9[%c64_56, %c1280_57] : memref<160x2048xbf16, #tpu.memory_space<vmem>>, vector<32x256xbf16>
    tpu.vector_store %arg9[%c64_56, %c1280_57], %103 {strides = array<i32>} : memref<160x2048xbf16, #tpu.memory_space<vmem>>, vector<32x256xbf16>,
    %105 = vector.extract_strided_slice %60 {offsets = [192, 512], sizes = [32, 256], strides = [1, 1]} : vector<256x1280xbf16> to vector<32x256xbf16>
    %c64_58 = arith.constant 64 : index
    %c1536_59 = arith.constant 1536 : index
    %106 = vector.load %arg9[%c64_58, %c1536_59] : memref<160x2048xbf16, #tpu.memory_space<vmem>>, vector<32x256xbf16>
    tpu.vector_store %arg9[%c64_58, %c1536_59], %105 {strides = array<i32>} : memref<160x2048xbf16, #tpu.memory_space<vmem>>, vector<32x256xbf16>,
    %107 = vector.extract_strided_slice %60 {offsets = [224, 512], sizes = [32, 256], strides = [1, 1]} : vector<256x1280xbf16> to vector<32x256xbf16>
    %c64_60 = arith.constant 64 : index
    %c1792_61 = arith.constant 1792 : index
    %108 = vector.load %arg9[%c64_60, %c1792_61] : memref<160x2048xbf16, #tpu.memory_space<vmem>>, vector<32x256xbf16>
    tpu.vector_store %arg9[%c64_60, %c1792_61], %107 {strides = array<i32>} : memref<160x2048xbf16, #tpu.memory_space<vmem>>, vector<32x256xbf16>,
    %109 = vector.extract_strided_slice %60 {offsets = [0, 768], sizes = [32, 256], strides = [1, 1]} : vector<256x1280xbf16> to vector<32x256xbf16>
    %c96_62 = arith.constant 96 : index
    %c0_63 = arith.constant 0 : index
    %110 = vector.load %arg9[%c96_62, %c0_63] : memref<160x2048xbf16, #tpu.memory_space<vmem>>, vector<32x256xbf16>
    tpu.vector_store %arg9[%c96_62, %c0_63], %109 {strides = array<i32>} : memref<160x2048xbf16, #tpu.memory_space<vmem>>, vector<32x256xbf16>,
    %111 = vector.extract_strided_slice %60 {offsets = [32, 768], sizes = [32, 256], strides = [1, 1]} : vector<256x1280xbf16> to vector<32x256xbf16>
    %c96_64 = arith.constant 96 : index
    %c256_65 = arith.constant 256 : index
    %112 = vector.load %arg9[%c96_64, %c256_65] : memref<160x2048xbf16, #tpu.memory_space<vmem>>, vector<32x256xbf16>
    tpu.vector_store %arg9[%c96_64, %c256_65], %111 {strides = array<i32>} : memref<160x2048xbf16, #tpu.memory_space<vmem>>, vector<32x256xbf16>,
    %113 = vector.extract_strided_slice %60 {offsets = [64, 768], sizes = [32, 256], strides = [1, 1]} : vector<256x1280xbf16> to vector<32x256xbf16>
    %c96_66 = arith.constant 96 : index
    %c512_67 = arith.constant 512 : index
    %114 = vector.load %arg9[%c96_66, %c512_67] : memref<160x2048xbf16, #tpu.memory_space<vmem>>, vector<32x256xbf16>
    tpu.vector_store %arg9[%c96_66, %c512_67], %113 {strides = array<i32>} : memref<160x2048xbf16, #tpu.memory_space<vmem>>, vector<32x256xbf16>,
    %115 = vector.extract_strided_slice %60 {offsets = [96, 768], sizes = [32, 256], strides = [1, 1]} : vector<256x1280xbf16> to vector<32x256xbf16>
    %c96_68 = arith.constant 96 : index
    %c768_69 = arith.constant 768 : index
    %116 = vector.load %arg9[%c96_68, %c768_69] : memref<160x2048xbf16, #tpu.memory_space<vmem>>, vector<32x256xbf16>
    tpu.vector_store %arg9[%c96_68, %c768_69], %115 {strides = array<i32>} : memref<160x2048xbf16, #tpu.memory_space<vmem>>, vector<32x256xbf16>,
    %117 = vector.extract_strided_slice %60 {offsets = [128, 768], sizes = [32, 256], strides = [1, 1]} : vector<256x1280xbf16> to vector<32x256xbf16>
    %c96_70 = arith.constant 96 : index
    %c1024_71 = arith.constant 1024 : index
    %118 = vector.load %arg9[%c96_70, %c1024_71] : memref<160x2048xbf16, #tpu.memory_space<vmem>>, vector<32x256xbf16>
    tpu.vector_store %arg9[%c96_70, %c1024_71], %117 {strides = array<i32>} : memref<160x2048xbf16, #tpu.memory_space<vmem>>, vector<32x256xbf16>,
    %119 = vector.extract_strided_slice %60 {offsets = [160, 768], sizes = [32, 256], strides = [1, 1]} : vector<256x1280xbf16> to vector<32x256xbf16>
    %c96_72 = arith.constant 96 : index
    %c1280_73 = arith.constant 1280 : index
    %120 = vector.load %arg9[%c96_72, %c1280_73] : memref<160x2048xbf16, #tpu.memory_space<vmem>>, vector<32x256xbf16>
    tpu.vector_store %arg9[%c96_72, %c1280_73], %119 {strides = array<i32>} : memref<160x2048xbf16, #tpu.memory_space<vmem>>, vector<32x256xbf16>,
    %121 = vector.extract_strided_slice %60 {offsets = [192, 768], sizes = [32, 256], strides = [1, 1]} : vector<256x1280xbf16> to vector<32x256xbf16>
    %c96_74 = arith.constant 96 : index
    %c1536_75 = arith.constant 1536 : index
    %122 = vector.load %arg9[%c96_74, %c1536_75] : memref<160x2048xbf16, #tpu.memory_space<vmem>>, vector<32x256xbf16>
    tpu.vector_store %arg9[%c96_74, %c1536_75], %121 {strides = array<i32>} : memref<160x2048xbf16, #tpu.memory_space<vmem>>, vector<32x256xbf16>,
    %123 = vector.extract_strided_slice %60 {offsets = [224, 768], sizes = [32, 256], strides = [1, 1]} : vector<256x1280xbf16> to vector<32x256xbf16>
    %c96_76 = arith.constant 96 : index
    %c1792_77 = arith.constant 1792 : index
    %124 = vector.load %arg9[%c96_76, %c1792_77] : memref<160x2048xbf16, #tpu.memory_space<vmem>>, vector<32x256xbf16>
    tpu.vector_store %arg9[%c96_76, %c1792_77], %123 {strides = array<i32>} : memref<160x2048xbf16, #tpu.memory_space<vmem>>, vector<32x256xbf16>,
    %125 = vector.extract_strided_slice %60 {offsets = [0, 1024], sizes = [32, 256], strides = [1, 1]} : vector<256x1280xbf16> to vector<32x256xbf16>
    %c128_78 = arith.constant 128 : index
    %c0_79 = arith.constant 0 : index
    %126 = vector.load %arg9[%c128_78, %c0_79] : memref<160x2048xbf16, #tpu.memory_space<vmem>>, vector<32x256xbf16>
    tpu.vector_store %arg9[%c128_78, %c0_79], %125 {strides = array<i32>} : memref<160x2048xbf16, #tpu.memory_space<vmem>>, vector<32x256xbf16>,
    %127 = vector.extract_strided_slice %60 {offsets = [32, 1024], sizes = [32, 256], strides = [1, 1]} : vector<256x1280xbf16> to vector<32x256xbf16>
    %c128_80 = arith.constant 128 : index
    %c256_81 = arith.constant 256 : index
    %128 = vector.load %arg9[%c128_80, %c256_81] : memref<160x2048xbf16, #tpu.memory_space<vmem>>, vector<32x256xbf16>
    tpu.vector_store %arg9[%c128_80, %c256_81], %127 {strides = array<i32>} : memref<160x2048xbf16, #tpu.memory_space<vmem>>, vector<32x256xbf16>,
    %129 = vector.extract_strided_slice %60 {offsets = [64, 1024], sizes = [32, 256], strides = [1, 1]} : vector<256x1280xbf16> to vector<32x256xbf16>
    %c128_82 = arith.constant 128 : index
    %c512_83 = arith.constant 512 : index
    %130 = vector.load %arg9[%c128_82, %c512_83] : memref<160x2048xbf16, #tpu.memory_space<vmem>>, vector<32x256xbf16>
    tpu.vector_store %arg9[%c128_82, %c512_83], %129 {strides = array<i32>} : memref<160x2048xbf16, #tpu.memory_space<vmem>>, vector<32x256xbf16>,
    %131 = vector.extract_strided_slice %60 {offsets = [96, 1024], sizes = [32, 256], strides = [1, 1]} : vector<256x1280xbf16> to vector<32x256xbf16>
    %c128_84 = arith.constant 128 : index
    %c768_85 = arith.constant 768 : index
    %132 = vector.load %arg9[%c128_84, %c768_85] : memref<160x2048xbf16, #tpu.memory_space<vmem>>, vector<32x256xbf16>
    tpu.vector_store %arg9[%c128_84, %c768_85], %131 {strides = array<i32>} : memref<160x2048xbf16, #tpu.memory_space<vmem>>, vector<32x256xbf16>,
    %133 = vector.extract_strided_slice %60 {offsets = [128, 1024], sizes = [32, 256], strides = [1, 1]} : vector<256x1280xbf16> to vector<32x256xbf16>
    %c128_86 = arith.constant 128 : index
    %c1024_87 = arith.constant 1024 : index
    %134 = vector.load %arg9[%c128_86, %c1024_87] : memref<160x2048xbf16, #tpu.memory_space<vmem>>, vector<32x256xbf16>
    tpu.vector_store %arg9[%c128_86, %c1024_87], %133 {strides = array<i32>} : memref<160x2048xbf16, #tpu.memory_space<vmem>>, vector<32x256xbf16>,
    %135 = vector.extract_strided_slice %60 {offsets = [160, 1024], sizes = [32, 256], strides = [1, 1]} : vector<256x1280xbf16> to vector<32x256xbf16>
    %c128_88 = arith.constant 128 : index
    %c1280_89 = arith.constant 1280 : index
    %136 = vector.load %arg9[%c128_88, %c1280_89] : memref<160x2048xbf16, #tpu.memory_space<vmem>>, vector<32x256xbf16>
    tpu.vector_store %arg9[%c128_88, %c1280_89], %135 {strides = array<i32>} : memref<160x2048xbf16, #tpu.memory_space<vmem>>, vector<32x256xbf16>,
    %137 = vector.extract_strided_slice %60 {offsets = [192, 1024], sizes = [32, 256], strides = [1, 1]} : vector<256x1280xbf16> to vector<32x256xbf16>
    %c128_90 = arith.constant 128 : index
    %c1536_91 = arith.constant 1536 : index
    %138 = vector.load %arg9[%c128_90, %c1536_91] : memref<160x2048xbf16, #tpu.memory_space<vmem>>, vector<32x256xbf16>
    tpu.vector_store %arg9[%c128_90, %c1536_91], %137 {strides = array<i32>} : memref<160x2048xbf16, #tpu.memory_space<vmem>>, vector<32x256xbf16>,
    %139 = vector.extract_strided_slice %60 {offsets = [224, 1024], sizes = [32, 256], strides = [1, 1]} : vector<256x1280xbf16> to vector<32x256xbf16>
    %c128_92 = arith.constant 128 : index
    %c1792_93 = arith.constant 1792 : index
    %140 = vector.load %arg9[%c128_92, %c1792_93] : memref<160x2048xbf16, #tpu.memory_space<vmem>>, vector<32x256xbf16>
    tpu.vector_store %arg9[%c128_92, %c1792_93], %139 {strides = array<i32>} : memref<160x2048xbf16, #tpu.memory_space<vmem>>, vector<32x256xbf16>,
    %c0_94 = arith.constant 0 : index
    %c0_95 = arith.constant 0 : index
    %141 = vector.load %arg5[%c0_94, %c0_95] : memref<48x160xbf16, #tpu.memory_space<vmem>>, vector<48x160xbf16>
    %c0_96 = arith.constant 0 : index
    %c0_97 = arith.constant 0 : index
    %142 = vector.load %arg9[%c0_96, %c0_97] : memref<160x2048xbf16, #tpu.memory_space<vmem>>, vector<160x2048xbf16>
    %cst_98 = arith.constant dense<0.000000e+00> : vector<48x2048xf32>
    %143 = tpu.matmul %141, %142, %cst_98 {dimension_numbers = #tpu.dot_dimension_numbers<[1], [0], [0], [1], [0, 0, 1, 1], [], []>} : vector<48x160xbf16>, vector<160x2048xbf16>, vector<48x2048xf32> -> vector<48x2048xf32>
    %c0_99 = arith.constant 0 : index
    %c0_100 = arith.constant 0 : index
    %144 = vector.load %arg6[%c0_99, %c0_100] : memref<48x1xf32, #tpu.memory_space<vmem>>, vector<48x1xf32>
    %145 = vector.broadcast %144 : vector<48x1xf32> to vector<48x2048xf32>
    %146 = arith.addf %143, %145 : vector<48x2048xf32>
    %cst_101 = arith.constant 0.000000e+00 : f32
    %147 = vector.broadcast %cst_101 : f32 to vector<48x2048xf32>
    %148 = arith.maximumf %146, %147 : vector<48x2048xf32>
    %149 = vector.extract_strided_slice %148 {offsets = [0, 0], sizes = [48, 256], strides = [1, 1]} : vector<48x2048xf32> to vector<48x256xf32>
    %c128_i32 = arith.constant 128 : i32
    %150 = tpu.dynamic_rotate %149 by %c128_i32 dim 1 : vector<48x256xf32>, i32 -> vector<48x256xf32>
    %151 = arith.maximumf %149, %150 : vector<48x256xf32>
    %c64_i32 = arith.constant 64 : i32
    %152 = tpu.dynamic_rotate %151 by %c64_i32 dim 1 : vector<48x256xf32>, i32 -> vector<48x256xf32>
    %153 = arith.maximumf %151, %152 : vector<48x256xf32>
    %c32_i32 = arith.constant 32 : i32
    %154 = tpu.dynamic_rotate %153 by %c32_i32 dim 1 : vector<48x256xf32>, i32 -> vector<48x256xf32>
    %155 = arith.maximumf %153, %154 : vector<48x256xf32>
    %c16_i32 = arith.constant 16 : i32
    %156 = tpu.dynamic_rotate %155 by %c16_i32 dim 1 : vector<48x256xf32>, i32 -> vector<48x256xf32>
    %157 = arith.maximumf %155, %156 : vector<48x256xf32>
    %c0_102 = arith.constant 0 : index
    %c0_103 = arith.constant 0 : index
    %c0_104 = arith.constant 0 : index
    %158 = vector.load %arg7[%c0_102, %c0_103, %c0_104] : memref<8x48x256xf32, #tpu.memory_space<vmem>>, vector<1x48x256xf32>
    %159 = vector.shape_cast %158 : vector<1x48x256xf32> to vector<48x256xf32>
    %160 = vector.shape_cast %157 : vector<48x256xf32> to vector<1x48x256xf32>
    tpu.vector_store %arg7[%c0_102, %c0_103, %c0_104], %160 {strides = array<i32>} : memref<8x48x256xf32, #tpu.memory_space<vmem>>, vector<1x48x256xf32>,
    %161 = vector.extract_strided_slice %148 {offsets = [0, 256], sizes = [48, 256], strides = [1, 1]} : vector<48x2048xf32> to vector<48x256xf32>
    %c128_i32_105 = arith.constant 128 : i32
    %162 = tpu.dynamic_rotate %161 by %c128_i32_105 dim 1 : vector<48x256xf32>, i32 -> vector<48x256xf32>
    %163 = arith.maximumf %161, %162 : vector<48x256xf32>
    %c64_i32_106 = arith.constant 64 : i32
    %164 = tpu.dynamic_rotate %163 by %c64_i32_106 dim 1 : vector<48x256xf32>, i32 -> vector<48x256xf32>
    %165 = arith.maximumf %163, %164 : vector<48x256xf32>
    %c32_i32_107 = arith.constant 32 : i32
    %166 = tpu.dynamic_rotate %165 by %c32_i32_107 dim 1 : vector<48x256xf32>, i32 -> vector<48x256xf32>
    %167 = arith.maximumf %165, %166 : vector<48x256xf32>
    %c16_i32_108 = arith.constant 16 : i32
    %168 = tpu.dynamic_rotate %167 by %c16_i32_108 dim 1 : vector<48x256xf32>, i32 -> vector<48x256xf32>
    %169 = arith.maximumf %167, %168 : vector<48x256xf32>
    %c1 = arith.constant 1 : index
    %c0_109 = arith.constant 0 : index
    %c0_110 = arith.constant 0 : index
    %170 = vector.load %arg7[%c1, %c0_109, %c0_110] : memref<8x48x256xf32, #tpu.memory_space<vmem>>, vector<1x48x256xf32>
    %171 = vector.shape_cast %170 : vector<1x48x256xf32> to vector<48x256xf32>
    %172 = vector.shape_cast %169 : vector<48x256xf32> to vector<1x48x256xf32>
    tpu.vector_store %arg7[%c1, %c0_109, %c0_110], %172 {strides = array<i32>} : memref<8x48x256xf32, #tpu.memory_space<vmem>>, vector<1x48x256xf32>,
    %173 = vector.extract_strided_slice %148 {offsets = [0, 512], sizes = [48, 256], strides = [1, 1]} : vector<48x2048xf32> to vector<48x256xf32>
    %c128_i32_111 = arith.constant 128 : i32
    %174 = tpu.dynamic_rotate %173 by %c128_i32_111 dim 1 : vector<48x256xf32>, i32 -> vector<48x256xf32>
    %175 = arith.maximumf %173, %174 : vector<48x256xf32>
    %c64_i32_112 = arith.constant 64 : i32
    %176 = tpu.dynamic_rotate %175 by %c64_i32_112 dim 1 : vector<48x256xf32>, i32 -> vector<48x256xf32>
    %177 = arith.maximumf %175, %176 : vector<48x256xf32>
    %c32_i32_113 = arith.constant 32 : i32
    %178 = tpu.dynamic_rotate %177 by %c32_i32_113 dim 1 : vector<48x256xf32>, i32 -> vector<48x256xf32>
    %179 = arith.maximumf %177, %178 : vector<48x256xf32>
    %c16_i32_114 = arith.constant 16 : i32
    %180 = tpu.dynamic_rotate %179 by %c16_i32_114 dim 1 : vector<48x256xf32>, i32 -> vector<48x256xf32>
    %181 = arith.maximumf %179, %180 : vector<48x256xf32>
    %c2 = arith.constant 2 : index
    %c0_115 = arith.constant 0 : index
    %c0_116 = arith.constant 0 : index
    %182 = vector.load %arg7[%c2, %c0_115, %c0_116] : memref<8x48x256xf32, #tpu.memory_space<vmem>>, vector<1x48x256xf32>
    %183 = vector.shape_cast %182 : vector<1x48x256xf32> to vector<48x256xf32>
    %184 = vector.shape_cast %181 : vector<48x256xf32> to vector<1x48x256xf32>
    tpu.vector_store %arg7[%c2, %c0_115, %c0_116], %184 {strides = array<i32>} : memref<8x48x256xf32, #tpu.memory_space<vmem>>, vector<1x48x256xf32>,
    %185 = vector.extract_strided_slice %148 {offsets = [0, 768], sizes = [48, 256], strides = [1, 1]} : vector<48x2048xf32> to vector<48x256xf32>
    %c128_i32_117 = arith.constant 128 : i32
    %186 = tpu.dynamic_rotate %185 by %c128_i32_117 dim 1 : vector<48x256xf32>, i32 -> vector<48x256xf32>
    %187 = arith.maximumf %185, %186 : vector<48x256xf32>
    %c64_i32_118 = arith.constant 64 : i32
    %188 = tpu.dynamic_rotate %187 by %c64_i32_118 dim 1 : vector<48x256xf32>, i32 -> vector<48x256xf32>
    %189 = arith.maximumf %187, %188 : vector<48x256xf32>
    %c32_i32_119 = arith.constant 32 : i32
    %190 = tpu.dynamic_rotate %189 by %c32_i32_119 dim 1 : vector<48x256xf32>, i32 -> vector<48x256xf32>
    %191 = arith.maximumf %189, %190 : vector<48x256xf32>
    %c16_i32_120 = arith.constant 16 : i32
    %192 = tpu.dynamic_rotate %191 by %c16_i32_120 dim 1 : vector<48x256xf32>, i32 -> vector<48x256xf32>
    %193 = arith.maximumf %191, %192 : vector<48x256xf32>
    %c3 = arith.constant 3 : index
    %c0_121 = arith.constant 0 : index
    %c0_122 = arith.constant 0 : index
    %194 = vector.load %arg7[%c3, %c0_121, %c0_122] : memref<8x48x256xf32, #tpu.memory_space<vmem>>, vector<1x48x256xf32>
    %195 = vector.shape_cast %194 : vector<1x48x256xf32> to vector<48x256xf32>
    %196 = vector.shape_cast %193 : vector<48x256xf32> to vector<1x48x256xf32>
    tpu.vector_store %arg7[%c3, %c0_121, %c0_122], %196 {strides = array<i32>} : memref<8x48x256xf32, #tpu.memory_space<vmem>>, vector<1x48x256xf32>,
    %197 = vector.extract_strided_slice %148 {offsets = [0, 1024], sizes = [48, 256], strides = [1, 1]} : vector<48x2048xf32> to vector<48x256xf32>
    %c128_i32_123 = arith.constant 128 : i32
    %198 = tpu.dynamic_rotate %197 by %c128_i32_123 dim 1 : vector<48x256xf32>, i32 -> vector<48x256xf32>
    %199 = arith.maximumf %197, %198 : vector<48x256xf32>
    %c64_i32_124 = arith.constant 64 : i32
    %200 = tpu.dynamic_rotate %199 by %c64_i32_124 dim 1 : vector<48x256xf32>, i32 -> vector<48x256xf32>
    %201 = arith.maximumf %199, %200 : vector<48x256xf32>
    %c32_i32_125 = arith.constant 32 : i32
    %202 = tpu.dynamic_rotate %201 by %c32_i32_125 dim 1 : vector<48x256xf32>, i32 -> vector<48x256xf32>
    %203 = arith.maximumf %201, %202 : vector<48x256xf32>
    %c16_i32_126 = arith.constant 16 : i32
    %204 = tpu.dynamic_rotate %203 by %c16_i32_126 dim 1 : vector<48x256xf32>, i32 -> vector<48x256xf32>
    %205 = arith.maximumf %203, %204 : vector<48x256xf32>
    %c4 = arith.constant 4 : index
    %c0_127 = arith.constant 0 : index
    %c0_128 = arith.constant 0 : index
    %206 = vector.load %arg7[%c4, %c0_127, %c0_128] : memref<8x48x256xf32, #tpu.memory_space<vmem>>, vector<1x48x256xf32>
    %207 = vector.shape_cast %206 : vector<1x48x256xf32> to vector<48x256xf32>
    %208 = vector.shape_cast %205 : vector<48x256xf32> to vector<1x48x256xf32>
    tpu.vector_store %arg7[%c4, %c0_127, %c0_128], %208 {strides = array<i32>} : memref<8x48x256xf32, #tpu.memory_space<vmem>>, vector<1x48x256xf32>,
    %209 = vector.extract_strided_slice %148 {offsets = [0, 1280], sizes = [48, 256], strides = [1, 1]} : vector<48x2048xf32> to vector<48x256xf32>
    %c128_i32_129 = arith.constant 128 : i32
    %210 = tpu.dynamic_rotate %209 by %c128_i32_129 dim 1 : vector<48x256xf32>, i32 -> vector<48x256xf32>
    %211 = arith.maximumf %209, %210 : vector<48x256xf32>
    %c64_i32_130 = arith.constant 64 : i32
    %212 = tpu.dynamic_rotate %211 by %c64_i32_130 dim 1 : vector<48x256xf32>, i32 -> vector<48x256xf32>
    %213 = arith.maximumf %211, %212 : vector<48x256xf32>
    %c32_i32_131 = arith.constant 32 : i32
    %214 = tpu.dynamic_rotate %213 by %c32_i32_131 dim 1 : vector<48x256xf32>, i32 -> vector<48x256xf32>
    %215 = arith.maximumf %213, %214 : vector<48x256xf32>
    %c16_i32_132 = arith.constant 16 : i32
    %216 = tpu.dynamic_rotate %215 by %c16_i32_132 dim 1 : vector<48x256xf32>, i32 -> vector<48x256xf32>
    %217 = arith.maximumf %215, %216 : vector<48x256xf32>
    %c5 = arith.constant 5 : index
    %c0_133 = arith.constant 0 : index
    %c0_134 = arith.constant 0 : index
    %218 = vector.load %arg7[%c5, %c0_133, %c0_134] : memref<8x48x256xf32, #tpu.memory_space<vmem>>, vector<1x48x256xf32>
    %219 = vector.shape_cast %218 : vector<1x48x256xf32> to vector<48x256xf32>
    %220 = vector.shape_cast %217 : vector<48x256xf32> to vector<1x48x256xf32>
    tpu.vector_store %arg7[%c5, %c0_133, %c0_134], %220 {strides = array<i32>} : memref<8x48x256xf32, #tpu.memory_space<vmem>>, vector<1x48x256xf32>,
    %221 = vector.extract_strided_slice %148 {offsets = [0, 1536], sizes = [48, 256], strides = [1, 1]} : vector<48x2048xf32> to vector<48x256xf32>
    %c128_i32_135 = arith.constant 128 : i32
    %222 = tpu.dynamic_rotate %221 by %c128_i32_135 dim 1 : vector<48x256xf32>, i32 -> vector<48x256xf32>
    %223 = arith.maximumf %221, %222 : vector<48x256xf32>
    %c64_i32_136 = arith.constant 64 : i32
    %224 = tpu.dynamic_rotate %223 by %c64_i32_136 dim 1 : vector<48x256xf32>, i32 -> vector<48x256xf32>
    %225 = arith.maximumf %223, %224 : vector<48x256xf32>
    %c32_i32_137 = arith.constant 32 : i32
    %226 = tpu.dynamic_rotate %225 by %c32_i32_137 dim 1 : vector<48x256xf32>, i32 -> vector<48x256xf32>
    %227 = arith.maximumf %225, %226 : vector<48x256xf32>
    %c16_i32_138 = arith.constant 16 : i32
    %228 = tpu.dynamic_rotate %227 by %c16_i32_138 dim 1 : vector<48x256xf32>, i32 -> vector<48x256xf32>
    %229 = arith.maximumf %227, %228 : vector<48x256xf32>
    %c6 = arith.constant 6 : index
    %c0_139 = arith.constant 0 : index
    %c0_140 = arith.constant 0 : index
    %230 = vector.load %arg7[%c6, %c0_139, %c0_140] : memref<8x48x256xf32, #tpu.memory_space<vmem>>, vector<1x48x256xf32>
    %231 = vector.shape_cast %230 : vector<1x48x256xf32> to vector<48x256xf32>
    %232 = vector.shape_cast %229 : vector<48x256xf32> to vector<1x48x256xf32>
    tpu.vector_store %arg7[%c6, %c0_139, %c0_140], %232 {strides = array<i32>} : memref<8x48x256xf32, #tpu.memory_space<vmem>>, vector<1x48x256xf32>,
    %233 = vector.extract_strided_slice %148 {offsets = [0, 1792], sizes = [48, 256], strides = [1, 1]} : vector<48x2048xf32> to vector<48x256xf32>
    %c128_i32_141 = arith.constant 128 : i32
    %234 = tpu.dynamic_rotate %233 by %c128_i32_141 dim 1 : vector<48x256xf32>, i32 -> vector<48x256xf32>
    %235 = arith.maximumf %233, %234 : vector<48x256xf32>
    %c64_i32_142 = arith.constant 64 : i32
    %236 = tpu.dynamic_rotate %235 by %c64_i32_142 dim 1 : vector<48x256xf32>, i32 -> vector<48x256xf32>
    %237 = arith.maximumf %235, %236 : vector<48x256xf32>
    %c32_i32_143 = arith.constant 32 : i32
    %238 = tpu.dynamic_rotate %237 by %c32_i32_143 dim 1 : vector<48x256xf32>, i32 -> vector<48x256xf32>
    %239 = arith.maximumf %237, %238 : vector<48x256xf32>
    %c16_i32_144 = arith.constant 16 : i32
    %240 = tpu.dynamic_rotate %239 by %c16_i32_144 dim 1 : vector<48x256xf32>, i32 -> vector<48x256xf32>
    %241 = arith.maximumf %239, %240 : vector<48x256xf32>
    %c7 = arith.constant 7 : index
    %c0_145 = arith.constant 0 : index
    %c0_146 = arith.constant 0 : index
    %242 = vector.load %arg7[%c7, %c0_145, %c0_146] : memref<8x48x256xf32, #tpu.memory_space<vmem>>, vector<1x48x256xf32>
    %243 = vector.shape_cast %242 : vector<1x48x256xf32> to vector<48x256xf32>
    %244 = vector.shape_cast %241 : vector<48x256xf32> to vector<1x48x256xf32>
    tpu.vector_store %arg7[%c7, %c0_145, %c0_146], %244 {strides = array<i32>} : memref<8x48x256xf32, #tpu.memory_space<vmem>>, vector<1x48x256xf32>,
    return
  }
  func.func @transform_0(%arg0: i32) -> (i32, i32, i32) {
    %c0_i32 = arith.constant 0 : i32
    %c0_i32_0 = arith.constant 0 : i32
    %c0_i32_1 = arith.constant 0 : i32
    return %arg0, %c0_i32, %c0_i32_0 : i32, i32, i32
  }
  func.func @transform_1(%arg0: i32) -> (i32, i32) {
    %c0_i32 = arith.constant 0 : i32
    %c0_i32_0 = arith.constant 0 : i32
    %c0_i32_1 = arith.constant 0 : i32
    return %c0_i32, %c0_i32_0 : i32, i32
  }
  func.func @transform_2(%arg0: i32) -> (i32, i32) {
    %c0_i32 = arith.constant 0 : i32
    %c0_i32_0 = arith.constant 0 : i32
    %c0_i32_1 = arith.constant 0 : i32
    return %c0_i32, %c0_i32_0 : i32, i32
  }
  func.func @transform_3(%arg0: i32) -> (i32, i32) {
    %c0_i32 = arith.constant 0 : i32
    %c0_i32_0 = arith.constant 0 : i32
    %c0_i32_1 = arith.constant 0 : i32
    return %c0_i32, %c0_i32_0 : i32, i32
  }
  func.func @transform_4(%arg0: i32) -> (i32, i32) {
    %c0_i32 = arith.constant 0 : i32
    %c0_i32_0 = arith.constant 0 : i32
    %c0_i32_1 = arith.constant 0 : i32
    return %c0_i32, %c0_i32_0 : i32, i32
  }
  func.func @transform_5(%arg0: i32) -> (i32, i32) {
    %c0_i32 = arith.constant 0 : i32
    %c0_i32_0 = arith.constant 0 : i32
    %c0_i32_1 = arith.constant 0 : i32
    return %c0_i32, %c0_i32_0 : i32, i32
  }
  func.func @transform_6(%arg0: i32) -> (i32, i32, i32) {
    %c0_i32 = arith.constant 0 : i32
    %c0_i32_0 = arith.constant 0 : i32
    %c0_i32_1 = arith.constant 0 : i32
    return %arg0, %c0_i32, %c0_i32_0 : i32, i32, i32
  }
}

</mosaic_0001>

<bundles_post_ra>
// kernel: feature_extractor.1
= control target key start
LH: loop header
LB: loop body
LE: loop exit
PB: predicated region body
PF: predicated region fallthrough
CT: control target
= control target key end

     0   :  { %s13268_s21 = smov 0   ;;  %s18574_s0 = inlined_call_operand.vmem [shape: bf16[2,20,2048], index: 0, kind: input, shape index: {}]   ;;  %s18575_s1 = inlined_call_operand.vmem [shape: bf16[512,20], index: 1, kind: input, shape index: {}]   ;;  %s18576_s2 = inlined_call_operand.vmem [shape: f32[32,1], index: 2, kind: input, shape index: {}]   ;;  %s18577_s3 = inlined_call_operand.vmem [shape: bf16[224,1280], index: 3, kind: input, shape index: {}]   ;;  %s18578_s4 = inlined_call_operand.vmem [shape: bf16[48,160], index: 4, kind: input, shape index: {}]   ;;  %s18579_s5 = inlined_call_operand.vmem [shape: f32[48,1], index: 5, kind: input, shape index: {}]   ;;  %s18580_s6 = inlined_call_operand.vmem [shape: f32[16,48,256], index: 6, kind: output, shape index: {}]  }
   0x1 LB: > { %s13274_s22 = sadd.s32 4294967295, %s13227_s21   ;;  %p10368_p0 = scmp.ge.s32.totalorder %s13227_s21, 1  ;;  %s13227_s21 = sphi %s13268_s21, %s16_s21  }
   0x2   : > { %p212_p1 = scmp.lt.s32.totalorder %s13227_s21, 3 }
   0x4   : > { %p213_p2 = pnand %p10368_p0, %p212_p1 }
   0x6   : > { %216 = sbr.rel (%p213_p2) target bundleno = 4247 (0x1097), region = 44 }
   0xb   : > { %p243_p3 = scmp.lt.s32.totalorder %s13274_s22, 1  ;;  %vm721_vm0 = vcmask 1041408   ;;  %v12722_v26 = vld [vmem:[%s18575_s1] sm:$0xff]  ;;  %vm624_vm1 = vcmask 162816   ;;  %v12723_v27 = vld [vmem:[%s18575_s1 + $0x8] sm:$0xff]  ;;  %v12724_v28 = vld [vmem:[%s18575_s1 + $0x10] sm:$0xff] }
   0xc   : > { %v12725_v29 = vld [vmem:[%s18575_s1 + $0x18] sm:$0xff]  ;;  %v12726_v30 = vld [vmem:[%s18575_s1 + $0x20] sm:$0xff]  ;;  %v12727_v31 = vld [vmem:[%s18575_s1 + $0x28] sm:$0xff]  ;;  %vm4618_vm2 = vcmask 1043456   ;;  %vm4619_vm3 = vcmask 785412   ;;  %vm5669_vm5 = vcmask 785408  }
   0xd   : > { %s244_s23 = scalar_select %p243_p3, %s13274_s22, 1  ;;  %v12728_v32 = vld [vmem:[%s18575_s1 + $0x30] sm:$0xff]  ;;  %v12729_v33 = vld [vmem:[%s18575_s1 + $0x38] sm:$0xff]  ;;  %v12730_v34 = vld [vmem:[%s18575_s1 + $0x40] sm:$0xff]  ;;  %vm8847_vm6 = vcmask 261120  }
   0xe   : > { %v12731_v50 = vld [vmem:[%s18575_s1 + $0x48] sm:$0xff]  ;;  %vm13980_vm4 = vmor %vm4619_vm3, %vm4618_vm2  ;;  %s13230_s14 = smov 64   ;;  %s13231_s15 = smov 32  }
   0xf   : > { %s13108_s24 = smul.u32 192, %s244_s23  ;;  %s13232_s16 = smov 16  }
  0x10   : > { %s10370_s17 = sshll.u32 %s13274_s22, 3 }
  0x11   : > { %s13283_s27 = scalar_lea.vmem %s18574_s0, %s13108_s24  ;;  %p18049_p4 = scmp.lt.s32.totalorder %s10370_s17, 15 }
  0x12   : > { %v336_v0 = vld [vmem:[%s13283_s27 + $0x80] sm:$0x33]  ;;  %v337_v1 = vld [vmem:[%s13283_s27 + $0x88] sm:$0x33]  ;;  %v339_v41 = vld [vmem:[%s13283_s27 + $0x98] sm:$0x33] }
  0x13   : > { %v560_v2 = vunpack.c.l.b16 %v336_v0  ;;  %v561_v3 = vunpack.c.h.b16 %v336_v0  ;;  %v562_v4 = vunpack.c.l.b16 %v337_v1  ;;  %v563_v5 = vunpack.c.h.b16 %v337_v1  ;;  %v10502_v6 = vld [vmem:[%s13283_s27] sm:$0xf]  ;;  %v12754_v12 = vld [vmem:[%s13283_s27 + $0x4] sm:$0xf]  ;;  %v10510_v14 = vld [vmem:[%s13283_s27 + $0x8] sm:$0xf] }
  0x14   : > { %v12762_v7 = vld [vmem:[%s13283_s27 + $0x3c] sm:$0xf0]  ;;  %v10504_v13 = vld [vmem:[%s13283_s27 + $0x40] sm:$0xf0]  ;;  %v12763_v15 = vld [vmem:[%s13283_s27 + $0x44] sm:$0xf0]  ;;  %v566_v42 = vunpack.c.l.b16 %v339_v41  ;;  %v567_v43 = vunpack.c.h.b16 %v339_v41 }
  0x15   : > { %v592_v8 = vpack.c.b16 %v560_v2, %v560_v2  ;;  %v593_v9 = vpack.c.b16 %v561_v3, %v561_v3  ;;  %v594_v10 = vpack.c.b16 %v562_v4, %v562_v4  ;;  %v595_v11 = vpack.c.b16 %v563_v5, %v563_v5  ;;  %v12755_v16 = vld [vmem:[%s13283_s27 + $0xc] sm:$0xf]  ;;  %v338_v53 = vld [vmem:[%s13283_s27 + $0x90] sm:$0x33]  ;;  %s18644_s17 = smov (!%p18049_p4, %s10370_s17), 15 }
  0x16   : > { %v10512_v17 = vld [vmem:[%s13283_s27 + $0x48] sm:$0xf0]  ;;  %v10503_v22 = vor.u32 %v12762_v7, %v10502_v6  ;;  %v10507_v23 = vor.u32 %v12754_v12, %v10504_v13  ;;  %v10511_v24 = vor.u32 %v12763_v15, %v10510_v14  ;;  %v598_v44 = vpack.c.b16 %v566_v42, %v566_v42  ;;  %v12732_v2 = vld [vmem:[%s18575_s1 + $0x50] sm:$0xff]  ;;  %s13109_s22 = smul.u32 96, %s18644_s17 }
  0x17   : > { %v723_v18 = vsel %vm721_vm0, %v592_v8, 0  ;;  %v726_v19 = vsel %vm721_vm0, %v593_v9, 0  ;;  %v729_v20 = vsel %vm721_vm0, %v594_v10, 0  ;;  %v732_v21 = vsel %vm721_vm0, %v595_v11, 0 }
  0x18   : > { %776 = vmatpush.bf16.msra.mxu0 %v723_v18  ;;  %945 = vmatpush.bf16.msra.mxu1 %v726_v19  ;;  %v10515_v25 = vor.u32 %v12755_v16, %v10512_v17  ;;  %v599_v45 = vpack.c.b16 %v567_v43, %v567_v43  ;;  %v741_v46 = vsel %vm721_vm0, %v598_v44, 0  ;;  %v564_v54 = vunpack.c.l.b16 %v338_v53  ;;  %v12733_v17 = vld [vmem:[%s18575_s1 + $0x58] sm:$0xff]  ;;  %s18090_s23 = scalar_lea.vmem %s18580_s6, %s13109_s22 }
  0x19   : > { %1114 = vmatpush.bf16.msra.mxu2 %v729_v20  ;;  %1283 = vmatpush.bf16.msra.mxu3 %v732_v21  ;;  %v565_v56 = vunpack.c.h.b16 %v338_v53 }
  0x1a   : > { %v744_v47 = vsel %vm721_vm0, %v599_v45, 0  ;;  %v596_v55 = vpack.c.b16 %v564_v54, %v564_v54 }
  0x1b   : > { %v597_v58 = vpack.c.b16 %v565_v56, %v565_v56 }
  0x1c   : > { %777 = vmatpush.bf16.msra.mxu0 %v10503_v22  ;;  %946 = vmatpush.bf16.msra.mxu1 %v10507_v23  ;;  %v735_v57 = vsel %vm721_vm0, %v596_v55, 0 }
  0x1d   : > { %1115 = vmatpush.bf16.msra.mxu2 %v10511_v24  ;;  %1284 = vmatpush.bf16.msra.mxu3 %v10515_v25  ;;  %v738_v63 = vsel %vm721_vm0, %v597_v58, 0 }
  0x1f   : > { %10564 = vmatmul.msk.bf16.vlgmr.msra.gmra.mxu0 %vm624_vm1, %v12722_v26  ;;  %10596 = vmatmul.msk.bf16.vlgmr.msra.gmra.mxu1 %vm624_vm1, %v12722_v26 }
  0x20   : > { %10628 = vmatmul.msk.bf16.vlgmr.msra.gmra.mxu2 %vm624_vm1, %v12722_v26  ;;  %10660 = vmatmul.msk.bf16.vlgmr.msra.gmra.mxu3 %vm624_vm1, %v12722_v26 }
  0x21   : > { %1790 = vmatpush.bf16.msrb.mxu2 %v741_v46  ;;  %1959 = vmatpush.bf16.msrb.mxu3 %v744_v47 }
  0x22   : > { %1452 = vmatpush.bf16.msrb.mxu0 %v735_v57  ;;  %1621 = vmatpush.bf16.msrb.mxu1 %v738_v63 }
  0x2f   : > { %10565 = vmatmul.msk.bf16.gmra.mxu0 %vm624_vm1, %v12723_v27  ;;  %10597 = vmatmul.msk.bf16.gmra.mxu1 %vm624_vm1, %v12723_v27 }
  0x30   : > { %10629 = vmatmul.msk.bf16.gmra.mxu2 %vm624_vm1, %v12723_v27  ;;  %10661 = vmatmul.msk.bf16.gmra.mxu3 %vm624_vm1, %v12723_v27 }
  0x3f   : > { %10566 = vmatmul.msk.bf16.gmra.mxu0 %vm624_vm1, %v12724_v28  ;;  %10598 = vmatmul.msk.bf16.gmra.mxu1 %vm624_vm1, %v12724_v28 }
  0x40   : > { %10630 = vmatmul.msk.bf16.gmra.mxu2 %vm624_vm1, %v12724_v28  ;;  %10662 = vmatmul.msk.bf16.gmra.mxu3 %vm624_vm1, %v12724_v28 }
  0x4f   : > { %10567 = vmatmul.msk.bf16.gmra.mxu0 %vm624_vm1, %v12725_v29  ;;  %10599 = vmatmul.msk.bf16.gmra.mxu1 %vm624_vm1, %v12725_v29 }
  0x50   : > { %10631 = vmatmul.msk.bf16.gmra.mxu2 %vm624_vm1, %v12725_v29  ;;  %10663 = vmatmul.msk.bf16.gmra.mxu3 %vm624_vm1, %v12725_v29 }
  0x5f   : > { %10568 = vmatmul.msk.bf16.gmra.mxu0 %vm624_vm1, %v12726_v30  ;;  %10600 = vmatmul.msk.bf16.gmra.mxu1 %vm624_vm1, %v12726_v30 }
  0x60   : > { %10632 = vmatmul.msk.bf16.gmra.mxu2 %vm624_vm1, %v12726_v30  ;;  %10664 = vmatmul.msk.bf16.gmra.mxu3 %vm624_vm1, %v12726_v30 }
  0x6f   : > { %10569 = vmatmul.msk.bf16.gmra.mxu0 %vm624_vm1, %v12727_v31  ;;  %10601 = vmatmul.msk.bf16.gmra.mxu1 %vm624_vm1, %v12727_v31 }
  0x70   : > { %10633 = vmatmul.msk.bf16.gmra.mxu2 %vm624_vm1, %v12727_v31  ;;  %10665 = vmatmul.msk.bf16.gmra.mxu3 %vm624_vm1, %v12727_v31 }
  0x7f   : > { %10570 = vmatmul.msk.bf16.gmra.mxu0 %vm624_vm1, %v12728_v32  ;;  %10602 = vmatmul.msk.bf16.gmra.mxu1 %vm624_vm1, %v12728_v32 }
  0x80   : > { %10634 = vmatmul.msk.bf16.gmra.mxu2 %vm624_vm1, %v12728_v32  ;;  %10666 = vmatmul.msk.bf16.gmra.mxu3 %vm624_vm1, %v12728_v32 }
  0x8f   : > { %10571 = vmatmul.msk.bf16.gmra.mxu0 %vm624_vm1, %v12729_v33  ;;  %10603 = vmatmul.msk.bf16.gmra.mxu1 %vm624_vm1, %v12729_v33 }
  0x90   : > { %10635 = vmatmul.msk.bf16.gmra.mxu2 %vm624_vm1, %v12729_v33  ;;  %10667 = vmatmul.msk.bf16.gmra.mxu3 %vm624_vm1, %v12729_v33 }
  0x9c   : > { %v13358_v35 = vpop.f32.mrf.mxu0  ;;  %v13360_v36 = vpop.f32.mrf.mxu1 }
  0x9f   : > { %10572 = vmatmul.msk.bf16.gmra.mxu0 %vm624_vm1, %v12730_v34  ;;  %10604 = vmatmul.msk.bf16.gmra.mxu1 %vm624_vm1, %v12730_v34 }
  0xa0   : > { %10636 = vmatmul.msk.bf16.gmra.mxu2 %vm624_vm1, %v12730_v34  ;;  %10668 = vmatmul.msk.bf16.gmra.mxu3 %vm624_vm1, %v12730_v34  ;;  %v12734_v34 = vld [vmem:[%s18575_s1 + $0x60] sm:$0xff] }
  0xa3   : > { %v13366_v37 = vpop.f32.mrf.mxu2  ;;  %v13368_v38 = vpop.f32.mrf.mxu3 }
  0xa4   : > { %v13370_v39 = vpop.f32.mrf.mxu0  ;;  %v13372_v40 = vpop.f32.mrf.mxu1 }
  0xab   : > { %v13377_v48 = vpop.f32.mrf.mxu2  ;;  %v13379_v49 = vpop.f32.mrf.mxu3 }
  0xac   : > { %v13384_v51 = vpop.f32.mrf.mxu0  ;;  %v13386_v52 = vpop.f32.mrf.mxu1 }
  0xaf   : > { %10573 = vmatmul.msk.bf16.gmra.mxu0 %vm624_vm1, %v12731_v50  ;;  %10605 = vmatmul.msk.bf16.gmra.mxu1 %vm624_vm1, %v12731_v50 }
  0xb0   : > { %10637 = vmatmul.msk.bf16.gmra.mxu2 %vm624_vm1, %v12731_v50  ;;  %10669 = vmatmul.msk.bf16.gmra.mxu3 %vm624_vm1, %v12731_v50 }
  0xb3   : > { %v13394_v59 = vpop.f32.mrf.mxu2  ;;  %v13396_v60 = vpop.f32.mrf.mxu3 }
  0xb4   : > { %v13398_v61 = vpop.f32.mrf.mxu0  ;;  %v13400_v62 = vpop.f32.mrf.mxu1 }
  0xbb   : > { %v13403_v0 = vpop.f32.mrf.mxu2  ;;  %v13405_v1 = vpop.f32.mrf.mxu3 }
  0xbc   : > { %v789_v3 = vpop.f32.mrf.mxu0  ;;  %v958_v4 = vpop.f32.mrf.mxu1 }
  0xbd   : > { %v3474_v5 = vmax.f32 %v13358_v35, %v789_v3  ;;  %v3475_v6 = vmax.f32 %v13360_v36, %v958_v4  ;;  %v12736_v4 = vld [vmem:[%s18575_s1 + $0x70] sm:$0xff] }
  0xbf   : > { %10574 = vmatmul.msk.bf16.gmra.mxu0 %vm624_vm1, %v12732_v2  ;;  %10606 = vmatmul.msk.bf16.gmra.mxu1 %vm624_vm1, %v12732_v2 }
  0xc0   : > { %10638 = vmatmul.msk.bf16.gmra.mxu2 %vm624_vm1, %v12732_v2  ;;  %10670 = vmatmul.msk.bf16.gmra.mxu3 %vm624_vm1, %v12732_v2 }
  0xc3   : > { %v1127_v7 = vpop.f32.mrf.mxu2  ;;  %v1296_v8 = vpop.f32.mrf.mxu3 }
  0xc4   : > { %v3476_v9 = vmax.f32 %v13366_v37, %v1127_v7  ;;  %v3477_v10 = vmax.f32 %v13368_v38, %v1296_v8  ;;  %v791_v11 = vpop.f32.mrf.mxu0  ;;  %v960_v12 = vpop.f32.mrf.mxu1 }
  0xc5   : > { %v3490_v13 = vmax.f32 %v13370_v39, %v791_v11  ;;  %v3491_v14 = vmax.f32 %v13372_v40, %v960_v12 }
  0xcb   : > { %v1129_v15 = vpop.f32.mrf.mxu2  ;;  %v1298_v16 = vpop.f32.mrf.mxu3 }
  0xcc   : > { %v3492_v18 = vmax.f32 %v13377_v48, %v1129_v15  ;;  %v3493_v19 = vmax.f32 %v13379_v49, %v1298_v16  ;;  %v794_v20 = vpop.f32.mrf.mxu0  ;;  %v963_v21 = vpop.f32.mrf.mxu1 }
  0xcd   : > { %v3506_v22 = vmax.f32 %v13384_v51, %v794_v20  ;;  %v3507_v23 = vmax.f32 %v13386_v52, %v963_v21  ;;  %v12735_v51 = vld [vmem:[%s18575_s1 + $0x68] sm:$0xff]  ;;  %v12737_v21 = vld [vmem:[%s18575_s1 + $0x78] sm:$0xff] }
  0xcf   : > { %10575 = vmatmul.msk.bf16.gmra.mxu0 %vm624_vm1, %v12733_v17  ;;  %10607 = vmatmul.msk.bf16.gmra.mxu1 %vm624_vm1, %v12733_v17 }
  0xd0   : > { %10639 = vmatmul.msk.bf16.gmra.mxu2 %vm624_vm1, %v12733_v17  ;;  %10671 = vmatmul.msk.bf16.gmra.mxu3 %vm624_vm1, %v12733_v17 }
  0xd3   : > { %v1132_v24 = vpop.f32.mrf.mxu2  ;;  %v1301_v25 = vpop.f32.mrf.mxu3 }
  0xd4   : > { %v3508_v26 = vmax.f32 %v13394_v59, %v1132_v24  ;;  %v3509_v27 = vmax.f32 %v13396_v60, %v1301_v25  ;;  %v796_v28 = vpop.f32.mrf.mxu0  ;;  %v965_v29 = vpop.f32.mrf.mxu1 }
  0xd5   : > { %v3522_v30 = vmax.f32 %v13398_v61, %v796_v28  ;;  %v3523_v31 = vmax.f32 %v13400_v62, %v965_v29 }
  0xdb   : > { %v1134_v32 = vpop.f32.mrf.mxu2  ;;  %v1303_v33 = vpop.f32.mrf.mxu3 }
  0xdc   : > { %v3524_v35 = vmax.f32 %v13403_v0, %v1134_v32  ;;  %v3525_v36 = vmax.f32 %v13405_v1, %v1303_v33  ;;  %v799_v37 = vpop.f32.mrf.mxu0  ;;  %v968_v38 = vpop.f32.mrf.mxu1 }
  0xdd   : > { %v13440_v39 = vmax.f32 %v3474_v5, %v799_v37  ;;  %v13442_v40 = vmax.f32 %v3475_v6, %v968_v38  ;;  %v12738_v38 = vld [vmem:[%s18575_s1 + $0x80] sm:$0xff] }
  0xdf   : > { %10576 = vmatmul.msk.bf16.gmra.mxu0 %vm624_vm1, %v12734_v34  ;;  %10608 = vmatmul.msk.bf16.gmra.mxu1 %vm624_vm1, %v12734_v34 }
  0xe0   : > { %10640 = vmatmul.msk.bf16.gmra.mxu2 %vm624_vm1, %v12734_v34  ;;  %10672 = vmatmul.msk.bf16.gmra.mxu3 %vm624_vm1, %v12734_v34 }
  0xe3   : > { %v1137_v41 = vpop.f32.mrf.mxu2  ;;  %v1306_v42 = vpop.f32.mrf.mxu3 }
  0xe4   : > { %v13448_v43 = vmax.f32 %v3476_v9, %v1137_v41  ;;  %v13450_v44 = vmax.f32 %v3477_v10, %v1306_v42  ;;  %v801_v45 = vpop.f32.mrf.mxu0  ;;  %v970_v46 = vpop.f32.mrf.mxu1 }
  0xe5   : > { %v13452_v47 = vmax.f32 %v3490_v13, %v801_v45  ;;  %v13454_v48 = vmax.f32 %v3491_v14, %v970_v46 }
  0xeb   : > { %v1139_v49 = vpop.f32.mrf.mxu2  ;;  %v1308_v50 = vpop.f32.mrf.mxu3 }
  0xec   : > { %v13459_v52 = vmax.f32 %v3492_v18, %v1139_v49  ;;  %v13461_v53 = vmax.f32 %v3493_v19, %v1308_v50  ;;  %v804_v54 = vpop.f32.mrf.mxu0  ;;  %v973_v55 = vpop.f32.mrf.mxu1 }
  0xed   : > { %v13463_v56 = vmax.f32 %v3506_v22, %v804_v54  ;;  %v13465_v57 = vmax.f32 %v3507_v23, %v973_v55  ;;  %v12739_v55 = vld [vmem:[%s18575_s1 + $0x88] sm:$0xff] }
  0xef   : > { %10577 = vmatmul.msk.bf16.gmra.mxu0 %vm624_vm1, %v12735_v51  ;;  %10609 = vmatmul.msk.bf16.gmra.mxu1 %vm624_vm1, %v12735_v51 }
  0xf0   : > { %10641 = vmatmul.msk.bf16.gmra.mxu2 %vm624_vm1, %v12735_v51  ;;  %10673 = vmatmul.msk.bf16.gmra.mxu3 %vm624_vm1, %v12735_v51 }
  0xf3   : > { %v1142_v58 = vpop.f32.mrf.mxu2  ;;  %v1311_v59 = vpop.f32.mrf.mxu3 }
  0xf4   : > { %v13471_v60 = vmax.f32 %v3508_v26, %v1142_v58  ;;  %v13473_v61 = vmax.f32 %v3509_v27, %v1311_v59  ;;  %v806_v62 = vpop.f32.mrf.mxu0  ;;  %v975_v63 = vpop.f32.mrf.mxu1 }
  0xf5   : > { %v13475_v0 = vmax.f32 %v3522_v30, %v806_v62  ;;  %v13477_v1 = vmax.f32 %v3523_v31, %v975_v63 }
  0xfb   : > { %v1144_v2 = vpop.f32.mrf.mxu2  ;;  %v1313_v3 = vpop.f32.mrf.mxu3 }
  0xfc   : > { %v13482_v5 = vmax.f32 %v3524_v35, %v1144_v2  ;;  %v13484_v6 = vmax.f32 %v3525_v36, %v1313_v3  ;;  %v809_v7 = vpop.f32.mrf.mxu0  ;;  %v978_v8 = vpop.f32.mrf.mxu1 }
  0xfd   : > { %v3602_v9 = vmax.f32 %v13440_v39, %v809_v7  ;;  %v3603_v10 = vmax.f32 %v13442_v40, %v978_v8  ;;  %v12740_v8 = vld [vmem:[%s18575_s1 + $0x90] sm:$0xff] }
  0xff   : > { %10578 = vmatmul.msk.bf16.gmra.mxu0 %vm624_vm1, %v12736_v4  ;;  %10610 = vmatmul.msk.bf16.gmra.mxu1 %vm624_vm1, %v12736_v4 }
 0x100   : > { %10642 = vmatmul.msk.bf16.gmra.mxu2 %vm624_vm1, %v12736_v4  ;;  %10674 = vmatmul.msk.bf16.gmra.mxu3 %vm624_vm1, %v12736_v4 }
 0x103   : > { %v1147_v11 = vpop.f32.mrf.mxu2  ;;  %v1316_v12 = vpop.f32.mrf.mxu3 }
 0x104   : > { %v3604_v13 = vmax.f32 %v13448_v43, %v1147_v11  ;;  %v3605_v14 = vmax.f32 %v13450_v44, %v1316_v12  ;;  %v811_v15 = vpop.f32.mrf.mxu0  ;;  %v980_v16 = vpop.f32.mrf.mxu1 }
 0x105   : > { %v3618_v17 = vmax.f32 %v13452_v47, %v811_v15  ;;  %v3619_v18 = vmax.f32 %v13454_v48, %v980_v16 }
 0x10b   : > { %v1149_v19 = vpop.f32.mrf.mxu2  ;;  %v1318_v20 = vpop.f32.mrf.mxu3 }
 0x10c   : > { %v3620_v22 = vmax.f32 %v13459_v52, %v1149_v19  ;;  %v3621_v23 = vmax.f32 %v13461_v53, %v1318_v20  ;;  %v814_v24 = vpop.f32.mrf.mxu0  ;;  %v983_v25 = vpop.f32.mrf.mxu1 }
 0x10d   : > { %v3634_v26 = vmax.f32 %v13463_v56, %v814_v24  ;;  %v3635_v27 = vmax.f32 %v13465_v57, %v983_v25  ;;  %v12741_v25 = vld [vmem:[%s18575_s1 + $0x98] sm:$0xff] }
 0x10f   : > { %10579 = vmatmul.msk.bf16.gmra.mxu0 %vm624_vm1, %v12737_v21  ;;  %10611 = vmatmul.msk.bf16.gmra.mxu1 %vm624_vm1, %v12737_v21 }
 0x110   : > { %10643 = vmatmul.msk.bf16.gmra.mxu2 %vm624_vm1, %v12737_v21  ;;  %10675 = vmatmul.msk.bf16.gmra.mxu3 %vm624_vm1, %v12737_v21 }
 0x113   : > { %v1152_v28 = vpop.f32.mrf.mxu2  ;;  %v1321_v29 = vpop.f32.mrf.mxu3 }
 0x114   : > { %v3636_v30 = vmax.f32 %v13471_v60, %v1152_v28  ;;  %v3637_v31 = vmax.f32 %v13473_v61, %v1321_v29  ;;  %v816_v32 = vpop.f32.mrf.mxu0  ;;  %v985_v33 = vpop.f32.mrf.mxu1 }
 0x115   : > { %v3650_v34 = vmax.f32 %v13475_v0, %v816_v32  ;;  %v3651_v35 = vmax.f32 %v13477_v1, %v985_v33 }
 0x11b   : > { %v1154_v36 = vpop.f32.mrf.mxu2  ;;  %v1323_v37 = vpop.f32.mrf.mxu3 }
 0x11c   : > { %v3652_v39 = vmax.f32 %v13482_v5, %v1154_v36  ;;  %v3653_v40 = vmax.f32 %v13484_v6, %v1323_v37  ;;  %v819_v41 = vpop.f32.mrf.mxu0  ;;  %v988_v42 = vpop.f32.mrf.mxu1 }
 0x11d   : > { %v13516_v43 = vmax.f32 %v3602_v9, %v819_v41  ;;  %v13518_v44 = vmax.f32 %v3603_v10, %v988_v42  ;;  %v12742_v42 = vld [vmem:[%s18575_s1 + $0xa0] sm:$0xff] }
 0x11f   : > { %10580 = vmatmul.msk.bf16.gmra.mxu0 %vm624_vm1, %v12738_v38  ;;  %10612 = vmatmul.msk.bf16.gmra.mxu1 %vm624_vm1, %v12738_v38 }
 0x120   : > { %10644 = vmatmul.msk.bf16.gmra.mxu2 %vm624_vm1, %v12738_v38  ;;  %10676 = vmatmul.msk.bf16.gmra.mxu3 %vm624_vm1, %v12738_v38 }
 0x123   : > { %v1157_v45 = vpop.f32.mrf.mxu2  ;;  %v1326_v46 = vpop.f32.mrf.mxu3 }
 0x124   : > { %v13524_v47 = vmax.f32 %v3604_v13, %v1157_v45  ;;  %v13526_v48 = vmax.f32 %v3605_v14, %v1326_v46  ;;  %v821_v49 = vpop.f32.mrf.mxu0  ;;  %v990_v50 = vpop.f32.mrf.mxu1 }
 0x125   : > { %v13528_v51 = vmax.f32 %v3618_v17, %v821_v49  ;;  %v13530_v52 = vmax.f32 %v3619_v18, %v990_v50 }
 0x12b   : > { %v1159_v53 = vpop.f32.mrf.mxu2  ;;  %v1328_v54 = vpop.f32.mrf.mxu3 }
 0x12c   : > { %v13535_v56 = vmax.f32 %v3620_v22, %v1159_v53  ;;  %v13537_v57 = vmax.f32 %v3621_v23, %v1328_v54  ;;  %v824_v58 = vpop.f32.mrf.mxu0  ;;  %v993_v59 = vpop.f32.mrf.mxu1 }
 0x12d   : > { %v13539_v60 = vmax.f32 %v3634_v26, %v824_v58  ;;  %v13541_v61 = vmax.f32 %v3635_v27, %v993_v59  ;;  %v12743_v59 = vld [vmem:[%s18575_s1 + $0xa8] sm:$0xff] }
 0x12f   : > { %10581 = vmatmul.msk.bf16.gmra.mxu0 %vm624_vm1, %v12739_v55  ;;  %10613 = vmatmul.msk.bf16.gmra.mxu1 %vm624_vm1, %v12739_v55 }
 0x130   : > { %10645 = vmatmul.msk.bf16.gmra.mxu2 %vm624_vm1, %v12739_v55  ;;  %10677 = vmatmul.msk.bf16.gmra.mxu3 %vm624_vm1, %v12739_v55 }
 0x133   : > { %v1162_v62 = vpop.f32.mrf.mxu2  ;;  %v1331_v63 = vpop.f32.mrf.mxu3 }
 0x134   : > { %v13547_v0 = vmax.f32 %v3636_v30, %v1162_v62  ;;  %v13549_v1 = vmax.f32 %v3637_v31, %v1331_v63  ;;  %v826_v2 = vpop.f32.mrf.mxu0  ;;  %v995_v3 = vpop.f32.mrf.mxu1 }
 0x135   : > { %v13551_v4 = vmax.f32 %v3650_v34, %v826_v2  ;;  %v13553_v5 = vmax.f32 %v3651_v35, %v995_v3 }
 0x13b   : > { %v1164_v6 = vpop.f32.mrf.mxu2  ;;  %v1333_v7 = vpop.f32.mrf.mxu3 }
 0x13c   : > { %v13558_v9 = vmax.f32 %v3652_v39, %v1164_v6  ;;  %v13560_v10 = vmax.f32 %v3653_v40, %v1333_v7  ;;  %v829_v11 = vpop.f32.mrf.mxu0  ;;  %v998_v12 = vpop.f32.mrf.mxu1 }
 0x13d   : > { %v3730_v13 = vmax.f32 %v13516_v43, %v829_v11  ;;  %v3731_v14 = vmax.f32 %v13518_v44, %v998_v12  ;;  %v12744_v12 = vld [vmem:[%s18575_s1 + $0xb0] sm:$0xff] }
 0x13f   : > { %10582 = vmatmul.msk.bf16.gmra.mxu0 %vm624_vm1, %v12740_v8  ;;  %10614 = vmatmul.msk.bf16.gmra.mxu1 %vm624_vm1, %v12740_v8 }
 0x140   : > { %10646 = vmatmul.msk.bf16.gmra.mxu2 %vm624_vm1, %v12740_v8  ;;  %10678 = vmatmul.msk.bf16.gmra.mxu3 %vm624_vm1, %v12740_v8 }
 0x143   : > { %v1167_v15 = vpop.f32.mrf.mxu2  ;;  %v1336_v16 = vpop.f32.mrf.mxu3 }
 0x144   : > { %v3732_v17 = vmax.f32 %v13524_v47, %v1167_v15  ;;  %v3733_v18 = vmax.f32 %v13526_v48, %v1336_v16  ;;  %v831_v19 = vpop.f32.mrf.mxu0  ;;  %v1000_v20 = vpop.f32.mrf.mxu1 }
 0x145   : > { %v3746_v21 = vmax.f32 %v13528_v51, %v831_v19  ;;  %v3747_v22 = vmax.f32 %v13530_v52, %v1000_v20 }
 0x14b   : > { %v1169_v23 = vpop.f32.mrf.mxu2  ;;  %v1338_v24 = vpop.f32.mrf.mxu3 }
 0x14c   : > { %v3748_v26 = vmax.f32 %v13535_v56, %v1169_v23  ;;  %v3749_v27 = vmax.f32 %v13537_v57, %v1338_v24  ;;  %v834_v28 = vpop.f32.mrf.mxu0  ;;  %v1003_v29 = vpop.f32.mrf.mxu1 }
 0x14d   : > { %v3762_v30 = vmax.f32 %v13539_v60, %v834_v28  ;;  %v3763_v31 = vmax.f32 %v13541_v61, %v1003_v29  ;;  %v12745_v29 = vld [vmem:[%s18575_s1 + $0xb8] sm:$0xff] }
 0x14f   : > { %10583 = vmatmul.msk.bf16.gmra.mxu0 %vm624_vm1, %v12741_v25  ;;  %10615 = vmatmul.msk.bf16.gmra.mxu1 %vm624_vm1, %v12741_v25 }
 0x150   : > { %10647 = vmatmul.msk.bf16.gmra.mxu2 %vm624_vm1, %v12741_v25  ;;  %10679 = vmatmul.msk.bf16.gmra.mxu3 %vm624_vm1, %v12741_v25 }
 0x153   : > { %v1172_v32 = vpop.f32.mrf.mxu2  ;;  %v1341_v33 = vpop.f32.mrf.mxu3 }
 0x154   : > { %v3764_v34 = vmax.f32 %v13547_v0, %v1172_v32  ;;  %v3765_v35 = vmax.f32 %v13549_v1, %v1341_v33  ;;  %v836_v36 = vpop.f32.mrf.mxu0  ;;  %v1005_v37 = vpop.f32.mrf.mxu1 }
 0x155   : > { %v3778_v38 = vmax.f32 %v13551_v4, %v836_v36  ;;  %v3779_v39 = vmax.f32 %v13553_v5, %v1005_v37 }
 0x15b   : > { %v1174_v40 = vpop.f32.mrf.mxu2  ;;  %v1343_v41 = vpop.f32.mrf.mxu3 }
 0x15c   : > { %v3780_v43 = vmax.f32 %v13558_v9, %v1174_v40  ;;  %v3781_v44 = vmax.f32 %v13560_v10, %v1343_v41  ;;  %v839_v45 = vpop.f32.mrf.mxu0  ;;  %v1008_v46 = vpop.f32.mrf.mxu1 }
 0x15d   : > { %v13592_v47 = vmax.f32 %v3730_v13, %v839_v45  ;;  %v13594_v48 = vmax.f32 %v3731_v14, %v1008_v46  ;;  %v12746_v46 = vld [vmem:[%s18575_s1 + $0xc0] sm:$0xff] }
 0x15f   : > { %10584 = vmatmul.msk.bf16.gmra.mxu0 %vm624_vm1, %v12742_v42  ;;  %10616 = vmatmul.msk.bf16.gmra.mxu1 %vm624_vm1, %v12742_v42 }
 0x160   : > { %10648 = vmatmul.msk.bf16.gmra.mxu2 %vm624_vm1, %v12742_v42  ;;  %10680 = vmatmul.msk.bf16.gmra.mxu3 %vm624_vm1, %v12742_v42 }
 0x163   : > { %v1177_v49 = vpop.f32.mrf.mxu2  ;;  %v1346_v50 = vpop.f32.mrf.mxu3 }
 0x164   : > { %v13600_v51 = vmax.f32 %v3732_v17, %v1177_v49  ;;  %v13602_v52 = vmax.f32 %v3733_v18, %v1346_v50  ;;  %v841_v53 = vpop.f32.mrf.mxu0  ;;  %v1010_v54 = vpop.f32.mrf.mxu1 }
 0x165   : > { %v13604_v55 = vmax.f32 %v3746_v21, %v841_v53  ;;  %v13606_v56 = vmax.f32 %v3747_v22, %v1010_v54 }
 0x16b   : > { %v1179_v57 = vpop.f32.mrf.mxu2  ;;  %v1348_v58 = vpop.f32.mrf.mxu3 }
 0x16c   : > { %v13611_v60 = vmax.f32 %v3748_v26, %v1179_v57  ;;  %v13613_v61 = vmax.f32 %v3749_v27, %v1348_v58  ;;  %v844_v62 = vpop.f32.mrf.mxu0  ;;  %v1013_v63 = vpop.f32.mrf.mxu1 }
 0x16d   : > { %v13615_v0 = vmax.f32 %v3762_v30, %v844_v62  ;;  %v13617_v1 = vmax.f32 %v3763_v31, %v1013_v63  ;;  %v12765_v62 = vld [vmem:[%s13283_s27 + $0x54] sm:$0xf0]  ;;  %v12757_v63 = vld [vmem:[%s13283_s27 + $0x1c] sm:$0xf] }
 0x16f   : > { %10585 = vmatmul.msk.bf16.gmra.mxu0 %vm624_vm1, %v12743_v59  ;;  %10617 = vmatmul.msk.bf16.gmra.mxu1 %vm624_vm1, %v12743_v59 }
 0x170   : > { %10649 = vmatmul.msk.bf16.gmra.mxu2 %vm624_vm1, %v12743_v59  ;;  %10681 = vmatmul.msk.bf16.gmra.mxu3 %vm624_vm1, %v12743_v59 }
 0x173   : > { %v1182_v2 = vpop.f32.mrf.mxu2  ;;  %v1351_v3 = vpop.f32.mrf.mxu3 }
 0x174   : > { %v13623_v4 = vmax.f32 %v3764_v34, %v1182_v2  ;;  %v13625_v5 = vmax.f32 %v3765_v35, %v1351_v3  ;;  %v846_v6 = vpop.f32.mrf.mxu0  ;;  %v1015_v7 = vpop.f32.mrf.mxu1 }
 0x175   : > { %v13627_v8 = vmax.f32 %v3778_v38, %v846_v6  ;;  %v13629_v9 = vmax.f32 %v3779_v39, %v1015_v7 }
 0x17b   : > { %v1184_v10 = vpop.f32.mrf.mxu2  ;;  %v1353_v11 = vpop.f32.mrf.mxu3 }
 0x17c   : > { %v13634_v13 = vmax.f32 %v3780_v43, %v1184_v10  ;;  %v13636_v14 = vmax.f32 %v3781_v44, %v1353_v11  ;;  %v849_v15 = vpop.f32.mrf.mxu0  ;;  %v1018_v16 = vpop.f32.mrf.mxu1 }
 0x17d   : > { %v3858_v17 = vmax.f32 %v13592_v47, %v849_v15  ;;  %v3859_v18 = vmax.f32 %v13594_v48, %v1018_v16  ;;  %v12756_v15 = vld [vmem:[%s13283_s27 + $0x14] sm:$0xf] }
 0x17e   : > { %v10520_v16 = vld [vmem:[%s13283_s27 + $0x50] sm:$0xf0] }
 0x17f   : > { %10586 = vmatmul.msk.bf16.gmra.mxu0 %vm624_vm1, %v12744_v12  ;;  %10618 = vmatmul.msk.bf16.gmra.mxu1 %vm624_vm1, %v12744_v12 }
 0x180   : > { %10650 = vmatmul.msk.bf16.gmra.mxu2 %vm624_vm1, %v12744_v12  ;;  %10682 = vmatmul.msk.bf16.gmra.mxu3 %vm624_vm1, %v12744_v12  ;;  %v10518_v12 = vld [vmem:[%s13283_s27 + $0x10] sm:$0xf] }
 0x183   : > { %v1187_v19 = vpop.f32.mrf.mxu2  ;;  %v1356_v20 = vpop.f32.mrf.mxu3 }
 0x184   : > { %v3860_v21 = vmax.f32 %v13600_v51, %v1187_v19  ;;  %v3861_v22 = vmax.f32 %v13602_v52, %v1356_v20  ;;  %v851_v23 = vpop.f32.mrf.mxu0  ;;  %v1020_v24 = vpop.f32.mrf.mxu1 }
 0x185   : > { %v3874_v25 = vmax.f32 %v13604_v55, %v851_v23  ;;  %v3875_v26 = vmax.f32 %v13606_v56, %v1020_v24 }
 0x18b   : > { %v1189_v27 = vpop.f32.mrf.mxu2  ;;  %v1358_v28 = vpop.f32.mrf.mxu3 }
 0x18c   : > { %v3876_v30 = vmax.f32 %v13611_v60, %v1189_v27  ;;  %v3877_v31 = vmax.f32 %v13613_v61, %v1358_v28  ;;  %v854_v32 = vpop.f32.mrf.mxu0  ;;  %v1023_v33 = vpop.f32.mrf.mxu1  ;;  %v10526_v61 = vld [vmem:[%s13283_s27 + $0x18] sm:$0xf]  ;;  %v12748_v28 = vld [vmem:[%s18575_s1 + $0xd0] sm:$0xff] }
 0x18d   : > { %v3890_v34 = vmax.f32 %v13615_v0, %v854_v32  ;;  %v3891_v35 = vmax.f32 %v13617_v1, %v1023_v33  ;;  %v10527_v0 = vor.u32 %v12765_v62, %v10526_v61  ;;  %v10528_v1 = vld [vmem:[%s13283_s27 + $0x58] sm:$0xf0]  ;;  %v12750_v62 = vld [vmem:[%s18575_s1 + $0xe0] sm:$0xff] }
 0x18e   : > { %v10531_v2 = vor.u32 %v12757_v63, %v10528_v1 }
 0x18f   : > { %10587 = vmatmul.msk.bf16.gmra.mxu0 %vm624_vm1, %v12745_v29  ;;  %10619 = vmatmul.msk.bf16.gmra.mxu1 %vm624_vm1, %v12745_v29 }
 0x190   : > { %10651 = vmatmul.msk.bf16.gmra.mxu2 %vm624_vm1, %v12745_v29  ;;  %10683 = vmatmul.msk.bf16.gmra.mxu3 %vm624_vm1, %v12745_v29 }
 0x191   : > { %1791 = vmatpush.bf16.msrb.mxu2 %v10527_v0  ;;  %1960 = vmatpush.bf16.msrb.mxu3 %v10531_v2 }
 0x193   : > { %v1192_v36 = vpop.f32.mrf.mxu2  ;;  %v1361_v37 = vpop.f32.mrf.mxu3 }
 0x194   : > { %v3892_v38 = vmax.f32 %v13623_v4, %v1192_v36  ;;  %v3893_v39 = vmax.f32 %v13625_v5, %v1361_v37  ;;  %v856_v40 = vpop.f32.mrf.mxu0  ;;  %v1025_v41 = vpop.f32.mrf.mxu1  ;;  %v12747_v5 = vld [vmem:[%s18575_s1 + $0xc8] sm:$0xff] }
 0x195   : > { %v3906_v42 = vmax.f32 %v13627_v8, %v856_v40  ;;  %v3907_v43 = vmax.f32 %v13629_v9, %v1025_v41 }
 0x19b   : > { %v1194_v44 = vpop.f32.mrf.mxu2  ;;  %v1363_v45 = vpop.f32.mrf.mxu3 }
 0x19c   : > { %v3908_v47 = vmax.f32 %v13634_v13, %v1194_v44  ;;  %v3909_v48 = vmax.f32 %v13636_v14, %v1363_v45  ;;  %v859_v49 = vpop.f32.mrf.mxu0  ;;  %v1028_v50 = vpop.f32.mrf.mxu1  ;;  %v12764_v13 = vld [vmem:[%s13283_s27 + $0x4c] sm:$0xf0]  ;;  %v12749_v45 = vld [vmem:[%s18575_s1 + $0xd8] sm:$0xff] }
 0x19d   : > { %v13668_v51 = vmax.f32 %v3858_v17, %v859_v49  ;;  %v13670_v52 = vmax.f32 %v3859_v18, %v1028_v50  ;;  %v10519_v14 = vor.u32 %v12764_v13, %v10518_v12  ;;  %v10523_v17 = vor.u32 %v12756_v15, %v10520_v16  ;;  %v12751_v15 = vld [vmem:[%s18575_s1 + $0xe8] sm:$0xff] }
 0x19f   : > { %10588 = vmatmul.msk.bf16.gmra.mxu0 %vm624_vm1, %v12746_v46  ;;  %10620 = vmatmul.msk.bf16.gmra.mxu1 %vm624_vm1, %v12746_v46 }
 0x1a0   : > { %10652 = vmatmul.msk.bf16.gmra.mxu2 %vm624_vm1, %v12746_v46  ;;  %10684 = vmatmul.msk.bf16.gmra.mxu3 %vm624_vm1, %v12746_v46 }
 0x1a1   : > { %1453 = vmatpush.bf16.msrb.mxu0 %v10519_v14  ;;  %1622 = vmatpush.bf16.msrb.mxu1 %v10523_v17 }
 0x1a3   : > { %v1197_v53 = vpop.f32.mrf.mxu2  ;;  %v1366_v54 = vpop.f32.mrf.mxu3 }
 0x1a4   : > { %v13676_v55 = vmax.f32 %v3860_v21, %v1197_v53  ;;  %v13678_v56 = vmax.f32 %v3861_v22, %v1366_v54  ;;  %v861_v57 = vpop.f32.mrf.mxu0  ;;  %v1030_v58 = vpop.f32.mrf.mxu1 }
 0x1a5   : > { %v13680_v59 = vmax.f32 %v3874_v25, %v861_v57  ;;  %v13682_v60 = vmax.f32 %v3875_v26, %v1030_v58 }
 0x1ab   : > { %v1199_v3 = vpop.f32.mrf.mxu2  ;;  %v1368_v4 = vpop.f32.mrf.mxu3 }
 0x1ac   : > { %v13691_v6 = vmax.f32 %v3876_v30, %v1199_v3  ;;  %v13693_v7 = vmax.f32 %v3877_v31, %v1368_v4  ;;  %v864_v8 = vpop.f32.mrf.mxu0  ;;  %v1033_v9 = vpop.f32.mrf.mxu1 }
 0x1ad   : > { %v13695_v10 = vmax.f32 %v3890_v34, %v864_v8  ;;  %v13697_v11 = vmax.f32 %v3891_v35, %v1033_v9 }
 0x1af   : > { %10589 = vmatmul.msk.bf16.gmra.mxu0 %vm624_vm1, %v12747_v5  ;;  %10621 = vmatmul.msk.bf16.gmra.mxu1 %vm624_vm1, %v12747_v5 }
 0x1b0   : > { %10653 = vmatmul.msk.bf16.gmra.mxu2 %vm624_vm1, %v12747_v5  ;;  %10685 = vmatmul.msk.bf16.gmra.mxu3 %vm624_vm1, %v12747_v5 }
 0x1b3   : > { %v1202_v18 = vpop.f32.mrf.mxu2  ;;  %v1371_v19 = vpop.f32.mrf.mxu3 }
 0x1b4   : > { %v13707_v20 = vmax.f32 %v3892_v38, %v1202_v18  ;;  %v13709_v21 = vmax.f32 %v3893_v39, %v1371_v19  ;;  %v866_v22 = vpop.f32.mrf.mxu0  ;;  %v1035_v23 = vpop.f32.mrf.mxu1 }
 0x1b5   : > { %v13711_v24 = vmax.f32 %v3906_v42, %v866_v22  ;;  %v13713_v25 = vmax.f32 %v3907_v43, %v1035_v23 }
 0x1bb   : > { %v1204_v26 = vpop.f32.mrf.mxu2  ;;  %v1373_v27 = vpop.f32.mrf.mxu3 }
 0x1bc   : > { %v13718_v29 = vmax.f32 %v3908_v47, %v1204_v26  ;;  %v13720_v30 = vmax.f32 %v3909_v48, %v1373_v27  ;;  %v869_v31 = vpop.f32.mrf.mxu0  ;;  %v1038_v32 = vpop.f32.mrf.mxu1 }
 0x1bd   : > { %v3986_v33 = vmax.f32 %v13668_v51, %v869_v31  ;;  %v3987_v34 = vmax.f32 %v13670_v52, %v1038_v32 }
 0x1bf   : > { %10590 = vmatmul.msk.bf16.gmra.mxu0 %vm624_vm1, %v12748_v28  ;;  %10622 = vmatmul.msk.bf16.gmra.mxu1 %vm624_vm1, %v12748_v28 }
 0x1c0   : > { %10654 = vmatmul.msk.bf16.gmra.mxu2 %vm624_vm1, %v12748_v28  ;;  %10686 = vmatmul.msk.bf16.gmra.mxu3 %vm624_vm1, %v12748_v28 }
 0x1c3   : > { %v1207_v35 = vpop.f32.mrf.mxu2  ;;  %v1376_v36 = vpop.f32.mrf.mxu3 }
 0x1c4   : > { %v3988_v37 = vmax.f32 %v13676_v55, %v1207_v35  ;;  %v3989_v38 = vmax.f32 %v13678_v56, %v1376_v36  ;;  %v871_v39 = vpop.f32.mrf.mxu0  ;;  %v1040_v40 = vpop.f32.mrf.mxu1  ;;  %v12752_v35 = vld [vmem:[%s18575_s1 + $0xf0] sm:$0xff] }
 0x1c5   : > { %v4002_v41 = vmax.f32 %v13680_v59, %v871_v39  ;;  %v4003_v42 = vmax.f32 %v13682_v60, %v1040_v40  ;;  %v4436_v40 = vld [vmem:[%s18576_s2 + $0x10] sm:$0xff] }
 0x1cb   : > { %v1209_v43 = vpop.f32.mrf.mxu2  ;;  %v1378_v44 = vpop.f32.mrf.mxu3 }
 0x1cc   : > { %v4004_v46 = vmax.f32 %v13691_v6, %v1209_v43  ;;  %v4005_v47 = vmax.f32 %v13693_v7, %v1378_v44  ;;  %v874_v48 = vpop.f32.mrf.mxu0  ;;  %v1043_v49 = vpop.f32.mrf.mxu1 }
 0x1cd   : > { %v4018_v50 = vmax.f32 %v13695_v10, %v874_v48  ;;  %v4019_v51 = vmax.f32 %v13697_v11, %v1043_v49  ;;  %v4437_v49 = vld [vmem:[%s18576_s2 + $0x18] sm:$0xff] }
 0x1cf   : > { %10591 = vmatmul.msk.bf16.gmra.mxu0 %vm624_vm1, %v12749_v45  ;;  %10623 = vmatmul.msk.bf16.gmra.mxu1 %vm624_vm1, %v12749_v45 }
 0x1d0   : > { %10655 = vmatmul.msk.bf16.gmra.mxu2 %vm624_vm1, %v12749_v45  ;;  %10687 = vmatmul.msk.bf16.gmra.mxu3 %vm624_vm1, %v12749_v45 }
 0x1d3   : > { %v1212_v52 = vpop.f32.mrf.mxu2  ;;  %v1381_v53 = vpop.f32.mrf.mxu3 }
 0x1d4   : > { %v4020_v54 = vmax.f32 %v13707_v20, %v1212_v52  ;;  %v4021_v55 = vmax.f32 %v13709_v21, %v1381_v53  ;;  %v876_v56 = vpop.f32.mrf.mxu0  ;;  %v1045_v57 = vpop.f32.mrf.mxu1  ;;  %v13229_v20 = vmov 0   ;;  %v4434_v21 = vld [vmem:[%s18576_s2] sm:$0xff] }
 0x1d5   : > { %v4034_v58 = vmax.f32 %v13711_v24, %v876_v56  ;;  %v4035_v59 = vmax.f32 %v13713_v25, %v1045_v57  ;;  %13122 = vset.pattern.permute.xlu0 %v13229_v20  ;;  %13123 = vset.pattern.permute.xlu1 %v13229_v20 }
 0x1d6   : > { %4440 = vperm.xlu0 %13122, %v4434_v21   ;;  %13124 = vset.pattern.permute.xlu2 %v13229_v20 }
 0x1d7   : > { %4450 = vperm.xlu1 %13123, %v4436_v40  }
 0x1db   : > { %v1214_v60 = vpop.f32.mrf.mxu2  ;;  %v1383_v61 = vpop.f32.mrf.mxu3 }
 0x1dc   : > { %v4036_v63 = vmax.f32 %v13718_v29, %v1214_v60  ;;  %v4037_v0 = vmax.f32 %v13720_v30, %v1383_v61  ;;  %v879_v1 = vpop.f32.mrf.mxu0  ;;  %v1048_v2 = vpop.f32.mrf.mxu1  ;;  %v4435_v30 = vld [vmem:[%s18576_s2 + $0x8] sm:$0xff] }
 0x1dd   : > { %v13752_v3 = vmax.f32 %v3986_v33, %v879_v1  ;;  %v13754_v4 = vmax.f32 %v3987_v34, %v1048_v2 }
 0x1de   : > { %4445 = vperm.xlu0 %13122, %v4435_v30   ;;  %v13126_v30 = vld [vmem:[%s18575_s1 + $0x8] sm:$0xff] }
 0x1df   : > { %10592 = vmatmul.msk.bf16.gmra.mxu0 %vm624_vm1, %v12750_v62  ;;  %10624 = vmatmul.msk.bf16.gmra.mxu1 %vm624_vm1, %v12750_v62 }
 0x1e0   : > { %10656 = vmatmul.msk.bf16.gmra.mxu2 %vm624_vm1, %v12750_v62  ;;  %10688 = vmatmul.msk.bf16.gmra.mxu3 %vm624_vm1, %v12750_v62 }
 0x1e1   : > { %4455 = vperm.xlu1 %13123, %v4437_v49  }
 0x1e3   : > { %v1217_v5 = vpop.f32.mrf.mxu2  ;;  %v1386_v6 = vpop.f32.mrf.mxu3 }
 0x1e4   : > { %v13760_v7 = vmax.f32 %v3988_v37, %v1217_v5  ;;  %v13762_v8 = vmax.f32 %v3989_v38, %v1386_v6  ;;  %v881_v9 = vpop.f32.mrf.mxu0  ;;  %v1050_v10 = vpop.f32.mrf.mxu1 }
 0x1e5   : > { %v13764_v11 = vmax.f32 %v4002_v41, %v881_v9  ;;  %v13766_v12 = vmax.f32 %v4003_v42, %v1050_v10 }
 0x1eb   : > { %v1219_v13 = vpop.f32.mrf.mxu2  ;;  %v1388_v14 = vpop.f32.mrf.mxu3 }
 0x1ec   : > { %v13771_v16 = vmax.f32 %v4004_v46, %v1219_v13  ;;  %v13773_v17 = vmax.f32 %v4005_v47, %v1388_v14  ;;  %v884_v18 = vpop.f32.mrf.mxu0  ;;  %v1053_v19 = vpop.f32.mrf.mxu1  ;;  %v13125_v13 = vld [vmem:[%s18575_s1] sm:$0xff] }
 0x1ed   : > { %v13778_v22 = vmax.f32 %v4018_v50, %v884_v18  ;;  %v13780_v23 = vmax.f32 %v4019_v51, %v1053_v19 }
 0x1ef   : > { %10593 = vmatmul.msk.bf16.gmra.mxu0 %vm624_vm1, %v12751_v15  ;;  %10625 = vmatmul.msk.bf16.gmra.mxu1 %vm624_vm1, %v12751_v15 }
 0x1f0   : > { %10657 = vmatmul.msk.bf16.gmra.mxu2 %vm624_vm1, %v12751_v15  ;;  %10689 = vmatmul.msk.bf16.gmra.mxu3 %vm624_vm1, %v12751_v15 }
 0x1f3   : > { %v1222_v24 = vpop.f32.mrf.mxu2  ;;  %v1391_v25 = vpop.f32.mrf.mxu3 }
 0x1f4   : > { %v13786_v26 = vmax.f32 %v4020_v54, %v1222_v24  ;;  %v13788_v27 = vmax.f32 %v4021_v55, %v1391_v25  ;;  %v886_v28 = vpop.f32.mrf.mxu0  ;;  %v1055_v29 = vpop.f32.mrf.mxu1  ;;  %v12753_v54 = vld [vmem:[%s18575_s1 + $0xf8] sm:$0xff] }
 0x1f5   : > { %v13793_v31 = vmax.f32 %v4034_v58, %v886_v28  ;;  %v13795_v32 = vmax.f32 %v4035_v59, %v1055_v29 }
 0x1fb   : > { %v1224_v33 = vpop.f32.mrf.mxu2  ;;  %v1393_v34 = vpop.f32.mrf.mxu3 }
 0x1fc   : > { %v13800_v36 = vmax.f32 %v4036_v63, %v1224_v33  ;;  %v13802_v37 = vmax.f32 %v4037_v0, %v1393_v34  ;;  %v889_v38 = vpop.f32.mrf.mxu0  ;;  %v1058_v39 = vpop.f32.mrf.mxu1 }
 0x1fd   : > { %v4114_v41 = vmax.f32 %v13752_v3, %v889_v38  ;;  %v4115_v42 = vmax.f32 %v13754_v4, %v1058_v39 }
 0x1ff   : > { %10594 = vmatmul.msk.bf16.gmra.mxu0 %vm624_vm1, %v12752_v35  ;;  %10626 = vmatmul.msk.bf16.gmra.mxu1 %vm624_vm1, %v12752_v35 }
 0x200   : > { %10658 = vmatmul.msk.bf16.gmra.mxu2 %vm624_vm1, %v12752_v35  ;;  %10690 = vmatmul.msk.bf16.gmra.mxu3 %vm624_vm1, %v12752_v35 }
 0x203   : > { %v1227_v43 = vpop.f32.mrf.mxu2  ;;  %v1396_v44 = vpop.f32.mrf.mxu3 }
 0x204   : > { %v4116_v45 = vmax.f32 %v13760_v7, %v1227_v43  ;;  %v4117_v46 = vmax.f32 %v13762_v8, %v1396_v44  ;;  %v891_v47 = vpop.f32.mrf.mxu0  ;;  %v1060_v48 = vpop.f32.mrf.mxu1 }
 0x205   : > { %v4130_v50 = vmax.f32 %v13764_v11, %v891_v47  ;;  %v4131_v51 = vmax.f32 %v13766_v12, %v1060_v48 }
 0x20b   : > { %v1229_v52 = vpop.f32.mrf.mxu2  ;;  %v1398_v53 = vpop.f32.mrf.mxu3 }
 0x20c   : > { %v4132_v55 = vmax.f32 %v13771_v16, %v1229_v52  ;;  %v4133_v56 = vmax.f32 %v13773_v17, %v1398_v53  ;;  %v894_v57 = vpop.f32.mrf.mxu0  ;;  %v1063_v58 = vpop.f32.mrf.mxu1 }
 0x20d   : > { %v4146_v59 = vmax.f32 %v13778_v22, %v894_v57  ;;  %v4147_v60 = vmax.f32 %v13780_v23, %v1063_v58 }
 0x20f   : > { %10595 = vmatmul.msk.bf16.gmra.mxu0 %vm624_vm1, %v12753_v54  ;;  %10627 = vmatmul.msk.bf16.gmra.mxu1 %vm624_vm1, %v12753_v54 }
 0x210   : > { %10659 = vmatmul.msk.bf16.gmra.mxu2 %vm624_vm1, %v12753_v54  ;;  %10691 = vmatmul.msk.bf16.gmra.mxu3 %vm624_vm1, %v12753_v54  ;;  %v13128_v54 = vld [vmem:[%s18575_s1 + $0x18] sm:$0xff] }
 0x213   : > { %v1232_v61 = vpop.f32.mrf.mxu2  ;;  %v1401_v62 = vpop.f32.mrf.mxu3 }
 0x214   : > { %v4148_v63 = vmax.f32 %v13786_v26, %v1232_v61  ;;  %v4149_v0 = vmax.f32 %v13788_v27, %v1401_v62  ;;  %v896_v1 = vpop.f32.mrf.mxu0  ;;  %v1065_v2 = vpop.f32.mrf.mxu1 }
 0x215   : > { %v4162_v3 = vmax.f32 %v13793_v31, %v896_v1  ;;  %v4163_v4 = vmax.f32 %v13795_v32, %v1065_v2 }
 0x21b   : > { %v1234_v5 = vpop.f32.mrf.mxu2  ;;  %v1403_v6 = vpop.f32.mrf.mxu3 }
 0x21c   : > { %v4164_v7 = vmax.f32 %v13800_v36, %v1234_v5  ;;  %v4165_v8 = vmax.f32 %v13802_v37, %v1403_v6  ;;  %v899_v9 = vpop.f32.mrf.mxu0  ;;  %v1068_v10 = vpop.f32.mrf.mxu1 }
 0x21d   : > { %v13837_v11 = vmax.f32 %v4114_v41, %v899_v9  ;;  %v13839_v12 = vmax.f32 %v4115_v42, %v1068_v10 }
 0x21f   : > { %10692 = vmatmul.msk.bf16.vlgmr.msrb.gmra.mxu0 %vm624_vm1, %v13125_v13  ;;  %10724 = vmatmul.msk.bf16.vlgmr.msrb.gmra.mxu1 %vm624_vm1, %v13125_v13 }
 0x220   : > { %10756 = vmatmul.msk.bf16.vlgmr.msrb.gmra.mxu2 %vm624_vm1, %v13125_v13  ;;  %10788 = vmatmul.msk.bf16.vlgmr.msrb.gmra.mxu3 %vm624_vm1, %v13125_v13 }
 0x223   : > { %v1237_v14 = vpop.f32.mrf.mxu2  ;;  %v1406_v15 = vpop.f32.mrf.mxu3 }
 0x224   : > { %v13848_v16 = vmax.f32 %v4116_v45, %v1237_v14  ;;  %v13850_v17 = vmax.f32 %v4117_v46, %v1406_v15  ;;  %v901_v18 = vpop.f32.mrf.mxu0  ;;  %v1070_v19 = vpop.f32.mrf.mxu1  ;;  %v13127_v45 = vld [vmem:[%s18575_s1 + $0x10] sm:$0xff] }
 0x225   : > { %v13852_v20 = vmax.f32 %v4130_v50, %v901_v18  ;;  %v13854_v21 = vmax.f32 %v4131_v51, %v1070_v19 }
 0x22b   : > { %v1239_v22 = vpop.f32.mrf.mxu2  ;;  %v1408_v23 = vpop.f32.mrf.mxu3 }
 0x22c   : > { %v13856_v24 = vmax.f32 %v4132_v55, %v1239_v22  ;;  %v13858_v25 = vmax.f32 %v4133_v56, %v1408_v23  ;;  %v904_v26 = vpop.f32.mrf.mxu0  ;;  %v1073_v27 = vpop.f32.mrf.mxu1 }
 0x22d   : > { %v13860_v28 = vmax.f32 %v4146_v59, %v904_v26  ;;  %v13862_v29 = vmax.f32 %v4147_v60, %v1073_v27 }
 0x22f   : > { %10693 = vmatmul.msk.bf16.gmra.mxu0 %vm624_vm1, %v13126_v30  ;;  %10725 = vmatmul.msk.bf16.gmra.mxu1 %vm624_vm1, %v13126_v30 }
 0x230   : > { %10757 = vmatmul.msk.bf16.gmra.mxu2 %vm624_vm1, %v13126_v30  ;;  %10789 = vmatmul.msk.bf16.gmra.mxu3 %vm624_vm1, %v13126_v30 }
 0x233   : > { %v1242_v31 = vpop.f32.mrf.mxu2  ;;  %v1411_v32 = vpop.f32.mrf.mxu3 }
 0x234   : > { %v13871_v33 = vmax.f32 %v4148_v63, %v1242_v31  ;;  %v13873_v34 = vmax.f32 %v4149_v0, %v1411_v32  ;;  %v906_v35 = vpop.f32.mrf.mxu0  ;;  %v1075_v36 = vpop.f32.mrf.mxu1  ;;  %v13129_v63 = vld [vmem:[%s18575_s1 + $0x20] sm:$0xff] }
 0x235   : > { %v13875_v37 = vmax.f32 %v4162_v3, %v906_v35  ;;  %v13877_v38 = vmax.f32 %v4163_v4, %v1075_v36 }
 0x23b   : > { %v1244_v39 = vpop.f32.mrf.mxu2  ;;  %v1413_v40 = vpop.f32.mrf.mxu3 }
 0x23c   : > { %v13879_v41 = vmax.f32 %v4164_v7, %v1244_v39  ;;  %v13881_v42 = vmax.f32 %v4165_v8, %v1413_v40  ;;  %v909_v43 = vpop.f32.mrf.mxu0  ;;  %v1078_v44 = vpop.f32.mrf.mxu1  ;;  %v13130_v8 = vld [vmem:[%s18575_s1 + $0x28] sm:$0xff] }
 0x23d   : > { %v4242_v18 = vmax.f32 %v13837_v11, %v909_v43  ;;  %v4243_v19 = vmax.f32 %v13839_v12, %v1078_v44  ;;  %v13131_v11 = vld [vmem:[%s18575_s1 + $0x30] sm:$0xff] }
 0x23f   : > { %10694 = vmatmul.msk.bf16.gmra.mxu0 %vm624_vm1, %v13127_v45  ;;  %10726 = vmatmul.msk.bf16.gmra.mxu1 %vm624_vm1, %v13127_v45 }
 0x240   : > { %10758 = vmatmul.msk.bf16.gmra.mxu2 %vm624_vm1, %v13127_v45  ;;  %10790 = vmatmul.msk.bf16.gmra.mxu3 %vm624_vm1, %v13127_v45 }
 0x243   : > { %v13890_v46 = vpop.f32.mrf.mxu2  ;;  %v13892_v47 = vpop.f32.mrf.mxu3 }
 0x244   : > { %v13894_v48 = vpop.f32.mrf.mxu0  ;;  %v13896_v49 = vpop.f32.mrf.mxu1  ;;  %v4244_v12 = vmax.f32 %v13848_v16, %v13890_v46  ;;  %v4245_v40 = vmax.f32 %v13850_v17, %v13892_v47 }
 0x245   : > { %v4258_v43 = vmax.f32 %v13852_v20, %v13894_v48  ;;  %v4259_v44 = vmax.f32 %v13854_v21, %v13896_v49 }
 0x248   : > { %v13955_v15 = vpop.permute.xlu0 %4440 }
 0x24b   : > { %v13898_v50 = vpop.f32.mrf.mxu2  ;;  %v13900_v51 = vpop.f32.mrf.mxu3 }
 0x24c   : > { %v13902_v52 = vpop.f32.mrf.mxu0  ;;  %v13904_v53 = vpop.f32.mrf.mxu1 }
 0x24f   : > { %10695 = vmatmul.msk.bf16.gmra.mxu0 %vm624_vm1, %v13128_v54  ;;  %10727 = vmatmul.msk.bf16.gmra.mxu1 %vm624_vm1, %v13128_v54 }
 0x250   : > { %10759 = vmatmul.msk.bf16.gmra.mxu2 %vm624_vm1, %v13128_v54  ;;  %10791 = vmatmul.msk.bf16.gmra.mxu3 %vm624_vm1, %v13128_v54  ;;  %v13984_v16 = vpop.permute.xlu0 %4445 }
 0x253   : > { %v13913_v55 = vpop.f32.mrf.mxu2  ;;  %v13915_v56 = vpop.f32.mrf.mxu3 }
 0x254   : > { %v13917_v57 = vpop.f32.mrf.mxu0  ;;  %v13919_v58 = vpop.f32.mrf.mxu1 }
 0x25b   : > { %v13921_v59 = vpop.f32.mrf.mxu2  ;;  %v13923_v60 = vpop.f32.mrf.mxu3 }
 0x25c   : > { %v919_v61 = vpop.f32.mrf.mxu0  ;;  %v1088_v62 = vpop.f32.mrf.mxu1 }
 0x25d   : > { %v4306_v22 = vmax.f32 %v4242_v18, %v919_v61  ;;  %v4307_v23 = vmax.f32 %v4243_v19, %v1088_v62 }
 0x25f   : > { %10696 = vmatmul.msk.bf16.gmra.mxu0 %vm624_vm1, %v13129_v63  ;;  %10728 = vmatmul.msk.bf16.gmra.mxu1 %vm624_vm1, %v13129_v63 }
 0x260   : > { %10760 = vmatmul.msk.bf16.gmra.mxu2 %vm624_vm1, %v13129_v63  ;;  %10792 = vmatmul.msk.bf16.gmra.mxu3 %vm624_vm1, %v13129_v63  ;;  %v12933_v63 = vld [vmem:[%s18577_s3 + $0x41c] sm:$0xf] }
 0x263   : > { %v1257_v0 = vpop.f32.mrf.mxu2  ;;  %v1426_v1 = vpop.f32.mrf.mxu3 }
 0x264   : > { %v921_v2 = vpop.f32.mrf.mxu0  ;;  %v1090_v3 = vpop.f32.mrf.mxu1  ;;  %v4308_v61 = vmax.f32 %v4244_v12, %v1257_v0  ;;  %v4309_v62 = vmax.f32 %v4245_v40, %v1426_v1 }
 0x265   : > { %v4322_v17 = vmax.f32 %v4258_v43, %v921_v2  ;;  %v4323_v46 = vmax.f32 %v4259_v44, %v1090_v3  ;;  %v4260_v3 = vmax.f32 %v13856_v24, %v13898_v50 }
 0x26b   : > { %v13932_v4 = vpop.f32.mrf.mxu2  ;;  %v13934_v5 = vpop.f32.mrf.mxu3 }
 0x26c   : > { %v13936_v6 = vpop.f32.mrf.mxu0  ;;  %v13938_v7 = vpop.f32.mrf.mxu1  ;;  %v4324_v40 = vmax.f32 %v4260_v3, %v13932_v4  ;;  %v4292_v3 = vmax.f32 %v13879_v41, %v13921_v59 }
 0x26f   : > { %10697 = vmatmul.msk.bf16.gmra.mxu0 %vm624_vm1, %v13130_v8  ;;  %10729 = vmatmul.msk.bf16.gmra.mxu1 %vm624_vm1, %v13130_v8 }
 0x270   : > { %10761 = vmatmul.msk.bf16.gmra.mxu2 %vm624_vm1, %v13130_v8  ;;  %10793 = vmatmul.msk.bf16.gmra.mxu3 %vm624_vm1, %v13130_v8 }
 0x273   : > { %v13947_v9 = vpop.f32.mrf.mxu2  ;;  %v13949_v10 = vpop.f32.mrf.mxu3 }
 0x274   : > { %v13951_v13 = vpop.f32.mrf.mxu0  ;;  %v13953_v14 = vpop.f32.mrf.mxu1 }
 0x27b   : > { %v13959_v26 = vpop.f32.mrf.mxu2  ;;  %v13961_v27 = vpop.f32.mrf.mxu3 }
 0x27c   : > { %v929_v30 = vpop.f32.mrf.mxu0  ;;  %v1098_v31 = vpop.f32.mrf.mxu1 }
 0x27d   : > { %v4370_v32 = vmax.f32 %v4306_v22, %v929_v30  ;;  %v4371_v35 = vmax.f32 %v4307_v23, %v1098_v31  ;;  %v4261_v30 = vmax.f32 %v13858_v25, %v13900_v51 }
 0x27f   : > { %v4458_v36 = vadd.f32 %v13955_v15, %v4370_v32  ;;  %v4459_v39 = vadd.f32 %v13955_v15, %v4371_v35  ;;  %10698 = vmatmul.msk.bf16.gmra.mxu0 %vm624_vm1, %v13131_v11  ;;  %10730 = vmatmul.msk.bf16.gmra.mxu1 %vm624_vm1, %v13131_v11  ;;  %v13996_v35 = vpop.permute.xlu1 %4450  ;;  %v4325_v43 = vmax.f32 %v4261_v30, %v13934_v5 }
 0x280   : > { %10762 = vmatmul.msk.bf16.gmra.mxu2 %vm624_vm1, %v13131_v11  ;;  %10794 = vmatmul.msk.bf16.gmra.mxu3 %vm624_vm1, %v13131_v11  ;;  %v4293_v30 = vmax.f32 %v13881_v42, %v13923_v60 }
 0x281   : > { %v4522_v45 = vmax.f32 %v4458_v36, 0.0  ;;  %v4523_v54 = vmax.f32 %v4459_v39, 0.0  ;;  %v4274_v36 = vmax.f32 %v13860_v28, %v13902_v52  ;;  %v4275_v39 = vmax.f32 %v13862_v29, %v13904_v53 }
 0x283   : > { %v4586_v47 = vpack.c.bf16 %v4523_v54, %v4522_v45  ;;  %v1267_v8 = vpop.f32.mrf.mxu2  ;;  %v1436_v18 = vpop.f32.mrf.mxu3  ;;  %v4338_v50 = vmax.f32 %v4274_v36, %v13936_v6  ;;  %v4339_v25 = vmax.f32 %v4275_v39, %v13938_v7 }
 0x284   : > { %v4372_v19 = vmax.f32 %v4308_v61, %v1267_v8  ;;  %v4373_v20 = vmax.f32 %v4309_v62, %v1436_v18  ;;  %v931_v48 = vpop.f32.mrf.mxu0  ;;  %v1100_v22 = vpop.f32.mrf.mxu1  ;;  %v13132_v62 = vld [vmem:[%s18575_s1 + $0x38] sm:$0xff]  ;;  %v4290_v18 = vmax.f32 %v13875_v37, %v13917_v57 }
 0x285   : > { %4621 = vst.msk [vmem:[#allocation2] sm:$0xff] %vm13980_vm4, %v4586_v47  ;;  %v4386_v21 = vmax.f32 %v4322_v17, %v931_v48  ;;  %v4387_v49 = vmax.f32 %v4323_v46, %v1100_v22  ;;  %v4276_v17 = vmax.f32 %v13871_v33, %v13913_v55  ;;  %v4277_v46 = vmax.f32 %v13873_v34, %v13915_v56 }
 0x286   : > { %v4460_v0 = vadd.f32 %v13955_v15, %v4372_v19  ;;  %v4461_v1 = vadd.f32 %v13955_v15, %v4373_v20  ;;  %v4291_v19 = vmax.f32 %v13877_v38, %v13919_v58  ;;  %v4354_v56 = vmax.f32 %v4290_v18, %v13951_v13  ;;  %v340_v18 = vld [vmem:[%s13283_s27 + $0xa0] sm:$0x33] }
 0x287   : > { %v4474_v23 = vadd.f32 %v13984_v16, %v4386_v21  ;;  %v4475_v2 = vadd.f32 %v13984_v16, %v4387_v49  ;;  %v4340_v22 = vmax.f32 %v4276_v17, %v13947_v9  ;;  %v4341_v33 = vmax.f32 %v4277_v46, %v13949_v10  ;;  %v14031_v34 = vpop.permute.xlu1 %4455 }
 0x288   : > { %v4524_v31 = vmax.f32 %v4460_v0, 0.0  ;;  %v4525_v32 = vmax.f32 %v4461_v1, 0.0  ;;  %v4355_v21 = vmax.f32 %v4291_v19, %v13953_v14  ;;  %v568_v19 = vunpack.c.l.b16 %v340_v18 }
 0x289   : > { %v4538_v11 = vmax.f32 %v4474_v23, 0.0  ;;  %v4539_v12 = vmax.f32 %v4475_v2, 0.0 }
 0x28a   : > { %v4587_v24 = vpack.c.bf16 %v4525_v32, %v4524_v31 }
 0x28b   : > { %v4594_v51 = vpack.c.bf16 %v4539_v12, %v4538_v11  ;;  %v1269_v44 = vpop.f32.mrf.mxu2  ;;  %v1438_v45 = vpop.f32.mrf.mxu3  ;;  %v4356_v11 = vmax.f32 %v4292_v3, %v13959_v26  ;;  %v4357_v12 = vmax.f32 %v4293_v30, %v13961_v27  ;;  %v13133_v27 = vld [vmem:[%s18575_s1 + $0x40] sm:$0xff] }
 0x28c   : > { %4625 = vst.msk [vmem:[#allocation2 + $0x20] sm:$0xff] %vm13980_vm4, %v4587_v24  ;;  %v4388_v28 = vmax.f32 %v4324_v40, %v1269_v44  ;;  %v4389_v52 = vmax.f32 %v4325_v43, %v1438_v45  ;;  %v934_v29 = vpop.f32.mrf.mxu0  ;;  %v1103_v53 = vpop.f32.mrf.mxu1 }
 0x28d   : > { %4622 = vst.msk [vmem:[#allocation2 + $0x8] sm:$0xff] %vm13980_vm4, %v4594_v51  ;;  %v4402_v4 = vmax.f32 %v4338_v50, %v934_v29  ;;  %v4403_v5 = vmax.f32 %v4339_v25, %v1103_v53 }
 0x28e   : > { %v4476_v54 = vadd.f32 %v13984_v16, %v4388_v28  ;;  %v4477_v6 = vadd.f32 %v13984_v16, %v4389_v52 }
 0x28f   : > { %v4490_v7 = vadd.f32 %v13996_v35, %v4402_v4  ;;  %v4491_v61 = vadd.f32 %v13996_v35, %v4403_v5  ;;  %10699 = vmatmul.msk.bf16.gmra.mxu0 %vm624_vm1, %v13132_v62  ;;  %10731 = vmatmul.msk.bf16.gmra.mxu1 %vm624_vm1, %v13132_v62  ;;  %v341_v4 = vld [vmem:[%s13283_s27 + $0xa8] sm:$0x33] }
 0x290   : > { %v4540_v47 = vmax.f32 %v4476_v54, 0.0  ;;  %v4541_v8 = vmax.f32 %v4477_v6, 0.0  ;;  %10763 = vmatmul.msk.bf16.gmra.mxu2 %vm624_vm1, %v13132_v62  ;;  %10795 = vmatmul.msk.bf16.gmra.mxu3 %vm624_vm1, %v13132_v62  ;;  %v570_v5 = vunpack.c.l.b16 %v341_v4  ;;  %v571_v54 = vunpack.c.h.b16 %v341_v4 }
 0x291   : > { %v4554_v20 = vmax.f32 %v4490_v7, 0.0  ;;  %v4555_v48 = vmax.f32 %v4491_v61, 0.0 }
 0x292   : > { %v4595_v55 = vpack.c.bf16 %v4541_v8, %v4540_v47  ;;  %v602_v6 = vpack.c.b16 %v570_v5, %v570_v5  ;;  %v603_v7 = vpack.c.b16 %v571_v54, %v571_v54 }
 0x293   : > { %v4602_v49 = vpack.c.bf16 %v4555_v48, %v4554_v20  ;;  %v1272_v0 = vpop.f32.mrf.mxu2  ;;  %v1441_v1 = vpop.f32.mrf.mxu3  ;;  %v13134_v20 = vld [vmem:[%s18575_s1 + $0x48] sm:$0xff]  ;;  %v600_v48 = vpack.c.b16 %v568_v19, %v568_v19 }
 0x294   : > { %4626 = vst.msk [vmem:[#allocation2 + $0x28] sm:$0xff] %vm13980_vm4, %v4595_v55  ;;  %v4404_v37 = vmax.f32 %v4340_v22, %v1272_v0  ;;  %v4405_v38 = vmax.f32 %v4341_v33, %v1441_v1  ;;  %v936_v57 = vpop.f32.mrf.mxu0  ;;  %v1105_v58 = vpop.f32.mrf.mxu1  ;;  %v753_v61 = vsel %vm721_vm0, %v602_v6, 0  ;;  %v756_v62 = vsel %vm721_vm0, %v603_v7, 0  ;;  %v13137_v7 = vld [vmem:[%s18575_s1 + $0x60] sm:$0xff] }
 0x295   : > { %4623 = vst.msk [vmem:[#allocation2 + $0x10] sm:$0xff] %vm13980_vm4, %v4602_v49  ;;  %v4418_v9 = vmax.f32 %v4354_v56, %v936_v57  ;;  %v4419_v10 = vmax.f32 %v4355_v21, %v1105_v58  ;;  %2466 = vmatpush.bf16.msra.mxu2 %v753_v61  ;;  %2635 = vmatpush.bf16.msra.mxu3 %v756_v62  ;;  %v569_v22 = vunpack.c.h.b16 %v340_v18  ;;  %v747_v33 = vsel %vm721_vm0, %v600_v48, 0 }
 0x296   : > { %v4492_v23 = vadd.f32 %v13996_v35, %v4404_v37  ;;  %v4493_v13 = vadd.f32 %v13996_v35, %v4405_v38  ;;  %2128 = vmatpush.bf16.msra.mxu0 %v747_v33 }
 0x297   : > { %v4506_v14 = vadd.f32 %v14031_v34, %v4418_v9  ;;  %v4507_v2 = vadd.f32 %v14031_v34, %v4419_v10  ;;  %v601_v55 = vpack.c.b16 %v569_v22, %v569_v22 }
 0x298   : > { %v4556_v31 = vmax.f32 %v4492_v23, 0.0  ;;  %v4557_v32 = vmax.f32 %v4493_v13, 0.0  ;;  %v13135_v23 = vld [vmem:[%s18575_s1 + $0x50] sm:$0xff] }
 0x299   : > { %v4570_v36 = vmax.f32 %v4506_v14, 0.0  ;;  %v4571_v39 = vmax.f32 %v4507_v2, 0.0  ;;  %v750_v1 = vsel %vm721_vm0, %v601_v55, 0 }
 0x29a   : > { %v4603_v40 = vpack.c.bf16 %v4557_v32, %v4556_v31  ;;  %2297 = vmatpush.bf16.msra.mxu1 %v750_v1 }
 0x29b   : > { %v4610_v43 = vpack.c.bf16 %v4571_v39, %v4570_v36  ;;  %v1274_v24 = vpop.f32.mrf.mxu2  ;;  %v1443_v50 = vpop.f32.mrf.mxu3 }
 0x29c   : > { %4627 = vst.msk [vmem:[#allocation2 + $0x30] sm:$0xff] %vm13980_vm4, %v4603_v40  ;;  %v4420_v25 = vmax.f32 %v4356_v11, %v1274_v24  ;;  %v4421_v41 = vmax.f32 %v4357_v12, %v1443_v50  ;;  %v14051_v59 = vpop.f32.mrf.mxu0  ;;  %v14053_v42 = vpop.f32.mrf.mxu1 }
 0x29d   : > { %4624 = vst.msk [vmem:[#allocation2 + $0x18] sm:$0xff] %vm13980_vm4, %v4610_v43 }
 0x29e   : > { %v4508_v60 = vadd.f32 %v14031_v34, %v4420_v25  ;;  %v4509_v26 = vadd.f32 %v14031_v34, %v4421_v41  ;;  %v13136_v41 = vld [vmem:[%s18575_s1 + $0x58] sm:$0xff] }
 0x29f   : > { %10700 = vmatmul.msk.bf16.gmra.mxu0 %vm624_vm1, %v13133_v27  ;;  %10732 = vmatmul.msk.bf16.gmra.mxu1 %vm624_vm1, %v13133_v27 }
 0x2a0   : > { %v4572_v51 = vmax.f32 %v4508_v60, 0.0  ;;  %v4573_v44 = vmax.f32 %v4509_v26, 0.0  ;;  %10764 = vmatmul.msk.bf16.gmra.mxu2 %vm624_vm1, %v13133_v27  ;;  %10796 = vmatmul.msk.bf16.gmra.mxu3 %vm624_vm1, %v13133_v27 }
 0x2a2   : > { %v4611_v45 = vpack.c.bf16 %v4573_v44, %v4572_v51 }
 0x2a3   : > { %v14066_v28 = vpop.f32.mrf.mxu2  ;;  %v14068_v52 = vpop.f32.mrf.mxu3 }
 0x2a4   : > { %4628 = vst.msk [vmem:[#allocation2 + $0x38] sm:$0xff] %vm13980_vm4, %v4611_v45  ;;  %v14072_v29 = vpop.f32.mrf.mxu0  ;;  %v14074_v53 = vpop.f32.mrf.mxu1 }
 0x2ab   : > { %v14079_v17 = vpop.f32.mrf.mxu2  ;;  %v14081_v46 = vpop.f32.mrf.mxu3 }
 0x2ac   : > { %v14083_v47 = vpop.f32.mrf.mxu0  ;;  %v14085_v8 = vpop.f32.mrf.mxu1 }
 0x2af   : > { %10701 = vmatmul.msk.bf16.gmra.mxu0 %vm624_vm1, %v13134_v20  ;;  %10733 = vmatmul.msk.bf16.gmra.mxu1 %vm624_vm1, %v13134_v20 }
 0x2b0   : > { %10765 = vmatmul.msk.bf16.gmra.mxu2 %vm624_vm1, %v13134_v20  ;;  %10797 = vmatmul.msk.bf16.gmra.mxu3 %vm624_vm1, %v13134_v20 }
 0x2b3   : > { %v14096_v56 = vpop.f32.mrf.mxu2  ;;  %v14098_v21 = vpop.f32.mrf.mxu3 }
 0x2b4   : > { %v14100_v49 = vpop.f32.mrf.mxu0  ;;  %v14102_v0 = vpop.f32.mrf.mxu1 }
 0x2bb   : > { %v14105_v37 = vpop.f32.mrf.mxu2  ;;  %v14107_v38 = vpop.f32.mrf.mxu3 }
 0x2bc   : > { %v1465_v57 = vpop.f32.mrf.mxu0  ;;  %v1634_v58 = vpop.f32.mrf.mxu1 }
 0x2bd   : > { %v3478_v9 = vmax.f32 %v14051_v59, %v1465_v57  ;;  %v3479_v10 = vmax.f32 %v14053_v42, %v1634_v58 }
 0x2bf   : > { %10702 = vmatmul.msk.bf16.gmra.mxu0 %vm624_vm1, %v13135_v23  ;;  %10734 = vmatmul.msk.bf16.gmra.mxu1 %vm624_vm1, %v13135_v23 }
 0x2c0   : > { %10766 = vmatmul.msk.bf16.gmra.mxu2 %vm624_vm1, %v13135_v23  ;;  %10798 = vmatmul.msk.bf16.gmra.mxu3 %vm624_vm1, %v13135_v23 }
 0x2c3   : > { %v1803_v13 = vpop.f32.mrf.mxu2  ;;  %v1972_v14 = vpop.f32.mrf.mxu3 }
 0x2c4   : > { %v3480_v2 = vmax.f32 %v14066_v28, %v1803_v13  ;;  %v3481_v3 = vmax.f32 %v14068_v52, %v1972_v14  ;;  %v1467_v30 = vpop.f32.mrf.mxu0  ;;  %v1636_v31 = vpop.f32.mrf.mxu1 }
 0x2c5   : > { %v3494_v32 = vmax.f32 %v14072_v29, %v1467_v30  ;;  %v3495_v36 = vmax.f32 %v14074_v53, %v1636_v31 }
 0x2cb   : > { %v1805_v39 = vpop.f32.mrf.mxu2  ;;  %v1974_v11 = vpop.f32.mrf.mxu3 }
 0x2cc   : > { %v3496_v12 = vmax.f32 %v14079_v17, %v1805_v39  ;;  %v3497_v40 = vmax.f32 %v14081_v46, %v1974_v11  ;;  %v1470_v43 = vpop.f32.mrf.mxu0  ;;  %v1639_v24 = vpop.f32.mrf.mxu1  ;;  %v13139_v39 = vld [vmem:[%s18575_s1 + $0x70] sm:$0xff] }
 0x2cd   : > { %v3510_v50 = vmax.f32 %v14083_v47, %v1470_v43  ;;  %v3511_v25 = vmax.f32 %v14085_v8, %v1639_v24 }
 0x2cf   : > { %10703 = vmatmul.msk.bf16.gmra.mxu0 %vm624_vm1, %v13136_v41  ;;  %10735 = vmatmul.msk.bf16.gmra.mxu1 %vm624_vm1, %v13136_v41 }
 0x2d0   : > { %10767 = vmatmul.msk.bf16.gmra.mxu2 %vm624_vm1, %v13136_v41  ;;  %10799 = vmatmul.msk.bf16.gmra.mxu3 %vm624_vm1, %v13136_v41 }
 0x2d3   : > { %v1808_v59 = vpop.f32.mrf.mxu2  ;;  %v1977_v42 = vpop.f32.mrf.mxu3 }
 0x2d4   : > { %v3512_v60 = vmax.f32 %v14096_v56, %v1808_v59  ;;  %v3513_v26 = vmax.f32 %v14098_v21, %v1977_v42  ;;  %v1472_v27 = vpop.f32.mrf.mxu0  ;;  %v1641_v51 = vpop.f32.mrf.mxu1 }
 0x2d5   : > { %v3526_v44 = vmax.f32 %v14100_v49, %v1472_v27  ;;  %v3527_v45 = vmax.f32 %v14102_v0, %v1641_v51  ;;  %v13138_v0 = vld [vmem:[%s18575_s1 + $0x68] sm:$0xff] }
 0x2db   : > { %v1810_v28 = vpop.f32.mrf.mxu2  ;;  %v1979_v52 = vpop.f32.mrf.mxu3 }
 0x2dc   : > { %v3528_v29 = vmax.f32 %v14105_v37, %v1810_v28  ;;  %v3529_v53 = vmax.f32 %v14107_v38, %v1979_v52  ;;  %v1475_v4 = vpop.f32.mrf.mxu0  ;;  %v1644_v5 = vpop.f32.mrf.mxu1  ;;  %v13140_v28 = vld [vmem:[%s18575_s1 + $0x78] sm:$0xff] }
 0x2dd   : > { %v14139_v54 = vmax.f32 %v3478_v9, %v1475_v4  ;;  %v14141_v6 = vmax.f32 %v3479_v10, %v1644_v5 }
 0x2df   : > { %10704 = vmatmul.msk.bf16.gmra.mxu0 %vm624_vm1, %v13137_v7  ;;  %10736 = vmatmul.msk.bf16.gmra.mxu1 %vm624_vm1, %v13137_v7 }
 0x2e0   : > { %10768 = vmatmul.msk.bf16.gmra.mxu2 %vm624_vm1, %v13137_v7  ;;  %10800 = vmatmul.msk.bf16.gmra.mxu3 %vm624_vm1, %v13137_v7 }
 0x2e3   : > { %v1813_v61 = vpop.f32.mrf.mxu2  ;;  %v1982_v62 = vpop.f32.mrf.mxu3 }
 0x2e4   : > { %v14150_v17 = vmax.f32 %v3480_v2, %v1813_v61  ;;  %v14152_v46 = vmax.f32 %v3481_v3, %v1982_v62  ;;  %v1477_v47 = vpop.f32.mrf.mxu0  ;;  %v1646_v8 = vpop.f32.mrf.mxu1 }
 0x2e5   : > { %v14154_v18 = vmax.f32 %v3494_v32, %v1477_v47  ;;  %v14156_v19 = vmax.f32 %v3495_v36, %v1646_v8 }
 0x2eb   : > { %v1815_v20 = vpop.f32.mrf.mxu2  ;;  %v1984_v48 = vpop.f32.mrf.mxu3 }
 0x2ec   : > { %v14158_v22 = vmax.f32 %v3496_v12, %v1815_v20  ;;  %v14160_v33 = vmax.f32 %v3497_v40, %v1984_v48  ;;  %v1480_v55 = vpop.f32.mrf.mxu0  ;;  %v1649_v56 = vpop.f32.mrf.mxu1  ;;  %v13141_v20 = vld [vmem:[%s18575_s1 + $0x80] sm:$0xff] }
 0x2ed   : > { %v14162_v21 = vmax.f32 %v3510_v50, %v1480_v55  ;;  %v14164_v49 = vmax.f32 %v3511_v25, %v1649_v56 }
 0x2ef   : > { %10705 = vmatmul.msk.bf16.gmra.mxu0 %vm624_vm1, %v13138_v0  ;;  %10737 = vmatmul.msk.bf16.gmra.mxu1 %vm624_vm1, %v13138_v0 }
 0x2f0   : > { %10769 = vmatmul.msk.bf16.gmra.mxu2 %vm624_vm1, %v13138_v0  ;;  %10801 = vmatmul.msk.bf16.gmra.mxu3 %vm624_vm1, %v13138_v0 }
 0x2f3   : > { %v1818_v1 = vpop.f32.mrf.mxu2  ;;  %v1987_v37 = vpop.f32.mrf.mxu3 }
 0x2f4   : > { %v14173_v38 = vmax.f32 %v3512_v60, %v1818_v1  ;;  %v14175_v57 = vmax.f32 %v3513_v26, %v1987_v37  ;;  %v1482_v58 = vpop.f32.mrf.mxu0  ;;  %v1651_v9 = vpop.f32.mrf.mxu1 }
 0x2f5   : > { %v14177_v10 = vmax.f32 %v3526_v44, %v1482_v58  ;;  %v14179_v23 = vmax.f32 %v3527_v45, %v1651_v9 }
 0x2fb   : > { %v1820_v13 = vpop.f32.mrf.mxu2  ;;  %v1989_v14 = vpop.f32.mrf.mxu3 }
 0x2fc   : > { %v14181_v2 = vmax.f32 %v3528_v29, %v1820_v13  ;;  %v14183_v3 = vmax.f32 %v3529_v53, %v1989_v14  ;;  %v1485_v30 = vpop.f32.mrf.mxu0  ;;  %v1654_v31 = vpop.f32.mrf.mxu1  ;;  %v13142_v13 = vld [vmem:[%s18575_s1 + $0x88] sm:$0xff] }
 0x2fd   : > { %v3606_v32 = vmax.f32 %v14139_v54, %v1485_v30  ;;  %v3607_v36 = vmax.f32 %v14141_v6, %v1654_v31 }
 0x2ff   : > { %10706 = vmatmul.msk.bf16.gmra.mxu0 %vm624_vm1, %v13139_v39  ;;  %10738 = vmatmul.msk.bf16.gmra.mxu1 %vm624_vm1, %v13139_v39 }
 0x300   : > { %10770 = vmatmul.msk.bf16.gmra.mxu2 %vm624_vm1, %v13139_v39  ;;  %10802 = vmatmul.msk.bf16.gmra.mxu3 %vm624_vm1, %v13139_v39 }
 0x303   : > { %v1823_v11 = vpop.f32.mrf.mxu2  ;;  %v1992_v12 = vpop.f32.mrf.mxu3 }
 0x304   : > { %v3608_v40 = vmax.f32 %v14150_v17, %v1823_v11  ;;  %v3609_v43 = vmax.f32 %v14152_v46, %v1992_v12  ;;  %v1487_v24 = vpop.f32.mrf.mxu0  ;;  %v1656_v50 = vpop.f32.mrf.mxu1 }
 0x305   : > { %v3622_v25 = vmax.f32 %v14154_v18, %v1487_v24  ;;  %v3623_v41 = vmax.f32 %v14156_v19, %v1656_v50 }
 0x30b   : > { %v1825_v59 = vpop.f32.mrf.mxu2  ;;  %v1994_v42 = vpop.f32.mrf.mxu3 }
 0x30c   : > { %v3624_v60 = vmax.f32 %v14158_v22, %v1825_v59  ;;  %v3625_v26 = vmax.f32 %v14160_v33, %v1994_v42  ;;  %v1490_v27 = vpop.f32.mrf.mxu0  ;;  %v1659_v51 = vpop.f32.mrf.mxu1  ;;  %v13143_v59 = vld [vmem:[%s18575_s1 + $0x90] sm:$0xff] }
 0x30d   : > { %v3638_v44 = vmax.f32 %v14162_v21, %v1490_v27  ;;  %v3639_v45 = vmax.f32 %v14164_v49, %v1659_v51 }
 0x30f   : > { %10707 = vmatmul.msk.bf16.gmra.mxu0 %vm624_vm1, %v13140_v28  ;;  %10739 = vmatmul.msk.bf16.gmra.mxu1 %vm624_vm1, %v13140_v28 }
 0x310   : > { %10771 = vmatmul.msk.bf16.gmra.mxu2 %vm624_vm1, %v13140_v28  ;;  %10803 = vmatmul.msk.bf16.gmra.mxu3 %vm624_vm1, %v13140_v28 }
 0x313   : > { %v1828_v52 = vpop.f32.mrf.mxu2  ;;  %v1997_v29 = vpop.f32.mrf.mxu3 }
 0x314   : > { %v3640_v53 = vmax.f32 %v14173_v38, %v1828_v52  ;;  %v3641_v4 = vmax.f32 %v14175_v57, %v1997_v29  ;;  %v1492_v5 = vpop.f32.mrf.mxu0  ;;  %v1661_v54 = vpop.f32.mrf.mxu1 }
 0x315   : > { %v3654_v6 = vmax.f32 %v14177_v10, %v1492_v5  ;;  %v3655_v7 = vmax.f32 %v14179_v23, %v1661_v54 }
 0x31b   : > { %v1830_v61 = vpop.f32.mrf.mxu2  ;;  %v1999_v62 = vpop.f32.mrf.mxu3 }
 0x31c   : > { %v3656_v17 = vmax.f32 %v14181_v2, %v1830_v61  ;;  %v3657_v46 = vmax.f32 %v14183_v3, %v1999_v62  ;;  %v1495_v47 = vpop.f32.mrf.mxu0  ;;  %v1664_v8 = vpop.f32.mrf.mxu1  ;;  %v13144_v61 = vld [vmem:[%s18575_s1 + $0x98] sm:$0xff] }
 0x31d   : > { %v14215_v18 = vmax.f32 %v3606_v32, %v1495_v47  ;;  %v14217_v19 = vmax.f32 %v3607_v36, %v1664_v8 }
 0x31f   : > { %10708 = vmatmul.msk.bf16.gmra.mxu0 %vm624_vm1, %v13141_v20  ;;  %10740 = vmatmul.msk.bf16.gmra.mxu1 %vm624_vm1, %v13141_v20 }
 0x320   : > { %10772 = vmatmul.msk.bf16.gmra.mxu2 %vm624_vm1, %v13141_v20  ;;  %10804 = vmatmul.msk.bf16.gmra.mxu3 %vm624_vm1, %v13141_v20 }
 0x323   : > { %v1833_v48 = vpop.f32.mrf.mxu2  ;;  %v2002_v22 = vpop.f32.mrf.mxu3 }
 0x324   : > { %v14226_v33 = vmax.f32 %v3608_v40, %v1833_v48  ;;  %v14228_v55 = vmax.f32 %v3609_v43, %v2002_v22  ;;  %v1497_v56 = vpop.f32.mrf.mxu0  ;;  %v1666_v21 = vpop.f32.mrf.mxu1 }
 0x325   : > { %v14230_v49 = vmax.f32 %v3622_v25, %v1497_v56  ;;  %v14232_v0 = vmax.f32 %v3623_v41, %v1666_v21 }
 0x32b   : > { %v1835_v1 = vpop.f32.mrf.mxu2  ;;  %v2004_v37 = vpop.f32.mrf.mxu3 }
 0x32c   : > { %v14234_v38 = vmax.f32 %v3624_v60, %v1835_v1  ;;  %v14236_v57 = vmax.f32 %v3625_v26, %v2004_v37  ;;  %v1500_v58 = vpop.f32.mrf.mxu0  ;;  %v1669_v9 = vpop.f32.mrf.mxu1  ;;  %v13145_v1 = vld [vmem:[%s18575_s1 + $0xa0] sm:$0xff] }
 0x32d   : > { %v14238_v10 = vmax.f32 %v3638_v44, %v1500_v58  ;;  %v14240_v23 = vmax.f32 %v3639_v45, %v1669_v9 }
 0x32f   : > { %10709 = vmatmul.msk.bf16.gmra.mxu0 %vm624_vm1, %v13142_v13  ;;  %10741 = vmatmul.msk.bf16.gmra.mxu1 %vm624_vm1, %v13142_v13 }
 0x330   : > { %10773 = vmatmul.msk.bf16.gmra.mxu2 %vm624_vm1, %v13142_v13  ;;  %10805 = vmatmul.msk.bf16.gmra.mxu3 %vm624_vm1, %v13142_v13 }
 0x333   : > { %v1838_v14 = vpop.f32.mrf.mxu2  ;;  %v2007_v2 = vpop.f32.mrf.mxu3 }
 0x334   : > { %v14249_v3 = vmax.f32 %v3640_v53, %v1838_v14  ;;  %v14251_v30 = vmax.f32 %v3641_v4, %v2007_v2  ;;  %v1502_v31 = vpop.f32.mrf.mxu0  ;;  %v1671_v32 = vpop.f32.mrf.mxu1 }
 0x335   : > { %v14253_v36 = vmax.f32 %v3654_v6, %v1502_v31  ;;  %v14255_v39 = vmax.f32 %v3655_v7, %v1671_v32 }
 0x33b   : > { %v1840_v11 = vpop.f32.mrf.mxu2  ;;  %v2009_v12 = vpop.f32.mrf.mxu3 }
 0x33c   : > { %v14257_v40 = vmax.f32 %v3656_v17, %v1840_v11  ;;  %v14259_v43 = vmax.f32 %v3657_v46, %v2009_v12  ;;  %v1505_v24 = vpop.f32.mrf.mxu0  ;;  %v1674_v50 = vpop.f32.mrf.mxu1  ;;  %v13146_v11 = vld [vmem:[%s18575_s1 + $0xa8] sm:$0xff] }
 0x33d   : > { %v3734_v25 = vmax.f32 %v14215_v18, %v1505_v24  ;;  %v3735_v41 = vmax.f32 %v14217_v19, %v1674_v50 }
 0x33f   : > { %10710 = vmatmul.msk.bf16.gmra.mxu0 %vm624_vm1, %v13143_v59  ;;  %10742 = vmatmul.msk.bf16.gmra.mxu1 %vm624_vm1, %v13143_v59 }
 0x340   : > { %10774 = vmatmul.msk.bf16.gmra.mxu2 %vm624_vm1, %v13143_v59  ;;  %10806 = vmatmul.msk.bf16.gmra.mxu3 %vm624_vm1, %v13143_v59 }
 0x343   : > { %v1843_v42 = vpop.f32.mrf.mxu2  ;;  %v2012_v60 = vpop.f32.mrf.mxu3 }
 0x344   : > { %v3736_v26 = vmax.f32 %v14226_v33, %v1843_v42  ;;  %v3737_v27 = vmax.f32 %v14228_v55, %v2012_v60  ;;  %v1507_v51 = vpop.f32.mrf.mxu0  ;;  %v1676_v44 = vpop.f32.mrf.mxu1 }
 0x345   : > { %v3750_v45 = vmax.f32 %v14230_v49, %v1507_v51  ;;  %v3751_v28 = vmax.f32 %v14232_v0, %v1676_v44 }
 0x34b   : > { %v1845_v52 = vpop.f32.mrf.mxu2  ;;  %v2014_v29 = vpop.f32.mrf.mxu3 }
 0x34c   : > { %v3752_v53 = vmax.f32 %v14234_v38, %v1845_v52  ;;  %v3753_v4 = vmax.f32 %v14236_v57, %v2014_v29  ;;  %v1510_v5 = vpop.f32.mrf.mxu0  ;;  %v1679_v54 = vpop.f32.mrf.mxu1  ;;  %v13147_v52 = vld [vmem:[%s18575_s1 + $0xb0] sm:$0xff] }
 0x34d   : > { %v3766_v6 = vmax.f32 %v14238_v10, %v1510_v5  ;;  %v3767_v7 = vmax.f32 %v14240_v23, %v1679_v54 }
 0x34f   : > { %10711 = vmatmul.msk.bf16.gmra.mxu0 %vm624_vm1, %v13144_v61  ;;  %10743 = vmatmul.msk.bf16.gmra.mxu1 %vm624_vm1, %v13144_v61 }
 0x350   : > { %10775 = vmatmul.msk.bf16.gmra.mxu2 %vm624_vm1, %v13144_v61  ;;  %10807 = vmatmul.msk.bf16.gmra.mxu3 %vm624_vm1, %v13144_v61 }
 0x353   : > { %v1848_v62 = vpop.f32.mrf.mxu2  ;;  %v2017_v17 = vpop.f32.mrf.mxu3 }
 0x354   : > { %v3768_v46 = vmax.f32 %v14249_v3, %v1848_v62  ;;  %v3769_v47 = vmax.f32 %v14251_v30, %v2017_v17  ;;  %v1512_v8 = vpop.f32.mrf.mxu0  ;;  %v1681_v18 = vpop.f32.mrf.mxu1 }
 0x355   : > { %v3782_v19 = vmax.f32 %v14253_v36, %v1512_v8  ;;  %v3783_v20 = vmax.f32 %v14255_v39, %v1681_v18 }
 0x35b   : > { %v1850_v48 = vpop.f32.mrf.mxu2  ;;  %v2019_v22 = vpop.f32.mrf.mxu3 }
 0x35c   : > { %v3784_v33 = vmax.f32 %v14257_v40, %v1850_v48  ;;  %v3785_v55 = vmax.f32 %v14259_v43, %v2019_v22  ;;  %v1515_v56 = vpop.f32.mrf.mxu0  ;;  %v1684_v21 = vpop.f32.mrf.mxu1  ;;  %v13148_v48 = vld [vmem:[%s18575_s1 + $0xb8] sm:$0xff] }
 0x35d   : > { %v14291_v49 = vmax.f32 %v3734_v25, %v1515_v56  ;;  %v14293_v0 = vmax.f32 %v3735_v41, %v1684_v21 }
 0x35f   : > { %10712 = vmatmul.msk.bf16.gmra.mxu0 %vm624_vm1, %v13145_v1  ;;  %10744 = vmatmul.msk.bf16.gmra.mxu1 %vm624_vm1, %v13145_v1 }
 0x360   : > { %10776 = vmatmul.msk.bf16.gmra.mxu2 %vm624_vm1, %v13145_v1  ;;  %10808 = vmatmul.msk.bf16.gmra.mxu3 %vm624_vm1, %v13145_v1 }
 0x363   : > { %v1853_v37 = vpop.f32.mrf.mxu2  ;;  %v2022_v38 = vpop.f32.mrf.mxu3 }
 0x364   : > { %v14302_v57 = vmax.f32 %v3736_v26, %v1853_v37  ;;  %v14304_v58 = vmax.f32 %v3737_v27, %v2022_v38  ;;  %v1517_v9 = vpop.f32.mrf.mxu0  ;;  %v1686_v10 = vpop.f32.mrf.mxu1 }
 0x365   : > { %v14306_v23 = vmax.f32 %v3750_v45, %v1517_v9  ;;  %v14308_v13 = vmax.f32 %v3751_v28, %v1686_v10 }
 0x36b   : > { %v1855_v14 = vpop.f32.mrf.mxu2  ;;  %v2024_v2 = vpop.f32.mrf.mxu3 }
 0x36c   : > { %v14310_v3 = vmax.f32 %v3752_v53, %v1855_v14  ;;  %v14312_v30 = vmax.f32 %v3753_v4, %v2024_v2  ;;  %v1520_v31 = vpop.f32.mrf.mxu0  ;;  %v1689_v32 = vpop.f32.mrf.mxu1  ;;  %v13149_v14 = vld [vmem:[%s18575_s1 + $0xc0] sm:$0xff] }
 0x36d   : > { %v14314_v36 = vmax.f32 %v3766_v6, %v1520_v31  ;;  %v14316_v39 = vmax.f32 %v3767_v7, %v1689_v32 }
 0x36f   : > { %10713 = vmatmul.msk.bf16.gmra.mxu0 %vm624_vm1, %v13146_v11  ;;  %10745 = vmatmul.msk.bf16.gmra.mxu1 %vm624_vm1, %v13146_v11 }
 0x370   : > { %10777 = vmatmul.msk.bf16.gmra.mxu2 %vm624_vm1, %v13146_v11  ;;  %10809 = vmatmul.msk.bf16.gmra.mxu3 %vm624_vm1, %v13146_v11 }
 0x373   : > { %v1858_v12 = vpop.f32.mrf.mxu2  ;;  %v2027_v40 = vpop.f32.mrf.mxu3 }
 0x374   : > { %v14325_v43 = vmax.f32 %v3768_v46, %v1858_v12  ;;  %v14327_v24 = vmax.f32 %v3769_v47, %v2027_v40  ;;  %v1522_v50 = vpop.f32.mrf.mxu0  ;;  %v1691_v25 = vpop.f32.mrf.mxu1  ;;  %v10542_v12 = vld [vmem:[%s13283_s27 + $0x28] sm:$0xf] }
 0x375   : > { %v14329_v41 = vmax.f32 %v3782_v19, %v1522_v50  ;;  %v14331_v59 = vmax.f32 %v3783_v20, %v1691_v25  ;;  %v12767_v40 = vld [vmem:[%s13283_s27 + $0x64] sm:$0xf0]  ;;  %v10544_v50 = vld [vmem:[%s13283_s27 + $0x68] sm:$0xf0] }
 0x37b   : > { %v1860_v42 = vpop.f32.mrf.mxu2  ;;  %v2029_v60 = vpop.f32.mrf.mxu3 }
 0x37c   : > { %v14333_v26 = vmax.f32 %v3784_v33, %v1860_v42  ;;  %v14335_v27 = vmax.f32 %v3785_v55, %v2029_v60  ;;  %v1525_v51 = vpop.f32.mrf.mxu0  ;;  %v1694_v44 = vpop.f32.mrf.mxu1 }
 0x37d   : > { %v3862_v45 = vmax.f32 %v14291_v49, %v1525_v51  ;;  %v3863_v28 = vmax.f32 %v14293_v0, %v1694_v44 }
 0x37f   : > { %10714 = vmatmul.msk.bf16.gmra.mxu0 %vm624_vm1, %v13147_v52  ;;  %10746 = vmatmul.msk.bf16.gmra.mxu1 %vm624_vm1, %v13147_v52 }
 0x380   : > { %10778 = vmatmul.msk.bf16.gmra.mxu2 %vm624_vm1, %v13147_v52  ;;  %10810 = vmatmul.msk.bf16.gmra.mxu3 %vm624_vm1, %v13147_v52 }
 0x383   : > { %v1863_v29 = vpop.f32.mrf.mxu2  ;;  %v2032_v53 = vpop.f32.mrf.mxu3 }
 0x384   : > { %v3864_v4 = vmax.f32 %v14302_v57, %v1863_v29  ;;  %v3865_v5 = vmax.f32 %v14304_v58, %v2032_v53  ;;  %v1527_v54 = vpop.f32.mrf.mxu0  ;;  %v1696_v6 = vpop.f32.mrf.mxu1  ;;  %v13150_v29 = vld [vmem:[%s18575_s1 + $0xc8] sm:$0xff]  ;;  %v12758_v53 = vld [vmem:[%s13283_s27 + $0x24] sm:$0xf] }
 0x385   : > { %v3878_v7 = vmax.f32 %v14306_v23, %v1527_v54  ;;  %v3879_v61 = vmax.f32 %v14308_v13, %v1696_v6 }
 0x38b   : > { %v1865_v62 = vpop.f32.mrf.mxu2  ;;  %v2034_v17 = vpop.f32.mrf.mxu3 }
 0x38c   : > { %v3880_v46 = vmax.f32 %v14310_v3, %v1865_v62  ;;  %v3881_v47 = vmax.f32 %v14312_v30, %v2034_v17  ;;  %v1530_v8 = vpop.f32.mrf.mxu0  ;;  %v1699_v18 = vpop.f32.mrf.mxu1 }
 0x38d   : > { %v3894_v19 = vmax.f32 %v14314_v36, %v1530_v8  ;;  %v3895_v20 = vmax.f32 %v14316_v39, %v1699_v18 }
 0x38f   : > { %10715 = vmatmul.msk.bf16.gmra.mxu0 %vm624_vm1, %v13148_v48  ;;  %10747 = vmatmul.msk.bf16.gmra.mxu1 %vm624_vm1, %v13148_v48 }
 0x390   : > { %10779 = vmatmul.msk.bf16.gmra.mxu2 %vm624_vm1, %v13148_v48  ;;  %10811 = vmatmul.msk.bf16.gmra.mxu3 %vm624_vm1, %v13148_v48 }
 0x393   : > { %v1868_v22 = vpop.f32.mrf.mxu2  ;;  %v2037_v33 = vpop.f32.mrf.mxu3 }
 0x394   : > { %v3896_v55 = vmax.f32 %v14325_v43, %v1868_v22  ;;  %v3897_v56 = vmax.f32 %v14327_v24, %v2037_v33  ;;  %v1532_v21 = vpop.f32.mrf.mxu0  ;;  %v1701_v49 = vpop.f32.mrf.mxu1  ;;  %v12759_v43 = vld [vmem:[%s13283_s27 + $0x2c] sm:$0xf]  ;;  %v10543_v24 = vor.u32 %v12767_v40, %v10542_v12 }
 0x395   : > { %v3910_v0 = vmax.f32 %v14329_v41, %v1532_v21  ;;  %v3911_v1 = vmax.f32 %v14331_v59, %v1701_v49  ;;  %v10547_v25 = vor.u32 %v12759_v43, %v10544_v50 }
 0x396   : > { %2467 = vmatpush.bf16.msra.mxu2 %v10543_v24 }
 0x397   : > { %2636 = vmatpush.bf16.msra.mxu3 %v10547_v25 }
 0x39b   : > { %v1870_v37 = vpop.f32.mrf.mxu2  ;;  %v2039_v38 = vpop.f32.mrf.mxu3 }
 0x39c   : > { %v3912_v57 = vmax.f32 %v14333_v26, %v1870_v37  ;;  %v3913_v58 = vmax.f32 %v14335_v27, %v2039_v38  ;;  %v1535_v9 = vpop.f32.mrf.mxu0  ;;  %v1704_v10 = vpop.f32.mrf.mxu1 }
 0x39d   : > { %v14367_v23 = vmax.f32 %v3862_v45, %v1535_v9  ;;  %v14369_v13 = vmax.f32 %v3863_v28, %v1704_v10  ;;  %v10534_v45 = vld [vmem:[%s13283_s27 + $0x20] sm:$0xf] }
 0x39e   : > { %v12766_v28 = vld [vmem:[%s13283_s27 + $0x5c] sm:$0xf0] }
 0x39f   : > { %10716 = vmatmul.msk.bf16.gmra.mxu0 %vm624_vm1, %v13149_v14  ;;  %10748 = vmatmul.msk.bf16.gmra.mxu1 %vm624_vm1, %v13149_v14  ;;  %v10535_v52 = vor.u32 %v12766_v28, %v10534_v45 }
 0x3a0   : > { %10780 = vmatmul.msk.bf16.gmra.mxu2 %vm624_vm1, %v13149_v14  ;;  %10812 = vmatmul.msk.bf16.gmra.mxu3 %vm624_vm1, %v13149_v14 }
 0x3a1   : > { %2129 = vmatpush.bf16.msra.mxu0 %v10535_v52 }
 0x3a3   : > { %v1873_v2 = vpop.f32.mrf.mxu2  ;;  %v2042_v3 = vpop.f32.mrf.mxu3 }
 0x3a4   : > { %v14378_v30 = vmax.f32 %v3864_v4, %v1873_v2  ;;  %v14380_v31 = vmax.f32 %v3865_v5, %v2042_v3  ;;  %v1537_v32 = vpop.f32.mrf.mxu0  ;;  %v1706_v36 = vpop.f32.mrf.mxu1  ;;  %v10536_v4 = vld [vmem:[%s13283_s27 + $0x60] sm:$0xf0] }
 0x3a5   : > { %v14382_v39 = vmax.f32 %v3878_v7, %v1537_v32  ;;  %v14384_v11 = vmax.f32 %v3879_v61, %v1706_v36  ;;  %v10539_v5 = vor.u32 %v12758_v53, %v10536_v4 }
 0x3a7   : > { %2298 = vmatpush.bf16.msra.mxu1 %v10539_v5 }
 0x3ab   : > { %v1875_v41 = vpop.f32.mrf.mxu2  ;;  %v2044_v59 = vpop.f32.mrf.mxu3 }
 0x3ac   : > { %v14390_v42 = vmax.f32 %v3880_v46, %v1875_v41  ;;  %v14392_v60 = vmax.f32 %v3881_v47, %v2044_v59  ;;  %v1540_v26 = vpop.f32.mrf.mxu0  ;;  %v1709_v27 = vpop.f32.mrf.mxu1 }
 0x3ad   : > { %v14394_v51 = vmax.f32 %v3894_v19, %v1540_v26  ;;  %v14396_v44 = vmax.f32 %v3895_v20, %v1709_v27 }
 0x3af   : > { %10717 = vmatmul.msk.bf16.gmra.mxu0 %vm624_vm1, %v13150_v29  ;;  %10749 = vmatmul.msk.bf16.gmra.mxu1 %vm624_vm1, %v13150_v29 }
 0x3b0   : > { %10781 = vmatmul.msk.bf16.gmra.mxu2 %vm624_vm1, %v13150_v29  ;;  %10813 = vmatmul.msk.bf16.gmra.mxu3 %vm624_vm1, %v13150_v29 }
 0x3b3   : > { %v1878_v54 = vpop.f32.mrf.mxu2  ;;  %v2047_v6 = vpop.f32.mrf.mxu3 }
 0x3b4   : > { %v14409_v7 = vmax.f32 %v3896_v55, %v1878_v54  ;;  %v14411_v61 = vmax.f32 %v3897_v56, %v2047_v6  ;;  %v1542_v62 = vpop.f32.mrf.mxu0  ;;  %v1711_v17 = vpop.f32.mrf.mxu1  ;;  %v13151_v56 = vld [vmem:[%s18575_s1 + $0xd0] sm:$0xff] }
 0x3b5   : > { %v14413_v46 = vmax.f32 %v3910_v0, %v1542_v62  ;;  %v14415_v47 = vmax.f32 %v3911_v1, %v1711_v17 }
 0x3bb   : > { %v1880_v8 = vpop.f32.mrf.mxu2  ;;  %v2049_v18 = vpop.f32.mrf.mxu3 }
 0x3bc   : > { %v14417_v19 = vmax.f32 %v3912_v57, %v1880_v8  ;;  %v14419_v20 = vmax.f32 %v3913_v58, %v2049_v18  ;;  %v1545_v48 = vpop.f32.mrf.mxu0  ;;  %v1714_v22 = vpop.f32.mrf.mxu1  ;;  %v13154_v8 = vld [vmem:[%s18575_s1 + $0xe8] sm:$0xff] }
 0x3bd   : > { %v3990_v33 = vmax.f32 %v14367_v23, %v1545_v48  ;;  %v3991_v55 = vmax.f32 %v14369_v13, %v1714_v22 }
 0x3bf   : > { %10718 = vmatmul.msk.bf16.gmra.mxu0 %vm624_vm1, %v13151_v56  ;;  %10750 = vmatmul.msk.bf16.gmra.mxu1 %vm624_vm1, %v13151_v56 }
 0x3c0   : > { %10782 = vmatmul.msk.bf16.gmra.mxu2 %vm624_vm1, %v13151_v56  ;;  %10814 = vmatmul.msk.bf16.gmra.mxu3 %vm624_vm1, %v13151_v56 }
 0x3c3   : > { %v1883_v21 = vpop.f32.mrf.mxu2  ;;  %v2052_v49 = vpop.f32.mrf.mxu3 }
 0x3c4   : > { %v3992_v0 = vmax.f32 %v14378_v30, %v1883_v21  ;;  %v3993_v1 = vmax.f32 %v14380_v31, %v2052_v49  ;;  %v1547_v37 = vpop.f32.mrf.mxu0  ;;  %v1716_v38 = vpop.f32.mrf.mxu1  ;;  %v13152_v31 = vld [vmem:[%s18575_s1 + $0xd8] sm:$0xff] }
 0x3c5   : > { %v4006_v57 = vmax.f32 %v14382_v39, %v1547_v37  ;;  %v4007_v58 = vmax.f32 %v14384_v11, %v1716_v38 }
 0x3cb   : > { %v1885_v9 = vpop.f32.mrf.mxu2  ;;  %v2054_v10 = vpop.f32.mrf.mxu3 }
 0x3cc   : > { %v4008_v23 = vmax.f32 %v14390_v42, %v1885_v9  ;;  %v4009_v13 = vmax.f32 %v14392_v60, %v2054_v10  ;;  %v1550_v14 = vpop.f32.mrf.mxu0  ;;  %v1719_v2 = vpop.f32.mrf.mxu1  ;;  %v13155_v9 = vld [vmem:[%s18575_s1 + $0xf0] sm:$0xff] }
 0x3cd   : > { %v4022_v3 = vmax.f32 %v14394_v51, %v1550_v14  ;;  %v4023_v30 = vmax.f32 %v14396_v44, %v1719_v2  ;;  %v13153_v51 = vld [vmem:[%s18575_s1 + $0xe0] sm:$0xff] }
 0x3cf   : > { %10719 = vmatmul.msk.bf16.gmra.mxu0 %vm624_vm1, %v13152_v31  ;;  %10751 = vmatmul.msk.bf16.gmra.mxu1 %vm624_vm1, %v13152_v31 }
 0x3d0   : > { %10783 = vmatmul.msk.bf16.gmra.mxu2 %vm624_vm1, %v13152_v31  ;;  %10815 = vmatmul.msk.bf16.gmra.mxu3 %vm624_vm1, %v13152_v31 }
 0x3d3   : > { %v1888_v32 = vpop.f32.mrf.mxu2  ;;  %v2057_v36 = vpop.f32.mrf.mxu3 }
 0x3d4   : > { %v4024_v39 = vmax.f32 %v14409_v7, %v1888_v32  ;;  %v4025_v11 = vmax.f32 %v14411_v61, %v2057_v36  ;;  %v1552_v12 = vpop.f32.mrf.mxu0  ;;  %v1721_v40 = vpop.f32.mrf.mxu1 }
 0x3d5   : > { %v4038_v43 = vmax.f32 %v14413_v46, %v1552_v12  ;;  %v4039_v24 = vmax.f32 %v14415_v47, %v1721_v40 }
 0x3db   : > { %v1890_v50 = vpop.f32.mrf.mxu2  ;;  %v2059_v25 = vpop.f32.mrf.mxu3 }
 0x3dc   : > { %v4040_v41 = vmax.f32 %v14417_v19, %v1890_v50  ;;  %v4041_v59 = vmax.f32 %v14419_v20, %v2059_v25  ;;  %v1555_v42 = vpop.f32.mrf.mxu0  ;;  %v1724_v60 = vpop.f32.mrf.mxu1  ;;  %v13156_v50 = vld [vmem:[%s18575_s1 + $0xf8] sm:$0xff] }
 0x3dd   : > { %v14451_v26 = vmax.f32 %v3990_v33, %v1555_v42  ;;  %v14453_v27 = vmax.f32 %v3991_v55, %v1724_v60 }
 0x3df   : > { %10720 = vmatmul.msk.bf16.gmra.mxu0 %vm624_vm1, %v13153_v51  ;;  %10752 = vmatmul.msk.bf16.gmra.mxu1 %vm624_vm1, %v13153_v51 }
 0x3e0   : > { %10784 = vmatmul.msk.bf16.gmra.mxu2 %vm624_vm1, %v13153_v51  ;;  %10816 = vmatmul.msk.bf16.gmra.mxu3 %vm624_vm1, %v13153_v51 }
 0x3e3   : > { %v1893_v44 = vpop.f32.mrf.mxu2  ;;  %v2062_v45 = vpop.f32.mrf.mxu3 }
 0x3e4   : > { %v14462_v28 = vmax.f32 %v3992_v0, %v1893_v44  ;;  %v14464_v52 = vmax.f32 %v3993_v1, %v2062_v45  ;;  %v1557_v29 = vpop.f32.mrf.mxu0  ;;  %v1726_v53 = vpop.f32.mrf.mxu1 }
 0x3e5   : > { %v14466_v4 = vmax.f32 %v4006_v57, %v1557_v29  ;;  %v14468_v5 = vmax.f32 %v4007_v58, %v1726_v53 }
 0x3eb   : > { %v1895_v54 = vpop.f32.mrf.mxu2  ;;  %v2064_v6 = vpop.f32.mrf.mxu3 }
 0x3ec   : > { %v14470_v7 = vmax.f32 %v4008_v23, %v1895_v54  ;;  %v14472_v61 = vmax.f32 %v4009_v13, %v2064_v6  ;;  %v1560_v62 = vpop.f32.mrf.mxu0  ;;  %v1729_v17 = vpop.f32.mrf.mxu1  ;;  %v13157_v54 = vld [vmem:[%s18575_s1] sm:$0xff] }
 0x3ed   : > { %v14474_v46 = vmax.f32 %v4022_v3, %v1560_v62  ;;  %v14476_v47 = vmax.f32 %v4023_v30, %v1729_v17 }
 0x3ef   : > { %10721 = vmatmul.msk.bf16.gmra.mxu0 %vm624_vm1, %v13154_v8  ;;  %10753 = vmatmul.msk.bf16.gmra.mxu1 %vm624_vm1, %v13154_v8 }
 0x3f0   : > { %10785 = vmatmul.msk.bf16.gmra.mxu2 %vm624_vm1, %v13154_v8  ;;  %10817 = vmatmul.msk.bf16.gmra.mxu3 %vm624_vm1, %v13154_v8 }
 0x3f3   : > { %v1898_v18 = vpop.f32.mrf.mxu2  ;;  %v2067_v19 = vpop.f32.mrf.mxu3 }
 0x3f4   : > { %v14485_v20 = vmax.f32 %v4024_v39, %v1898_v18  ;;  %v14487_v48 = vmax.f32 %v4025_v11, %v2067_v19  ;;  %v1562_v22 = vpop.f32.mrf.mxu0  ;;  %v1731_v33 = vpop.f32.mrf.mxu1 }
 0x3f5   : > { %v14489_v55 = vmax.f32 %v4038_v43, %v1562_v22  ;;  %v14491_v56 = vmax.f32 %v4039_v24, %v1731_v33 }
 0x3fb   : > { %v1900_v21 = vpop.f32.mrf.mxu2  ;;  %v2069_v49 = vpop.f32.mrf.mxu3 }
 0x3fc   : > { %v14493_v0 = vmax.f32 %v4040_v41, %v1900_v21  ;;  %v14495_v1 = vmax.f32 %v4041_v59, %v2069_v49  ;;  %v1565_v37 = vpop.f32.mrf.mxu0  ;;  %v1734_v38 = vpop.f32.mrf.mxu1  ;;  %v13158_v21 = vld [vmem:[%s18575_s1 + $0x8] sm:$0xff] }
 0x3fd   : > { %v4118_v57 = vmax.f32 %v14451_v26, %v1565_v37  ;;  %v4119_v58 = vmax.f32 %v14453_v27, %v1734_v38 }
 0x3ff   : > { %10722 = vmatmul.msk.bf16.gmra.mxu0 %vm624_vm1, %v13155_v9  ;;  %10754 = vmatmul.msk.bf16.gmra.mxu1 %vm624_vm1, %v13155_v9 }
 0x400   : > { %10786 = vmatmul.msk.bf16.gmra.mxu2 %vm624_vm1, %v13155_v9  ;;  %10818 = vmatmul.msk.bf16.gmra.mxu3 %vm624_vm1, %v13155_v9 }
 0x403   : > { %v1903_v10 = vpop.f32.mrf.mxu2  ;;  %v2072_v23 = vpop.f32.mrf.mxu3 }
 0x404   : > { %v4120_v13 = vmax.f32 %v14462_v28, %v1903_v10  ;;  %v4121_v14 = vmax.f32 %v14464_v52, %v2072_v23  ;;  %v1567_v2 = vpop.f32.mrf.mxu0  ;;  %v1736_v3 = vpop.f32.mrf.mxu1 }
 0x405   : > { %v4134_v30 = vmax.f32 %v14466_v4, %v1567_v2  ;;  %v4135_v31 = vmax.f32 %v14468_v5, %v1736_v3 }
 0x40b   : > { %v1905_v32 = vpop.f32.mrf.mxu2  ;;  %v2074_v36 = vpop.f32.mrf.mxu3 }
 0x40c   : > { %v4136_v39 = vmax.f32 %v14470_v7, %v1905_v32  ;;  %v4137_v11 = vmax.f32 %v14472_v61, %v2074_v36  ;;  %v1570_v12 = vpop.f32.mrf.mxu0  ;;  %v1739_v40 = vpop.f32.mrf.mxu1 }
 0x40d   : > { %v4150_v43 = vmax.f32 %v14474_v46, %v1570_v12  ;;  %v4151_v24 = vmax.f32 %v14476_v47, %v1739_v40 }
 0x40f   : > { %10723 = vmatmul.msk.bf16.gmra.mxu0 %vm624_vm1, %v13156_v50  ;;  %10755 = vmatmul.msk.bf16.gmra.mxu1 %vm624_vm1, %v13156_v50 }
 0x410   : > { %10787 = vmatmul.msk.bf16.gmra.mxu2 %vm624_vm1, %v13156_v50  ;;  %10819 = vmatmul.msk.bf16.gmra.mxu3 %vm624_vm1, %v13156_v50 }
 0x413   : > { %v1908_v25 = vpop.f32.mrf.mxu2  ;;  %v2077_v41 = vpop.f32.mrf.mxu3 }
 0x414   : > { %v4152_v59 = vmax.f32 %v14485_v20, %v1908_v25  ;;  %v4153_v42 = vmax.f32 %v14487_v48, %v2077_v41  ;;  %v1572_v60 = vpop.f32.mrf.mxu0  ;;  %v1741_v26 = vpop.f32.mrf.mxu1 }
 0x415   : > { %v4166_v27 = vmax.f32 %v14489_v55, %v1572_v60  ;;  %v4167_v51 = vmax.f32 %v14491_v56, %v1741_v26 }
 0x41b   : > { %v1910_v44 = vpop.f32.mrf.mxu2  ;;  %v2079_v45 = vpop.f32.mrf.mxu3 }
 0x41c   : > { %v4168_v28 = vmax.f32 %v14493_v0, %v1910_v44  ;;  %v4169_v52 = vmax.f32 %v14495_v1, %v2079_v45  ;;  %v1575_v29 = vpop.f32.mrf.mxu0  ;;  %v1744_v53 = vpop.f32.mrf.mxu1 }
 0x41d   : > { %v14527_v4 = vmax.f32 %v4118_v57, %v1575_v29  ;;  %v14529_v5 = vmax.f32 %v4119_v58, %v1744_v53 }
 0x41f   : > { %10820 = vmatmul.msk.bf16.vlgmr.msra.gmra.mxu0 %vm624_vm1, %v13157_v54  ;;  %10852 = vmatmul.msk.bf16.vlgmr.msra.gmra.mxu1 %vm624_vm1, %v13157_v54 }
 0x420   : > { %10884 = vmatmul.msk.bf16.vlgmr.msra.gmra.mxu2 %vm624_vm1, %v13157_v54  ;;  %10916 = vmatmul.msk.bf16.vlgmr.msra.gmra.mxu3 %vm624_vm1, %v13157_v54 }
 0x423   : > { %v1913_v6 = vpop.f32.mrf.mxu2  ;;  %v2082_v7 = vpop.f32.mrf.mxu3 }
 0x424   : > { %v14538_v61 = vmax.f32 %v4120_v13, %v1913_v6  ;;  %v14540_v62 = vmax.f32 %v4121_v14, %v2082_v7  ;;  %v1577_v17 = vpop.f32.mrf.mxu0  ;;  %v1746_v46 = vpop.f32.mrf.mxu1  ;;  %v13162_v7 = vld [vmem:[%s18575_s1 + $0x28] sm:$0xff] }
 0x425   : > { %v14542_v47 = vmax.f32 %v4134_v30, %v1577_v17  ;;  %v14544_v8 = vmax.f32 %v4135_v31, %v1746_v46  ;;  %v13159_v30 = vld [vmem:[%s18575_s1 + $0x10] sm:$0xff] }
 0x42b   : > { %v1915_v18 = vpop.f32.mrf.mxu2  ;;  %v2084_v19 = vpop.f32.mrf.mxu3 }
 0x42c   : > { %v14546_v20 = vmax.f32 %v4136_v39, %v1915_v18  ;;  %v14548_v48 = vmax.f32 %v4137_v11, %v2084_v19  ;;  %v1580_v22 = vpop.f32.mrf.mxu0  ;;  %v1749_v33 = vpop.f32.mrf.mxu1 }
 0x42d   : > { %v14550_v55 = vmax.f32 %v4150_v43, %v1580_v22  ;;  %v14552_v56 = vmax.f32 %v4151_v24, %v1749_v33  ;;  %v13160_v24 = vld [vmem:[%s18575_s1 + $0x18] sm:$0xff] }
 0x42f   : > { %10821 = vmatmul.msk.bf16.gmra.mxu0 %vm624_vm1, %v13158_v21  ;;  %10853 = vmatmul.msk.bf16.gmra.mxu1 %vm624_vm1, %v13158_v21 }
 0x430   : > { %10885 = vmatmul.msk.bf16.gmra.mxu2 %vm624_vm1, %v13158_v21  ;;  %10917 = vmatmul.msk.bf16.gmra.mxu3 %vm624_vm1, %v13158_v21 }
 0x433   : > { %v1918_v49 = vpop.f32.mrf.mxu2  ;;  %v2087_v0 = vpop.f32.mrf.mxu3 }
 0x434   : > { %v14561_v1 = vmax.f32 %v4152_v59, %v1918_v49  ;;  %v14563_v37 = vmax.f32 %v4153_v42, %v2087_v0  ;;  %v1582_v38 = vpop.f32.mrf.mxu0  ;;  %v1751_v57 = vpop.f32.mrf.mxu1 }
 0x435   : > { %v14565_v58 = vmax.f32 %v4166_v27, %v1582_v38  ;;  %v14567_v9 = vmax.f32 %v4167_v51, %v1751_v57  ;;  %v13161_v51 = vld [vmem:[%s18575_s1 + $0x20] sm:$0xff] }
 0x43b   : > { %v1920_v10 = vpop.f32.mrf.mxu2  ;;  %v2089_v23 = vpop.f32.mrf.mxu3 }
 0x43c   : > { %v14569_v13 = vmax.f32 %v4168_v28, %v1920_v10  ;;  %v14571_v14 = vmax.f32 %v4169_v52, %v2089_v23  ;;  %v1585_v2 = vpop.f32.mrf.mxu0  ;;  %v1754_v3 = vpop.f32.mrf.mxu1 }
 0x43d   : > { %v4246_v22 = vmax.f32 %v14527_v4, %v1585_v2  ;;  %v4247_v33 = vmax.f32 %v14529_v5, %v1754_v3  ;;  %v13163_v4 = vld [vmem:[%s18575_s1 + $0x30] sm:$0xff] }
 0x43f   : > { %10822 = vmatmul.msk.bf16.gmra.mxu0 %vm624_vm1, %v13159_v30  ;;  %10854 = vmatmul.msk.bf16.gmra.mxu1 %vm624_vm1, %v13159_v30 }
 0x440   : > { %10886 = vmatmul.msk.bf16.gmra.mxu2 %vm624_vm1, %v13159_v30  ;;  %10918 = vmatmul.msk.bf16.gmra.mxu3 %vm624_vm1, %v13159_v30 }
 0x443   : > { %v14580_v31 = vpop.f32.mrf.mxu2  ;;  %v14582_v32 = vpop.f32.mrf.mxu3 }
 0x444   : > { %v14584_v36 = vpop.f32.mrf.mxu0  ;;  %v14586_v39 = vpop.f32.mrf.mxu1  ;;  %v4248_v5 = vmax.f32 %v14538_v61, %v14580_v31  ;;  %v4249_v2 = vmax.f32 %v14540_v62, %v14582_v32 }
 0x445   : > { %v4262_v3 = vmax.f32 %v14542_v47, %v14584_v36 }
 0x44b   : > { %v14588_v11 = vpop.f32.mrf.mxu2  ;;  %v14590_v12 = vpop.f32.mrf.mxu3 }
 0x44c   : > { %v14592_v40 = vpop.f32.mrf.mxu0  ;;  %v14594_v43 = vpop.f32.mrf.mxu1 }
 0x44f   : > { %10823 = vmatmul.msk.bf16.gmra.mxu0 %vm624_vm1, %v13160_v24  ;;  %10855 = vmatmul.msk.bf16.gmra.mxu1 %vm624_vm1, %v13160_v24 }
 0x450   : > { %10887 = vmatmul.msk.bf16.gmra.mxu2 %vm624_vm1, %v13160_v24  ;;  %10919 = vmatmul.msk.bf16.gmra.mxu3 %vm624_vm1, %v13160_v24 }
 0x453   : > { %v14603_v50 = vpop.f32.mrf.mxu2  ;;  %v14605_v25 = vpop.f32.mrf.mxu3 }
 0x454   : > { %v14607_v41 = vpop.f32.mrf.mxu0  ;;  %v14609_v59 = vpop.f32.mrf.mxu1 }
 0x45b   : > { %v14611_v42 = vpop.f32.mrf.mxu2  ;;  %v14613_v60 = vpop.f32.mrf.mxu3 }
 0x45c   : > { %v1595_v26 = vpop.f32.mrf.mxu0  ;;  %v1764_v27 = vpop.f32.mrf.mxu1 }
 0x45d   : > { %v4310_v21 = vmax.f32 %v4246_v22, %v1595_v26  ;;  %v4311_v49 = vmax.f32 %v4247_v33, %v1764_v27  ;;  %v4263_v26 = vmax.f32 %v14544_v8, %v14586_v39 }
 0x45f   : > { %10824 = vmatmul.msk.bf16.gmra.mxu0 %vm624_vm1, %v13161_v51  ;;  %10856 = vmatmul.msk.bf16.gmra.mxu1 %vm624_vm1, %v13161_v51 }
 0x460   : > { %10888 = vmatmul.msk.bf16.gmra.mxu2 %vm624_vm1, %v13161_v51  ;;  %10920 = vmatmul.msk.bf16.gmra.mxu3 %vm624_vm1, %v13161_v51 }
 0x463   : > { %v1933_v44 = vpop.f32.mrf.mxu2  ;;  %v2102_v45 = vpop.f32.mrf.mxu3 }
 0x464   : > { %v1597_v28 = vpop.f32.mrf.mxu0  ;;  %v1766_v52 = vpop.f32.mrf.mxu1  ;;  %v4312_v22 = vmax.f32 %v4248_v5, %v1933_v44  ;;  %v4313_v33 = vmax.f32 %v4249_v2, %v2102_v45 }
 0x46b   : > { %v1935_v29 = vpop.f32.mrf.mxu2  ;;  %v2104_v53 = vpop.f32.mrf.mxu3 }
 0x46c   : > { %v14622_v54 = vpop.f32.mrf.mxu0  ;;  %v14624_v6 = vpop.f32.mrf.mxu1 }
 0x46f   : > { %10825 = vmatmul.msk.bf16.gmra.mxu0 %vm624_vm1, %v13162_v7  ;;  %10857 = vmatmul.msk.bf16.gmra.mxu1 %vm624_vm1, %v13162_v7 }
 0x470   : > { %10889 = vmatmul.msk.bf16.gmra.mxu2 %vm624_vm1, %v13162_v7  ;;  %10921 = vmatmul.msk.bf16.gmra.mxu3 %vm624_vm1, %v13162_v7 }
 0x473   : > { %v14633_v17 = vpop.f32.mrf.mxu2  ;;  %v14635_v46 = vpop.f32.mrf.mxu3 }
 0x474   : > { %v14637_v18 = vpop.f32.mrf.mxu0  ;;  %v14639_v19 = vpop.f32.mrf.mxu1 }
 0x47b   : > { %v14643_v0 = vpop.f32.mrf.mxu2  ;;  %v14645_v38 = vpop.f32.mrf.mxu3 }
 0x47c   : > { %v1605_v57 = vpop.f32.mrf.mxu0  ;;  %v1774_v10 = vpop.f32.mrf.mxu1 }
 0x47d   : > { %v4374_v23 = vmax.f32 %v4310_v21, %v1605_v57  ;;  %v4375_v30 = vmax.f32 %v4311_v49, %v1774_v10  ;;  %v4326_v21 = vmax.f32 %v4262_v3, %v1597_v28  ;;  %v4327_v49 = vmax.f32 %v4263_v26, %v1766_v52 }
 0x47e   : > { %v4264_v28 = vmax.f32 %v14546_v20, %v14588_v11  ;;  %v4265_v52 = vmax.f32 %v14548_v48, %v14590_v12 }
 0x47f   : > { %v4462_v24 = vadd.f32 %v13955_v15, %v4374_v23  ;;  %v4463_v51 = vadd.f32 %v13955_v15, %v4375_v30  ;;  %10826 = vmatmul.msk.bf16.gmra.mxu0 %vm624_vm1, %v13163_v4  ;;  %10858 = vmatmul.msk.bf16.gmra.mxu1 %vm624_vm1, %v13163_v4 }
 0x480   : > { %10890 = vmatmul.msk.bf16.gmra.mxu2 %vm624_vm1, %v13163_v4  ;;  %10922 = vmatmul.msk.bf16.gmra.mxu3 %vm624_vm1, %v13163_v4  ;;  %v4279_v4 = vmax.f32 %v14552_v56, %v14594_v43  ;;  %v4328_v3 = vmax.f32 %v4264_v28, %v1935_v29  ;;  %v4329_v26 = vmax.f32 %v4265_v52, %v2104_v53 }
 0x481   : > { %v4526_v27 = vmax.f32 %v4462_v24, 0.0  ;;  %v4527_v7 = vmax.f32 %v4463_v51, 0.0  ;;  %v4278_v51 = vmax.f32 %v14550_v55, %v14592_v40  ;;  %v4296_v28 = vmax.f32 %v14569_v13, %v14611_v42 }
 0x482   : > { %v4343_v20 = vmax.f32 %v4279_v4, %v14624_v6  ;;  %v4297_v52 = vmax.f32 %v14571_v14, %v14613_v60 }
 0x483   : > { %v4588_v61 = vpack.c.bf16 %v4527_v7, %v4526_v27  ;;  %v1943_v31 = vpop.f32.mrf.mxu2  ;;  %v2112_v57 = vpop.f32.mrf.mxu3  ;;  %v4342_v7 = vmax.f32 %v4278_v51, %v14622_v54 }
 0x484   : > { %v4376_v62 = vmax.f32 %v4312_v22, %v1943_v31  ;;  %v4377_v32 = vmax.f32 %v4313_v33, %v2112_v57  ;;  %v1607_v10 = vpop.f32.mrf.mxu0  ;;  %v1776_v23 = vpop.f32.mrf.mxu1 }
 0x485   : > { %4629 = vst.msk [vmem:[#allocation2 + $0x40] sm:$0xff] %vm13980_vm4, %v4588_v61  ;;  %v4390_v47 = vmax.f32 %v4326_v21, %v1607_v10  ;;  %v4391_v36 = vmax.f32 %v4327_v49, %v1776_v23  ;;  %v13164_v21 = vld [vmem:[%s18575_s1 + $0x38] sm:$0xff]  ;;  %v4280_v49 = vmax.f32 %v14561_v1, %v14603_v50  ;;  %v4281_v61 = vmax.f32 %v14563_v37, %v14605_v25 }
 0x486   : > { %v4464_v8 = vadd.f32 %v13955_v15, %v4376_v62  ;;  %v4465_v39 = vadd.f32 %v13955_v15, %v4377_v32  ;;  %v4294_v62 = vmax.f32 %v14565_v58, %v14607_v41  ;;  %v4295_v32 = vmax.f32 %v14567_v9, %v14609_v59 }
 0x487   : > { %v4478_v44 = vadd.f32 %v13984_v16, %v4390_v47  ;;  %v4479_v45 = vadd.f32 %v13984_v16, %v4391_v36  ;;  %v4344_v47 = vmax.f32 %v4280_v49, %v14633_v17  ;;  %v4345_v1 = vmax.f32 %v4281_v61, %v14635_v46 }
 0x488   : > { %v4528_v30 = vmax.f32 %v4464_v8, 0.0  ;;  %v4529_v24 = vmax.f32 %v4465_v39, 0.0  ;;  %v4358_v37 = vmax.f32 %v4294_v62, %v14637_v18  ;;  %v4359_v25 = vmax.f32 %v4295_v32, %v14639_v19  ;;  %v342_v62 = vld [vmem:[%s13283_s27 + $0xb0] sm:$0x33] }
 0x489   : > { %v4542_v5 = vmax.f32 %v4478_v44, 0.0  ;;  %v4543_v2 = vmax.f32 %v4479_v45, 0.0  ;;  %v572_v32 = vunpack.c.l.b16 %v342_v62 }
 0x48a   : > { %v4589_v27 = vpack.c.bf16 %v4529_v24, %v4528_v30 }
 0x48b   : > { %v4596_v11 = vpack.c.bf16 %v4543_v2, %v4542_v5  ;;  %v1945_v22 = vpop.f32.mrf.mxu2  ;;  %v2114_v48 = vpop.f32.mrf.mxu3  ;;  %v4360_v5 = vmax.f32 %v4296_v28, %v14643_v0  ;;  %v4361_v2 = vmax.f32 %v4297_v52, %v14645_v38  ;;  %v13165_v38 = vld [vmem:[%s18575_s1 + $0x40] sm:$0xff] }
 0x48c   : > { %4633 = vst.msk [vmem:[#allocation2 + $0x60] sm:$0xff] %vm13980_vm4, %v4589_v27  ;;  %v4392_v12 = vmax.f32 %v4328_v3, %v1945_v22  ;;  %v4393_v55 = vmax.f32 %v4329_v26, %v2114_v48  ;;  %v1610_v40 = vpop.f32.mrf.mxu0  ;;  %v1779_v33 = vpop.f32.mrf.mxu1 }
 0x48d   : > { %4630 = vst.msk [vmem:[#allocation2 + $0x48] sm:$0xff] %vm13980_vm4, %v4596_v11  ;;  %v4406_v56 = vmax.f32 %v4342_v7, %v1610_v40  ;;  %v4407_v43 = vmax.f32 %v4343_v20, %v1779_v33 }
 0x48e   : > { %v4480_v29 = vadd.f32 %v13984_v16, %v4392_v12  ;;  %v4481_v53 = vadd.f32 %v13984_v16, %v4393_v55 }
 0x48f   : > { %v4494_v54 = vadd.f32 %v13996_v35, %v4406_v56  ;;  %v4495_v6 = vadd.f32 %v13996_v35, %v4407_v43  ;;  %10827 = vmatmul.msk.bf16.gmra.mxu0 %vm624_vm1, %v13164_v21  ;;  %10859 = vmatmul.msk.bf16.gmra.mxu1 %vm624_vm1, %v13164_v21  ;;  %v343_v56 = vld [vmem:[%s13283_s27 + $0xb8] sm:$0x33] }
 0x490   : > { %v4544_v31 = vmax.f32 %v4480_v29, 0.0  ;;  %v4545_v57 = vmax.f32 %v4481_v53, 0.0  ;;  %10891 = vmatmul.msk.bf16.gmra.mxu2 %vm624_vm1, %v13164_v21  ;;  %10923 = vmatmul.msk.bf16.gmra.mxu3 %vm624_vm1, %v13164_v21  ;;  %v574_v43 = vunpack.c.l.b16 %v343_v56  ;;  %v575_v29 = vunpack.c.h.b16 %v343_v56 }
 0x491   : > { %v4558_v10 = vmax.f32 %v4494_v54, 0.0  ;;  %v4559_v23 = vmax.f32 %v4495_v6, 0.0 }
 0x492   : > { %v4597_v50 = vpack.c.bf16 %v4545_v57, %v4544_v31  ;;  %v606_v53 = vpack.c.b16 %v574_v43, %v574_v43  ;;  %v607_v54 = vpack.c.b16 %v575_v29, %v575_v29 }
 0x493   : > { %v4604_v36 = vpack.c.bf16 %v4559_v23, %v4558_v10  ;;  %v1948_v8 = vpop.f32.mrf.mxu2  ;;  %v2117_v39 = vpop.f32.mrf.mxu3  ;;  %v13166_v10 = vld [vmem:[%s18575_s1 + $0x48] sm:$0xff]  ;;  %v604_v23 = vpack.c.b16 %v572_v32, %v572_v32 }
 0x494   : > { %4634 = vst.msk [vmem:[#allocation2 + $0x68] sm:$0xff] %vm13980_vm4, %v4597_v50  ;;  %v4408_v58 = vmax.f32 %v4344_v47, %v1948_v8  ;;  %v4409_v41 = vmax.f32 %v4345_v1, %v2117_v39  ;;  %v1612_v9 = vpop.f32.mrf.mxu0  ;;  %v1781_v59 = vpop.f32.mrf.mxu1  ;;  %v765_v6 = vsel %vm721_vm0, %v606_v53, 0  ;;  %v768_v21 = vsel %vm721_vm0, %v607_v54, 0  ;;  %v13169_v54 = vld [vmem:[%s18575_s1 + $0x60] sm:$0xff] }
 0x495   : > { %4631 = vst.msk [vmem:[#allocation2 + $0x50] sm:$0xff] %vm13980_vm4, %v4604_v36  ;;  %v4422_v17 = vmax.f32 %v4358_v37, %v1612_v9  ;;  %v4423_v46 = vmax.f32 %v4359_v25, %v1781_v59  ;;  %3142 = vmatpush.bf16.msrb.mxu2 %v765_v6  ;;  %3311 = vmatpush.bf16.msrb.mxu3 %v768_v21  ;;  %v573_v47 = vunpack.c.h.b16 %v342_v62  ;;  %v759_v1 = vsel %vm721_vm0, %v604_v23, 0 }
 0x496   : > { %v4496_v44 = vadd.f32 %v13996_v35, %v4408_v58  ;;  %v4497_v18 = vadd.f32 %v13996_v35, %v4409_v41  ;;  %2804 = vmatpush.bf16.msrb.mxu0 %v759_v1 }
 0x497   : > { %v4510_v19 = vadd.f32 %v14031_v34, %v4422_v17  ;;  %v4511_v45 = vadd.f32 %v14031_v34, %v4423_v46  ;;  %v605_v50 = vpack.c.b16 %v573_v47, %v573_v47 }
 0x498   : > { %v4560_v30 = vmax.f32 %v4496_v44, 0.0  ;;  %v4561_v24 = vmax.f32 %v4497_v18, 0.0  ;;  %v13167_v44 = vld [vmem:[%s18575_s1 + $0x50] sm:$0xff] }
 0x499   : > { %v4574_v51 = vmax.f32 %v4510_v19, 0.0  ;;  %v4575_v4 = vmax.f32 %v4511_v45, 0.0  ;;  %v762_v39 = vsel %vm721_vm0, %v605_v50, 0 }
 0x49a   : > { %v4605_v3 = vpack.c.bf16 %v4561_v24, %v4560_v30  ;;  %2973 = vmatpush.bf16.msrb.mxu1 %v762_v39 }
 0x49b   : > { %v4612_v26 = vpack.c.bf16 %v4575_v4, %v4574_v51  ;;  %v1950_v27 = vpop.f32.mrf.mxu2  ;;  %v2119_v7 = vpop.f32.mrf.mxu3 }
 0x49c   : > { %4635 = vst.msk [vmem:[#allocation2 + $0x70] sm:$0xff] %vm13980_vm4, %v4605_v3  ;;  %v4424_v20 = vmax.f32 %v4360_v5, %v1950_v27  ;;  %v4425_v13 = vmax.f32 %v4361_v2, %v2119_v7  ;;  %v14723_v42 = vpop.f32.mrf.mxu0  ;;  %v14725_v14 = vpop.f32.mrf.mxu1 }
 0x49d   : > { %4632 = vst.msk [vmem:[#allocation2 + $0x58] sm:$0xff] %vm13980_vm4, %v4612_v26 }
 0x49e   : > { %v4512_v60 = vadd.f32 %v14031_v34, %v4424_v20  ;;  %v4513_v0 = vadd.f32 %v14031_v34, %v4425_v13  ;;  %v13168_v13 = vld [vmem:[%s18575_s1 + $0x58] sm:$0xff] }
 0x49f   : > { %10828 = vmatmul.msk.bf16.gmra.mxu0 %vm624_vm1, %v13165_v38  ;;  %10860 = vmatmul.msk.bf16.gmra.mxu1 %vm624_vm1, %v13165_v38 }
 0x4a0   : > { %v4576_v11 = vmax.f32 %v4512_v60, 0.0  ;;  %v4577_v22 = vmax.f32 %v4513_v0, 0.0  ;;  %10892 = vmatmul.msk.bf16.gmra.mxu2 %vm624_vm1, %v13165_v38  ;;  %10924 = vmatmul.msk.bf16.gmra.mxu3 %vm624_vm1, %v13165_v38 }
 0x4a2   : > { %v4613_v48 = vpack.c.bf16 %v4577_v22, %v4576_v11 }
 0x4a3   : > { %v14738_v12 = vpop.f32.mrf.mxu2  ;;  %v14740_v55 = vpop.f32.mrf.mxu3 }
 0x4a4   : > { %4636 = vst.msk [vmem:[#allocation2 + $0x78] sm:$0xff] %vm13980_vm4, %v4613_v48  ;;  %v14744_v40 = vpop.f32.mrf.mxu0  ;;  %v14746_v33 = vpop.f32.mrf.mxu1 }
 0x4ab   : > { %v14751_v49 = vpop.f32.mrf.mxu2  ;;  %v14753_v61 = vpop.f32.mrf.mxu3 }
 0x4ac   : > { %v14755_v31 = vpop.f32.mrf.mxu0  ;;  %v14757_v57 = vpop.f32.mrf.mxu1 }
 0x4af   : > { %10829 = vmatmul.msk.bf16.gmra.mxu0 %vm624_vm1, %v13166_v10  ;;  %10861 = vmatmul.msk.bf16.gmra.mxu1 %vm624_vm1, %v13166_v10 }
 0x4b0   : > { %10893 = vmatmul.msk.bf16.gmra.mxu2 %vm624_vm1, %v13166_v10  ;;  %10925 = vmatmul.msk.bf16.gmra.mxu3 %vm624_vm1, %v13166_v10 }
 0x4b3   : > { %v14768_v37 = vpop.f32.mrf.mxu2  ;;  %v14770_v25 = vpop.f32.mrf.mxu3 }
 0x4b4   : > { %v14772_v36 = vpop.f32.mrf.mxu0  ;;  %v14774_v8 = vpop.f32.mrf.mxu1 }
 0x4bb   : > { %v14777_v58 = vpop.f32.mrf.mxu2  ;;  %v14779_v41 = vpop.f32.mrf.mxu3 }
 0x4bc   : > { %v2141_v9 = vpop.f32.mrf.mxu0  ;;  %v2310_v59 = vpop.f32.mrf.mxu1 }
 0x4bd   : > { %v3482_v17 = vmax.f32 %v14723_v42, %v2141_v9  ;;  %v3483_v46 = vmax.f32 %v14725_v14, %v2310_v59 }
 0x4bf   : > { %10830 = vmatmul.msk.bf16.gmra.mxu0 %vm624_vm1, %v13167_v44  ;;  %10862 = vmatmul.msk.bf16.gmra.mxu1 %vm624_vm1, %v13167_v44 }
 0x4c0   : > { %10894 = vmatmul.msk.bf16.gmra.mxu2 %vm624_vm1, %v13167_v44  ;;  %10926 = vmatmul.msk.bf16.gmra.mxu3 %vm624_vm1, %v13167_v44 }
 0x4c3   : > { %v2479_v18 = vpop.f32.mrf.mxu2  ;;  %v2648_v19 = vpop.f32.mrf.mxu3 }
 0x4c4   : > { %v3484_v45 = vmax.f32 %v14738_v12, %v2479_v18  ;;  %v3485_v28 = vmax.f32 %v14740_v55, %v2648_v19  ;;  %v2143_v52 = vpop.f32.mrf.mxu0  ;;  %v2312_v30 = vpop.f32.mrf.mxu1 }
 0x4c5   : > { %v3498_v24 = vmax.f32 %v14744_v40, %v2143_v52  ;;  %v3499_v51 = vmax.f32 %v14746_v33, %v2312_v30 }
 0x4cb   : > { %v2481_v4 = vpop.f32.mrf.mxu2  ;;  %v2650_v5 = vpop.f32.mrf.mxu3 }
 0x4cc   : > { %v3500_v2 = vmax.f32 %v14751_v49, %v2481_v4  ;;  %v3501_v3 = vmax.f32 %v14753_v61, %v2650_v5  ;;  %v2146_v26 = vpop.f32.mrf.mxu0  ;;  %v2315_v27 = vpop.f32.mrf.mxu1  ;;  %v13171_v4 = vld [vmem:[%s18575_s1 + $0x70] sm:$0xff] }
 0x4cd   : > { %v3514_v7 = vmax.f32 %v14755_v31, %v2146_v26  ;;  %v3515_v20 = vmax.f32 %v14757_v57, %v2315_v27 }
 0x4cf   : > { %10831 = vmatmul.msk.bf16.gmra.mxu0 %vm624_vm1, %v13168_v13  ;;  %10863 = vmatmul.msk.bf16.gmra.mxu1 %vm624_vm1, %v13168_v13 }
 0x4d0   : > { %10895 = vmatmul.msk.bf16.gmra.mxu2 %vm624_vm1, %v13168_v13  ;;  %10927 = vmatmul.msk.bf16.gmra.mxu3 %vm624_vm1, %v13168_v13 }
 0x4d3   : > { %v2484_v42 = vpop.f32.mrf.mxu2  ;;  %v2653_v14 = vpop.f32.mrf.mxu3 }
 0x4d4   : > { %v3516_v60 = vmax.f32 %v14768_v37, %v2484_v42  ;;  %v3517_v0 = vmax.f32 %v14770_v25, %v2653_v14  ;;  %v2148_v38 = vpop.f32.mrf.mxu0  ;;  %v2317_v11 = vpop.f32.mrf.mxu1 }
 0x4d5   : > { %v3530_v22 = vmax.f32 %v14772_v36, %v2148_v38  ;;  %v3531_v48 = vmax.f32 %v14774_v8, %v2317_v11  ;;  %v13170_v8 = vld [vmem:[%s18575_s1 + $0x68] sm:$0xff] }
 0x4db   : > { %v2486_v12 = vpop.f32.mrf.mxu2  ;;  %v2655_v55 = vpop.f32.mrf.mxu3 }
 0x4dc   : > { %v3532_v40 = vmax.f32 %v14777_v58, %v2486_v12  ;;  %v3533_v33 = vmax.f32 %v14779_v41, %v2655_v55  ;;  %v2151_v56 = vpop.f32.mrf.mxu0  ;;  %v2320_v43 = vpop.f32.mrf.mxu1  ;;  %v13172_v12 = vld [vmem:[%s18575_s1 + $0x78] sm:$0xff] }
 0x4dd   : > { %v14811_v29 = vmax.f32 %v3482_v17, %v2151_v56  ;;  %v14813_v53 = vmax.f32 %v3483_v46, %v2320_v43 }
 0x4df   : > { %10832 = vmatmul.msk.bf16.gmra.mxu0 %vm624_vm1, %v13169_v54  ;;  %10864 = vmatmul.msk.bf16.gmra.mxu1 %vm624_vm1, %v13169_v54 }
 0x4e0   : > { %10896 = vmatmul.msk.bf16.gmra.mxu2 %vm624_vm1, %v13169_v54  ;;  %10928 = vmatmul.msk.bf16.gmra.mxu3 %vm624_vm1, %v13169_v54 }
 0x4e3   : > { %v2489_v6 = vpop.f32.mrf.mxu2  ;;  %v2658_v21 = vpop.f32.mrf.mxu3 }
 0x4e4   : > { %v14822_v49 = vmax.f32 %v3484_v45, %v2489_v6  ;;  %v14824_v61 = vmax.f32 %v3485_v28, %v2658_v21  ;;  %v2153_v31 = vpop.f32.mrf.mxu0  ;;  %v2322_v57 = vpop.f32.mrf.mxu1 }
 0x4e5   : > { %v14826_v62 = vmax.f32 %v3498_v24, %v2153_v31  ;;  %v14828_v32 = vmax.f32 %v3499_v51, %v2322_v57 }
 0x4eb   : > { %v2491_v10 = vpop.f32.mrf.mxu2  ;;  %v2660_v23 = vpop.f32.mrf.mxu3 }
 0x4ec   : > { %v14830_v47 = vmax.f32 %v3500_v2, %v2491_v10  ;;  %v14832_v1 = vmax.f32 %v3501_v3, %v2660_v23  ;;  %v2156_v50 = vpop.f32.mrf.mxu0  ;;  %v2325_v37 = vpop.f32.mrf.mxu1  ;;  %v13173_v10 = vld [vmem:[%s18575_s1 + $0x80] sm:$0xff] }
 0x4ed   : > { %v14834_v25 = vmax.f32 %v3514_v7, %v2156_v50  ;;  %v14836_v36 = vmax.f32 %v3515_v20, %v2325_v37 }
 0x4ef   : > { %10833 = vmatmul.msk.bf16.gmra.mxu0 %vm624_vm1, %v13170_v8  ;;  %10865 = vmatmul.msk.bf16.gmra.mxu1 %vm624_vm1, %v13170_v8 }
 0x4f0   : > { %10897 = vmatmul.msk.bf16.gmra.mxu2 %vm624_vm1, %v13170_v8  ;;  %10929 = vmatmul.msk.bf16.gmra.mxu3 %vm624_vm1, %v13170_v8 }
 0x4f3   : > { %v2494_v39 = vpop.f32.mrf.mxu2  ;;  %v2663_v58 = vpop.f32.mrf.mxu3 }
 0x4f4   : > { %v14845_v41 = vmax.f32 %v3516_v60, %v2494_v39  ;;  %v14847_v9 = vmax.f32 %v3517_v0, %v2663_v58  ;;  %v2158_v59 = vpop.f32.mrf.mxu0  ;;  %v2327_v17 = vpop.f32.mrf.mxu1 }
 0x4f5   : > { %v14849_v46 = vmax.f32 %v3530_v22, %v2158_v59  ;;  %v14851_v44 = vmax.f32 %v3531_v48, %v2327_v17 }
 0x4fb   : > { %v2496_v18 = vpop.f32.mrf.mxu2  ;;  %v2665_v19 = vpop.f32.mrf.mxu3 }
 0x4fc   : > { %v14853_v45 = vmax.f32 %v3532_v40, %v2496_v18  ;;  %v14855_v28 = vmax.f32 %v3533_v33, %v2665_v19  ;;  %v2161_v52 = vpop.f32.mrf.mxu0  ;;  %v2330_v30 = vpop.f32.mrf.mxu1  ;;  %v13174_v18 = vld [vmem:[%s18575_s1 + $0x88] sm:$0xff] }
 0x4fd   : > { %v3610_v24 = vmax.f32 %v14811_v29, %v2161_v52  ;;  %v3611_v51 = vmax.f32 %v14813_v53, %v2330_v30 }
 0x4ff   : > { %10834 = vmatmul.msk.bf16.gmra.mxu0 %vm624_vm1, %v13171_v4  ;;  %10866 = vmatmul.msk.bf16.gmra.mxu1 %vm624_vm1, %v13171_v4 }
 0x500   : > { %10898 = vmatmul.msk.bf16.gmra.mxu2 %vm624_vm1, %v13171_v4  ;;  %10930 = vmatmul.msk.bf16.gmra.mxu3 %vm624_vm1, %v13171_v4 }
 0x503   : > { %v2499_v5 = vpop.f32.mrf.mxu2  ;;  %v2668_v2 = vpop.f32.mrf.mxu3 }
 0x504   : > { %v3612_v3 = vmax.f32 %v14822_v49, %v2499_v5  ;;  %v3613_v26 = vmax.f32 %v14824_v61, %v2668_v2  ;;  %v2163_v27 = vpop.f32.mrf.mxu0  ;;  %v2332_v7 = vpop.f32.mrf.mxu1 }
 0x505   : > { %v3626_v20 = vmax.f32 %v14826_v62, %v2163_v27  ;;  %v3627_v13 = vmax.f32 %v14828_v32, %v2332_v7 }
 0x50b   : > { %v2501_v42 = vpop.f32.mrf.mxu2  ;;  %v2670_v14 = vpop.f32.mrf.mxu3 }
 0x50c   : > { %v3628_v60 = vmax.f32 %v14830_v47, %v2501_v42  ;;  %v3629_v0 = vmax.f32 %v14832_v1, %v2670_v14  ;;  %v2166_v38 = vpop.f32.mrf.mxu0  ;;  %v2335_v11 = vpop.f32.mrf.mxu1  ;;  %v13175_v42 = vld [vmem:[%s18575_s1 + $0x90] sm:$0xff] }
 0x50d   : > { %v3642_v22 = vmax.f32 %v14834_v25, %v2166_v38  ;;  %v3643_v48 = vmax.f32 %v14836_v36, %v2335_v11 }
 0x50f   : > { %10835 = vmatmul.msk.bf16.gmra.mxu0 %vm624_vm1, %v13172_v12  ;;  %10867 = vmatmul.msk.bf16.gmra.mxu1 %vm624_vm1, %v13172_v12 }
 0x510   : > { %10899 = vmatmul.msk.bf16.gmra.mxu2 %vm624_vm1, %v13172_v12  ;;  %10931 = vmatmul.msk.bf16.gmra.mxu3 %vm624_vm1, %v13172_v12 }
 0x513   : > { %v2504_v55 = vpop.f32.mrf.mxu2  ;;  %v2673_v40 = vpop.f32.mrf.mxu3 }
 0x514   : > { %v3644_v33 = vmax.f32 %v14845_v41, %v2504_v55  ;;  %v3645_v56 = vmax.f32 %v14847_v9, %v2673_v40  ;;  %v2168_v43 = vpop.f32.mrf.mxu0  ;;  %v2337_v29 = vpop.f32.mrf.mxu1 }
 0x515   : > { %v3658_v53 = vmax.f32 %v14849_v46, %v2168_v43  ;;  %v3659_v54 = vmax.f32 %v14851_v44, %v2337_v29 }
 0x51b   : > { %v2506_v6 = vpop.f32.mrf.mxu2  ;;  %v2675_v21 = vpop.f32.mrf.mxu3 }
 0x51c   : > { %v3660_v49 = vmax.f32 %v14853_v45, %v2506_v6  ;;  %v3661_v61 = vmax.f32 %v14855_v28, %v2675_v21  ;;  %v2171_v31 = vpop.f32.mrf.mxu0  ;;  %v2340_v57 = vpop.f32.mrf.mxu1  ;;  %v13176_v6 = vld [vmem:[%s18575_s1 + $0x98] sm:$0xff] }
 0x51d   : > { %v14887_v62 = vmax.f32 %v3610_v24, %v2171_v31  ;;  %v14889_v32 = vmax.f32 %v3611_v51, %v2340_v57 }
 0x51f   : > { %10836 = vmatmul.msk.bf16.gmra.mxu0 %vm624_vm1, %v13173_v10  ;;  %10868 = vmatmul.msk.bf16.gmra.mxu1 %vm624_vm1, %v13173_v10 }
 0x520   : > { %10900 = vmatmul.msk.bf16.gmra.mxu2 %vm624_vm1, %v13173_v10  ;;  %10932 = vmatmul.msk.bf16.gmra.mxu3 %vm624_vm1, %v13173_v10 }
 0x523   : > { %v2509_v23 = vpop.f32.mrf.mxu2  ;;  %v2678_v47 = vpop.f32.mrf.mxu3 }
 0x524   : > { %v14898_v1 = vmax.f32 %v3612_v3, %v2509_v23  ;;  %v14900_v50 = vmax.f32 %v3613_v26, %v2678_v47  ;;  %v2173_v37 = vpop.f32.mrf.mxu0  ;;  %v2342_v25 = vpop.f32.mrf.mxu1 }
 0x525   : > { %v14902_v36 = vmax.f32 %v3626_v20, %v2173_v37  ;;  %v14904_v8 = vmax.f32 %v3627_v13, %v2342_v25 }
 0x52b   : > { %v2511_v39 = vpop.f32.mrf.mxu2  ;;  %v2680_v58 = vpop.f32.mrf.mxu3 }
 0x52c   : > { %v14906_v41 = vmax.f32 %v3628_v60, %v2511_v39  ;;  %v14908_v9 = vmax.f32 %v3629_v0, %v2680_v58  ;;  %v2176_v59 = vpop.f32.mrf.mxu0  ;;  %v2345_v17 = vpop.f32.mrf.mxu1  ;;  %v13177_v39 = vld [vmem:[%s18575_s1 + $0xa0] sm:$0xff] }
 0x52d   : > { %v14910_v46 = vmax.f32 %v3642_v22, %v2176_v59  ;;  %v14912_v44 = vmax.f32 %v3643_v48, %v2345_v17 }
 0x52f   : > { %10837 = vmatmul.msk.bf16.gmra.mxu0 %vm624_vm1, %v13174_v18  ;;  %10869 = vmatmul.msk.bf16.gmra.mxu1 %vm624_vm1, %v13174_v18 }
 0x530   : > { %10901 = vmatmul.msk.bf16.gmra.mxu2 %vm624_vm1, %v13174_v18  ;;  %10933 = vmatmul.msk.bf16.gmra.mxu3 %vm624_vm1, %v13174_v18 }
 0x533   : > { %v2514_v19 = vpop.f32.mrf.mxu2  ;;  %v2683_v45 = vpop.f32.mrf.mxu3 }
 0x534   : > { %v14921_v28 = vmax.f32 %v3644_v33, %v2514_v19  ;;  %v14923_v52 = vmax.f32 %v3645_v56, %v2683_v45  ;;  %v2178_v30 = vpop.f32.mrf.mxu0  ;;  %v2347_v24 = vpop.f32.mrf.mxu1 }
 0x535   : > { %v14925_v51 = vmax.f32 %v3658_v53, %v2178_v30  ;;  %v14927_v4 = vmax.f32 %v3659_v54, %v2347_v24 }
 0x53b   : > { %v2516_v5 = vpop.f32.mrf.mxu2  ;;  %v2685_v2 = vpop.f32.mrf.mxu3 }
 0x53c   : > { %v14929_v3 = vmax.f32 %v3660_v49, %v2516_v5  ;;  %v14931_v26 = vmax.f32 %v3661_v61, %v2685_v2  ;;  %v2181_v27 = vpop.f32.mrf.mxu0  ;;  %v2350_v7 = vpop.f32.mrf.mxu1  ;;  %v13178_v5 = vld [vmem:[%s18575_s1 + $0xa8] sm:$0xff] }
 0x53d   : > { %v3738_v20 = vmax.f32 %v14887_v62, %v2181_v27  ;;  %v3739_v13 = vmax.f32 %v14889_v32, %v2350_v7 }
 0x53f   : > { %10838 = vmatmul.msk.bf16.gmra.mxu0 %vm624_vm1, %v13175_v42  ;;  %10870 = vmatmul.msk.bf16.gmra.mxu1 %vm624_vm1, %v13175_v42 }
 0x540   : > { %10902 = vmatmul.msk.bf16.gmra.mxu2 %vm624_vm1, %v13175_v42  ;;  %10934 = vmatmul.msk.bf16.gmra.mxu3 %vm624_vm1, %v13175_v42 }
 0x543   : > { %v2519_v14 = vpop.f32.mrf.mxu2  ;;  %v2688_v60 = vpop.f32.mrf.mxu3 }
 0x544   : > { %v3740_v0 = vmax.f32 %v14898_v1, %v2519_v14  ;;  %v3741_v38 = vmax.f32 %v14900_v50, %v2688_v60  ;;  %v2183_v11 = vpop.f32.mrf.mxu0  ;;  %v2352_v22 = vpop.f32.mrf.mxu1 }
 0x545   : > { %v3754_v48 = vmax.f32 %v14902_v36, %v2183_v11  ;;  %v3755_v12 = vmax.f32 %v14904_v8, %v2352_v22 }
 0x54b   : > { %v2521_v55 = vpop.f32.mrf.mxu2  ;;  %v2690_v40 = vpop.f32.mrf.mxu3 }
 0x54c   : > { %v3756_v33 = vmax.f32 %v14906_v41, %v2521_v55  ;;  %v3757_v56 = vmax.f32 %v14908_v9, %v2690_v40  ;;  %v2186_v43 = vpop.f32.mrf.mxu0  ;;  %v2355_v29 = vpop.f32.mrf.mxu1  ;;  %v13179_v55 = vld [vmem:[%s18575_s1 + $0xb0] sm:$0xff] }
 0x54d   : > { %v3770_v53 = vmax.f32 %v14910_v46, %v2186_v43  ;;  %v3771_v54 = vmax.f32 %v14912_v44, %v2355_v29 }
 0x54f   : > { %10839 = vmatmul.msk.bf16.gmra.mxu0 %vm624_vm1, %v13176_v6  ;;  %10871 = vmatmul.msk.bf16.gmra.mxu1 %vm624_vm1, %v13176_v6 }
 0x550   : > { %10903 = vmatmul.msk.bf16.gmra.mxu2 %vm624_vm1, %v13176_v6  ;;  %10935 = vmatmul.msk.bf16.gmra.mxu3 %vm624_vm1, %v13176_v6 }
 0x553   : > { %v2524_v21 = vpop.f32.mrf.mxu2  ;;  %v2693_v49 = vpop.f32.mrf.mxu3 }
 0x554   : > { %v3772_v61 = vmax.f32 %v14921_v28, %v2524_v21  ;;  %v3773_v31 = vmax.f32 %v14923_v52, %v2693_v49  ;;  %v2188_v57 = vpop.f32.mrf.mxu0  ;;  %v2357_v62 = vpop.f32.mrf.mxu1 }
 0x555   : > { %v3786_v32 = vmax.f32 %v14925_v51, %v2188_v57  ;;  %v3787_v10 = vmax.f32 %v14927_v4, %v2357_v62 }
 0x55b   : > { %v2526_v23 = vpop.f32.mrf.mxu2  ;;  %v2695_v47 = vpop.f32.mrf.mxu3 }
 0x55c   : > { %v3788_v1 = vmax.f32 %v14929_v3, %v2526_v23  ;;  %v3789_v50 = vmax.f32 %v14931_v26, %v2695_v47  ;;  %v2191_v37 = vpop.f32.mrf.mxu0  ;;  %v2360_v25 = vpop.f32.mrf.mxu1  ;;  %v13180_v23 = vld [vmem:[%s18575_s1 + $0xb8] sm:$0xff] }
 0x55d   : > { %v14963_v36 = vmax.f32 %v3738_v20, %v2191_v37  ;;  %v14965_v8 = vmax.f32 %v3739_v13, %v2360_v25 }
 0x55f   : > { %10840 = vmatmul.msk.bf16.gmra.mxu0 %vm624_vm1, %v13177_v39  ;;  %10872 = vmatmul.msk.bf16.gmra.mxu1 %vm624_vm1, %v13177_v39 }
 0x560   : > { %10904 = vmatmul.msk.bf16.gmra.mxu2 %vm624_vm1, %v13177_v39  ;;  %10936 = vmatmul.msk.bf16.gmra.mxu3 %vm624_vm1, %v13177_v39 }
 0x563   : > { %v2529_v58 = vpop.f32.mrf.mxu2  ;;  %v2698_v41 = vpop.f32.mrf.mxu3 }
 0x564   : > { %v14974_v9 = vmax.f32 %v3740_v0, %v2529_v58  ;;  %v14976_v59 = vmax.f32 %v3741_v38, %v2698_v41  ;;  %v2193_v17 = vpop.f32.mrf.mxu0  ;;  %v2362_v46 = vpop.f32.mrf.mxu1 }
 0x565   : > { %v14978_v44 = vmax.f32 %v3754_v48, %v2193_v17  ;;  %v14980_v18 = vmax.f32 %v3755_v12, %v2362_v46 }
 0x56b   : > { %v2531_v19 = vpop.f32.mrf.mxu2  ;;  %v2700_v45 = vpop.f32.mrf.mxu3 }
 0x56c   : > { %v14982_v28 = vmax.f32 %v3756_v33, %v2531_v19  ;;  %v14984_v52 = vmax.f32 %v3757_v56, %v2700_v45  ;;  %v2196_v30 = vpop.f32.mrf.mxu0  ;;  %v2365_v24 = vpop.f32.mrf.mxu1  ;;  %v13181_v19 = vld [vmem:[%s18575_s1 + $0xc0] sm:$0xff] }
 0x56d   : > { %v14986_v51 = vmax.f32 %v3770_v53, %v2196_v30  ;;  %v14988_v4 = vmax.f32 %v3771_v54, %v2365_v24 }
 0x56f   : > { %10841 = vmatmul.msk.bf16.gmra.mxu0 %vm624_vm1, %v13178_v5  ;;  %10873 = vmatmul.msk.bf16.gmra.mxu1 %vm624_vm1, %v13178_v5 }
 0x570   : > { %10905 = vmatmul.msk.bf16.gmra.mxu2 %vm624_vm1, %v13178_v5  ;;  %10937 = vmatmul.msk.bf16.gmra.mxu3 %vm624_vm1, %v13178_v5 }
 0x573   : > { %v2534_v2 = vpop.f32.mrf.mxu2  ;;  %v2703_v3 = vpop.f32.mrf.mxu3 }
 0x574   : > { %v14997_v26 = vmax.f32 %v3772_v61, %v2534_v2  ;;  %v14999_v27 = vmax.f32 %v3773_v31, %v2703_v3  ;;  %v2198_v7 = vpop.f32.mrf.mxu0  ;;  %v2367_v20 = vpop.f32.mrf.mxu1  ;;  %v10558_v2 = vld [vmem:[%s13283_s27 + $0x38] sm:$0xf] }
 0x575   : > { %v15001_v13 = vmax.f32 %v3786_v32, %v2198_v7  ;;  %v15003_v42 = vmax.f32 %v3787_v10, %v2367_v20  ;;  %v12769_v3 = vld [vmem:[%s13283_s27 + $0x74] sm:$0xf0]  ;;  %v10560_v7 = vld [vmem:[%s13283_s27 + $0x78] sm:$0xf0] }
 0x57b   : > { %v2536_v14 = vpop.f32.mrf.mxu2  ;;  %v2705_v60 = vpop.f32.mrf.mxu3 }
 0x57c   : > { %v15005_v0 = vmax.f32 %v3788_v1, %v2536_v14  ;;  %v15007_v38 = vmax.f32 %v3789_v50, %v2705_v60  ;;  %v2201_v11 = vpop.f32.mrf.mxu0  ;;  %v2370_v22 = vpop.f32.mrf.mxu1 }
 0x57d   : > { %v3866_v48 = vmax.f32 %v14963_v36, %v2201_v11  ;;  %v3867_v12 = vmax.f32 %v14965_v8, %v2370_v22 }
 0x57f   : > { %10842 = vmatmul.msk.bf16.gmra.mxu0 %vm624_vm1, %v13179_v55  ;;  %10874 = vmatmul.msk.bf16.gmra.mxu1 %vm624_vm1, %v13179_v55 }
 0x580   : > { %10906 = vmatmul.msk.bf16.gmra.mxu2 %vm624_vm1, %v13179_v55  ;;  %10938 = vmatmul.msk.bf16.gmra.mxu3 %vm624_vm1, %v13179_v55 }
 0x583   : > { %v2539_v40 = vpop.f32.mrf.mxu2  ;;  %v2708_v33 = vpop.f32.mrf.mxu3 }
 0x584   : > { %v3868_v56 = vmax.f32 %v14974_v9, %v2539_v40  ;;  %v3869_v43 = vmax.f32 %v14976_v59, %v2708_v33  ;;  %v2203_v29 = vpop.f32.mrf.mxu0  ;;  %v2372_v53 = vpop.f32.mrf.mxu1  ;;  %v13182_v40 = vld [vmem:[%s18575_s1 + $0xc8] sm:$0xff]  ;;  %v12760_v33 = vld [vmem:[%s13283_s27 + $0x34] sm:$0xf] }
 0x585   : > { %v3882_v54 = vmax.f32 %v14978_v44, %v2203_v29  ;;  %v3883_v6 = vmax.f32 %v14980_v18, %v2372_v53 }
 0x58b   : > { %v2541_v21 = vpop.f32.mrf.mxu2  ;;  %v2710_v49 = vpop.f32.mrf.mxu3 }
 0x58c   : > { %v3884_v61 = vmax.f32 %v14982_v28, %v2541_v21  ;;  %v3885_v31 = vmax.f32 %v14984_v52, %v2710_v49  ;;  %v2206_v57 = vpop.f32.mrf.mxu0  ;;  %v2375_v62 = vpop.f32.mrf.mxu1 }
 0x58d   : > { %v3898_v32 = vmax.f32 %v14986_v51, %v2206_v57  ;;  %v3899_v10 = vmax.f32 %v14988_v4, %v2375_v62 }
 0x58f   : > { %10843 = vmatmul.msk.bf16.gmra.mxu0 %vm624_vm1, %v13180_v23  ;;  %10875 = vmatmul.msk.bf16.gmra.mxu1 %vm624_vm1, %v13180_v23 }
 0x590   : > { %10907 = vmatmul.msk.bf16.gmra.mxu2 %vm624_vm1, %v13180_v23  ;;  %10939 = vmatmul.msk.bf16.gmra.mxu3 %vm624_vm1, %v13180_v23 }
 0x593   : > { %v2544_v47 = vpop.f32.mrf.mxu2  ;;  %v2713_v1 = vpop.f32.mrf.mxu3 }
 0x594   : > { %v3900_v50 = vmax.f32 %v14997_v26, %v2544_v47  ;;  %v3901_v37 = vmax.f32 %v14999_v27, %v2713_v1  ;;  %v2208_v25 = vpop.f32.mrf.mxu0  ;;  %v2377_v36 = vpop.f32.mrf.mxu1  ;;  %v12761_v26 = vld [vmem:[%s13283_s27 + $0x3c] sm:$0xf]  ;;  %v10559_v27 = vor.u32 %v12769_v3, %v10558_v2 }
 0x595   : > { %v3914_v8 = vmax.f32 %v15001_v13, %v2208_v25  ;;  %v3915_v39 = vmax.f32 %v15003_v42, %v2377_v36  ;;  %v10563_v20 = vor.u32 %v12761_v26, %v10560_v7 }
 0x596   : > { %3143 = vmatpush.bf16.msrb.mxu2 %v10559_v27 }
 0x597   : > { %3312 = vmatpush.bf16.msrb.mxu3 %v10563_v20 }
 0x59b   : > { %v2546_v58 = vpop.f32.mrf.mxu2  ;;  %v2715_v41 = vpop.f32.mrf.mxu3 }
 0x59c   : > { %v3916_v9 = vmax.f32 %v15005_v0, %v2546_v58  ;;  %v3917_v59 = vmax.f32 %v15007_v38, %v2715_v41  ;;  %v2211_v17 = vpop.f32.mrf.mxu0  ;;  %v2380_v46 = vpop.f32.mrf.mxu1 }
 0x59d   : > { %v15039_v44 = vmax.f32 %v3866_v48, %v2211_v17  ;;  %v15041_v18 = vmax.f32 %v3867_v12, %v2380_v46  ;;  %v10550_v48 = vld [vmem:[%s13283_s27 + $0x30] sm:$0xf] }
 0x59e   : > { %v12768_v12 = vld [vmem:[%s13283_s27 + $0x6c] sm:$0xf0] }
 0x59f   : > { %10844 = vmatmul.msk.bf16.gmra.mxu0 %vm624_vm1, %v13181_v19  ;;  %10876 = vmatmul.msk.bf16.gmra.mxu1 %vm624_vm1, %v13181_v19  ;;  %v10551_v55 = vor.u32 %v12768_v12, %v10550_v48 }
 0x5a0   : > { %10908 = vmatmul.msk.bf16.gmra.mxu2 %vm624_vm1, %v13181_v19  ;;  %10940 = vmatmul.msk.bf16.gmra.mxu3 %vm624_vm1, %v13181_v19 }
 0x5a1   : > { %2805 = vmatpush.bf16.msrb.mxu0 %v10551_v55 }
 0x5a3   : > { %v2549_v45 = vpop.f32.mrf.mxu2  ;;  %v2718_v28 = vpop.f32.mrf.mxu3 }
 0x5a4   : > { %v15050_v52 = vmax.f32 %v3868_v56, %v2549_v45  ;;  %v15052_v30 = vmax.f32 %v3869_v43, %v2718_v28  ;;  %v2213_v24 = vpop.f32.mrf.mxu0  ;;  %v2382_v51 = vpop.f32.mrf.mxu1  ;;  %v10552_v56 = vld [vmem:[%s13283_s27 + $0x70] sm:$0xf0] }
 0x5a5   : > { %v15054_v4 = vmax.f32 %v3882_v54, %v2213_v24  ;;  %v15056_v5 = vmax.f32 %v3883_v6, %v2382_v51  ;;  %v10555_v43 = vor.u32 %v12760_v33, %v10552_v56 }
 0x5a7   : > { %2974 = vmatpush.bf16.msrb.mxu1 %v10555_v43 }
 0x5ab   : > { %v2551_v13 = vpop.f32.mrf.mxu2  ;;  %v2720_v42 = vpop.f32.mrf.mxu3 }
 0x5ac   : > { %v15062_v14 = vmax.f32 %v3884_v61, %v2551_v13  ;;  %v15064_v60 = vmax.f32 %v3885_v31, %v2720_v42  ;;  %v2216_v0 = vpop.f32.mrf.mxu0  ;;  %v2385_v38 = vpop.f32.mrf.mxu1 }
 0x5ad   : > { %v15066_v11 = vmax.f32 %v3898_v32, %v2216_v0  ;;  %v15068_v22 = vmax.f32 %v3899_v10, %v2385_v38 }
 0x5af   : > { %10845 = vmatmul.msk.bf16.gmra.mxu0 %vm624_vm1, %v13182_v40  ;;  %10877 = vmatmul.msk.bf16.gmra.mxu1 %vm624_vm1, %v13182_v40 }
 0x5b0   : > { %10909 = vmatmul.msk.bf16.gmra.mxu2 %vm624_vm1, %v13182_v40  ;;  %10941 = vmatmul.msk.bf16.gmra.mxu3 %vm624_vm1, %v13182_v40 }
 0x5b3   : > { %v2554_v29 = vpop.f32.mrf.mxu2  ;;  %v2723_v53 = vpop.f32.mrf.mxu3 }
 0x5b4   : > { %v15081_v54 = vmax.f32 %v3900_v50, %v2554_v29  ;;  %v15083_v6 = vmax.f32 %v3901_v37, %v2723_v53  ;;  %v2218_v21 = vpop.f32.mrf.mxu0  ;;  %v2387_v49 = vpop.f32.mrf.mxu1  ;;  %v13183_v37 = vld [vmem:[%s18575_s1 + $0xd0] sm:$0xff] }
 0x5b5   : > { %v15085_v61 = vmax.f32 %v3914_v8, %v2218_v21  ;;  %v15087_v31 = vmax.f32 %v3915_v39, %v2387_v49 }
 0x5bb   : > { %v2556_v57 = vpop.f32.mrf.mxu2  ;;  %v2725_v62 = vpop.f32.mrf.mxu3 }
 0x5bc   : > { %v15089_v32 = vmax.f32 %v3916_v9, %v2556_v57  ;;  %v15091_v10 = vmax.f32 %v3917_v59, %v2725_v62  ;;  %v2221_v23 = vpop.f32.mrf.mxu0  ;;  %v2390_v47 = vpop.f32.mrf.mxu1  ;;  %v13186_v57 = vld [vmem:[%s18575_s1 + $0xe8] sm:$0xff] }
 0x5bd   : > { %v3994_v1 = vmax.f32 %v15039_v44, %v2221_v23  ;;  %v3995_v50 = vmax.f32 %v15041_v18, %v2390_v47 }
 0x5bf   : > { %10846 = vmatmul.msk.bf16.gmra.mxu0 %vm624_vm1, %v13183_v37  ;;  %10878 = vmatmul.msk.bf16.gmra.mxu1 %vm624_vm1, %v13183_v37 }
 0x5c0   : > { %10910 = vmatmul.msk.bf16.gmra.mxu2 %vm624_vm1, %v13183_v37  ;;  %10942 = vmatmul.msk.bf16.gmra.mxu3 %vm624_vm1, %v13183_v37 }
 0x5c3   : > { %v2559_v25 = vpop.f32.mrf.mxu2  ;;  %v2728_v36 = vpop.f32.mrf.mxu3 }
 0x5c4   : > { %v3996_v8 = vmax.f32 %v15050_v52, %v2559_v25  ;;  %v3997_v39 = vmax.f32 %v15052_v30, %v2728_v36  ;;  %v2223_v58 = vpop.f32.mrf.mxu0  ;;  %v2392_v41 = vpop.f32.mrf.mxu1  ;;  %v13184_v30 = vld [vmem:[%s18575_s1 + $0xd8] sm:$0xff] }
 0x5c5   : > { %v4010_v9 = vmax.f32 %v15054_v4, %v2223_v58  ;;  %v4011_v59 = vmax.f32 %v15056_v5, %v2392_v41 }
 0x5cb   : > { %v2561_v17 = vpop.f32.mrf.mxu2  ;;  %v2730_v46 = vpop.f32.mrf.mxu3 }
 0x5cc   : > { %v4012_v44 = vmax.f32 %v15062_v14, %v2561_v17  ;;  %v4013_v18 = vmax.f32 %v15064_v60, %v2730_v46  ;;  %v2226_v19 = vpop.f32.mrf.mxu0  ;;  %v2395_v45 = vpop.f32.mrf.mxu1  ;;  %v13187_v17 = vld [vmem:[%s18575_s1 + $0xf0] sm:$0xff] }
 0x5cd   : > { %v4026_v28 = vmax.f32 %v15066_v11, %v2226_v19  ;;  %v4027_v52 = vmax.f32 %v15068_v22, %v2395_v45  ;;  %v13185_v11 = vld [vmem:[%s18575_s1 + $0xe0] sm:$0xff] }
 0x5cf   : > { %10847 = vmatmul.msk.bf16.gmra.mxu0 %vm624_vm1, %v13184_v30  ;;  %10879 = vmatmul.msk.bf16.gmra.mxu1 %vm624_vm1, %v13184_v30 }
 0x5d0   : > { %10911 = vmatmul.msk.bf16.gmra.mxu2 %vm624_vm1, %v13184_v30  ;;  %10943 = vmatmul.msk.bf16.gmra.mxu3 %vm624_vm1, %v13184_v30 }
 0x5d3   : > { %v2564_v24 = vpop.f32.mrf.mxu2  ;;  %v2733_v51 = vpop.f32.mrf.mxu3 }
 0x5d4   : > { %v4028_v4 = vmax.f32 %v15081_v54, %v2564_v24  ;;  %v4029_v5 = vmax.f32 %v15083_v6, %v2733_v51  ;;  %v2228_v2 = vpop.f32.mrf.mxu0  ;;  %v2397_v3 = vpop.f32.mrf.mxu1 }
 0x5d5   : > { %v4042_v26 = vmax.f32 %v15085_v61, %v2228_v2  ;;  %v4043_v27 = vmax.f32 %v15087_v31, %v2397_v3 }
 0x5db   : > { %v2566_v7 = vpop.f32.mrf.mxu2  ;;  %v2735_v20 = vpop.f32.mrf.mxu3 }
 0x5dc   : > { %v4044_v13 = vmax.f32 %v15089_v32, %v2566_v7  ;;  %v4045_v42 = vmax.f32 %v15091_v10, %v2735_v20  ;;  %v2231_v14 = vpop.f32.mrf.mxu0  ;;  %v2400_v60 = vpop.f32.mrf.mxu1  ;;  %v13188_v7 = vld [vmem:[%s18575_s1 + $0xf8] sm:$0xff] }
 0x5dd   : > { %v15123_v0 = vmax.f32 %v3994_v1, %v2231_v14  ;;  %v15125_v38 = vmax.f32 %v3995_v50, %v2400_v60 }
 0x5df   : > { %10848 = vmatmul.msk.bf16.gmra.mxu0 %vm624_vm1, %v13185_v11  ;;  %10880 = vmatmul.msk.bf16.gmra.mxu1 %vm624_vm1, %v13185_v11 }
 0x5e0   : > { %10912 = vmatmul.msk.bf16.gmra.mxu2 %vm624_vm1, %v13185_v11  ;;  %10944 = vmatmul.msk.bf16.gmra.mxu3 %vm624_vm1, %v13185_v11 }
 0x5e3   : > { %v2569_v22 = vpop.f32.mrf.mxu2  ;;  %v2738_v48 = vpop.f32.mrf.mxu3 }
 0x5e4   : > { %v15134_v12 = vmax.f32 %v3996_v8, %v2569_v22  ;;  %v15136_v55 = vmax.f32 %v3997_v39, %v2738_v48  ;;  %v2233_v40 = vpop.f32.mrf.mxu0  ;;  %v2402_v33 = vpop.f32.mrf.mxu1 }
 0x5e5   : > { %v15138_v56 = vmax.f32 %v4010_v9, %v2233_v40  ;;  %v15140_v43 = vmax.f32 %v4011_v59, %v2402_v33 }
 0x5eb   : > { %v2571_v29 = vpop.f32.mrf.mxu2  ;;  %v2740_v53 = vpop.f32.mrf.mxu3 }
 0x5ec   : > { %v15142_v54 = vmax.f32 %v4012_v44, %v2571_v29  ;;  %v15144_v6 = vmax.f32 %v4013_v18, %v2740_v53  ;;  %v2236_v21 = vpop.f32.mrf.mxu0  ;;  %v2405_v49 = vpop.f32.mrf.mxu1  ;;  %v13189_v29 = vld [vmem:[%s18575_s1] sm:$0xff] }
 0x5ed   : > { %v15146_v61 = vmax.f32 %v4026_v28, %v2236_v21  ;;  %v15148_v31 = vmax.f32 %v4027_v52, %v2405_v49 }
 0x5ef   : > { %10849 = vmatmul.msk.bf16.gmra.mxu0 %vm624_vm1, %v13186_v57  ;;  %10881 = vmatmul.msk.bf16.gmra.mxu1 %vm624_vm1, %v13186_v57 }
 0x5f0   : > { %10913 = vmatmul.msk.bf16.gmra.mxu2 %vm624_vm1, %v13186_v57  ;;  %10945 = vmatmul.msk.bf16.gmra.mxu3 %vm624_vm1, %v13186_v57 }
 0x5f3   : > { %v2574_v62 = vpop.f32.mrf.mxu2  ;;  %v2743_v32 = vpop.f32.mrf.mxu3 }
 0x5f4   : > { %v15157_v10 = vmax.f32 %v4028_v4, %v2574_v62  ;;  %v15159_v23 = vmax.f32 %v4029_v5, %v2743_v32  ;;  %v2238_v47 = vpop.f32.mrf.mxu0  ;;  %v2407_v1 = vpop.f32.mrf.mxu1 }
 0x5f5   : > { %v15161_v50 = vmax.f32 %v4042_v26, %v2238_v47  ;;  %v15163_v37 = vmax.f32 %v4043_v27, %v2407_v1 }
 0x5fb   : > { %v2576_v25 = vpop.f32.mrf.mxu2  ;;  %v2745_v36 = vpop.f32.mrf.mxu3 }
 0x5fc   : > { %v15165_v8 = vmax.f32 %v4044_v13, %v2576_v25  ;;  %v15167_v39 = vmax.f32 %v4045_v42, %v2745_v36  ;;  %v2241_v58 = vpop.f32.mrf.mxu0  ;;  %v2410_v41 = vpop.f32.mrf.mxu1  ;;  %v13190_v25 = vld [vmem:[%s18575_s1 + $0x8] sm:$0xff] }
 0x5fd   : > { %v4122_v9 = vmax.f32 %v15123_v0, %v2241_v58  ;;  %v4123_v59 = vmax.f32 %v15125_v38, %v2410_v41 }
 0x5ff   : > { %10850 = vmatmul.msk.bf16.gmra.mxu0 %vm624_vm1, %v13187_v17  ;;  %10882 = vmatmul.msk.bf16.gmra.mxu1 %vm624_vm1, %v13187_v17 }
 0x600   : > { %10914 = vmatmul.msk.bf16.gmra.mxu2 %vm624_vm1, %v13187_v17  ;;  %10946 = vmatmul.msk.bf16.gmra.mxu3 %vm624_vm1, %v13187_v17 }
 0x603   : > { %v2579_v46 = vpop.f32.mrf.mxu2  ;;  %v2748_v44 = vpop.f32.mrf.mxu3 }
 0x604   : > { %v4124_v18 = vmax.f32 %v15134_v12, %v2579_v46  ;;  %v4125_v19 = vmax.f32 %v15136_v55, %v2748_v44  ;;  %v2243_v45 = vpop.f32.mrf.mxu0  ;;  %v2412_v28 = vpop.f32.mrf.mxu1 }
 0x605   : > { %v4138_v52 = vmax.f32 %v15138_v56, %v2243_v45  ;;  %v4139_v30 = vmax.f32 %v15140_v43, %v2412_v28 }
 0x60b   : > { %v2581_v24 = vpop.f32.mrf.mxu2  ;;  %v2750_v51 = vpop.f32.mrf.mxu3 }
 0x60c   : > { %v4140_v4 = vmax.f32 %v15142_v54, %v2581_v24  ;;  %v4141_v5 = vmax.f32 %v15144_v6, %v2750_v51  ;;  %v2246_v2 = vpop.f32.mrf.mxu0  ;;  %v2415_v3 = vpop.f32.mrf.mxu1 }
 0x60d   : > { %v4154_v26 = vmax.f32 %v15146_v61, %v2246_v2  ;;  %v4155_v27 = vmax.f32 %v15148_v31, %v2415_v3 }
 0x60f   : > { %10851 = vmatmul.msk.bf16.gmra.mxu0 %vm624_vm1, %v13188_v7  ;;  %10883 = vmatmul.msk.bf16.gmra.mxu1 %vm624_vm1, %v13188_v7 }
 0x610   : > { %10915 = vmatmul.msk.bf16.gmra.mxu2 %vm624_vm1, %v13188_v7  ;;  %10947 = vmatmul.msk.bf16.gmra.mxu3 %vm624_vm1, %v13188_v7 }
 0x613   : > { %v2584_v20 = vpop.f32.mrf.mxu2  ;;  %v2753_v13 = vpop.f32.mrf.mxu3 }
 0x614   : > { %v4156_v42 = vmax.f32 %v15157_v10, %v2584_v20  ;;  %v4157_v14 = vmax.f32 %v15159_v23, %v2753_v13  ;;  %v2248_v60 = vpop.f32.mrf.mxu0  ;;  %v2417_v0 = vpop.f32.mrf.mxu1 }
 0x615   : > { %v4170_v38 = vmax.f32 %v15161_v50, %v2248_v60  ;;  %v4171_v11 = vmax.f32 %v15163_v37, %v2417_v0 }
 0x61b   : > { %v2586_v22 = vpop.f32.mrf.mxu2  ;;  %v2755_v48 = vpop.f32.mrf.mxu3 }
 0x61c   : > { %v4172_v12 = vmax.f32 %v15165_v8, %v2586_v22  ;;  %v4173_v55 = vmax.f32 %v15167_v39, %v2755_v48  ;;  %v2251_v40 = vpop.f32.mrf.mxu0  ;;  %v2420_v33 = vpop.f32.mrf.mxu1 }
 0x61d   : > { %v15199_v56 = vmax.f32 %v4122_v9, %v2251_v40  ;;  %v15201_v43 = vmax.f32 %v4123_v59, %v2420_v33 }
 0x61f   : > { %10948 = vmatmul.msk.bf16.vlgmr.msrb.gmra.mxu0 %vm624_vm1, %v13189_v29  ;;  %10980 = vmatmul.msk.bf16.vlgmr.msrb.gmra.mxu1 %vm624_vm1, %v13189_v29 }
 0x620   : > { %11012 = vmatmul.msk.bf16.vlgmr.msrb.gmra.mxu2 %vm624_vm1, %v13189_v29  ;;  %11044 = vmatmul.msk.bf16.vlgmr.msrb.gmra.mxu3 %vm624_vm1, %v13189_v29 }
 0x623   : > { %v2589_v53 = vpop.f32.mrf.mxu2  ;;  %v2758_v54 = vpop.f32.mrf.mxu3 }
 0x624   : > { %v15210_v6 = vmax.f32 %v4124_v18, %v2589_v53  ;;  %v15212_v21 = vmax.f32 %v4125_v19, %v2758_v54  ;;  %v2253_v49 = vpop.f32.mrf.mxu0  ;;  %v2422_v61 = vpop.f32.mrf.mxu1  ;;  %v13194_v54 = vld [vmem:[%s18575_s1 + $0x28] sm:$0xff] }
 0x625   : > { %v15214_v31 = vmax.f32 %v4138_v52, %v2253_v49  ;;  %v15216_v57 = vmax.f32 %v4139_v30, %v2422_v61  ;;  %v13191_v52 = vld [vmem:[%s18575_s1 + $0x10] sm:$0xff] }
 0x62b   : > { %v2591_v62 = vpop.f32.mrf.mxu2  ;;  %v2760_v32 = vpop.f32.mrf.mxu3 }
 0x62c   : > { %v15218_v10 = vmax.f32 %v4140_v4, %v2591_v62  ;;  %v15220_v23 = vmax.f32 %v4141_v5, %v2760_v32  ;;  %v2256_v47 = vpop.f32.mrf.mxu0  ;;  %v2425_v1 = vpop.f32.mrf.mxu1 }
 0x62d   : > { %v15222_v50 = vmax.f32 %v4154_v26, %v2256_v47  ;;  %v15224_v37 = vmax.f32 %v4155_v27, %v2425_v1  ;;  %v13192_v27 = vld [vmem:[%s18575_s1 + $0x18] sm:$0xff] }
 0x62f   : > { %10949 = vmatmul.msk.bf16.gmra.mxu0 %vm624_vm1, %v13190_v25  ;;  %10981 = vmatmul.msk.bf16.gmra.mxu1 %vm624_vm1, %v13190_v25 }
 0x630   : > { %11013 = vmatmul.msk.bf16.gmra.mxu2 %vm624_vm1, %v13190_v25  ;;  %11045 = vmatmul.msk.bf16.gmra.mxu3 %vm624_vm1, %v13190_v25 }
 0x633   : > { %v2594_v36 = vpop.f32.mrf.mxu2  ;;  %v2763_v8 = vpop.f32.mrf.mxu3 }
 0x634   : > { %v15233_v39 = vmax.f32 %v4156_v42, %v2594_v36  ;;  %v15235_v58 = vmax.f32 %v4157_v14, %v2763_v8  ;;  %v2258_v41 = vpop.f32.mrf.mxu0  ;;  %v2427_v9 = vpop.f32.mrf.mxu1 }
 0x635   : > { %v15237_v59 = vmax.f32 %v4170_v38, %v2258_v41  ;;  %v15239_v17 = vmax.f32 %v4171_v11, %v2427_v9  ;;  %v13193_v11 = vld [vmem:[%s18575_s1 + $0x20] sm:$0xff] }
 0x63b   : > { %v2596_v46 = vpop.f32.mrf.mxu2  ;;  %v2765_v44 = vpop.f32.mrf.mxu3 }
 0x63c   : > { %v15241_v18 = vmax.f32 %v4172_v12, %v2596_v46  ;;  %v15243_v19 = vmax.f32 %v4173_v55, %v2765_v44  ;;  %v2261_v45 = vpop.f32.mrf.mxu0  ;;  %v2430_v28 = vpop.f32.mrf.mxu1 }
 0x63d   : > { %v4250_v47 = vmax.f32 %v15199_v56, %v2261_v45  ;;  %v4251_v1 = vmax.f32 %v15201_v43, %v2430_v28  ;;  %v13195_v56 = vld [vmem:[%s18575_s1 + $0x30] sm:$0xff] }
 0x63f   : > { %10950 = vmatmul.msk.bf16.gmra.mxu0 %vm624_vm1, %v13191_v52  ;;  %10982 = vmatmul.msk.bf16.gmra.mxu1 %vm624_vm1, %v13191_v52 }
 0x640   : > { %11014 = vmatmul.msk.bf16.gmra.mxu2 %vm624_vm1, %v13191_v52  ;;  %11046 = vmatmul.msk.bf16.gmra.mxu3 %vm624_vm1, %v13191_v52 }
 0x643   : > { %v15252_v30 = vpop.f32.mrf.mxu2  ;;  %v15254_v24 = vpop.f32.mrf.mxu3 }
 0x644   : > { %v15256_v51 = vpop.f32.mrf.mxu0  ;;  %v15258_v4 = vpop.f32.mrf.mxu1  ;;  %v4252_v43 = vmax.f32 %v15210_v6, %v15252_v30  ;;  %v4253_v45 = vmax.f32 %v15212_v21, %v15254_v24 }
 0x645   : > { %v4266_v28 = vmax.f32 %v15214_v31, %v15256_v51 }
 0x64b   : > { %v15260_v5 = vpop.f32.mrf.mxu2  ;;  %v15262_v2 = vpop.f32.mrf.mxu3 }
 0x64c   : > { %v15264_v3 = vpop.f32.mrf.mxu0  ;;  %v15266_v26 = vpop.f32.mrf.mxu1 }
 0x64f   : > { %10951 = vmatmul.msk.bf16.gmra.mxu0 %vm624_vm1, %v13192_v27  ;;  %10983 = vmatmul.msk.bf16.gmra.mxu1 %vm624_vm1, %v13192_v27 }
 0x650   : > { %11015 = vmatmul.msk.bf16.gmra.mxu2 %vm624_vm1, %v13192_v27  ;;  %11047 = vmatmul.msk.bf16.gmra.mxu3 %vm624_vm1, %v13192_v27 }
 0x653   : > { %v15275_v7 = vpop.f32.mrf.mxu2  ;;  %v15277_v20 = vpop.f32.mrf.mxu3 }
 0x654   : > { %v15279_v13 = vpop.f32.mrf.mxu0  ;;  %v15281_v42 = vpop.f32.mrf.mxu1 }
 0x65b   : > { %v15283_v14 = vpop.f32.mrf.mxu2  ;;  %v15285_v60 = vpop.f32.mrf.mxu3 }
 0x65c   : > { %v2271_v0 = vpop.f32.mrf.mxu0  ;;  %v2440_v38 = vpop.f32.mrf.mxu1 }
 0x65d   : > { %v4314_v25 = vmax.f32 %v4250_v47, %v2271_v0  ;;  %v4315_v36 = vmax.f32 %v4251_v1, %v2440_v38  ;;  %v4267_v0 = vmax.f32 %v15216_v57, %v15258_v4 }
 0x65f   : > { %10952 = vmatmul.msk.bf16.gmra.mxu0 %vm624_vm1, %v13193_v11  ;;  %10984 = vmatmul.msk.bf16.gmra.mxu1 %vm624_vm1, %v13193_v11 }
 0x660   : > { %11016 = vmatmul.msk.bf16.gmra.mxu2 %vm624_vm1, %v13193_v11  ;;  %11048 = vmatmul.msk.bf16.gmra.mxu3 %vm624_vm1, %v13193_v11 }
 0x663   : > { %v2609_v22 = vpop.f32.mrf.mxu2  ;;  %v2778_v48 = vpop.f32.mrf.mxu3 }
 0x664   : > { %v2273_v12 = vpop.f32.mrf.mxu0  ;;  %v2442_v55 = vpop.f32.mrf.mxu1  ;;  %v4316_v47 = vmax.f32 %v4252_v43, %v2609_v22  ;;  %v4317_v1 = vmax.f32 %v4253_v45, %v2778_v48 }
 0x66b   : > { %v2611_v40 = vpop.f32.mrf.mxu2  ;;  %v2780_v33 = vpop.f32.mrf.mxu3 }
 0x66c   : > { %v15294_v29 = vpop.f32.mrf.mxu0  ;;  %v15296_v53 = vpop.f32.mrf.mxu1 }
 0x66f   : > { %10953 = vmatmul.msk.bf16.gmra.mxu0 %vm624_vm1, %v13194_v54  ;;  %10985 = vmatmul.msk.bf16.gmra.mxu1 %vm624_vm1, %v13194_v54 }
 0x670   : > { %11017 = vmatmul.msk.bf16.gmra.mxu2 %vm624_vm1, %v13194_v54  ;;  %11049 = vmatmul.msk.bf16.gmra.mxu3 %vm624_vm1, %v13194_v54 }
 0x673   : > { %v15305_v49 = vpop.f32.mrf.mxu2  ;;  %v15307_v61 = vpop.f32.mrf.mxu3 }
 0x674   : > { %v15309_v62 = vpop.f32.mrf.mxu0  ;;  %v15311_v32 = vpop.f32.mrf.mxu1 }
 0x67b   : > { %v15315_v8 = vpop.f32.mrf.mxu2  ;;  %v15317_v41 = vpop.f32.mrf.mxu3 }
 0x67c   : > { %v2281_v9 = vpop.f32.mrf.mxu0  ;;  %v2450_v46 = vpop.f32.mrf.mxu1 }
 0x67d   : > { %v4378_v44 = vmax.f32 %v4314_v25, %v2281_v9  ;;  %v4379_v52 = vmax.f32 %v4315_v36, %v2450_v46  ;;  %v4330_v25 = vmax.f32 %v4266_v28, %v2273_v12  ;;  %v4331_v36 = vmax.f32 %v4267_v0, %v2442_v55 }
 0x67e   : > { %v4268_v12 = vmax.f32 %v15218_v10, %v15260_v5  ;;  %v4269_v55 = vmax.f32 %v15220_v23, %v15262_v2 }
 0x67f   : > { %v4466_v27 = vadd.f32 %v13955_v15, %v4378_v44  ;;  %v4467_v11 = vadd.f32 %v13955_v15, %v4379_v52  ;;  %10954 = vmatmul.msk.bf16.gmra.mxu0 %vm624_vm1, %v13195_v56  ;;  %10986 = vmatmul.msk.bf16.gmra.mxu1 %vm624_vm1, %v13195_v56 }
 0x680   : > { %11018 = vmatmul.msk.bf16.gmra.mxu2 %vm624_vm1, %v13195_v56  ;;  %11050 = vmatmul.msk.bf16.gmra.mxu3 %vm624_vm1, %v13195_v56  ;;  %v4283_v56 = vmax.f32 %v15224_v37, %v15266_v26  ;;  %v4332_v28 = vmax.f32 %v4268_v12, %v2611_v40  ;;  %v4333_v0 = vmax.f32 %v4269_v55, %v2780_v33 }
 0x681   : > { %v4530_v38 = vmax.f32 %v4466_v27, 0.0  ;;  %v4531_v54 = vmax.f32 %v4467_v11, 0.0  ;;  %v4282_v11 = vmax.f32 %v15222_v50, %v15264_v3  ;;  %v4300_v12 = vmax.f32 %v15241_v18, %v15283_v14 }
 0x682   : > { %v4347_v10 = vmax.f32 %v4283_v56, %v15296_v53  ;;  %v4301_v55 = vmax.f32 %v15243_v19, %v15285_v60 }
 0x683   : > { %v4590_v6 = vpack.c.bf16 %v4531_v54, %v4530_v38  ;;  %v2619_v30 = vpop.f32.mrf.mxu2  ;;  %v2788_v9 = vpop.f32.mrf.mxu3  ;;  %v4346_v54 = vmax.f32 %v4282_v11, %v15294_v29 }
 0x684   : > { %v4380_v21 = vmax.f32 %v4316_v47, %v2619_v30  ;;  %v4381_v24 = vmax.f32 %v4317_v1, %v2788_v9  ;;  %v2283_v46 = vpop.f32.mrf.mxu0  ;;  %v2452_v44 = vpop.f32.mrf.mxu1 }
 0x685   : > { %4637 = vst.msk [vmem:[#allocation2 + $0x80] sm:$0xff] %vm13980_vm4, %v4590_v6  ;;  %v4394_v31 = vmax.f32 %v4330_v25, %v2283_v46  ;;  %v4395_v51 = vmax.f32 %v4331_v36, %v2452_v44  ;;  %v13196_v25 = vld [vmem:[%s18575_s1 + $0x38] sm:$0xff]  ;;  %v4284_v36 = vmax.f32 %v15233_v39, %v15275_v7  ;;  %v4285_v6 = vmax.f32 %v15235_v58, %v15277_v20 }
 0x686   : > { %v4468_v57 = vadd.f32 %v13955_v15, %v4380_v21  ;;  %v4469_v4 = vadd.f32 %v13955_v15, %v4381_v24  ;;  %v4298_v21 = vmax.f32 %v15237_v59, %v15279_v13  ;;  %v4299_v24 = vmax.f32 %v15239_v17, %v15281_v42 }
 0x687   : > { %v4482_v22 = vadd.f32 %v13984_v16, %v4394_v31  ;;  %v4483_v48 = vadd.f32 %v13984_v16, %v4395_v51  ;;  %v4348_v31 = vmax.f32 %v4284_v36, %v15305_v49  ;;  %v4349_v39 = vmax.f32 %v4285_v6, %v15307_v61 }
 0x688   : > { %v4532_v52 = vmax.f32 %v4468_v57, 0.0  ;;  %v4533_v27 = vmax.f32 %v4469_v4, 0.0  ;;  %v4362_v58 = vmax.f32 %v4298_v21, %v15309_v62  ;;  %v4363_v20 = vmax.f32 %v4299_v24, %v15311_v32  ;;  %v12877_v21 = vld [vmem:[%s18577_s3 + $0x254] sm:$0xf0] }
 0x689   : > { %v4546_v43 = vmax.f32 %v4482_v22, 0.0  ;;  %v4547_v45 = vmax.f32 %v4483_v48, 0.0 }
 0x68a   : > { %v4591_v38 = vpack.c.bf16 %v4533_v27, %v4532_v52 }
 0x68b   : > { %v4598_v5 = vpack.c.bf16 %v4547_v45, %v4546_v43  ;;  %v2621_v47 = vpop.f32.mrf.mxu2  ;;  %v2790_v23 = vpop.f32.mrf.mxu3  ;;  %v4364_v43 = vmax.f32 %v4300_v12, %v15315_v8  ;;  %v4365_v45 = vmax.f32 %v4301_v55, %v15317_v41  ;;  %v13197_v41 = vld [vmem:[%s18575_s1 + $0x40] sm:$0xff] }
 0x68c   : > { %4641 = vst.msk [vmem:[#allocation2 + $0xa0] sm:$0xff] %vm13980_vm4, %v4591_v38  ;;  %v4396_v2 = vmax.f32 %v4332_v28, %v2621_v47  ;;  %v4397_v50 = vmax.f32 %v4333_v0, %v2790_v23  ;;  %v2286_v3 = vpop.f32.mrf.mxu0  ;;  %v2455_v1 = vpop.f32.mrf.mxu1 }
 0x68d   : > { %4638 = vst.msk [vmem:[#allocation2 + $0x88] sm:$0xff] %vm13980_vm4, %v4598_v5  ;;  %v4410_v37 = vmax.f32 %v4346_v54, %v2286_v3  ;;  %v4411_v26 = vmax.f32 %v4347_v10, %v2455_v1 }
 0x68e   : > { %v4484_v40 = vadd.f32 %v13984_v16, %v4396_v2  ;;  %v4485_v33 = vadd.f32 %v13984_v16, %v4397_v50 }
 0x68f   : > { %v4498_v29 = vadd.f32 %v13996_v35, %v4410_v37  ;;  %v4499_v53 = vadd.f32 %v13996_v35, %v4411_v26  ;;  %10955 = vmatmul.msk.bf16.gmra.mxu0 %vm624_vm1, %v13196_v25  ;;  %10987 = vmatmul.msk.bf16.gmra.mxu1 %vm624_vm1, %v13196_v25  ;;  %v12872_v37 = vld [vmem:[%s18577_s3 + $0x234] sm:$0xf]  ;;  %v11488_v26 = vld [vmem:[%s18577_s3 + $0x258] sm:$0xf0] }
 0x690   : > { %v4548_v30 = vmax.f32 %v4484_v40, 0.0  ;;  %v4549_v9 = vmax.f32 %v4485_v33, 0.0  ;;  %11019 = vmatmul.msk.bf16.gmra.mxu2 %vm624_vm1, %v13196_v25  ;;  %11051 = vmatmul.msk.bf16.gmra.mxu3 %vm624_vm1, %v13196_v25  ;;  %v12932_v40 = vld [vmem:[%s18577_s3 + $0x414] sm:$0xf]  ;;  %v11491_v33 = vor.u32 %v12872_v37, %v11488_v26 }
 0x691   : > { %v4562_v46 = vmax.f32 %v4498_v29, 0.0  ;;  %v4563_v44 = vmax.f32 %v4499_v53, 0.0  ;;  %v11728_v29 = vld [vmem:[%s18577_s3 + $0x438] sm:$0xf0] }
 0x692   : > { %v4599_v7 = vpack.c.bf16 %v4549_v9, %v4548_v30  ;;  %v11731_v53 = vor.u32 %v12932_v40, %v11728_v29  ;;  %5896 = vmatpush.bf16.msra.mxu2 %v11491_v33  ;;  %v11486_v9 = vld [vmem:[%s18577_s3 + $0x230] sm:$0xf]  ;;  %v13201_v40 = vld [vmem:[%s18575_s1 + $0x60] sm:$0xff] }
 0x693   : > { %v4606_v51 = vpack.c.bf16 %v4563_v44, %v4562_v46  ;;  %v2624_v57 = vpop.f32.mrf.mxu2  ;;  %v2793_v4 = vpop.f32.mrf.mxu3  ;;  %v11487_v24 = vor.u32 %v12877_v21, %v11486_v9  ;;  %v13198_v46 = vld [vmem:[%s18575_s1 + $0x48] sm:$0xff]  ;;  %v11726_v44 = vld [vmem:[%s18577_s3 + $0x410] sm:$0xf]  ;;  %v12862_v21 = vld [vmem:[%s18577_s3 + $0x1e4] sm:$0xf] }
 0x694   : > { %4642 = vst.msk [vmem:[#allocation2 + $0xa8] sm:$0xff] %vm13980_vm4, %v4599_v7  ;;  %v4412_v59 = vmax.f32 %v4348_v31, %v2624_v57  ;;  %v4413_v13 = vmax.f32 %v4349_v39, %v2793_v4  ;;  %v2288_v17 = vpop.f32.mrf.mxu0  ;;  %v2457_v42 = vpop.f32.mrf.mxu1  ;;  %5987 = vmatpush.bf16.msra.mxu3 %v11731_v53  ;;  %v12937_v31 = vld [vmem:[%s18577_s3 + $0x434] sm:$0xf0] }
 0x695   : > { %4639 = vst.msk [vmem:[#allocation2 + $0x90] sm:$0xff] %vm13980_vm4, %v4606_v51  ;;  %v4426_v49 = vmax.f32 %v4362_v58, %v2288_v17  ;;  %v4427_v61 = vmax.f32 %v4363_v20, %v2457_v42  ;;  %5718 = vmatpush.bf16.msra.mxu0 %v11487_v24  ;;  %v11727_v39 = vor.u32 %v12937_v31, %v11726_v44  ;;  %v11448_v24 = vld [vmem:[%s18577_s3 + $0x208] sm:$0xf0] }
 0x696   : > { %v4500_v22 = vadd.f32 %v13996_v35, %v4412_v59  ;;  %v4501_v62 = vadd.f32 %v13996_v35, %v4413_v13 }
 0x697   : > { %v4514_v32 = vadd.f32 %v14031_v34, %v4426_v49  ;;  %v4515_v48 = vadd.f32 %v14031_v34, %v4427_v61  ;;  %5809 = vmatpush.bf16.msra.mxu1 %v11727_v39  ;;  %v13199_v49 = vld [vmem:[%s18575_s1 + $0x50] sm:$0xff] }
 0x698   : > { %v4564_v52 = vmax.f32 %v4500_v22, 0.0  ;;  %v4565_v27 = vmax.f32 %v4501_v62, 0.0 }
 0x699   : > { %v4578_v11 = vmax.f32 %v4514_v32, 0.0  ;;  %v4579_v56 = vmax.f32 %v4515_v48, 0.0 }
 0x69a   : > { %v4607_v28 = vpack.c.bf16 %v4565_v27, %v4564_v52 }
 0x69b   : > { %v4614_v0 = vpack.c.bf16 %v4579_v56, %v4578_v11  ;;  %v2626_v38 = vpop.f32.mrf.mxu2  ;;  %v2795_v54 = vpop.f32.mrf.mxu3 }
 0x69c   : > { %4643 = vst.msk [vmem:[#allocation2 + $0xb0] sm:$0xff] %vm13980_vm4, %v4607_v28  ;;  %v4428_v10 = vmax.f32 %v4364_v43, %v2626_v38  ;;  %v4429_v18 = vmax.f32 %v4365_v45, %v2795_v54  ;;  %v15395_v14 = vpop.f32.mrf.mxu0  ;;  %v15397_v19 = vpop.f32.mrf.mxu1  ;;  %v13200_v54 = vld [vmem:[%s18575_s1 + $0x58] sm:$0xff] }
 0x69d   : > { %4640 = vst.msk [vmem:[#allocation2 + $0x98] sm:$0xff] %vm13980_vm4, %v4614_v0 }
 0x69e   : > { %v4516_v60 = vadd.f32 %v14031_v34, %v4428_v10  ;;  %v4517_v8 = vadd.f32 %v14031_v34, %v4429_v18 }
 0x69f   : > { %10956 = vmatmul.msk.bf16.gmra.mxu0 %vm624_vm1, %v13197_v41  ;;  %10988 = vmatmul.msk.bf16.gmra.mxu1 %vm624_vm1, %v13197_v41 }
 0x6a0   : > { %v4580_v5 = vmax.f32 %v4516_v60, 0.0  ;;  %v4581_v47 = vmax.f32 %v4517_v8, 0.0  ;;  %11020 = vmatmul.msk.bf16.gmra.mxu2 %vm624_vm1, %v13197_v41  ;;  %11052 = vmatmul.msk.bf16.gmra.mxu3 %vm624_vm1, %v13197_v41 }
 0x6a2   : > { %v4615_v23 = vpack.c.bf16 %v4581_v47, %v4580_v5 }
 0x6a3   : > { %v15410_v2 = vpop.f32.mrf.mxu2  ;;  %v15412_v50 = vpop.f32.mrf.mxu3 }
 0x6a4   : > { %4644 = vst.msk [vmem:[#allocation2 + $0xb8] sm:$0xff] %vm13980_vm4, %v4615_v23  ;;  %v15416_v3 = vpop.f32.mrf.mxu0  ;;  %v15418_v1 = vpop.f32.mrf.mxu1 }
 0x6ab   : > { %v15432_v25 = vpop.f32.mrf.mxu2  ;;  %v15434_v36 = vpop.f32.mrf.mxu3 }
 0x6ac   : > { %v15436_v6 = vpop.f32.mrf.mxu0  ;;  %v15438_v30 = vpop.f32.mrf.mxu1 }
 0x6af   : > { %10957 = vmatmul.msk.bf16.gmra.mxu0 %vm624_vm1, %v13198_v46  ;;  %10989 = vmatmul.msk.bf16.gmra.mxu1 %vm624_vm1, %v13198_v46 }
 0x6b0   : > { %11021 = vmatmul.msk.bf16.gmra.mxu2 %vm624_vm1, %v13198_v46  ;;  %11053 = vmatmul.msk.bf16.gmra.mxu3 %vm624_vm1, %v13198_v46  ;;  %v11451_v46 = vor.u32 %v12862_v21, %v11448_v24 }
 0x6b2   : > { %5897 = vmatpush.bf16.msra.mxu2 %v11451_v46 }
 0x6b3   : > { %v15459_v7 = vpop.f32.mrf.mxu2  ;;  %v15461_v58 = vpop.f32.mrf.mxu3 }
 0x6b4   : > { %v15463_v20 = vpop.f32.mrf.mxu0  ;;  %v15465_v51 = vpop.f32.mrf.mxu1 }
 0x6bb   : > { %v15467_v57 = vpop.f32.mrf.mxu2  ;;  %v15469_v4 = vpop.f32.mrf.mxu3 }
 0x6bc   : > { %v2817_v59 = vpop.f32.mrf.mxu0  ;;  %v2986_v13 = vpop.f32.mrf.mxu1 }
 0x6bd   : > { %v3486_v17 = vmax.f32 %v15395_v14, %v2817_v59  ;;  %v3487_v42 = vmax.f32 %v15397_v19, %v2986_v13  ;;  %v12867_v59 = vld [vmem:[%s18577_s3 + $0x204] sm:$0xf0] }
 0x6bf   : > { %10958 = vmatmul.msk.bf16.gmra.mxu0 %vm624_vm1, %v13199_v49  ;;  %10990 = vmatmul.msk.bf16.gmra.mxu1 %vm624_vm1, %v13199_v49 }
 0x6c0   : > { %11022 = vmatmul.msk.bf16.gmra.mxu2 %vm624_vm1, %v13199_v49  ;;  %11054 = vmatmul.msk.bf16.gmra.mxu3 %vm624_vm1, %v13199_v49 }
 0x6c3   : > { %v3155_v61 = vpop.f32.mrf.mxu2  ;;  %v3324_v22 = vpop.f32.mrf.mxu3 }
 0x6c4   : > { %v3488_v62 = vmax.f32 %v15410_v2, %v3155_v61  ;;  %v3489_v32 = vmax.f32 %v15412_v50, %v3324_v22  ;;  %v2819_v48 = vpop.f32.mrf.mxu0  ;;  %v2988_v12 = vpop.f32.mrf.mxu1 }
 0x6c5   : > { %v3502_v55 = vmax.f32 %v15416_v3, %v2819_v48  ;;  %v3503_v52 = vmax.f32 %v15418_v1, %v2988_v12 }
 0x6cb   : > { %v3157_v27 = vpop.f32.mrf.mxu2  ;;  %v3326_v11 = vpop.f32.mrf.mxu3 }
 0x6cc   : > { %v3504_v56 = vmax.f32 %v15432_v25, %v3157_v27  ;;  %v3505_v43 = vmax.f32 %v15434_v36, %v3326_v11  ;;  %v2822_v45 = vpop.f32.mrf.mxu0  ;;  %v2991_v28 = vpop.f32.mrf.mxu1 }
 0x6cd   : > { %v3518_v0 = vmax.f32 %v15436_v6, %v2822_v45  ;;  %v3519_v38 = vmax.f32 %v15438_v30, %v2991_v28 }
 0x6cf   : > { %10959 = vmatmul.msk.bf16.gmra.mxu0 %vm624_vm1, %v13200_v54  ;;  %10991 = vmatmul.msk.bf16.gmra.mxu1 %vm624_vm1, %v13200_v54 }
 0x6d0   : > { %11023 = vmatmul.msk.bf16.gmra.mxu2 %vm624_vm1, %v13200_v54  ;;  %11055 = vmatmul.msk.bf16.gmra.mxu3 %vm624_vm1, %v13200_v54  ;;  %v11688_v54 = vld [vmem:[%s18577_s3 + $0x3e8] sm:$0xf0] }
 0x6d3   : > { %v3160_v10 = vpop.f32.mrf.mxu2  ;;  %v3329_v18 = vpop.f32.mrf.mxu3 }
 0x6d4   : > { %v3520_v14 = vmax.f32 %v15459_v7, %v3160_v10  ;;  %v3521_v19 = vmax.f32 %v15461_v58, %v3329_v18  ;;  %v2824_v60 = vpop.f32.mrf.mxu0  ;;  %v2993_v8 = vpop.f32.mrf.mxu1 }
 0x6d5   : > { %v3534_v41 = vmax.f32 %v15463_v20, %v2824_v60  ;;  %v3535_v5 = vmax.f32 %v15465_v51, %v2993_v8 }
 0x6db   : > { %v3162_v47 = vpop.f32.mrf.mxu2  ;;  %v3331_v23 = vpop.f32.mrf.mxu3 }
 0x6dc   : > { %v3536_v2 = vmax.f32 %v15467_v57, %v3162_v47  ;;  %v3537_v50 = vmax.f32 %v15469_v4, %v3331_v23  ;;  %v2827_v3 = vpop.f32.mrf.mxu0  ;;  %v2996_v1 = vpop.f32.mrf.mxu1  ;;  %v11446_v4 = vld [vmem:[%s18577_s3 + $0x1e0] sm:$0xf] }
 0x6dd   : > { %v15501_v37 = vmax.f32 %v3486_v17, %v2827_v3  ;;  %v15503_v26 = vmax.f32 %v3487_v42, %v2996_v1  ;;  %v11447_v13 = vor.u32 %v12867_v59, %v11446_v4  ;;  %v13202_v17 = vld [vmem:[%s18575_s1 + $0x68] sm:$0xff]  ;;  %v11686_v23 = vld [vmem:[%s18577_s3 + $0x3c0] sm:$0xf] }
 0x6de   : > { %v13205_v59 = vld [vmem:[%s18575_s1 + $0x80] sm:$0xff] }
 0x6df   : > { %10960 = vmatmul.msk.bf16.gmra.mxu0 %vm624_vm1, %v13201_v40  ;;  %10992 = vmatmul.msk.bf16.gmra.mxu1 %vm624_vm1, %v13201_v40 }
 0x6e0   : > { %11024 = vmatmul.msk.bf16.gmra.mxu2 %vm624_vm1, %v13201_v40  ;;  %11056 = vmatmul.msk.bf16.gmra.mxu3 %vm624_vm1, %v13201_v40 }
 0x6e1   : > { %5719 = vmatpush.bf16.msra.mxu0 %v11447_v13 }
 0x6e3   : > { %v3165_v33 = vpop.f32.mrf.mxu2  ;;  %v3334_v29 = vpop.f32.mrf.mxu3 }
 0x6e4   : > { %v15512_v53 = vmax.f32 %v3488_v62, %v3165_v33  ;;  %v15514_v25 = vmax.f32 %v3489_v32, %v3334_v29  ;;  %v2829_v36 = vpop.f32.mrf.mxu0  ;;  %v2998_v6 = vpop.f32.mrf.mxu1 }
 0x6e5   : > { %v15516_v30 = vmax.f32 %v3502_v55, %v2829_v36  ;;  %v15518_v9 = vmax.f32 %v3503_v52, %v2998_v6 }
 0x6eb   : > { %v3167_v44 = vpop.f32.mrf.mxu2  ;;  %v3336_v31 = vpop.f32.mrf.mxu3 }
 0x6ec   : > { %v15526_v39 = vmax.f32 %v3504_v56, %v3167_v44  ;;  %v15528_v7 = vmax.f32 %v3505_v43, %v3336_v31  ;;  %v2832_v58 = vpop.f32.mrf.mxu0  ;;  %v3001_v20 = vpop.f32.mrf.mxu1 }
 0x6ed   : > { %v15530_v51 = vmax.f32 %v3518_v0, %v2832_v58  ;;  %v15532_v57 = vmax.f32 %v3519_v38, %v3001_v20  ;;  %v13203_v0 = vld [vmem:[%s18575_s1 + $0x70] sm:$0xff]  ;;  %v12922_v38 = vld [vmem:[%s18577_s3 + $0x3c4] sm:$0xf] }
 0x6ee   : > { %v11691_v10 = vor.u32 %v12922_v38, %v11688_v54  ;;  %v11406_v38 = vld [vmem:[%s18577_s3 + $0x190] sm:$0xf]  ;;  %v12857_v54 = vld [vmem:[%s18577_s3 + $0x1b4] sm:$0xf0] }
 0x6ef   : > { %10961 = vmatmul.msk.bf16.gmra.mxu0 %vm624_vm1, %v13202_v17  ;;  %10993 = vmatmul.msk.bf16.gmra.mxu1 %vm624_vm1, %v13202_v17 }
 0x6f0   : > { %11025 = vmatmul.msk.bf16.gmra.mxu2 %vm624_vm1, %v13202_v17  ;;  %11057 = vmatmul.msk.bf16.gmra.mxu3 %vm624_vm1, %v13202_v17 }
 0x6f1   : > { %5988 = vmatpush.bf16.msra.mxu3 %v11691_v10  ;;  %v11407_v10 = vor.u32 %v12857_v54, %v11406_v38  ;;  %v13209_v54 = vld [vmem:[%s18575_s1 + $0xa0] sm:$0xff] }
 0x6f3   : > { %v3170_v42 = vpop.f32.mrf.mxu2  ;;  %v3339_v49 = vpop.f32.mrf.mxu3  ;;  %5720 = vmatpush.bf16.msra.mxu0 %v11407_v10 }
 0x6f4   : > { %v15547_v61 = vmax.f32 %v3520_v14, %v3170_v42  ;;  %v15549_v22 = vmax.f32 %v3521_v19, %v3339_v49  ;;  %v2834_v62 = vpop.f32.mrf.mxu0  ;;  %v3003_v32 = vpop.f32.mrf.mxu1 }
 0x6f5   : > { %v15551_v48 = vmax.f32 %v3534_v41, %v2834_v62  ;;  %v15553_v12 = vmax.f32 %v3535_v5, %v3003_v32 }
 0x6fb   : > { %v3172_v55 = vpop.f32.mrf.mxu2  ;;  %v3341_v52 = vpop.f32.mrf.mxu3 }
 0x6fc   : > { %v15555_v27 = vmax.f32 %v3536_v2, %v3172_v55  ;;  %v15557_v11 = vmax.f32 %v3537_v50, %v3341_v52  ;;  %v2837_v56 = vpop.f32.mrf.mxu0  ;;  %v3006_v43 = vpop.f32.mrf.mxu1  ;;  %v12927_v2 = vld [vmem:[%s18577_s3 + $0x3e4] sm:$0xf0] }
 0x6fd   : > { %v3614_v45 = vmax.f32 %v15501_v37, %v2837_v56  ;;  %v3615_v28 = vmax.f32 %v15503_v26, %v3006_v43  ;;  %v11687_v50 = vor.u32 %v12927_v2, %v11686_v23 }
 0x6ff   : > { %10962 = vmatmul.msk.bf16.gmra.mxu0 %vm624_vm1, %v13203_v0  ;;  %10994 = vmatmul.msk.bf16.gmra.mxu1 %vm624_vm1, %v13203_v0 }
 0x700   : > { %11026 = vmatmul.msk.bf16.gmra.mxu2 %vm624_vm1, %v13203_v0  ;;  %11058 = vmatmul.msk.bf16.gmra.mxu3 %vm624_vm1, %v13203_v0 }
 0x701   : > { %5810 = vmatpush.bf16.msra.mxu1 %v11687_v50 }
 0x703   : > { %v3175_v18 = vpop.f32.mrf.mxu2  ;;  %v3344_v14 = vpop.f32.mrf.mxu3 }
 0x704   : > { %v3616_v19 = vmax.f32 %v15512_v53, %v3175_v18  ;;  %v3617_v60 = vmax.f32 %v15514_v25, %v3344_v14  ;;  %v2839_v8 = vpop.f32.mrf.mxu0  ;;  %v3008_v41 = vpop.f32.mrf.mxu1  ;;  %v13204_v25 = vld [vmem:[%s18575_s1 + $0x78] sm:$0xff]  ;;  %v13206_v18 = vld [vmem:[%s18575_s1 + $0x88] sm:$0xff] }
 0x705   : > { %v3630_v5 = vmax.f32 %v15516_v30, %v2839_v8  ;;  %v3631_v47 = vmax.f32 %v15518_v9, %v3008_v41 }
 0x70b   : > { %v3177_v3 = vpop.f32.mrf.mxu2  ;;  %v3346_v1 = vpop.f32.mrf.mxu3 }
 0x70c   : > { %v3632_v37 = vmax.f32 %v15526_v39, %v3177_v3  ;;  %v3633_v26 = vmax.f32 %v15528_v7, %v3346_v1  ;;  %v2842_v40 = vpop.f32.mrf.mxu0  ;;  %v3011_v33 = vpop.f32.mrf.mxu1 }
 0x70d   : > { %v3646_v29 = vmax.f32 %v15530_v51, %v2842_v40  ;;  %v3647_v53 = vmax.f32 %v15532_v57, %v3011_v33 }
 0x70f   : > { %10963 = vmatmul.msk.bf16.gmra.mxu0 %vm624_vm1, %v13204_v25  ;;  %10995 = vmatmul.msk.bf16.gmra.mxu1 %vm624_vm1, %v13204_v25 }
 0x710   : > { %11027 = vmatmul.msk.bf16.gmra.mxu2 %vm624_vm1, %v13204_v25  ;;  %11059 = vmatmul.msk.bf16.gmra.mxu3 %vm624_vm1, %v13204_v25 }
 0x713   : > { %v3180_v36 = vpop.f32.mrf.mxu2  ;;  %v3349_v6 = vpop.f32.mrf.mxu3 }
 0x714   : > { %v3648_v30 = vmax.f32 %v15547_v61, %v3180_v36  ;;  %v3649_v9 = vmax.f32 %v15549_v22, %v3349_v6  ;;  %v2844_v21 = vpop.f32.mrf.mxu0  ;;  %v3013_v24 = vpop.f32.mrf.mxu1 }
 0x715   : > { %v3662_v46 = vmax.f32 %v15551_v48, %v2844_v21  ;;  %v3663_v44 = vmax.f32 %v15553_v12, %v3013_v24  ;;  %v12852_v48 = vld [vmem:[%s18577_s3 + $0x194] sm:$0xf]  ;;  %v11408_v12 = vld [vmem:[%s18577_s3 + $0x1b8] sm:$0xf0] }
 0x716   : > { %v11411_v55 = vor.u32 %v12852_v48, %v11408_v12 }
 0x718   : > { %5898 = vmatpush.bf16.msra.mxu2 %v11411_v55 }
 0x71b   : > { %v3182_v31 = vpop.f32.mrf.mxu2  ;;  %v3351_v39 = vpop.f32.mrf.mxu3 }
 0x71c   : > { %v3664_v7 = vmax.f32 %v15555_v27, %v3182_v31  ;;  %v3665_v58 = vmax.f32 %v15557_v11, %v3351_v39  ;;  %v2847_v20 = vpop.f32.mrf.mxu0  ;;  %v3016_v51 = vpop.f32.mrf.mxu1 }
 0x71d   : > { %v15601_v57 = vmax.f32 %v3614_v45, %v2847_v20  ;;  %v15603_v4 = vmax.f32 %v3615_v28, %v3016_v51 }
 0x71f   : > { %10964 = vmatmul.msk.bf16.gmra.mxu0 %vm624_vm1, %v13205_v59  ;;  %10996 = vmatmul.msk.bf16.gmra.mxu1 %vm624_vm1, %v13205_v59 }
 0x720   : > { %11028 = vmatmul.msk.bf16.gmra.mxu2 %vm624_vm1, %v13205_v59  ;;  %11060 = vmatmul.msk.bf16.gmra.mxu3 %vm624_vm1, %v13205_v59 }
 0x723   : > { %v3185_v13 = vpop.f32.mrf.mxu2  ;;  %v3354_v17 = vpop.f32.mrf.mxu3 }
 0x724   : > { %v15612_v42 = vmax.f32 %v3616_v19, %v3185_v13  ;;  %v15614_v49 = vmax.f32 %v3617_v60, %v3354_v17  ;;  %v2849_v61 = vpop.f32.mrf.mxu0  ;;  %v3018_v22 = vpop.f32.mrf.mxu1 }
 0x725   : > { %v15616_v62 = vmax.f32 %v3630_v5, %v2849_v61  ;;  %v15618_v32 = vmax.f32 %v3631_v47, %v3018_v22 }
 0x72b   : > { %v3187_v52 = vpop.f32.mrf.mxu2  ;;  %v3356_v27 = vpop.f32.mrf.mxu3 }
 0x72c   : > { %v15626_v11 = vmax.f32 %v3632_v37, %v3187_v52  ;;  %v15628_v56 = vmax.f32 %v3633_v26, %v3356_v27  ;;  %v2852_v43 = vpop.f32.mrf.mxu0  ;;  %v3021_v45 = vpop.f32.mrf.mxu1 }
 0x72d   : > { %v15630_v28 = vmax.f32 %v3646_v29, %v2852_v43  ;;  %v15632_v0 = vmax.f32 %v3647_v53, %v3021_v45  ;;  %v13207_v29 = vld [vmem:[%s18575_s1 + $0x90] sm:$0xff]  ;;  %v12917_v45 = vld [vmem:[%s18577_s3 + $0x394] sm:$0xf0] }
 0x72e   : > { %v11646_v43 = vld [vmem:[%s18577_s3 + $0x370] sm:$0xf] }
 0x72f   : > { %10965 = vmatmul.msk.bf16.gmra.mxu0 %vm624_vm1, %v13206_v18  ;;  %10997 = vmatmul.msk.bf16.gmra.mxu1 %vm624_vm1, %v13206_v18  ;;  %v11647_v38 = vor.u32 %v12917_v45, %v11646_v43 }
 0x730   : > { %11029 = vmatmul.msk.bf16.gmra.mxu2 %vm624_vm1, %v13206_v18  ;;  %11061 = vmatmul.msk.bf16.gmra.mxu3 %vm624_vm1, %v13206_v18 }
 0x731   : > { %5811 = vmatpush.bf16.msra.mxu1 %v11647_v38 }
 0x733   : > { %v3190_v14 = vpop.f32.mrf.mxu2  ;;  %v3359_v19 = vpop.f32.mrf.mxu3 }
 0x734   : > { %v15647_v60 = vmax.f32 %v3648_v30, %v3190_v14  ;;  %v15649_v8 = vmax.f32 %v3649_v9, %v3359_v19  ;;  %v2854_v41 = vpop.f32.mrf.mxu0  ;;  %v3023_v5 = vpop.f32.mrf.mxu1 }
 0x735   : > { %v15651_v47 = vmax.f32 %v3662_v46, %v2854_v41  ;;  %v15653_v23 = vmax.f32 %v3663_v44, %v3023_v5 }
 0x73b   : > { %v3192_v2 = vpop.f32.mrf.mxu2  ;;  %v3361_v50 = vpop.f32.mrf.mxu3 }
 0x73c   : > { %v15655_v3 = vmax.f32 %v3664_v7, %v3192_v2  ;;  %v15657_v1 = vmax.f32 %v3665_v58, %v3361_v50  ;;  %v2857_v37 = vpop.f32.mrf.mxu0  ;;  %v3026_v26 = vpop.f32.mrf.mxu1 }
 0x73d   : > { %v3742_v40 = vmax.f32 %v15601_v57, %v2857_v37  ;;  %v3743_v33 = vmax.f32 %v15603_v4, %v3026_v26  ;;  %v13208_v57 = vld [vmem:[%s18575_s1 + $0x98] sm:$0xff] }
 0x73f   : > { %10966 = vmatmul.msk.bf16.gmra.mxu0 %vm624_vm1, %v13207_v29  ;;  %10998 = vmatmul.msk.bf16.gmra.mxu1 %vm624_vm1, %v13207_v29 }
 0x740   : > { %11030 = vmatmul.msk.bf16.gmra.mxu2 %vm624_vm1, %v13207_v29  ;;  %11062 = vmatmul.msk.bf16.gmra.mxu3 %vm624_vm1, %v13207_v29 }
 0x743   : > { %v3195_v53 = vpop.f32.mrf.mxu2  ;;  %v3364_v25 = vpop.f32.mrf.mxu3 }
 0x744   : > { %v3744_v36 = vmax.f32 %v15612_v42, %v3195_v53  ;;  %v3745_v6 = vmax.f32 %v15614_v49, %v3364_v25  ;;  %v2859_v30 = vpop.f32.mrf.mxu0  ;;  %v3028_v9 = vpop.f32.mrf.mxu1  ;;  %v11366_v25 = vld [vmem:[%s18577_s3 + $0x140] sm:$0xf] }
 0x745   : > { %v3758_v21 = vmax.f32 %v15616_v62, %v2859_v30  ;;  %v3759_v24 = vmax.f32 %v15618_v32, %v3028_v9  ;;  %v12912_v62 = vld [vmem:[%s18577_s3 + $0x374] sm:$0xf]  ;;  %v11648_v32 = vld [vmem:[%s18577_s3 + $0x398] sm:$0xf0]  ;;  %v13210_v30 = vld [vmem:[%s18575_s1 + $0xa8] sm:$0xff] }
 0x746   : > { %v11651_v48 = vor.u32 %v12912_v62, %v11648_v32 }
 0x748   : > { %5989 = vmatpush.bf16.msra.mxu3 %v11651_v48 }
 0x74b   : > { %v3197_v46 = vpop.f32.mrf.mxu2  ;;  %v3366_v44 = vpop.f32.mrf.mxu3 }
 0x74c   : > { %v3760_v31 = vmax.f32 %v15626_v11, %v3197_v46  ;;  %v3761_v39 = vmax.f32 %v15628_v56, %v3366_v44  ;;  %v2862_v7 = vpop.f32.mrf.mxu0  ;;  %v3031_v58 = vpop.f32.mrf.mxu1 }
 0x74d   : > { %v3774_v20 = vmax.f32 %v15630_v28, %v2862_v7  ;;  %v3775_v51 = vmax.f32 %v15632_v0, %v3031_v58 }
 0x74f   : > { %10967 = vmatmul.msk.bf16.gmra.mxu0 %vm624_vm1, %v13208_v57  ;;  %10999 = vmatmul.msk.bf16.gmra.mxu1 %vm624_vm1, %v13208_v57 }
 0x750   : > { %11031 = vmatmul.msk.bf16.gmra.mxu2 %vm624_vm1, %v13208_v57  ;;  %11063 = vmatmul.msk.bf16.gmra.mxu3 %vm624_vm1, %v13208_v57 }
 0x753   : > { %v15683_v4 = vpop.f32.mrf.mxu2  ;;  %v15685_v59 = vpop.f32.mrf.mxu3 }
 0x754   : > { %v3776_v13 = vmax.f32 %v15647_v60, %v15683_v4  ;;  %v3777_v17 = vmax.f32 %v15649_v8, %v15685_v59  ;;  %v15691_v42 = vpop.f32.mrf.mxu0  ;;  %v15693_v49 = vpop.f32.mrf.mxu1 }
 0x755   : > { %v3790_v61 = vmax.f32 %v15651_v47, %v15691_v42  ;;  %v3791_v22 = vmax.f32 %v15653_v23, %v15693_v49  ;;  %v12842_v47 = vld [vmem:[%s18577_s3 + $0x144] sm:$0xf]  ;;  %v11368_v23 = vld [vmem:[%s18577_s3 + $0x168] sm:$0xf0]  ;;  %v13211_v49 = vld [vmem:[%s18575_s1 + $0xb0] sm:$0xff] }
 0x756   : > { %v11371_v2 = vor.u32 %v12842_v47, %v11368_v23 }
 0x758   : > { %5899 = vmatpush.bf16.msra.mxu2 %v11371_v2 }
 0x75b   : > { %v3202_v12 = vpop.f32.mrf.mxu2  ;;  %v3371_v55 = vpop.f32.mrf.mxu3 }
 0x75c   : > { %v3792_v52 = vmax.f32 %v15655_v3, %v3202_v12  ;;  %v3793_v27 = vmax.f32 %v15657_v1, %v3371_v55  ;;  %v2867_v11 = vpop.f32.mrf.mxu0  ;;  %v3036_v56 = vpop.f32.mrf.mxu1  ;;  %v7987_v55 = vld [vmem:[%s18579_s5 + $0x18] sm:$0xff] }
 0x75d   : > { %v15713_v28 = vmax.f32 %v3742_v40, %v2867_v11  ;;  %v15715_v0 = vmax.f32 %v3743_v33, %v3036_v56  ;;  %v7986_v33 = vld [vmem:[%s18579_s5 + $0x10] sm:$0xff]  ;;  %8007 = vperm.xlu1 %13123, %v7987_v55  }
 0x75e   : > { %8002 = vperm.xlu0 %13122, %v7986_v33   ;;  %v13213_v33 = vld [vmem:[%s18575_s1 + $0xc0] sm:$0xff] }
 0x75f   : > { %10968 = vmatmul.msk.bf16.gmra.mxu0 %vm624_vm1, %v13209_v54  ;;  %11000 = vmatmul.msk.bf16.gmra.mxu1 %vm624_vm1, %v13209_v54 }
 0x760   : > { %11032 = vmatmul.msk.bf16.gmra.mxu2 %vm624_vm1, %v13209_v54  ;;  %11064 = vmatmul.msk.bf16.gmra.mxu3 %vm624_vm1, %v13209_v54 }
 0x763   : > { %v3205_v10 = vpop.f32.mrf.mxu2  ;;  %v3374_v18 = vpop.f32.mrf.mxu3 }
 0x764   : > { %v15724_v14 = vmax.f32 %v3744_v36, %v3205_v10  ;;  %v15726_v19 = vmax.f32 %v3745_v6, %v3374_v18  ;;  %v2869_v60 = vpop.f32.mrf.mxu0  ;;  %v3038_v8 = vpop.f32.mrf.mxu1  ;;  %v12847_v36 = vld [vmem:[%s18577_s3 + $0x164] sm:$0xf0]  ;;  %v13212_v10 = vld [vmem:[%s18575_s1 + $0xb8] sm:$0xff] }
 0x765   : > { %v15728_v41 = vmax.f32 %v3758_v21, %v2869_v60  ;;  %v15730_v5 = vmax.f32 %v3759_v24, %v3038_v8  ;;  %v11367_v6 = vor.u32 %v12847_v36, %v11366_v25 }
 0x767   : > { %5721 = vmatpush.bf16.msra.mxu0 %v11367_v6 }
 0x76b   : > { %v3207_v50 = vpop.f32.mrf.mxu2  ;;  %v3376_v3 = vpop.f32.mrf.mxu3 }
 0x76c   : > { %v15738_v1 = vmax.f32 %v3760_v31, %v3207_v50  ;;  %v15740_v37 = vmax.f32 %v3761_v39, %v3376_v3  ;;  %v2872_v26 = vpop.f32.mrf.mxu0  ;;  %v3041_v40 = vpop.f32.mrf.mxu1  ;;  %v7989_v39 = vld [vmem:[%s18579_s5 + $0x28] sm:$0xff] }
 0x76d   : > { %v15745_v29 = vmax.f32 %v3774_v20, %v2872_v26  ;;  %v15747_v53 = vmax.f32 %v3775_v51, %v3041_v40  ;;  %8017 = vperm.xlu0 %13122, %v7989_v39   ;;  %v11608_v39 = vld [vmem:[%s18577_s3 + $0x348] sm:$0xf0] }
 0x76f   : > { %10969 = vmatmul.msk.bf16.gmra.mxu0 %vm624_vm1, %v13210_v30  ;;  %11001 = vmatmul.msk.bf16.gmra.mxu1 %vm624_vm1, %v13210_v30 }
 0x770   : > { %11033 = vmatmul.msk.bf16.gmra.mxu2 %vm624_vm1, %v13210_v30  ;;  %11065 = vmatmul.msk.bf16.gmra.mxu3 %vm624_vm1, %v13210_v30 }
 0x773   : > { %v3210_v9 = vpop.f32.mrf.mxu2  ;;  %v3379_v21 = vpop.f32.mrf.mxu3 }
 0x774   : > { %v15762_v24 = vmax.f32 %v3776_v13, %v3210_v9  ;;  %v15764_v46 = vmax.f32 %v3777_v17, %v3379_v21  ;;  %v2874_v44 = vpop.f32.mrf.mxu0  ;;  %v3043_v31 = vpop.f32.mrf.mxu1 }
 0x775   : > { %v15769_v7 = vmax.f32 %v3790_v61, %v2874_v44  ;;  %v15771_v58 = vmax.f32 %v3791_v22, %v3043_v31  ;;  %v12902_v44 = vld [vmem:[%s18577_s3 + $0x324] sm:$0xf] }
 0x77b   : > { %v3212_v20 = vpop.f32.mrf.mxu2  ;;  %v3381_v51 = vpop.f32.mrf.mxu3 }
 0x77c   : > { %v15773_v57 = vmax.f32 %v3792_v52, %v3212_v20  ;;  %v15775_v4 = vmax.f32 %v3793_v27, %v3381_v51  ;;  %v2877_v59 = vpop.f32.mrf.mxu0  ;;  %v3046_v13 = vpop.f32.mrf.mxu1 }
 0x77d   : > { %v3870_v17 = vmax.f32 %v15713_v28, %v2877_v59  ;;  %v3871_v42 = vmax.f32 %v15715_v0, %v3046_v13 }
 0x77f   : > { %10970 = vmatmul.msk.bf16.gmra.mxu0 %vm624_vm1, %v13211_v49  ;;  %11002 = vmatmul.msk.bf16.gmra.mxu1 %vm624_vm1, %v13211_v49 }
 0x780   : > { %11034 = vmatmul.msk.bf16.gmra.mxu2 %vm624_vm1, %v13211_v49  ;;  %11066 = vmatmul.msk.bf16.gmra.mxu3 %vm624_vm1, %v13211_v49  ;;  %v12837_v49 = vld [vmem:[%s18577_s3 + $0x114] sm:$0xf0] }
 0x783   : > { %v3215_v61 = vpop.f32.mrf.mxu2  ;;  %v3384_v22 = vpop.f32.mrf.mxu3 }
 0x784   : > { %v3872_v62 = vmax.f32 %v15724_v14, %v3215_v61  ;;  %v3873_v32 = vmax.f32 %v15726_v19, %v3384_v22  ;;  %v2879_v48 = vpop.f32.mrf.mxu0  ;;  %v3048_v12 = vpop.f32.mrf.mxu1  ;;  %v13214_v22 = vld [vmem:[%s18575_s1 + $0xc8] sm:$0xff] }
 0x785   : > { %v3886_v52 = vmax.f32 %v15728_v41, %v2879_v48  ;;  %v3887_v27 = vmax.f32 %v15730_v5, %v3048_v12 }
 0x78b   : > { %v3217_v11 = vpop.f32.mrf.mxu2  ;;  %v3386_v56 = vpop.f32.mrf.mxu3 }
 0x78c   : > { %v3888_v43 = vmax.f32 %v15738_v1, %v3217_v11  ;;  %v3889_v45 = vmax.f32 %v15740_v37, %v3386_v56  ;;  %v2882_v28 = vpop.f32.mrf.mxu0  ;;  %v3051_v0 = vpop.f32.mrf.mxu1 }
 0x78d   : > { %v3902_v38 = vmax.f32 %v15745_v29, %v2882_v28  ;;  %v3903_v54 = vmax.f32 %v15747_v53, %v3051_v0 }
 0x78f   : > { %10971 = vmatmul.msk.bf16.gmra.mxu0 %vm624_vm1, %v13212_v10  ;;  %11003 = vmatmul.msk.bf16.gmra.mxu1 %vm624_vm1, %v13212_v10 }
 0x790   : > { %11035 = vmatmul.msk.bf16.gmra.mxu2 %vm624_vm1, %v13212_v10  ;;  %11067 = vmatmul.msk.bf16.gmra.mxu3 %vm624_vm1, %v13212_v10 }
 0x793   : > { %v3220_v18 = vpop.f32.mrf.mxu2  ;;  %v3389_v14 = vpop.f32.mrf.mxu3 }
 0x794   : > { %v3904_v19 = vmax.f32 %v15762_v24, %v3220_v18  ;;  %v3905_v60 = vmax.f32 %v15764_v46, %v3389_v14  ;;  %v2884_v8 = vpop.f32.mrf.mxu0  ;;  %v3053_v41 = vpop.f32.mrf.mxu1  ;;  %v12832_v24 = vld [vmem:[%s18577_s3 + $0xf4] sm:$0xf]  ;;  %v11328_v46 = vld [vmem:[%s18577_s3 + $0x118] sm:$0xf0] }
 0x795   : > { %v3918_v5 = vmax.f32 %v15769_v7, %v2884_v8  ;;  %v3919_v47 = vmax.f32 %v15771_v58, %v3053_v41  ;;  %v11331_v31 = vor.u32 %v12832_v24, %v11328_v46  ;;  %v11611_v7 = vor.u32 %v12902_v44, %v11608_v39 }
 0x797   : > { %5900 = vmatpush.bf16.msra.mxu2 %v11331_v31  ;;  %5990 = vmatpush.bf16.msra.mxu3 %v11611_v7 }
 0x79b   : > { %v3222_v23 = vpop.f32.mrf.mxu2  ;;  %v3391_v2 = vpop.f32.mrf.mxu3 }
 0x79c   : > { %v3920_v50 = vmax.f32 %v15773_v57, %v3222_v23  ;;  %v3921_v3 = vmax.f32 %v15775_v4, %v3391_v2  ;;  %v2887_v1 = vpop.f32.mrf.mxu0  ;;  %v3056_v37 = vpop.f32.mrf.mxu1 }
 0x79d   : > { %v15810_v26 = vmax.f32 %v3870_v17, %v2887_v1  ;;  %v15812_v40 = vmax.f32 %v3871_v42, %v3056_v37  ;;  %v11326_v42 = vld [vmem:[%s18577_s3 + $0xf0] sm:$0xf] }
 0x79e   : > { %v11327_v61 = vor.u32 %v12837_v49, %v11326_v42 }
 0x79f   : > { %10972 = vmatmul.msk.bf16.gmra.mxu0 %vm624_vm1, %v13213_v33  ;;  %11004 = vmatmul.msk.bf16.gmra.mxu1 %vm624_vm1, %v13213_v33 }
 0x7a0   : > { %11036 = vmatmul.msk.bf16.gmra.mxu2 %vm624_vm1, %v13213_v33  ;;  %11068 = vmatmul.msk.bf16.gmra.mxu3 %vm624_vm1, %v13213_v33 }
 0x7a1   : > { %5722 = vmatpush.bf16.msra.mxu0 %v11327_v61 }
 0x7a3   : > { %v3225_v29 = vpop.f32.mrf.mxu2  ;;  %v3394_v53 = vpop.f32.mrf.mxu3 }
 0x7a4   : > { %v15821_v25 = vmax.f32 %v3872_v62, %v3225_v29  ;;  %v15823_v36 = vmax.f32 %v3873_v32, %v3394_v53  ;;  %v2889_v6 = vpop.f32.mrf.mxu0  ;;  %v3058_v30 = vpop.f32.mrf.mxu1  ;;  %v11606_v62 = vld [vmem:[%s18577_s3 + $0x320] sm:$0xf]  ;;  %v12907_v32 = vld [vmem:[%s18577_s3 + $0x344] sm:$0xf0] }
 0x7a5   : > { %v15825_v9 = vmax.f32 %v3886_v52, %v2889_v6  ;;  %v15827_v21 = vmax.f32 %v3887_v27, %v3058_v30  ;;  %v11607_v48 = vor.u32 %v12907_v32, %v11606_v62 }
 0x7a7   : > { %5812 = vmatpush.bf16.msra.mxu1 %v11607_v48 }
 0x7ab   : > { %v3227_v58 = vpop.f32.mrf.mxu2  ;;  %v3396_v20 = vpop.f32.mrf.mxu3 }
 0x7ac   : > { %v15841_v51 = vmax.f32 %v3888_v43, %v3227_v58  ;;  %v15843_v57 = vmax.f32 %v3889_v45, %v3396_v20  ;;  %v2892_v4 = vpop.f32.mrf.mxu0  ;;  %v3061_v59 = vpop.f32.mrf.mxu1 }
 0x7ad   : > { %v15845_v13 = vmax.f32 %v3902_v38, %v2892_v4  ;;  %v15847_v17 = vmax.f32 %v3903_v54, %v3061_v59 }
 0x7af   : > { %10973 = vmatmul.msk.bf16.gmra.mxu0 %vm624_vm1, %v13214_v22  ;;  %11005 = vmatmul.msk.bf16.gmra.mxu1 %vm624_vm1, %v13214_v22 }
 0x7b0   : > { %11037 = vmatmul.msk.bf16.gmra.mxu2 %vm624_vm1, %v13214_v22  ;;  %11069 = vmatmul.msk.bf16.gmra.mxu3 %vm624_vm1, %v13214_v22 }
 0x7b3   : > { %v3230_v12 = vpop.f32.mrf.mxu2  ;;  %v3399_v55 = vpop.f32.mrf.mxu3 }
 0x7b4   : > { %v15868_v52 = vmax.f32 %v3904_v19, %v3230_v12  ;;  %v15870_v27 = vmax.f32 %v3905_v60, %v3399_v55  ;;  %v2894_v11 = vpop.f32.mrf.mxu0  ;;  %v3063_v56 = vpop.f32.mrf.mxu1  ;;  %v13215_v60 = vld [vmem:[%s18575_s1 + $0xd0] sm:$0xff]  ;;  %v12822_v12 = vld [vmem:[%s18577_s3 + $0xa4] sm:$0xf]  ;;  %v11288_v55 = vld [vmem:[%s18577_s3 + $0xc8] sm:$0xf0] }
 0x7b5   : > { %v15872_v43 = vmax.f32 %v3918_v5, %v2894_v11  ;;  %v15874_v45 = vmax.f32 %v3919_v47, %v3063_v56 }
 0x7bb   : > { %v3232_v28 = vpop.f32.mrf.mxu2  ;;  %v3401_v0 = vpop.f32.mrf.mxu3 }
 0x7bc   : > { %v15876_v38 = vmax.f32 %v3920_v50, %v3232_v28  ;;  %v15878_v54 = vmax.f32 %v3921_v3, %v3401_v0  ;;  %v2897_v10 = vpop.f32.mrf.mxu0  ;;  %v3066_v18 = vpop.f32.mrf.mxu1 }
 0x7bd   : > { %v3998_v14 = vmax.f32 %v15810_v26, %v2897_v10  ;;  %v3999_v19 = vmax.f32 %v15812_v40, %v3066_v18  ;;  %v11286_v18 = vld [vmem:[%s18577_s3 + $0xa0] sm:$0xf] }
 0x7bf   : > { %10974 = vmatmul.msk.bf16.gmra.mxu0 %vm624_vm1, %v13215_v60  ;;  %11006 = vmatmul.msk.bf16.gmra.mxu1 %vm624_vm1, %v13215_v60 }
 0x7c0   : > { %11038 = vmatmul.msk.bf16.gmra.mxu2 %vm624_vm1, %v13215_v60  ;;  %11070 = vmatmul.msk.bf16.gmra.mxu3 %vm624_vm1, %v13215_v60  ;;  %v13218_v60 = vld [vmem:[%s18575_s1 + $0xe8] sm:$0xff] }
 0x7c3   : > { %v3235_v8 = vpop.f32.mrf.mxu2  ;;  %v3404_v41 = vpop.f32.mrf.mxu3 }
 0x7c4   : > { %v4000_v5 = vmax.f32 %v15821_v25, %v3235_v8  ;;  %v4001_v47 = vmax.f32 %v15823_v36, %v3404_v41  ;;  %v2899_v23 = vpop.f32.mrf.mxu0  ;;  %v3068_v2 = vpop.f32.mrf.mxu1  ;;  %v13216_v36 = vld [vmem:[%s18575_s1 + $0xd8] sm:$0xff] }
 0x7c5   : > { %v4014_v50 = vmax.f32 %v15825_v9, %v2899_v23  ;;  %v4015_v3 = vmax.f32 %v15827_v21, %v3068_v2 }
 0x7cb   : > { %v3237_v1 = vpop.f32.mrf.mxu2  ;;  %v3406_v37 = vpop.f32.mrf.mxu3 }
 0x7cc   : > { %v4016_v26 = vmax.f32 %v15841_v51, %v3237_v1  ;;  %v4017_v40 = vmax.f32 %v15843_v57, %v3406_v37  ;;  %v2902_v33 = vpop.f32.mrf.mxu0  ;;  %v3071_v29 = vpop.f32.mrf.mxu1  ;;  %v11246_v1 = vld [vmem:[%s18577_s3 + $0x50] sm:$0xf]  ;;  %v12817_v37 = vld [vmem:[%s18577_s3 + $0x74] sm:$0xf0] }
 0x7cd   : > { %v4030_v53 = vmax.f32 %v15845_v13, %v2902_v33  ;;  %v4031_v25 = vmax.f32 %v15847_v17, %v3071_v29  ;;  %v13217_v13 = vld [vmem:[%s18575_s1 + $0xe0] sm:$0xff]  ;;  %v12897_v33 = vld [vmem:[%s18577_s3 + $0x2f4] sm:$0xf0]  ;;  %v12812_v29 = vld [vmem:[%s18577_s3 + $0x54] sm:$0xf] }
 0x7cf   : > { %10975 = vmatmul.msk.bf16.gmra.mxu0 %vm624_vm1, %v13216_v36  ;;  %11007 = vmatmul.msk.bf16.gmra.mxu1 %vm624_vm1, %v13216_v36 }
 0x7d0   : > { %11039 = vmatmul.msk.bf16.gmra.mxu2 %vm624_vm1, %v13216_v36  ;;  %11071 = vmatmul.msk.bf16.gmra.mxu3 %vm624_vm1, %v13216_v36 }
 0x7d3   : > { %v3240_v6 = vpop.f32.mrf.mxu2  ;;  %v3409_v30 = vpop.f32.mrf.mxu3 }
 0x7d4   : > { %v4032_v9 = vmax.f32 %v15868_v52, %v3240_v6  ;;  %v4033_v21 = vmax.f32 %v15870_v27, %v3409_v30  ;;  %v2904_v24 = vpop.f32.mrf.mxu0  ;;  %v3073_v46 = vpop.f32.mrf.mxu1  ;;  %v11291_v52 = vor.u32 %v12822_v12, %v11288_v55  ;;  %v12892_v6 = vld [vmem:[%s18577_s3 + $0x2d4] sm:$0xf]  ;;  %v11568_v30 = vld [vmem:[%s18577_s3 + $0x2f8] sm:$0xf0] }
 0x7d5   : > { %v4046_v44 = vmax.f32 %v15872_v43, %v2904_v24  ;;  %v4047_v31 = vmax.f32 %v15874_v45, %v3073_v46  ;;  %v12807_v24 = vld [vmem:[%s18577_s3 + $0x24] sm:$0xf0]  ;;  %v11526_v46 = vld [vmem:[%s18577_s3 + $0x280] sm:$0xf] }
 0x7d6   : > { %5901 = vmatpush.bf16.msra.mxu2 %v11291_v52 }
 0x7db   : > { %v15908_v39 = vpop.f32.mrf.mxu2  ;;  %v15910_v7 = vpop.f32.mrf.mxu3 }
 0x7dc   : > { %v4048_v58 = vmax.f32 %v15876_v38, %v15908_v39  ;;  %v4049_v20 = vmax.f32 %v15878_v54, %v15910_v7  ;;  %v2907_v51 = vpop.f32.mrf.mxu0  ;;  %v3076_v57 = vpop.f32.mrf.mxu1  ;;  %v13219_v7 = vld [vmem:[%s18575_s1 + $0xf0] sm:$0xff] }
 0x7dd   : > { %v15916_v4 = vmax.f32 %v3998_v14, %v2907_v51  ;;  %v15918_v59 = vmax.f32 %v3999_v19, %v3076_v57  ;;  %v12827_v14 = vld [vmem:[%s18577_s3 + $0xc4] sm:$0xf0] }
 0x7de   : > { %v11287_v19 = vor.u32 %v12827_v14, %v11286_v18  ;;  %v12887_v57 = vld [vmem:[%s18577_s3 + $0x2a4] sm:$0xf0] }
 0x7df   : > { %10976 = vmatmul.msk.bf16.gmra.mxu0 %vm624_vm1, %v13217_v13  ;;  %11008 = vmatmul.msk.bf16.gmra.mxu1 %vm624_vm1, %v13217_v13  ;;  %v11527_v55 = vor.u32 %v12887_v57, %v11526_v46 }
 0x7e0   : > { %11040 = vmatmul.msk.bf16.gmra.mxu2 %vm624_vm1, %v13217_v13  ;;  %11072 = vmatmul.msk.bf16.gmra.mxu3 %vm624_vm1, %v13217_v13  ;;  %v12802_v13 = vld [vmem:[%s18577_s3 + $0x4] sm:$0xf] }
 0x7e1   : > { %5723 = vmatpush.bf16.msra.mxu0 %v11287_v19 }
 0x7e3   : > { %v3245_v17 = vpop.f32.mrf.mxu2  ;;  %v3414_v42 = vpop.f32.mrf.mxu3 }
 0x7e4   : > { %v15927_v49 = vmax.f32 %v4000_v5, %v3245_v17  ;;  %v15929_v61 = vmax.f32 %v4001_v47, %v3414_v42  ;;  %v2909_v22 = vpop.f32.mrf.mxu0  ;;  %v3078_v62 = vpop.f32.mrf.mxu1  ;;  %v11208_v17 = vld [vmem:[%s18577_s3 + $0x28] sm:$0xf0] }
 0x7e5   : > { %v15931_v32 = vmax.f32 %v4014_v50, %v2909_v22  ;;  %v15933_v48 = vmax.f32 %v4015_v3, %v3078_v62  ;;  %v11211_v52 = vor.u32 %v12802_v13, %v11208_v17 }
 0x7eb   : > { %v3247_v27 = vpop.f32.mrf.mxu2  ;;  %v3416_v11 = vpop.f32.mrf.mxu3 }
 0x7ec   : > { %v15941_v56 = vmax.f32 %v4016_v26, %v3247_v27  ;;  %v15943_v43 = vmax.f32 %v4017_v40, %v3416_v11  ;;  %v2912_v45 = vpop.f32.mrf.mxu0  ;;  %v3081_v28 = vpop.f32.mrf.mxu1  ;;  %v11566_v26 = vld [vmem:[%s18577_s3 + $0x2d0] sm:$0xf]  ;;  %v11247_v40 = vor.u32 %v12817_v37, %v11246_v1  ;;  %v12882_v27 = vld [vmem:[%s18577_s3 + $0x284] sm:$0xf]  ;;  %v11528_v11 = vld [vmem:[%s18577_s3 + $0x2a8] sm:$0xf0] }
 0x7ed   : > { %v15945_v0 = vmax.f32 %v4030_v53, %v2912_v45  ;;  %v15947_v10 = vmax.f32 %v4031_v25, %v3081_v28  ;;  %v11248_v53 = vld [vmem:[%s18577_s3 + $0x78] sm:$0xf0]  ;;  %v11567_v25 = vor.u32 %v12897_v33, %v11566_v26  ;;  %v11531_v54 = vor.u32 %v12882_v27, %v11528_v11  ;;  %v11080_v33 = vld [vmem:[#allocation2 + $0x8] sm:$0xf0] }
 0x7ee   : > { %v11251_v36 = vor.u32 %v12812_v29, %v11248_v53  ;;  %5724 = vmatpush.bf16.msra.mxu0 %v11247_v40  ;;  %v12771_v40 = vld [vmem:[#allocation2 + $0x4] sm:$0xf0] }
 0x7ef   : > { %10977 = vmatmul.msk.bf16.gmra.mxu0 %vm624_vm1, %v13218_v60  ;;  %11009 = vmatmul.msk.bf16.gmra.mxu1 %vm624_vm1, %v13218_v60 }
 0x7f0   : > { %11041 = vmatmul.msk.bf16.gmra.mxu2 %vm624_vm1, %v13218_v60  ;;  %11073 = vmatmul.msk.bf16.gmra.mxu3 %vm624_vm1, %v13218_v60 }
 0x7f1   : > { %5813 = vmatpush.bf16.msra.mxu1 %v11567_v25  ;;  %5902 = vmatpush.bf16.msra.mxu2 %v11251_v36 }
 0x7f3   : > { %v3250_v8 = vpop.f32.mrf.mxu2  ;;  %v3419_v41 = vpop.f32.mrf.mxu3 }
 0x7f4   : > { %v15962_v5 = vmax.f32 %v4032_v9, %v3250_v8  ;;  %v15964_v47 = vmax.f32 %v4033_v21, %v3419_v41  ;;  %v2914_v23 = vpop.f32.mrf.mxu0  ;;  %v3083_v2 = vpop.f32.mrf.mxu1  ;;  %v11571_v9 = vor.u32 %v12892_v6, %v11568_v30  ;;  %v11206_v21 = vld [vmem:[%s18577_s3] sm:$0xf] }
 0x7f5   : > { %v15966_v50 = vmax.f32 %v4046_v44, %v2914_v23  ;;  %v15968_v3 = vmax.f32 %v4047_v31, %v3083_v2  ;;  %v11207_v51 = vor.u32 %v12807_v24, %v11206_v21  ;;  %5814 = vmatpush.bf16.msra.mxu1 %v11527_v55  ;;  %5903 = vmatpush.bf16.msra.mxu2 %v11211_v52 }
 0x7f6   : > { %5991 = vmatpush.bf16.msra.mxu3 %v11571_v9  ;;  %v11078_v9 = vld [vmem:[#allocation2] sm:$0xf] }
 0x7f7   : > { %5725 = vmatpush.bf16.msra.mxu0 %v11207_v51 }
 0x7fa   : > { %5992 = vmatpush.bf16.msra.mxu3 %v11531_v54 }
 0x7fb   : > { %v3252_v44 = vpop.f32.mrf.mxu2  ;;  %v3421_v31 = vpop.f32.mrf.mxu3 }
 0x7fc   : > { %v16015_v42 = vmax.f32 %v4048_v58, %v3252_v44  ;;  %v16020_v22 = vmax.f32 %v4049_v20, %v3421_v31  ;;  %v2917_v62 = vpop.f32.mrf.mxu0  ;;  %v3086_v12 = vpop.f32.mrf.mxu1 }
 0x7fd   : > { %v4126_v38 = vmax.f32 %v15916_v4, %v2917_v62  ;;  %v4127_v39 = vmax.f32 %v15918_v59, %v3086_v12 }
 0x7ff   : > { %10978 = vmatmul.msk.bf16.gmra.mxu0 %vm624_vm1, %v13219_v7  ;;  %11010 = vmatmul.msk.bf16.gmra.mxu1 %vm624_vm1, %v13219_v7 }
 0x800   : > { %11042 = vmatmul.msk.bf16.gmra.mxu2 %vm624_vm1, %v13219_v7  ;;  %11074 = vmatmul.msk.bf16.gmra.mxu3 %vm624_vm1, %v13219_v7 }
 0x803   : > { %v3255_v58 = vpop.f32.mrf.mxu2  ;;  %v3424_v20 = vpop.f32.mrf.mxu3 }
 0x804   : > { %v4128_v4 = vmax.f32 %v15927_v49, %v3255_v58  ;;  %v4129_v59 = vmax.f32 %v15929_v61, %v3424_v20  ;;  %v2919_v45 = vpop.f32.mrf.mxu0  ;;  %v3088_v28 = vpop.f32.mrf.mxu1  ;;  %v13220_v61 = vld [vmem:[%s18575_s1 + $0xf8] sm:$0xff] }
 0x805   : > { %v4142_v18 = vmax.f32 %v15931_v32, %v2919_v45  ;;  %v4143_v14 = vmax.f32 %v15933_v48, %v3088_v28 }
 0x80b   : > { %v3257_v19 = vpop.f32.mrf.mxu2  ;;  %v3426_v60 = vpop.f32.mrf.mxu3 }
 0x80c   : > { %v4144_v8 = vmax.f32 %v15941_v56, %v3257_v19  ;;  %v4145_v41 = vmax.f32 %v15943_v43, %v3426_v60  ;;  %v2922_v23 = vpop.f32.mrf.mxu0  ;;  %v3091_v2 = vpop.f32.mrf.mxu1 }
 0x80d   : > { %v4158_v1 = vmax.f32 %v15945_v0, %v2922_v23  ;;  %v4159_v49 = vmax.f32 %v15947_v10, %v3091_v2 }
 0x80f   : > { %10979 = vmatmul.msk.bf16.gmra.mxu0 %vm624_vm1, %v13220_v61  ;;  %11011 = vmatmul.msk.bf16.gmra.mxu1 %vm624_vm1, %v13220_v61 }
 0x810   : > { %11043 = vmatmul.msk.bf16.gmra.mxu2 %vm624_vm1, %v13220_v61  ;;  %11075 = vmatmul.msk.bf16.gmra.mxu3 %vm624_vm1, %v13220_v61 }
 0x813   : > { %v3260_v32 = vpop.f32.mrf.mxu2  ;;  %v3429_v48 = vpop.f32.mrf.mxu3 }
 0x814   : > { %v4160_v56 = vmax.f32 %v15962_v5, %v3260_v32  ;;  %v4161_v43 = vmax.f32 %v15964_v47, %v3429_v48  ;;  %v2924_v0 = vpop.f32.mrf.mxu0  ;;  %v3093_v10 = vpop.f32.mrf.mxu1  ;;  %v12770_v5 = vld [vmem:[#allocation2 + $0x4] sm:$0xf] }
 0x815   : > { %v4174_v37 = vmax.f32 %v15966_v50, %v2924_v0  ;;  %v4175_v26 = vmax.f32 %v15968_v3, %v3093_v10  ;;  %v16062_v50 = vor.u32 %v12771_v40, %v11078_v9  ;;  %v16064_v3 = vor.u32 %v12770_v5, %v11080_v33  ;;  %v11104_v33 = vld [vmem:[#allocation2 + $0x38] sm:$0xf0] }
 0x817   : > { %18610 = vst [vmem:[#allocation4_spill] sm:$0xff] %v16062_v50 }
 0x818   : > { %18611 = vst [vmem:[#allocation5_spill] sm:$0xff] %v16064_v3 }
 0x81b   : > { %v3262_v29 = vpop.f32.mrf.mxu2  ;;  %v3431_v53 = vpop.f32.mrf.mxu3 }
 0x81c   : > { %v4176_v25 = vmax.f32 %v16015_v42, %v3262_v29  ;;  %v4177_v36 = vmax.f32 %v16020_v22, %v3431_v53  ;;  %v2927_v6 = vpop.f32.mrf.mxu0  ;;  %v3096_v30 = vpop.f32.mrf.mxu1  ;;  %v12773_v42 = vld [vmem:[#allocation2 + $0x14] sm:$0xf0]  ;;  %v11088_v22 = vld [vmem:[#allocation2 + $0x18] sm:$0xf0] }
 0x81d   : > { %v16058_v47 = vmax.f32 %v4126_v38, %v2927_v6  ;;  %v16060_v21 = vmax.f32 %v4127_v39, %v3096_v30  ;;  %v11086_v38 = vld [vmem:[#allocation2 + $0x10] sm:$0xf]  ;;  %v12772_v39 = vld [vmem:[#allocation2 + $0x14] sm:$0xf]  ;;  %v12777_v29 = vld [vmem:[#allocation2 + $0x34] sm:$0xf0] }
 0x81e   : > { %v16088_v58 = vor.u32 %v12773_v42, %v11086_v38  ;;  %v16090_v20 = vor.u32 %v12772_v39, %v11088_v22  ;;  %v11102_v6 = vld [vmem:[#allocation2 + $0x30] sm:$0xf]  ;;  %v11112_v22 = vld [vmem:[#allocation2 + $0x48] sm:$0xf0]  ;;  %v11110_v38 = vld [vmem:[#allocation2 + $0x40] sm:$0xf] }
 0x81f   : > { %5726 = vmatmul.bf16.vlgmr.msra.gmra.mxu0 %v16062_v50  ;;  %11764 = vmatmul.msk.bf16.vlgmr.msra.gmra.mxu1 %vm5669_vm5, %v16064_v3  ;;  %v16140_v5 = vor.u32 %v12777_v29, %v11102_v6  ;;  %v12780_v29 = vld [vmem:[#allocation2 + $0x54] sm:$0xf] }
 0x820   : > { %5904 = vmatmul.bf16.vlgmr.msra.gmra.mxu2 %v16062_v50  ;;  %11780 = vmatmul.msk.bf16.vlgmr.msra.gmra.mxu3 %vm5669_vm5, %v16064_v3  ;;  %18612 = vst [vmem:[#allocation6_spill] sm:$0xff] %v16088_v58 }
 0x821   : > { %18613 = vst [vmem:[#allocation7_spill] sm:$0xff] %v16090_v20 }
 0x822   : > { %18617 = vst [vmem:[#allocation11_spill] sm:$0xff] %v16140_v5 }
 0x823   : > { %v3265_v24 = vpop.f32.mrf.mxu2  ;;  %v3434_v46 = vpop.f32.mrf.mxu3 }
 0x824   : > { %v16072_v44 = vmax.f32 %v4128_v4, %v3265_v24  ;;  %v16074_v31 = vmax.f32 %v4129_v59, %v3434_v46  ;;  %v2929_v51 = vpop.f32.mrf.mxu0  ;;  %v3098_v57 = vpop.f32.mrf.mxu1 }
 0x825   : > { %v16076_v13 = vmax.f32 %v4142_v18, %v2929_v51  ;;  %v16078_v17 = vmax.f32 %v4143_v14, %v3098_v57 }
 0x82b   : > { %v3267_v62 = vpop.f32.mrf.mxu2  ;;  %v3436_v12 = vpop.f32.mrf.mxu3 }
 0x82c   : > { %v16080_v55 = vmax.f32 %v4144_v8, %v3267_v62  ;;  %v16082_v52 = vmax.f32 %v4145_v41, %v3436_v12  ;;  %v2932_v27 = vpop.f32.mrf.mxu0  ;;  %v3101_v11 = vpop.f32.mrf.mxu1  ;;  %v11096_v8 = vld [vmem:[#allocation2 + $0x28] sm:$0xf0]  ;;  %v12775_v41 = vld [vmem:[#allocation2 + $0x24] sm:$0xf0] }
 0x82d   : > { %v16084_v54 = vmax.f32 %v4158_v1, %v2932_v27  ;;  %v16086_v7 = vmax.f32 %v4159_v49, %v3101_v11  ;;  %v12774_v1 = vld [vmem:[#allocation2 + $0x24] sm:$0xf]  ;;  %v11094_v49 = vld [vmem:[#allocation2 + $0x20] sm:$0xf]  ;;  %v12779_v62 = vld [vmem:[#allocation2 + $0x44] sm:$0xf0] }
 0x82e   : > { %v16116_v0 = vor.u32 %v12774_v1, %v11096_v8  ;;  %v12778_v11 = vld [vmem:[#allocation2 + $0x44] sm:$0xf]  ;;  %v12781_v1 = vld [vmem:[#allocation2 + $0x54] sm:$0xf0] }
 0x82f   : > { %5731 = vmatmul.bf16.gmra.mxu0 %v16088_v58  ;;  %11765 = vmatmul.msk.bf16.gmra.mxu1 %vm5669_vm5, %v16090_v20 }
 0x830   : > { %5909 = vmatmul.bf16.gmra.mxu2 %v16088_v58  ;;  %11781 = vmatmul.msk.bf16.gmra.mxu3 %vm5669_vm5, %v16090_v20  ;;  %18616 = vst [vmem:[#allocation10_spill] sm:$0xff] %v16116_v0  ;;  %v11126_v20 = vld [vmem:[#allocation2 + $0x60] sm:$0xf] }
 0x833   : > { %v3270_v4 = vpop.f32.mrf.mxu2  ;;  %v3439_v59 = vpop.f32.mrf.mxu3 }
 0x834   : > { %v16098_v45 = vmax.f32 %v4160_v56, %v3270_v4  ;;  %v16100_v28 = vmax.f32 %v4161_v43, %v3439_v59  ;;  %v2934_v18 = vpop.f32.mrf.mxu0  ;;  %v3103_v14 = vpop.f32.mrf.mxu1  ;;  %v16114_v43 = vor.u32 %v12775_v41, %v11094_v49  ;;  %v16162_v59 = vor.u32 %v12779_v62, %v11110_v38 }
 0x835   : > { %v16102_v19 = vmax.f32 %v4174_v37, %v2934_v18  ;;  %v16104_v60 = vmax.f32 %v4175_v26, %v3103_v14  ;;  %v16164_v18 = vor.u32 %v12778_v11, %v11112_v22 }
 0x836   : > { %18615 = vst [vmem:[#allocation9_spill] sm:$0xff] %v16114_v43 }
 0x837   : > { %18619 = vst [vmem:[#allocation13_spill] sm:$0xff] %v16162_v59 }
 0x838   : > { %18620 = vst [vmem:[#allocation14_spill] sm:$0xff] %v16164_v18 }
 0x83b   : > { %v3272_v23 = vpop.f32.mrf.mxu2  ;;  %v3441_v2 = vpop.f32.mrf.mxu3 }
 0x83c   : > { %v16106_v61 = vmax.f32 %v4176_v25, %v3272_v23  ;;  %v16108_v32 = vmax.f32 %v4177_v36, %v3441_v2  ;;  %v16110_v48 = vpop.f32.mrf.mxu0  ;;  %v16112_v56 = vpop.f32.mrf.mxu1  ;;  %v12776_v36 = vld [vmem:[#allocation2 + $0x34] sm:$0xf]  ;;  %v11120_v2 = vld [vmem:[#allocation2 + $0x58] sm:$0xf0] }
 0x83d   : > { %v16142_v24 = vor.u32 %v12776_v36, %v11104_v33  ;;  %v11118_v36 = vld [vmem:[#allocation2 + $0x50] sm:$0xf]  ;;  %v16182_v11 = vor.u32 %v12780_v29, %v11120_v2  ;;  %v4254_v2 = vmax.f32 %v16058_v47, %v16110_v48  ;;  %v4255_v29 = vmax.f32 %v16060_v21, %v16112_v56 }
 0x83e   : > { %18614 = vst [vmem:[#allocation8_spill] sm:$0xff] %v16108_v32  ;;  %v16180_v62 = vor.u32 %v12781_v1, %v11118_v36  ;;  %v11128_v36 = vld [vmem:[#allocation2 + $0x68] sm:$0xf0] }
 0x83f   : > { %5736 = vmatmul.bf16.gmra.mxu0 %v16114_v43  ;;  %11766 = vmatmul.msk.bf16.gmra.mxu1 %vm5669_vm5, %v16116_v0  ;;  %18618 = vst [vmem:[#allocation12_spill] sm:$0xff] %v16142_v24 }
 0x840   : > { %5914 = vmatmul.bf16.gmra.mxu2 %v16114_v43  ;;  %11782 = vmatmul.msk.bf16.gmra.mxu3 %vm5669_vm5, %v16116_v0  ;;  %18621 = vst [vmem:[#allocation15_spill] sm:$0xff] %v16180_v62  ;;  %v12782_v43 = vld [vmem:[#allocation2 + $0x64] sm:$0xf] }
 0x841   : > { %18622 = vst [vmem:[#allocation16_spill] sm:$0xff] %v16182_v11  ;;  %v16208_v32 = vor.u32 %v12782_v43, %v11128_v36 }
 0x843   : > { %v16124_v10 = vpop.f32.mrf.mxu2  ;;  %v16126_v37 = vpop.f32.mrf.mxu3 }
 0x844   : > { %v16128_v26 = vpop.f32.mrf.mxu0  ;;  %v16130_v40 = vpop.f32.mrf.mxu1 }
 0x84b   : > { %v16132_v53 = vpop.f32.mrf.mxu2  ;;  %v16134_v25 = vpop.f32.mrf.mxu3 }
 0x84c   : > { %v16136_v30 = vpop.f32.mrf.mxu0  ;;  %v16138_v9 = vpop.f32.mrf.mxu1 }
 0x84f   : > { %5741 = vmatmul.bf16.gmra.mxu0 %v16140_v5  ;;  %11767 = vmatmul.msk.bf16.gmra.mxu1 %vm5669_vm5, %v16142_v24 }
 0x850   : > { %5919 = vmatmul.bf16.gmra.mxu2 %v16140_v5  ;;  %11783 = vmatmul.msk.bf16.gmra.mxu3 %vm5669_vm5, %v16142_v24  ;;  %v12783_v24 = vld [vmem:[#allocation2 + $0x64] sm:$0xf0] }
 0x851   : > { %v16206_v50 = vor.u32 %v12783_v24, %v11126_v20  ;;  %v4257_v20 = vmax.f32 %v16074_v31, %v16126_v37 }
 0x853   : > { %v16150_v46 = vpop.f32.mrf.mxu2  ;;  %v16152_v51 = vpop.f32.mrf.mxu3 }
 0x854   : > { %v16154_v57 = vpop.f32.mrf.mxu0  ;;  %v16156_v42 = vpop.f32.mrf.mxu1 }
 0x85b   : > { %v16158_v12 = vpop.f32.mrf.mxu2  ;;  %v16160_v27 = vpop.f32.mrf.mxu3 }
 0x85c   : > { %v2947_v39 = vpop.f32.mrf.mxu0  ;;  %v3116_v4 = vpop.f32.mrf.mxu1 }
 0x85d   : > { %v4319_v5 = vmax.f32 %v4255_v29, %v3116_v4 }
 0x85f   : > { %5746 = vmatmul.bf16.gmra.mxu0 %v16162_v59  ;;  %11768 = vmatmul.msk.bf16.gmra.mxu1 %vm5669_vm5, %v16164_v18 }
 0x860   : > { %5924 = vmatmul.bf16.gmra.mxu2 %v16162_v59  ;;  %11784 = vmatmul.msk.bf16.gmra.mxu3 %vm5669_vm5, %v16164_v18 }
 0x863   : > { %v3285_v14 = vpop.f32.mrf.mxu2  ;;  %v3454_v8 = vpop.f32.mrf.mxu3 }
 0x864   : > { %v2949_v41 = vpop.f32.mrf.mxu0  ;;  %v3118_v23 = vpop.f32.mrf.mxu1  ;;  %v4321_v4 = vmax.f32 %v4257_v20, %v3454_v8 }
 0x86b   : > { %v16172_v49 = vpop.f32.mrf.mxu2  ;;  %v16174_v33 = vpop.f32.mrf.mxu3 }
 0x86c   : > { %v16176_v6 = vpop.f32.mrf.mxu0  ;;  %v16178_v22 = vpop.f32.mrf.mxu1 }
 0x86f   : > { %5751 = vmatmul.bf16.gmra.mxu0 %v16180_v62  ;;  %11769 = vmatmul.msk.bf16.gmra.mxu1 %vm5669_vm5, %v16182_v11 }
 0x870   : > { %5929 = vmatmul.bf16.gmra.mxu2 %v16180_v62  ;;  %11785 = vmatmul.msk.bf16.gmra.mxu3 %vm5669_vm5, %v16182_v11  ;;  %v4318_v62 = vmax.f32 %v4254_v2, %v2947_v39  ;;  %v4256_v39 = vmax.f32 %v16072_v44, %v16124_v10 }
 0x872   : > { %v4320_v24 = vmax.f32 %v4256_v39, %v3285_v14  ;;  %v4287_v39 = vmax.f32 %v16086_v7, %v16138_v9 }
 0x873   : > { %v16190_v38 = vpop.f32.mrf.mxu2  ;;  %v16192_v18 = vpop.f32.mrf.mxu3 }
 0x874   : > { %v16194_v59 = vpop.f32.mrf.mxu0  ;;  %v16196_v1 = vpop.f32.mrf.mxu1 }
 0x87b   : > { %v16202_v0 = vpop.f32.mrf.mxu2  ;;  %v16204_v11 = vpop.f32.mrf.mxu3 }
 0x87c   : > { %v2957_v58 = vpop.f32.mrf.mxu0  ;;  %v3126_v3 = vpop.f32.mrf.mxu1 }
 0x87d   : > { %v4382_v47 = vmax.f32 %v4318_v62, %v2957_v58  ;;  %v4383_v48 = vmax.f32 %v4319_v5, %v3126_v3  ;;  %v4270_v3 = vmax.f32 %v16076_v13, %v16128_v26  ;;  %v4271_v58 = vmax.f32 %v16078_v17, %v16130_v40 }
 0x87f   : > { %v4470_v21 = vadd.f32 %v13955_v15, %v4382_v47  ;;  %v4471_v56 = vadd.f32 %v13955_v15, %v4383_v48  ;;  %5756 = vmatmul.bf16.gmra.mxu0 %v16206_v50  ;;  %11770 = vmatmul.msk.bf16.gmra.mxu1 %vm5669_vm5, %v16208_v32  ;;  %v4334_v62 = vmax.f32 %v4270_v3, %v2949_v41  ;;  %v11136_v3 = vld [vmem:[#allocation2 + $0x78] sm:$0xf0] }
 0x880   : > { %5934 = vmatmul.bf16.gmra.mxu2 %v16206_v50  ;;  %11786 = vmatmul.msk.bf16.gmra.mxu3 %vm5669_vm5, %v16208_v32  ;;  %v4335_v44 = vmax.f32 %v4271_v58, %v3118_v23  ;;  %v4272_v41 = vmax.f32 %v16080_v55, %v16132_v53  ;;  %v4273_v23 = vmax.f32 %v16082_v52, %v16134_v25  ;;  %v12785_v58 = vld [vmem:[#allocation2 + $0x74] sm:$0xf0] }
 0x881   : > { %v4534_v43 = vmax.f32 %v4470_v21, 0.0  ;;  %v4535_v5 = vmax.f32 %v4471_v56, 0.0  ;;  %v4286_v56 = vmax.f32 %v16084_v54, %v16136_v30  ;;  %v4351_v52 = vmax.f32 %v4287_v39, %v16178_v22  ;;  %v12784_v54 = vld [vmem:[#allocation2 + $0x74] sm:$0xf]  ;;  %v11134_v30 = vld [vmem:[#allocation2 + $0x70] sm:$0xf] }
 0x882   : > { %v18623_v39 = vld [vmem:[#allocation8_spill] sm:$0xff] }
 0x883   : > { %v4592_v10 = vpack.c.bf16 %v4535_v5, %v4534_v43  ;;  %v3295_v2 = vpop.f32.mrf.mxu2  ;;  %v3464_v31 = vpop.f32.mrf.mxu3  ;;  %v4336_v43 = vmax.f32 %v4272_v41, %v16172_v49  ;;  %v4337_v5 = vmax.f32 %v4273_v23, %v16174_v33  ;;  %v4350_v53 = vmax.f32 %v4286_v56, %v16176_v6 }
 0x884   : > { %v4384_v37 = vmax.f32 %v4320_v24, %v3295_v2  ;;  %v4385_v29 = vmax.f32 %v4321_v4, %v3464_v31  ;;  %v2959_v36 = vpop.f32.mrf.mxu0  ;;  %v3128_v47 = vpop.f32.mrf.mxu1  ;;  %v16246_v49 = vor.u32 %v12785_v58, %v11134_v30  ;;  %v16248_v33 = vor.u32 %v12784_v54, %v11136_v3  ;;  %v12786_v54 = vld [vmem:[#allocation2 + $0x84] sm:$0xf]  ;;  %v11142_v30 = vld [vmem:[#allocation2 + $0x80] sm:$0xf] }
 0x885   : > { %4645 = vst.msk [vmem:[#allocation2 + $0xc0] sm:$0xff] %vm13980_vm4, %v4592_v10  ;;  %v4398_v13 = vmax.f32 %v4334_v62, %v2959_v36  ;;  %v4399_v26 = vmax.f32 %v4335_v44, %v3128_v47  ;;  %v4289_v36 = vmax.f32 %v16100_v28, %v16152_v51  ;;  %v4304_v56 = vmax.f32 %v16106_v61, %v16158_v12 }
 0x886   : > { %v4472_v17 = vadd.f32 %v13955_v15, %v4384_v37  ;;  %v4473_v40 = vadd.f32 %v13955_v15, %v4385_v29  ;;  %v4288_v29 = vmax.f32 %v16098_v45, %v16150_v46 }
 0x887   : > { %v4486_v14 = vadd.f32 %v13984_v16, %v4398_v13  ;;  %v4487_v8 = vadd.f32 %v13984_v16, %v4399_v26  ;;  %v4303_v26 = vmax.f32 %v16104_v60, %v16156_v42  ;;  %v4353_v46 = vmax.f32 %v4289_v36, %v16192_v18 }
 0x888   : > { %v4536_v48 = vmax.f32 %v4472_v17, 0.0  ;;  %v4537_v21 = vmax.f32 %v4473_v40, 0.0  ;;  %v4352_v45 = vmax.f32 %v4288_v29, %v16190_v38 }
 0x889   : > { %v4550_v20 = vmax.f32 %v4486_v14, 0.0  ;;  %v4551_v15 = vmax.f32 %v4487_v8, 0.0  ;;  %v4367_v14 = vmax.f32 %v4303_v26, %v16196_v1  ;;  %v11736_v26 = vld [vmem:[%s18577_s3 + $0x440] sm:$0xf0] }
 0x88a   : > { %v4593_v55 = vpack.c.bf16 %v4537_v21, %v4536_v48 }
 0x88b   : > { %v4600_v25 = vpack.c.bf16 %v4551_v15, %v4550_v20  ;;  %v3297_v24 = vpop.f32.mrf.mxu2  ;;  %v3466_v4 = vpop.f32.mrf.mxu3  ;;  %v4305_v20 = vmax.f32 %v18623_v39, %v16160_v27 }
 0x88c   : > { %4649 = vst.msk [vmem:[#allocation2 + $0xe0] sm:$0xff] %vm13980_vm4, %v4593_v55  ;;  %v4400_v7 = vmax.f32 %v4336_v43, %v3297_v24  ;;  %v4401_v9 = vmax.f32 %v4337_v5, %v3466_v4  ;;  %v2962_v62 = vpop.f32.mrf.mxu0  ;;  %v3131_v44 = vpop.f32.mrf.mxu1  ;;  %v11144_v5 = vld [vmem:[#allocation2 + $0x88] sm:$0xf0]  ;;  %v12787_v55 = vld [vmem:[#allocation2 + $0x84] sm:$0xf0] }
 0x88d   : > { %4646 = vst.msk [vmem:[#allocation2 + $0xc8] sm:$0xff] %vm13980_vm4, %v4600_v25  ;;  %v4414_v6 = vmax.f32 %v4350_v53, %v2962_v62  ;;  %v4415_v22 = vmax.f32 %v4351_v52, %v3131_v44  ;;  %v4368_v53 = vmax.f32 %v4304_v56, %v16202_v0  ;;  %v16292_v62 = vor.u32 %v12786_v54, %v11144_v5  ;;  %v11160_v5 = vld [vmem:[#allocation2 + $0xa8] sm:$0xf0] }
 0x88e   : > { %v4488_v10 = vadd.f32 %v13984_v16, %v4400_v7  ;;  %v4489_v2 = vadd.f32 %v13984_v16, %v4401_v9  ;;  %v4302_v16 = vmax.f32 %v16102_v19, %v16154_v57  ;;  %v16290_v9 = vor.u32 %v12787_v55, %v11142_v30  ;;  %v12791_v55 = vld [vmem:[#allocation2 + $0xa4] sm:$0xf0] }
 0x88f   : > { %v4502_v31 = vadd.f32 %v13996_v35, %v4414_v6  ;;  %v4503_v37 = vadd.f32 %v13996_v35, %v4415_v22  ;;  %5761 = vmatmul.bf16.gmra.mxu0 %v16246_v49  ;;  %11771 = vmatmul.msk.bf16.gmra.mxu1 %vm5669_vm5, %v16248_v33 }
 0x890   : > { %v4552_v47 = vmax.f32 %v4488_v10, 0.0  ;;  %v4553_v13 = vmax.f32 %v4489_v2, 0.0  ;;  %5939 = vmatmul.bf16.gmra.mxu2 %v16246_v49  ;;  %11787 = vmatmul.msk.bf16.gmra.mxu3 %vm5669_vm5, %v16248_v33  ;;  %v4366_v51 = vmax.f32 %v4302_v16, %v16194_v59 }
 0x891   : > { %v4566_v17 = vmax.f32 %v4502_v31, 0.0  ;;  %v4567_v40 = vmax.f32 %v4503_v37, 0.0 }
 0x892   : > { %v4601_v28 = vpack.c.bf16 %v4553_v13, %v4552_v47  ;;  %v12873_v47 = vld [vmem:[%s18577_s3 + $0x23c] sm:$0xf]  ;;  %v11496_v13 = vld [vmem:[%s18577_s3 + $0x260] sm:$0xf0] }
 0x893   : > { %v4608_v8 = vpack.c.bf16 %v4567_v40, %v4566_v17  ;;  %v3300_v41 = vpop.f32.mrf.mxu2  ;;  %v3469_v23 = vpop.f32.mrf.mxu3  ;;  %v11499_v16 = vor.u32 %v12873_v47, %v11496_v13  ;;  %v11152_v17 = vld [vmem:[#allocation2 + $0x98] sm:$0xf0]  ;;  %v12789_v40 = vld [vmem:[#allocation2 + $0x94] sm:$0xf0]  ;;  %v12792_v13 = vld [vmem:[#allocation2 + $0xb4] sm:$0xf] }
 0x894   : > { %4650 = vst.msk [vmem:[#allocation2 + $0xe8] sm:$0xff] %vm13980_vm4, %v4601_v28  ;;  %v4416_v19 = vmax.f32 %v4352_v45, %v3300_v41  ;;  %v4417_v57 = vmax.f32 %v4353_v46, %v3469_v23  ;;  %v2964_v60 = vpop.f32.mrf.mxu0  ;;  %v3133_v42 = vpop.f32.mrf.mxu1  ;;  %v11739_v45 = vor.u32 %v12933_v63, %v11736_v26 }
 0x895   : > { %4647 = vst.msk [vmem:[#allocation2 + $0xd0] sm:$0xff] %vm13980_vm4, %v4608_v8  ;;  %v4430_v38 = vmax.f32 %v4366_v51, %v2964_v60  ;;  %v4431_v18 = vmax.f32 %v4367_v14, %v3133_v42  ;;  %6252 = vmatpush.bf16.msrb.mxu2 %v11499_v16  ;;  %v12788_v51 = vld [vmem:[#allocation2 + $0x94] sm:$0xf]  ;;  %v11150_v14 = vld [vmem:[#allocation2 + $0x90] sm:$0xf] }
 0x896   : > { %v4504_v48 = vadd.f32 %v13996_v35, %v4416_v19  ;;  %v4505_v59 = vadd.f32 %v13996_v35, %v4417_v57  ;;  %v4369_v35 = vmax.f32 %v4305_v20, %v16204_v11  ;;  %6343 = vmatpush.bf16.msrb.mxu3 %v11739_v45  ;;  %v16318_v57 = vor.u32 %v12789_v40, %v11150_v14  ;;  %v11166_v16 = vld [vmem:[#allocation2 + $0xb0] sm:$0xf] }
 0x897   : > { %v4518_v1 = vadd.f32 %v14031_v34, %v4430_v38  ;;  %v4519_v21 = vadd.f32 %v14031_v34, %v4431_v18  ;;  %v16320_v60 = vor.u32 %v12788_v51, %v11152_v17  ;;  %v11494_v38 = vld [vmem:[%s18577_s3 + $0x238] sm:$0xf]  ;;  %v12878_v18 = vld [vmem:[%s18577_s3 + $0x25c] sm:$0xf0]  ;;  %v11454_v51 = vld [vmem:[%s18577_s3 + $0x1e8] sm:$0xf] }
 0x898   : > { %v4568_v15 = vmax.f32 %v4504_v48, 0.0  ;;  %v4569_v3 = vmax.f32 %v4505_v59, 0.0  ;;  %v11495_v48 = vor.u32 %v12878_v18, %v11494_v38  ;;  %v11734_v59 = vld [vmem:[%s18577_s3 + $0x418] sm:$0xf]  ;;  %v12868_v14 = vld [vmem:[%s18577_s3 + $0x20c] sm:$0xf0] }
 0x899   : > { %v4582_v58 = vmax.f32 %v4518_v1, 0.0  ;;  %v4583_v43 = vmax.f32 %v4519_v21, 0.0  ;;  %v12938_v1 = vld [vmem:[%s18577_s3 + $0x43c] sm:$0xf0] }
 0x89a   : > { %v4609_v52 = vpack.c.bf16 %v4569_v3, %v4568_v15  ;;  %v11735_v21 = vor.u32 %v12938_v1, %v11734_v59  ;;  %6074 = vmatpush.bf16.msrb.mxu0 %v11495_v48  ;;  %v12923_v59 = vld [vmem:[%s18577_s3 + $0x3cc] sm:$0xf]  ;;  %v11696_v1 = vld [vmem:[%s18577_s3 + $0x3f0] sm:$0xf0] }
 0x89b   : > { %v4616_v25 = vpack.c.bf16 %v4583_v43, %v4582_v58  ;;  %v3302_v24 = vpop.f32.mrf.mxu2  ;;  %v3471_v4 = vpop.f32.mrf.mxu3 }
 0x89c   : > { %4651 = vst.msk [vmem:[#allocation2 + $0xf0] sm:$0xff] %vm13980_vm4, %v4609_v52  ;;  %v4432_v61 = vmax.f32 %v4368_v53, %v3302_v24  ;;  %v4433_v12 = vmax.f32 %v4369_v35, %v3471_v4  ;;  %v5727_v27 = vpop.f32.mrf.mxu0  ;;  %v5816_v7 = vpop.f32.mrf.mxu1  ;;  %6165 = vmatpush.bf16.msrb.mxu1 %v11735_v21  ;;  %v12790_v52 = vld [vmem:[#allocation2 + $0xa4] sm:$0xf]  ;;  %v11699_v21 = vor.u32 %v12923_v59, %v11696_v1  ;;  %v12838_v59 = vld [vmem:[%s18577_s3 + $0x11c] sm:$0xf0] }
 0x89d   : > { %4648 = vst.msk [vmem:[#allocation2 + $0xd8] sm:$0xff] %vm13980_vm4, %v4616_v25  ;;  %v5817_v31 = vadd.f32 %v5816_v7, %v5727_v27  ;;  %v11158_v25 = vld [vmem:[#allocation2 + $0xa0] sm:$0xf]  ;;  %v11654_v1 = vld [vmem:[%s18577_s3 + $0x378] sm:$0xf] }
 0x89e   : > { %v4520_v0 = vadd.f32 %v14031_v34, %v4432_v61  ;;  %v4521_v11 = vadd.f32 %v14031_v34, %v4433_v12  ;;  %v16340_v61 = vor.u32 %v12791_v55, %v11158_v25  ;;  %v16342_v12 = vor.u32 %v12790_v52, %v11160_v5  ;;  %6344 = vmatpush.bf16.msrb.mxu3 %v11699_v21 }
 0x89f   : > { %5766 = vmatmul.bf16.gmra.mxu0 %v16290_v9  ;;  %11772 = vmatmul.msk.bf16.gmra.mxu1 %vm5669_vm5, %v16292_v62 }
 0x8a0   : > { %v4584_v44 = vmax.f32 %v4520_v0, 0.0  ;;  %v4585_v6 = vmax.f32 %v4521_v11, 0.0  ;;  %5944 = vmatmul.bf16.gmra.mxu2 %v16290_v9  ;;  %11788 = vmatmul.msk.bf16.gmra.mxu3 %vm5669_vm5, %v16292_v62 }
 0x8a2   : > { %v4617_v22 = vpack.c.bf16 %v4585_v6, %v4584_v44 }
 0x8a3   : > { %v5905_v10 = vpop.f32.mrf.mxu2  ;;  %v5994_v2 = vpop.f32.mrf.mxu3 }
 0x8a4   : > { %4652 = vst.msk [vmem:[#allocation2 + $0xf8] sm:$0xff] %vm13980_vm4, %v4617_v22  ;;  %v5995_v34 = vadd.f32 %v5994_v2, %v5905_v10  ;;  %v5729_v37 = vpop.f32.mrf.mxu0  ;;  %v5818_v29 = vpop.f32.mrf.mxu1  ;;  %v12863_v2 = vld [vmem:[%s18577_s3 + $0x1ec] sm:$0xf] }
 0x8a5   : > { %v5819_v8 = vadd.f32 %v5818_v29, %v5729_v37  ;;  %v11168_v37 = vld [vmem:[#allocation2 + $0xb8] sm:$0xf0]  ;;  %v12793_v29 = vld [vmem:[#allocation2 + $0xb4] sm:$0xf0] }
 0x8a6   : > { %v7498_v36 = vpack.c.bf16 %v5995_v34, %v5817_v31  ;;  %v11456_v31 = vld [vmem:[%s18577_s3 + $0x210] sm:$0xf0]  ;;  %v16356_v45 = vor.u32 %v12793_v29, %v11166_v16  ;;  %v11184_v29 = vld [vmem:[#allocation2 + $0xd8] sm:$0xf0]  ;;  %v12843_v16 = vld [vmem:[%s18577_s3 + $0x14c] sm:$0xf] }
 0x8a7   : > { %v11459_v34 = vor.u32 %v12863_v2, %v11456_v31  ;;  %v11414_v2 = vld [vmem:[%s18577_s3 + $0x198] sm:$0xf] }
 0x8a8   : > { %7658 = vst [vmem:[#allocation3] sm:$0xff] %v7498_v36 }
 0x8a9   : > { %6253 = vmatpush.bf16.msrb.mxu2 %v11459_v34  ;;  %v12858_v34 = vld [vmem:[%s18577_s3 + $0x1bc] sm:$0xf0] }
 0x8ab   : > { %v5907_v46 = vpop.f32.mrf.mxu2  ;;  %v5996_v28 = vpop.f32.mrf.mxu3 }
 0x8ac   : > { %v5997_v41 = vadd.f32 %v5996_v28, %v5907_v46  ;;  %v5732_v23 = vpop.f32.mrf.mxu0  ;;  %v5821_v19 = vpop.f32.mrf.mxu1  ;;  %v16358_v46 = vor.u32 %v12792_v13, %v11168_v37  ;;  %v11415_v37 = vor.u32 %v12858_v34, %v11414_v2  ;;  %v12848_v13 = vld [vmem:[%s18577_s3 + $0x16c] sm:$0xf0]  ;;  %v12903_v2 = vld [vmem:[%s18577_s3 + $0x32c] sm:$0xf] }
 0x8ad   : > { %v5822_v20 = vadd.f32 %v5821_v19, %v5732_v23 }
 0x8ae   : > { %v7503_v42 = vpack.c.bf16 %v5997_v41, %v5819_v8  ;;  %v11455_v8 = vor.u32 %v12868_v14, %v11454_v51  ;;  %v11182_v51 = vld [vmem:[#allocation2 + $0xd0] sm:$0xf] }
 0x8af   : > { %5771 = vmatmul.bf16.gmra.mxu0 %v16318_v57  ;;  %11773 = vmatmul.msk.bf16.gmra.mxu1 %vm5669_vm5, %v16320_v60 }
 0x8b0   : > { %7659 = vst [vmem:[#allocation3 + $0x40] sm:$0xff] %v7503_v42  ;;  %5949 = vmatmul.bf16.gmra.mxu2 %v16318_v57  ;;  %11789 = vmatmul.msk.bf16.gmra.mxu3 %vm5669_vm5, %v16320_v60 }
 0x8b1   : > { %6075 = vmatpush.bf16.msrb.mxu0 %v11455_v8 }
 0x8b3   : > { %v5910_v56 = vpop.f32.mrf.mxu2  ;;  %v5999_v39 = vpop.f32.mrf.mxu3 }
 0x8b4   : > { %v6000_v15 = vadd.f32 %v5999_v39, %v5910_v56  ;;  %v5734_v3 = vpop.f32.mrf.mxu0  ;;  %v5823_v58 = vpop.f32.mrf.mxu1  ;;  %v11176_v56 = vld [vmem:[#allocation2 + $0xc8] sm:$0xf0]  ;;  %v12795_v39 = vld [vmem:[#allocation2 + $0xc4] sm:$0xf0] }
 0x8b5   : > { %v5824_v24 = vadd.f32 %v5823_v58, %v5734_v3  ;;  %v12794_v3 = vld [vmem:[#allocation2 + $0xc4] sm:$0xf]  ;;  %v11174_v58 = vld [vmem:[#allocation2 + $0xc0] sm:$0xf]  ;;  %6076 = vmatpush.bf16.msrb.mxu0 %v11415_v37 }
 0x8b6   : > { %v7508_v43 = vpack.c.bf16 %v6000_v15, %v5822_v20  ;;  %v16380_v52 = vor.u32 %v12794_v3, %v11176_v56  ;;  %v12918_v56 = vld [vmem:[%s18577_s3 + $0x39c] sm:$0xf0] }
 0x8b8   : > { %7660 = vst [vmem:[#allocation3 + $0x80] sm:$0xff] %v7508_v43 }
 0x8bb   : > { %v5912_v53 = vpop.f32.mrf.mxu2  ;;  %v6001_v35 = vpop.f32.mrf.mxu3 }
 0x8bc   : > { %v6002_v4 = vadd.f32 %v6001_v35, %v5912_v53  ;;  %v5737_v54 = vpop.f32.mrf.mxu0  ;;  %v5826_v30 = vpop.f32.mrf.mxu1  ;;  %v16378_v35 = vor.u32 %v12795_v39, %v11174_v58  ;;  %v12833_v39 = vld [vmem:[%s18577_s3 + $0xfc] sm:$0xf] }
 0x8bd   : > { %v5827_v11 = vadd.f32 %v5826_v30, %v5737_v54  ;;  %v12913_v58 = vld [vmem:[%s18577_s3 + $0x37c] sm:$0xf] }
 0x8be   : > { %v7513_v27 = vpack.c.bf16 %v6002_v4, %v5824_v24  ;;  %v11694_v24 = vld [vmem:[%s18577_s3 + $0x3c8] sm:$0xf]  ;;  %v12928_v4 = vld [vmem:[%s18577_s3 + $0x3ec] sm:$0xf0] }
 0x8bf   : > { %5776 = vmatmul.bf16.gmra.mxu0 %v16340_v61  ;;  %11774 = vmatmul.msk.bf16.gmra.mxu1 %vm5669_vm5, %v16342_v12  ;;  %v11695_v54 = vor.u32 %v12928_v4, %v11694_v24 }
 0x8c0   : > { %7661 = vst [vmem:[#allocation3 + $0xc0] sm:$0xff] %v7513_v27  ;;  %5954 = vmatmul.bf16.gmra.mxu2 %v16340_v61  ;;  %11790 = vmatmul.msk.bf16.gmra.mxu3 %vm5669_vm5, %v16342_v12 }
 0x8c1   : > { %6166 = vmatpush.bf16.msrb.mxu1 %v11695_v54 }
 0x8c3   : > { %v5915_v7 = vpop.f32.mrf.mxu2  ;;  %v6004_v0 = vpop.f32.mrf.mxu3 }
 0x8c4   : > { %v6005_v44 = vadd.f32 %v6004_v0, %v5915_v7  ;;  %v5739_v6 = vpop.f32.mrf.mxu0  ;;  %v5828_v22 = vpop.f32.mrf.mxu1 }
 0x8c5   : > { %v5829_v63 = vadd.f32 %v5828_v22, %v5739_v6  ;;  %v12853_v22 = vld [vmem:[%s18577_s3 + $0x19c] sm:$0xf] }
 0x8c6   : > { %v7518_v10 = vpack.c.bf16 %v6005_v44, %v5827_v11 }
 0x8c8   : > { %7662 = vst [vmem:[#allocation3 + $0x8] sm:$0xff] %v7518_v10  ;;  %v11416_v10 = vld [vmem:[%s18577_s3 + $0x1c0] sm:$0xf0] }
 0x8c9   : > { %v11419_v31 = vor.u32 %v12853_v22, %v11416_v10 }
 0x8cb   : > { %v5917_v36 = vpop.f32.mrf.mxu2  ;;  %v6006_v47 = vpop.f32.mrf.mxu3  ;;  %6254 = vmatpush.bf16.msrb.mxu2 %v11419_v31  ;;  %v11616_v31 = vld [vmem:[%s18577_s3 + $0x350] sm:$0xf0] }
 0x8cc   : > { %v6007_v26 = vadd.f32 %v6006_v47, %v5917_v36  ;;  %v5742_v17 = vpop.f32.mrf.mxu0  ;;  %v5831_v40 = vpop.f32.mrf.mxu1  ;;  %v12797_v36 = vld [vmem:[#allocation2 + $0xd4] sm:$0xf0]  ;;  %v11374_v47 = vld [vmem:[%s18577_s3 + $0x148] sm:$0xf]  ;;  %v11619_v34 = vor.u32 %v12903_v2, %v11616_v31  ;;  %v11200_v2 = vld [vmem:[#allocation2 + $0xf8] sm:$0xf0] }
 0x8cd   : > { %v5832_v19 = vadd.f32 %v5831_v40, %v5742_v17  ;;  %v11375_v17 = vor.u32 %v12848_v13, %v11374_v47  ;;  %v11376_v40 = vld [vmem:[%s18577_s3 + $0x170] sm:$0xf0]  ;;  %v11574_v47 = vld [vmem:[%s18577_s3 + $0x2d8] sm:$0xf] }
 0x8ce   : > { %v7523_v28 = vpack.c.bf16 %v6007_v26, %v5829_v63  ;;  %v12801_v31 = vld [vmem:[#allocation2 + $0xf4] sm:$0xf0] }
 0x8cf   : > { %5781 = vmatmul.bf16.gmra.mxu0 %v16356_v45  ;;  %11775 = vmatmul.msk.bf16.gmra.mxu1 %vm5669_vm5, %v16358_v46 }
 0x8d0   : > { %7663 = vst [vmem:[#allocation3 + $0x48] sm:$0xff] %v7523_v28  ;;  %5959 = vmatmul.bf16.gmra.mxu2 %v16356_v45  ;;  %11791 = vmatmul.msk.bf16.gmra.mxu3 %vm5669_vm5, %v16358_v46  ;;  %v12796_v28 = vld [vmem:[#allocation2 + $0xd4] sm:$0xf] }
 0x8d1   : > { %6077 = vmatpush.bf16.msrb.mxu0 %v11375_v17 }
 0x8d3   : > { %v5920_v41 = vpop.f32.mrf.mxu2  ;;  %v6009_v23 = vpop.f32.mrf.mxu3 }
 0x8d4   : > { %v6010_v42 = vadd.f32 %v6009_v23, %v5920_v41  ;;  %v5744_v38 = vpop.f32.mrf.mxu0  ;;  %v5833_v18 = vpop.f32.mrf.mxu1 }
 0x8d5   : > { %v5834_v43 = vadd.f32 %v5833_v18, %v5744_v38  ;;  %v16420_v38 = vor.u32 %v12796_v28, %v11184_v29  ;;  %v11254_v29 = vld [vmem:[%s18577_s3 + $0x58] sm:$0xf]  ;;  %v12893_v28 = vld [vmem:[%s18577_s3 + $0x2dc] sm:$0xf] }
 0x8d6   : > { %v7528_v48 = vpack.c.bf16 %v6010_v42, %v5832_v19  ;;  %v11379_v19 = vor.u32 %v12843_v16, %v11376_v40  ;;  %v16418_v42 = vor.u32 %v12797_v36, %v11182_v51  ;;  %v12818_v36 = vld [vmem:[%s18577_s3 + $0x7c] sm:$0xf0]  ;;  %v11576_v51 = vld [vmem:[%s18577_s3 + $0x300] sm:$0xf0] }
 0x8d7   : > { %v11255_v13 = vor.u32 %v12818_v36, %v11254_v29  ;;  %v12898_v16 = vld [vmem:[%s18577_s3 + $0x2fc] sm:$0xf0]  ;;  %v12800_v29 = vld [vmem:[#allocation2 + $0xf4] sm:$0xf]  ;;  %v11198_v36 = vld [vmem:[#allocation2 + $0xf0] sm:$0xf] }
 0x8d8   : > { %7664 = vst [vmem:[#allocation3 + $0x88] sm:$0xff] %v7528_v48  ;;  %6255 = vmatpush.bf16.msrb.mxu2 %v11379_v19  ;;  %v11334_v48 = vld [vmem:[%s18577_s3 + $0xf8] sm:$0xf]  ;;  %v11575_v17 = vor.u32 %v12898_v16, %v11574_v47  ;;  %v11214_v19 = vld [vmem:[%s18577_s3 + $0x8] sm:$0xf] }
 0x8d9   : > { %v11335_v21 = vor.u32 %v12838_v59, %v11334_v48  ;;  %v11534_v48 = vld [vmem:[%s18577_s3 + $0x288] sm:$0xf] }
 0x8db   : > { %v5922_v20 = vpop.f32.mrf.mxu2  ;;  %v6011_v15 = vpop.f32.mrf.mxu3  ;;  %6078 = vmatpush.bf16.msrb.mxu0 %v11335_v21 }
 0x8dc   : > { %v6012_v5 = vadd.f32 %v6011_v15, %v5922_v20  ;;  %v5747_v55 = vpop.f32.mrf.mxu0  ;;  %v5836_v53 = vpop.f32.mrf.mxu1  ;;  %v11336_v20 = vld [vmem:[%s18577_s3 + $0x120] sm:$0xf0]  ;;  %v11655_v15 = vor.u32 %v12918_v56, %v11654_v1  ;;  %v12888_v56 = vld [vmem:[%s18577_s3 + $0x2ac] sm:$0xf0] }
 0x8dd   : > { %v5837_v7 = vadd.f32 %v5836_v53, %v5747_v55  ;;  %v11339_v3 = vor.u32 %v12833_v39, %v11336_v20  ;;  %v11294_v55 = vld [vmem:[%s18577_s3 + $0xa8] sm:$0xf]  ;;  %v12828_v53 = vld [vmem:[%s18577_s3 + $0xcc] sm:$0xf0]  ;;  %v12803_v39 = vld [vmem:[%s18577_s3 + $0xc] sm:$0xf] }
 0x8de   : > { %v7533_v25 = vpack.c.bf16 %v6012_v5, %v5834_v43  ;;  %v11656_v43 = vld [vmem:[%s18577_s3 + $0x3a0] sm:$0xf0]  ;;  %6167 = vmatpush.bf16.msrb.mxu1 %v11655_v15  ;;  %v11295_v54 = vor.u32 %v12828_v53, %v11294_v55  ;;  %v11216_v20 = vld [vmem:[%s18577_s3 + $0x30] sm:$0xf0]  ;;  %v11190_v15 = vld [vmem:[#allocation2 + $0xe0] sm:$0xf]  ;;  %v11535_v55 = vor.u32 %v12888_v56, %v11534_v48 }
 0x8df   : > { %5786 = vmatmul.bf16.gmra.mxu0 %v16378_v35  ;;  %11776 = vmatmul.msk.bf16.gmra.mxu1 %vm5669_vm5, %v16380_v52  ;;  %v11659_v5 = vor.u32 %v12913_v58, %v11656_v43  ;;  %v12883_v53 = vld [vmem:[%s18577_s3 + $0x28c] sm:$0xf] }
 0x8e0   : > { %7665 = vst [vmem:[#allocation3 + $0xc8] sm:$0xff] %v7533_v25  ;;  %5964 = vmatmul.bf16.gmra.mxu2 %v16378_v35  ;;  %11792 = vmatmul.msk.bf16.gmra.mxu3 %vm5669_vm5, %v16380_v52  ;;  %v11614_v25 = vld [vmem:[%s18577_s3 + $0x328] sm:$0xf] }
 0x8e1   : > { %6256 = vmatpush.bf16.msrb.mxu2 %v11339_v3  ;;  %6345 = vmatpush.bf16.msrb.mxu3 %v11659_v5 }
 0x8e2   : > { %6079 = vmatpush.bf16.msrb.mxu0 %v11295_v54  ;;  %v11219_v54 = vor.u32 %v12803_v39, %v11216_v20  ;;  %v18624_v20 = vld [vmem:[#allocation4_spill] sm:$0xff] }
 0x8e3   : > { %v5925_v30 = vpop.f32.mrf.mxu2  ;;  %v6014_v27 = vpop.f32.mrf.mxu3 }
 0x8e4   : > { %v6015_v0 = vadd.f32 %v6014_v27, %v5925_v30  ;;  %v5749_v11 = vpop.f32.mrf.mxu0  ;;  %v5838_v44 = vpop.f32.mrf.mxu1  ;;  %v12908_v30 = vld [vmem:[%s18577_s3 + $0x34c] sm:$0xf0]  ;;  %v12823_v27 = vld [vmem:[%s18577_s3 + $0xac] sm:$0xf] }
 0x8e5   : > { %v5839_v14 = vadd.f32 %v5838_v44, %v5749_v11  ;;  %v11615_v22 = vor.u32 %v12908_v30, %v11614_v25  ;;  %6346 = vmatpush.bf16.msrb.mxu3 %v11619_v34  ;;  %v11536_v25 = vld [vmem:[%s18577_s3 + $0x2b0] sm:$0xf0] }
 0x8e6   : > { %v7538_v6 = vpack.c.bf16 %v6015_v0, %v5837_v7  ;;  %v11296_v7 = vld [vmem:[%s18577_s3 + $0xd0] sm:$0xf0]  ;;  %6080 = vmatpush.bf16.msrb.mxu0 %v11255_v13  ;;  %v11539_v30 = vor.u32 %v12883_v53, %v11536_v25 }
 0x8e7   : > { %v11299_v10 = vor.u32 %v12823_v27, %v11296_v7  ;;  %6168 = vmatpush.bf16.msrb.mxu1 %v11615_v22 }
 0x8e8   : > { %7666 = vst [vmem:[#allocation3 + $0x10] sm:$0xff] %v7538_v6 }
 0x8e9   : > { %6257 = vmatpush.bf16.msrb.mxu2 %v11299_v10 }
 0x8eb   : > { %v5927_v63 = vpop.f32.mrf.mxu2  ;;  %v6016_v26 = vpop.f32.mrf.mxu3  ;;  %6169 = vmatpush.bf16.msrb.mxu1 %v11575_v17  ;;  %v16536_v17 = vor.u32 %v12800_v29, %v11200_v2 }
 0x8ec   : > { %v6017_v8 = vadd.f32 %v6016_v26, %v5927_v63  ;;  %v5752_v41 = vpop.f32.mrf.mxu0  ;;  %v5841_v23 = vpop.f32.mrf.mxu1  ;;  %v12813_v63 = vld [vmem:[%s18577_s3 + $0x5c] sm:$0xf]  ;;  %v11256_v26 = vld [vmem:[%s18577_s3 + $0x80] sm:$0xf0] }
 0x8ed   : > { %v5842_v0 = vadd.f32 %v5841_v23, %v5752_v41  ;;  %v11259_v40 = vor.u32 %v12813_v63, %v11256_v26  ;;  %v11579_v41 = vor.u32 %v12893_v28, %v11576_v51  ;;  %v12798_v23 = vld [vmem:[#allocation2 + $0xe4] sm:$0xf]  ;;  %v16534_v26 = vor.u32 %v12801_v31, %v11198_v36 }
 0x8ee   : > { %v7543_v18 = vpack.c.bf16 %v6017_v8, %v5839_v14  ;;  %v11192_v14 = vld [vmem:[#allocation2 + $0xe8] sm:$0xf0]  ;;  %v12799_v8 = vld [vmem:[#allocation2 + $0xe4] sm:$0xf0] }
 0x8ef   : > { %5791 = vmatmul.bf16.gmra.mxu0 %v16418_v42  ;;  %11777 = vmatmul.msk.bf16.gmra.mxu1 %vm5669_vm5, %v16420_v38 }
 0x8f0   : > { %7667 = vst [vmem:[#allocation3 + $0x50] sm:$0xff] %v7543_v18  ;;  %5969 = vmatmul.bf16.gmra.mxu2 %v16418_v42  ;;  %11793 = vmatmul.msk.bf16.gmra.mxu3 %vm5669_vm5, %v16420_v38  ;;  %v12808_v18 = vld [vmem:[%s18577_s3 + $0x2c] sm:$0xf0] }
 0x8f1   : > { %6258 = vmatpush.bf16.msrb.mxu2 %v11259_v40  ;;  %6347 = vmatpush.bf16.msrb.mxu3 %v11579_v41  ;;  %v11215_v21 = vor.u32 %v12808_v18, %v11214_v19 }
 0x8f2   : > { %6170 = vmatpush.bf16.msrb.mxu1 %v11535_v55 }
 0x8f3   : > { %v5930_v24 = vpop.f32.mrf.mxu2  ;;  %v6019_v4 = vpop.f32.mrf.mxu3  ;;  %6081 = vmatpush.bf16.msrb.mxu0 %v11215_v21 }
 0x8f4   : > { %v6020_v11 = vadd.f32 %v6019_v4, %v5930_v24  ;;  %v5754_v44 = vpop.f32.mrf.mxu0  ;;  %v5843_v6 = vpop.f32.mrf.mxu1  ;;  %v16524_v24 = vor.u32 %v12799_v8, %v11190_v15  ;;  %v16526_v4 = vor.u32 %v12798_v23, %v11192_v14  ;;  %v18625_v15 = vld [vmem:[#allocation5_spill] sm:$0xff] }
 0x8f5   : > { %v5844_v3 = vadd.f32 %v5843_v6, %v5754_v44  ;;  %6259 = vmatpush.bf16.msrb.mxu2 %v11219_v54  ;;  %6348 = vmatpush.bf16.msrb.mxu3 %v11539_v30 }
 0x8f6   : > { %v7548_v37 = vpack.c.bf16 %v6020_v11, %v5842_v0 }
 0x8f8   : > { %7668 = vst [vmem:[#allocation3 + $0x90] sm:$0xff] %v7548_v37 }
 0x8fb   : > { %v5932_v59 = vpop.f32.mrf.mxu2  ;;  %v6021_v1 = vpop.f32.mrf.mxu3 }
 0x8fc   : > { %v6022_v58 = vadd.f32 %v6021_v1, %v5932_v59  ;;  %v5757_v43 = vpop.f32.mrf.mxu0  ;;  %v5846_v5 = vpop.f32.mrf.mxu1 }
 0x8fd   : > { %v5847_v11 = vadd.f32 %v5846_v5, %v5757_v43 }
 0x8fe   : > { %v7553_v27 = vpack.c.bf16 %v6022_v58, %v5844_v3 }
 0x8ff   : > { %5796 = vmatmul.bf16.gmra.mxu0 %v16524_v24  ;;  %11778 = vmatmul.msk.bf16.gmra.mxu1 %vm5669_vm5, %v16526_v4 }
 0x900   : > { %7669 = vst [vmem:[#allocation3 + $0xd0] sm:$0xff] %v7553_v27  ;;  %5974 = vmatmul.bf16.gmra.mxu2 %v16524_v24  ;;  %11794 = vmatmul.msk.bf16.gmra.mxu3 %vm5669_vm5, %v16526_v4 }
 0x903   : > { %v5935_v7 = vpop.f32.mrf.mxu2  ;;  %v6024_v0 = vpop.f32.mrf.mxu3 }
 0x904   : > { %v6025_v44 = vadd.f32 %v6024_v0, %v5935_v7  ;;  %v5759_v6 = vpop.f32.mrf.mxu0  ;;  %v5848_v22 = vpop.f32.mrf.mxu1 }
 0x905   : > { %v5849_v47 = vadd.f32 %v5848_v22, %v5759_v6  ;;  %v18626_v6 = vld [vmem:[#allocation6_spill] sm:$0xff]  ;;  %v18627_v22 = vld [vmem:[#allocation7_spill] sm:$0xff] }
 0x906   : > { %v7558_v10 = vpack.c.bf16 %v6025_v44, %v5847_v11 }
 0x908   : > { %7670 = vst [vmem:[#allocation3 + $0x18] sm:$0xff] %v7558_v10 }
 0x90b   : > { %v5937_v34 = vpop.f32.mrf.mxu2  ;;  %v6026_v37 = vpop.f32.mrf.mxu3 }
 0x90c   : > { %v6027_v13 = vadd.f32 %v6026_v37, %v5937_v34  ;;  %v5762_v16 = vpop.f32.mrf.mxu0  ;;  %v5851_v63 = vpop.f32.mrf.mxu1 }
 0x90d   : > { %v5852_v14 = vadd.f32 %v5851_v63, %v5762_v16 }
 0x90e   : > { %v7563_v40 = vpack.c.bf16 %v6027_v13, %v5849_v47 }
 0x90f   : > { %5801 = vmatmul.bf16.gmra.mxu0 %v16534_v26  ;;  %11779 = vmatmul.msk.bf16.gmra.mxu1 %vm5669_vm5, %v16536_v17 }
 0x910   : > { %7671 = vst [vmem:[#allocation3 + $0x58] sm:$0xff] %v7563_v40  ;;  %5979 = vmatmul.bf16.gmra.mxu2 %v16534_v26  ;;  %11795 = vmatmul.msk.bf16.gmra.mxu3 %vm5669_vm5, %v16536_v17 }
 0x913   : > { %v5940_v28 = vpop.f32.mrf.mxu2  ;;  %v6029_v51 = vpop.f32.mrf.mxu3 }
 0x914   : > { %v6030_v8 = vadd.f32 %v6029_v51, %v5940_v28  ;;  %v5764_v41 = vpop.f32.mrf.mxu0  ;;  %v5853_v23 = vpop.f32.mrf.mxu1 }
 0x915   : > { %v5854_v59 = vadd.f32 %v5853_v23, %v5764_v41 }
 0x916   : > { %v7568_v19 = vpack.c.bf16 %v6030_v8, %v5852_v14  ;;  %v18628_v14 = vld [vmem:[#allocation9_spill] sm:$0xff]  ;;  %v18629_v8 = vld [vmem:[#allocation10_spill] sm:$0xff] }
 0x918   : > { %7672 = vst [vmem:[#allocation3 + $0x98] sm:$0xff] %v7568_v19 }
 0x91b   : > { %v5942_v18 = vpop.f32.mrf.mxu2  ;;  %v6031_v48 = vpop.f32.mrf.mxu3 }
 0x91c   : > { %v6032_v1 = vadd.f32 %v6031_v48, %v5942_v18  ;;  %v5767_v21 = vpop.f32.mrf.mxu0  ;;  %v5856_v56 = vpop.f32.mrf.mxu1 }
 0x91d   : > { %v5857_v43 = vadd.f32 %v5856_v56, %v5767_v21 }
 0x91e   : > { %v7573_v39 = vpack.c.bf16 %v6032_v1, %v5854_v59 }
 0x91f   : > { %6082 = vmatmul.bf16.vlgmr.msrb.gmra.mxu0 %v18624_v20  ;;  %11796 = vmatmul.msk.bf16.vlgmr.msrb.gmra.mxu1 %vm5669_vm5, %v18625_v15 }
 0x920   : > { %7673 = vst [vmem:[#allocation3 + $0xd8] sm:$0xff] %v7573_v39  ;;  %6260 = vmatmul.bf16.vlgmr.msrb.gmra.mxu2 %v18624_v20  ;;  %11812 = vmatmul.msk.bf16.vlgmr.msrb.gmra.mxu3 %vm5669_vm5, %v18625_v15 }
 0x923   : > { %v5945_v3 = vpop.f32.mrf.mxu2  ;;  %v6034_v58 = vpop.f32.mrf.mxu3 }
 0x924   : > { %v6035_v5 = vadd.f32 %v6034_v58, %v5945_v3  ;;  %v5769_v55 = vpop.f32.mrf.mxu0  ;;  %v5858_v53 = vpop.f32.mrf.mxu1 }
 0x925   : > { %v5859_v27 = vadd.f32 %v5858_v53, %v5769_v55  ;;  %v18630_v55 = vld [vmem:[#allocation11_spill] sm:$0xff]  ;;  %v18631_v53 = vld [vmem:[#allocation12_spill] sm:$0xff] }
 0x926   : > { %v7578_v25 = vpack.c.bf16 %v6035_v5, %v5857_v43 }
 0x928   : > { %7674 = vst [vmem:[#allocation3 + $0x20] sm:$0xff] %v7578_v25 }
 0x92b   : > { %v5947_v54 = vpop.f32.mrf.mxu2  ;;  %v6036_v30 = vpop.f32.mrf.mxu3 }
 0x92c   : > { %v6037_v7 = vadd.f32 %v6036_v30, %v5947_v54  ;;  %v5772_v0 = vpop.f32.mrf.mxu0  ;;  %v5861_v11 = vpop.f32.mrf.mxu1 }
 0x92d   : > { %v5862_v31 = vadd.f32 %v5861_v11, %v5772_v0 }
 0x92e   : > { %v7583_v44 = vpack.c.bf16 %v6037_v7, %v5859_v27 }
 0x92f   : > { %6087 = vmatmul.bf16.gmra.mxu0 %v18626_v6  ;;  %11797 = vmatmul.msk.bf16.gmra.mxu1 %vm5669_vm5, %v18627_v22 }
 0x930   : > { %7675 = vst [vmem:[#allocation3 + $0x60] sm:$0xff] %v7583_v44  ;;  %6265 = vmatmul.bf16.gmra.mxu2 %v18626_v6  ;;  %11813 = vmatmul.msk.bf16.gmra.mxu3 %vm5669_vm5, %v18627_v22 }
 0x933   : > { %v5950_v10 = vpop.f32.mrf.mxu2  ;;  %v6039_v2 = vpop.f32.mrf.mxu3 }
 0x934   : > { %v6040_v34 = vadd.f32 %v6039_v2, %v5950_v10  ;;  %v5774_v37 = vpop.f32.mrf.mxu0  ;;  %v5863_v29 = vpop.f32.mrf.mxu1 }
 0x935   : > { %v5864_v16 = vadd.f32 %v5863_v29, %v5774_v37 }
 0x936   : > { %v7588_v36 = vpack.c.bf16 %v6040_v34, %v5862_v31 }
 0x938   : > { %7676 = vst [vmem:[#allocation3 + $0xa0] sm:$0xff] %v7588_v36  ;;  %v18632_v36 = vld [vmem:[#allocation13_spill] sm:$0xff] }
 0x93b   : > { %v5952_v47 = vpop.f32.mrf.mxu2  ;;  %v6041_v13 = vpop.f32.mrf.mxu3 }
 0x93c   : > { %v6042_v63 = vadd.f32 %v6041_v13, %v5952_v47  ;;  %v5777_v40 = vpop.f32.mrf.mxu0  ;;  %v5866_v28 = vpop.f32.mrf.mxu1  ;;  %v18633_v47 = vld [vmem:[#allocation14_spill] sm:$0xff] }
 0x93d   : > { %v5867_v19 = vadd.f32 %v5866_v28, %v5777_v40 }
 0x93e   : > { %v7593_v51 = vpack.c.bf16 %v6042_v63, %v5864_v16 }
 0x93f   : > { %6092 = vmatmul.bf16.gmra.mxu0 %v18628_v14  ;;  %11798 = vmatmul.msk.bf16.gmra.mxu1 %vm5669_vm5, %v18629_v8 }
 0x940   : > { %7677 = vst [vmem:[#allocation3 + $0xe0] sm:$0xff] %v7593_v51  ;;  %6270 = vmatmul.bf16.gmra.mxu2 %v18628_v14  ;;  %11814 = vmatmul.msk.bf16.gmra.mxu3 %vm5669_vm5, %v18629_v8 }
 0x943   : > { %v5955_v41 = vpop.f32.mrf.mxu2  ;;  %v6044_v23 = vpop.f32.mrf.mxu3 }
 0x944   : > { %v6045_v18 = vadd.f32 %v6044_v23, %v5955_v41  ;;  %v5779_v48 = vpop.f32.mrf.mxu0  ;;  %v5868_v59 = vpop.f32.mrf.mxu1 }
 0x945   : > { %v5869_v39 = vadd.f32 %v5868_v59, %v5779_v48 }
 0x946   : > { %v7598_v1 = vpack.c.bf16 %v6045_v18, %v5867_v19 }
 0x948   : > { %7678 = vst [vmem:[#allocation3 + $0x28] sm:$0xff] %v7598_v1 }
 0x94b   : > { %v5957_v21 = vpop.f32.mrf.mxu2  ;;  %v6046_v56 = vpop.f32.mrf.mxu3 }
 0x94c   : > { %v6047_v3 = vadd.f32 %v6046_v56, %v5957_v21  ;;  %v5782_v58 = vpop.f32.mrf.mxu0  ;;  %v5871_v43 = vpop.f32.mrf.mxu1  ;;  %v18634_v56 = vld [vmem:[#allocation15_spill] sm:$0xff] }
 0x94d   : > { %v5872_v30 = vadd.f32 %v5871_v43, %v5782_v58 }
 0x94e   : > { %v7603_v5 = vpack.c.bf16 %v6047_v3, %v5869_v39  ;;  %v18635_v39 = vld [vmem:[#allocation16_spill] sm:$0xff] }
 0x94f   : > { %6097 = vmatmul.bf16.gmra.mxu0 %v18630_v55  ;;  %11799 = vmatmul.msk.bf16.gmra.mxu1 %vm5669_vm5, %v18631_v53 }
 0x950   : > { %7679 = vst [vmem:[#allocation3 + $0x68] sm:$0xff] %v7603_v5  ;;  %6275 = vmatmul.bf16.gmra.mxu2 %v18630_v55  ;;  %11815 = vmatmul.msk.bf16.gmra.mxu3 %vm5669_vm5, %v18631_v53 }
 0x953   : > { %v5960_v25 = vpop.f32.mrf.mxu2  ;;  %v6049_v54 = vpop.f32.mrf.mxu3 }
 0x954   : > { %v6050_v27 = vadd.f32 %v6049_v54, %v5960_v25  ;;  %v5784_v7 = vpop.f32.mrf.mxu0  ;;  %v5873_v0 = vpop.f32.mrf.mxu1 }
 0x955   : > { %v5874_v2 = vadd.f32 %v5873_v0, %v5784_v7 }
 0x956   : > { %v7608_v11 = vpack.c.bf16 %v6050_v27, %v5872_v30 }
 0x958   : > { %7680 = vst [vmem:[#allocation3 + $0xa8] sm:$0xff] %v7608_v11 }
 0x95b   : > { %v5962_v44 = vpop.f32.mrf.mxu2  ;;  %v6051_v10 = vpop.f32.mrf.mxu3 }
 0x95c   : > { %v6052_v31 = vadd.f32 %v6051_v10, %v5962_v44  ;;  %v5787_v34 = vpop.f32.mrf.mxu0  ;;  %v5876_v37 = vpop.f32.mrf.mxu1 }
 0x95d   : > { %v5877_v63 = vadd.f32 %v5876_v37, %v5787_v34 }
 0x95e   : > { %v7613_v29 = vpack.c.bf16 %v6052_v31, %v5874_v2 }
 0x95f   : > { %6102 = vmatmul.bf16.gmra.mxu0 %v18632_v36  ;;  %11800 = vmatmul.msk.bf16.gmra.mxu1 %vm5669_vm5, %v18633_v47 }
 0x960   : > { %7681 = vst [vmem:[#allocation3 + $0xe8] sm:$0xff] %v7613_v29  ;;  %6280 = vmatmul.bf16.gmra.mxu2 %v18632_v36  ;;  %11816 = vmatmul.msk.bf16.gmra.mxu3 %vm5669_vm5, %v18633_v47 }
 0x963   : > { %v5965_v13 = vpop.f32.mrf.mxu2  ;;  %v6054_v16 = vpop.f32.mrf.mxu3 }
 0x964   : > { %v6055_v40 = vadd.f32 %v6054_v16, %v5965_v13  ;;  %v5789_v28 = vpop.f32.mrf.mxu0  ;;  %v5878_v51 = vpop.f32.mrf.mxu1 }
 0x965   : > { %v5879_v18 = vadd.f32 %v5878_v51, %v5789_v28 }
 0x966   : > { %v7618_v41 = vpack.c.bf16 %v6055_v40, %v5877_v63 }
 0x968   : > { %7682 = vst [vmem:[#allocation3 + $0x30] sm:$0xff] %v7618_v41 }
 0x96b   : > { %v5967_v23 = vpop.f32.mrf.mxu2  ;;  %v6056_v19 = vpop.f32.mrf.mxu3 }
 0x96c   : > { %v6057_v48 = vadd.f32 %v6056_v19, %v5967_v23  ;;  %v5792_v59 = vpop.f32.mrf.mxu0  ;;  %v5881_v1 = vpop.f32.mrf.mxu1 }
 0x96d   : > { %v5882_v43 = vadd.f32 %v5881_v1, %v5792_v59 }
 0x96e   : > { %v7623_v21 = vpack.c.bf16 %v6057_v48, %v5879_v18 }
 0x96f   : > { %6107 = vmatmul.bf16.gmra.mxu0 %v18634_v56  ;;  %11801 = vmatmul.msk.bf16.gmra.mxu1 %vm5669_vm5, %v18635_v39 }
 0x970   : > { %7683 = vst [vmem:[#allocation3 + $0x70] sm:$0xff] %v7623_v21  ;;  %6285 = vmatmul.bf16.gmra.mxu2 %v18634_v56  ;;  %11817 = vmatmul.msk.bf16.gmra.mxu3 %vm5669_vm5, %v18635_v39 }
 0x973   : > { %v5970_v3 = vpop.f32.mrf.mxu2  ;;  %v6059_v58 = vpop.f32.mrf.mxu3 }
 0x974   : > { %v6060_v5 = vadd.f32 %v6059_v58, %v5970_v3  ;;  %v5794_v25 = vpop.f32.mrf.mxu0  ;;  %v5883_v54 = vpop.f32.mrf.mxu1 }
 0x975   : > { %v5884_v0 = vadd.f32 %v5883_v54, %v5794_v25 }
 0x976   : > { %v7628_v30 = vpack.c.bf16 %v6060_v5, %v5882_v43 }
 0x978   : > { %7684 = vst [vmem:[#allocation3 + $0xb0] sm:$0xff] %v7628_v30 }
 0x97b   : > { %v5972_v27 = vpop.f32.mrf.mxu2  ;;  %v6061_v7 = vpop.f32.mrf.mxu3 }
 0x97c   : > { %v6062_v11 = vadd.f32 %v6061_v7, %v5972_v27  ;;  %v5797_v44 = vpop.f32.mrf.mxu0  ;;  %v5886_v10 = vpop.f32.mrf.mxu1 }
 0x97d   : > { %v5887_v37 = vadd.f32 %v5886_v10, %v5797_v44 }
 0x97e   : > { %v7633_v2 = vpack.c.bf16 %v6062_v11, %v5884_v0 }
 0x97f   : > { %6112 = vmatmul.bf16.gmra.mxu0 %v16206_v50  ;;  %11802 = vmatmul.msk.bf16.gmra.mxu1 %vm5669_vm5, %v16208_v32 }
 0x980   : > { %7685 = vst [vmem:[#allocation3 + $0xf0] sm:$0xff] %v7633_v2  ;;  %6290 = vmatmul.bf16.gmra.mxu2 %v16206_v50  ;;  %11818 = vmatmul.msk.bf16.gmra.mxu3 %vm5669_vm5, %v16208_v32 }
 0x983   : > { %v5975_v31 = vpop.f32.mrf.mxu2  ;;  %v6064_v34 = vpop.f32.mrf.mxu3 }
 0x984   : > { %v6065_v29 = vadd.f32 %v6064_v34, %v5975_v31  ;;  %v5799_v13 = vpop.f32.mrf.mxu0  ;;  %v5888_v16 = vpop.f32.mrf.mxu1 }
 0x985   : > { %v5889_v51 = vadd.f32 %v5888_v16, %v5799_v13  ;;  %v11504_v13 = vld [vmem:[%s18577_s3 + $0x268] sm:$0xf0] }
 0x986   : > { %v7638_v63 = vpack.c.bf16 %v6065_v29, %v5887_v37  ;;  %v12874_v29 = vld [vmem:[%s18577_s3 + $0x244] sm:$0xf] }
 0x987   : > { %v11507_v16 = vor.u32 %v12874_v29, %v11504_v13 }
 0x988   : > { %7686 = vst [vmem:[#allocation3 + $0x38] sm:$0xff] %v7638_v63  ;;  %v12934_v63 = vld [vmem:[%s18577_s3 + $0x424] sm:$0xf] }
 0x989   : > { %6608 = vmatpush.bf16.msra.mxu2 %v11507_v16 }
 0x98b   : > { %v5977_v40 = vpop.f32.mrf.mxu2  ;;  %v6066_v28 = vpop.f32.mrf.mxu3 }
 0x98c   : > { %v6067_v41 = vadd.f32 %v6066_v28, %v5977_v40  ;;  %v5802_v23 = vpop.f32.mrf.mxu0  ;;  %v5891_v19 = vpop.f32.mrf.mxu1  ;;  %v11744_v40 = vld [vmem:[%s18577_s3 + $0x448] sm:$0xf0] }
 0x98d   : > { %v5892_v1 = vadd.f32 %v5891_v19, %v5802_v23  ;;  %v11747_v28 = vor.u32 %v12934_v63, %v11744_v40 }
 0x98e   : > { %v7643_v18 = vpack.c.bf16 %v6067_v41, %v5889_v51 }
 0x98f   : > { %6117 = vmatmul.bf16.gmra.mxu0 %v16246_v49  ;;  %11803 = vmatmul.msk.bf16.gmra.mxu1 %vm5669_vm5, %v16248_v33 }
 0x990   : > { %7687 = vst [vmem:[#allocation3 + $0x78] sm:$0xff] %v7643_v18  ;;  %6295 = vmatmul.bf16.gmra.mxu2 %v16246_v49  ;;  %11819 = vmatmul.msk.bf16.gmra.mxu3 %vm5669_vm5, %v16248_v33 }
 0x991   : > { %6699 = vmatpush.bf16.msra.mxu3 %v11747_v28 }
 0x993   : > { %v5980_v48 = vpop.f32.mrf.mxu2  ;;  %v6069_v59 = vpop.f32.mrf.mxu3 }
 0x994   : > { %v6070_v21 = vadd.f32 %v6069_v59, %v5980_v48  ;;  %v5804_v3 = vpop.f32.mrf.mxu0  ;;  %v5893_v58 = vpop.f32.mrf.mxu1 }
 0x995   : > { %v5894_v54 = vadd.f32 %v5893_v58, %v5804_v3  ;;  %v11742_v58 = vld [vmem:[%s18577_s3 + $0x420] sm:$0xf] }
 0x996   : > { %v7648_v43 = vpack.c.bf16 %v6070_v21, %v5892_v1  ;;  %v11502_v1 = vld [vmem:[%s18577_s3 + $0x240] sm:$0xf]  ;;  %v12879_v21 = vld [vmem:[%s18577_s3 + $0x264] sm:$0xf0] }
 0x997   : > { %v11503_v3 = vor.u32 %v12879_v21, %v11502_v1 }
 0x998   : > { %7688 = vst [vmem:[#allocation3 + $0xb8] sm:$0xff] %v7648_v43  ;;  %v12939_v43 = vld [vmem:[%s18577_s3 + $0x444] sm:$0xf0] }
 0x999   : > { %6430 = vmatpush.bf16.msra.mxu0 %v11503_v3 }
 0x99b   : > { %v5982_v5 = vpop.f32.mrf.mxu2  ;;  %v6071_v25 = vpop.f32.mrf.mxu3 }
 0x99c   : > { %v6072_v30 = vadd.f32 %v6071_v25, %v5982_v5  ;;  %v6083_v27 = vpop.f32.mrf.mxu0  ;;  %v6172_v7 = vpop.f32.mrf.mxu1  ;;  %v11743_v5 = vor.u32 %v12939_v43, %v11742_v58 }
 0x99d   : > { %v6173_v10 = vadd.f32 %v6172_v7, %v6083_v27 }
 0x99e   : > { %v7653_v0 = vpack.c.bf16 %v6072_v30, %v5894_v54  ;;  %6521 = vmatpush.bf16.msra.mxu1 %v11743_v5  ;;  %v11462_v5 = vld [vmem:[%s18577_s3 + $0x1f0] sm:$0xf] }
 0x99f   : > { %6122 = vmatmul.bf16.gmra.mxu0 %v16290_v9  ;;  %11804 = vmatmul.msk.bf16.gmra.mxu1 %vm5669_vm5, %v16292_v62 }
 0x9a0   : > { %7689 = vst [vmem:[#allocation3 + $0xf8] sm:$0xff] %v7653_v0  ;;  %6300 = vmatmul.bf16.gmra.mxu2 %v16290_v9  ;;  %11820 = vmatmul.msk.bf16.gmra.mxu3 %vm5669_vm5, %v16292_v62 }
 0x9a3   : > { %v6261_v11 = vpop.f32.mrf.mxu2  ;;  %v6350_v44 = vpop.f32.mrf.mxu3 }
 0x9a4   : > { %v6351_v2 = vadd.f32 %v6350_v44, %v6261_v11  ;;  %v6085_v31 = vpop.f32.mrf.mxu0  ;;  %v6174_v34 = vpop.f32.mrf.mxu1 }
 0x9a5   : > { %v6175_v23 = vadd.f32 %v6174_v34, %v6085_v31 }
 0x9a6   : > { %v7499_v37 = vpack.c.bf16 %v6351_v2, %v6173_v10 }
 0x9a8   : > { %7690 = vst [vmem:[#allocation3 + $0x100] sm:$0xff] %v7499_v37 }
 0x9ab   : > { %v6263_v51 = vpop.f32.mrf.mxu2  ;;  %v6352_v41 = vpop.f32.mrf.mxu3 }
 0x9ac   : > { %v6353_v19 = vadd.f32 %v6352_v41, %v6263_v51  ;;  %v6088_v18 = vpop.f32.mrf.mxu0  ;;  %v6177_v48 = vpop.f32.mrf.mxu1 }
 0x9ad   : > { %v6178_v30 = vadd.f32 %v6177_v48, %v6088_v18 }
 0x9ae   : > { %v7504_v59 = vpack.c.bf16 %v6353_v19, %v6175_v23  ;;  %v12864_v23 = vld [vmem:[%s18577_s3 + $0x1f4] sm:$0xf]  ;;  %v11464_v19 = vld [vmem:[%s18577_s3 + $0x218] sm:$0xf0] }
 0x9af   : > { %6127 = vmatmul.bf16.gmra.mxu0 %v16318_v57  ;;  %11805 = vmatmul.msk.bf16.gmra.mxu1 %vm5669_vm5, %v16320_v60  ;;  %v11467_v18 = vor.u32 %v12864_v23, %v11464_v19 }
 0x9b0   : > { %7691 = vst [vmem:[#allocation3 + $0x140] sm:$0xff] %v7504_v59  ;;  %6305 = vmatmul.bf16.gmra.mxu2 %v16318_v57  ;;  %11821 = vmatmul.msk.bf16.gmra.mxu3 %vm5669_vm5, %v16320_v60 }
 0x9b1   : > { %6609 = vmatpush.bf16.msra.mxu2 %v11467_v18 }
 0x9b3   : > { %v6266_v25 = vpop.f32.mrf.mxu2  ;;  %v6355_v54 = vpop.f32.mrf.mxu3 }
 0x9b4   : > { %v6356_v27 = vadd.f32 %v6355_v54, %v6266_v25  ;;  %v6090_v7 = vpop.f32.mrf.mxu0  ;;  %v6179_v0 = vpop.f32.mrf.mxu1  ;;  %v12869_v25 = vld [vmem:[%s18577_s3 + $0x214] sm:$0xf0] }
 0x9b5   : > { %v6180_v2 = vadd.f32 %v6179_v0, %v6090_v7  ;;  %v11463_v54 = vor.u32 %v12869_v25, %v11462_v5  ;;  %v11422_v5 = vld [vmem:[%s18577_s3 + $0x1a0] sm:$0xf] }
 0x9b6   : > { %v7509_v11 = vpack.c.bf16 %v6356_v27, %v6178_v30 }
 0x9b7   : > { %6431 = vmatpush.bf16.msra.mxu0 %v11463_v54  ;;  %v12859_v54 = vld [vmem:[%s18577_s3 + $0x1c4] sm:$0xf0] }
 0x9b8   : > { %7692 = vst [vmem:[#allocation3 + $0x180] sm:$0xff] %v7509_v11 }
 0x9bb   : > { %v6268_v44 = vpop.f32.mrf.mxu2  ;;  %v6357_v10 = vpop.f32.mrf.mxu3 }
 0x9bc   : > { %v6358_v31 = vadd.f32 %v6357_v10, %v6268_v44  ;;  %v6093_v34 = vpop.f32.mrf.mxu0  ;;  %v6182_v37 = vpop.f32.mrf.mxu1 }
 0x9bd   : > { %v6183_v63 = vadd.f32 %v6182_v37, %v6093_v34 }
 0x9be   : > { %v7514_v29 = vpack.c.bf16 %v6358_v31, %v6180_v2  ;;  %v12924_v2 = vld [vmem:[%s18577_s3 + $0x3d4] sm:$0xf]  ;;  %v11704_v31 = vld [vmem:[%s18577_s3 + $0x3f8] sm:$0xf0] }
 0x9bf   : > { %6132 = vmatmul.bf16.gmra.mxu0 %v16340_v61  ;;  %11806 = vmatmul.msk.bf16.gmra.mxu1 %vm5669_vm5, %v16342_v12  ;;  %v11707_v34 = vor.u32 %v12924_v2, %v11704_v31  ;;  %v11384_v2 = vld [vmem:[%s18577_s3 + $0x178] sm:$0xf0] }
 0x9c0   : > { %7693 = vst [vmem:[#allocation3 + $0x1c0] sm:$0xff] %v7514_v29  ;;  %6310 = vmatmul.bf16.gmra.mxu2 %v16340_v61  ;;  %11822 = vmatmul.msk.bf16.gmra.mxu3 %vm5669_vm5, %v16342_v12 }
 0x9c1   : > { %6700 = vmatpush.bf16.msra.mxu3 %v11707_v34 }
 0x9c3   : > { %v6271_v13 = vpop.f32.mrf.mxu2  ;;  %v6360_v16 = vpop.f32.mrf.mxu3 }
 0x9c4   : > { %v6361_v40 = vadd.f32 %v6360_v16, %v6271_v13  ;;  %v6095_v28 = vpop.f32.mrf.mxu0  ;;  %v6184_v51 = vpop.f32.mrf.mxu1 }
 0x9c5   : > { %v6185_v1 = vadd.f32 %v6184_v51, %v6095_v28  ;;  %v11702_v51 = vld [vmem:[%s18577_s3 + $0x3d0] sm:$0xf] }
 0x9c6   : > { %v7519_v41 = vpack.c.bf16 %v6361_v40, %v6183_v63 }
 0x9c8   : > { %7694 = vst [vmem:[#allocation3 + $0x108] sm:$0xff] %v7519_v41  ;;  %v12929_v41 = vld [vmem:[%s18577_s3 + $0x3f4] sm:$0xf0] }
 0x9c9   : > { %v11703_v23 = vor.u32 %v12929_v41, %v11702_v51  ;;  %v12919_v41 = vld [vmem:[%s18577_s3 + $0x3a4] sm:$0xf0] }
 0x9cb   : > { %v6273_v48 = vpop.f32.mrf.mxu2  ;;  %v6362_v59 = vpop.f32.mrf.mxu3  ;;  %6522 = vmatpush.bf16.msra.mxu1 %v11703_v23  ;;  %v12834_v23 = vld [vmem:[%s18577_s3 + $0x104] sm:$0xf] }
 0x9cc   : > { %v6363_v21 = vadd.f32 %v6362_v59, %v6273_v48  ;;  %v6098_v3 = vpop.f32.mrf.mxu0  ;;  %v6187_v58 = vpop.f32.mrf.mxu1 }
 0x9cd   : > { %v6188_v7 = vadd.f32 %v6187_v58, %v6098_v3  ;;  %v12854_v58 = vld [vmem:[%s18577_s3 + $0x1a4] sm:$0xf] }
 0x9ce   : > { %v7524_v43 = vpack.c.bf16 %v6363_v21, %v6185_v1 }
 0x9cf   : > { %6137 = vmatmul.bf16.gmra.mxu0 %v16356_v45  ;;  %11807 = vmatmul.msk.bf16.gmra.mxu1 %vm5669_vm5, %v16358_v46 }
 0x9d0   : > { %7695 = vst [vmem:[#allocation3 + $0x148] sm:$0xff] %v7524_v43  ;;  %6315 = vmatmul.bf16.gmra.mxu2 %v16356_v45  ;;  %11823 = vmatmul.msk.bf16.gmra.mxu3 %vm5669_vm5, %v16358_v46  ;;  %v11424_v43 = vld [vmem:[%s18577_s3 + $0x1c8] sm:$0xf0] }
 0x9d1   : > { %v11427_v25 = vor.u32 %v12854_v58, %v11424_v43  ;;  %v12829_v58 = vld [vmem:[%s18577_s3 + $0xd4] sm:$0xf0]  ;;  %v11622_v43 = vld [vmem:[%s18577_s3 + $0x330] sm:$0xf] }
 0x9d3   : > { %v6276_v30 = vpop.f32.mrf.mxu2  ;;  %v6365_v27 = vpop.f32.mrf.mxu3  ;;  %6610 = vmatpush.bf16.msra.mxu2 %v11427_v25 }
 0x9d4   : > { %v6366_v0 = vadd.f32 %v6365_v27, %v6276_v30  ;;  %v6100_v11 = vpop.f32.mrf.mxu0  ;;  %v6189_v44 = vpop.f32.mrf.mxu1  ;;  %v11423_v30 = vor.u32 %v12859_v54, %v11422_v5  ;;  %v11382_v27 = vld [vmem:[%s18577_s3 + $0x150] sm:$0xf] }
 0x9d5   : > { %v6190_v13 = vadd.f32 %v6189_v44, %v6100_v11 }
 0x9d6   : > { %v7529_v10 = vpack.c.bf16 %v6366_v0, %v6188_v7  ;;  %6432 = vmatpush.bf16.msra.mxu0 %v11423_v30  ;;  %v12849_v7 = vld [vmem:[%s18577_s3 + $0x174] sm:$0xf0]  ;;  %v12844_v0 = vld [vmem:[%s18577_s3 + $0x154] sm:$0xf] }
 0x9d7   : > { %v12909_v30 = vld [vmem:[%s18577_s3 + $0x354] sm:$0xf0] }
 0x9d8   : > { %7696 = vst [vmem:[#allocation3 + $0x188] sm:$0xff] %v7529_v10  ;;  %v11383_v10 = vor.u32 %v12849_v7, %v11382_v27  ;;  %v12824_v27 = vld [vmem:[%s18577_s3 + $0xb4] sm:$0xf]  ;;  %v11304_v7 = vld [vmem:[%s18577_s3 + $0xd8] sm:$0xf0] }
 0x9da   : > { %6433 = vmatpush.bf16.msra.mxu0 %v11383_v10 }
 0x9db   : > { %v6278_v37 = vpop.f32.mrf.mxu2  ;;  %v6367_v29 = vpop.f32.mrf.mxu3 }
 0x9dc   : > { %v6368_v16 = vadd.f32 %v6367_v29, %v6278_v37  ;;  %v6103_v63 = vpop.f32.mrf.mxu0  ;;  %v6192_v40 = vpop.f32.mrf.mxu1 }
 0x9dd   : > { %v6193_v48 = vadd.f32 %v6192_v40, %v6103_v63  ;;  %v11342_v63 = vld [vmem:[%s18577_s3 + $0x100] sm:$0xf]  ;;  %v12839_v40 = vld [vmem:[%s18577_s3 + $0x124] sm:$0xf0] }
 0x9de   : > { %v7534_v28 = vpack.c.bf16 %v6368_v16, %v6190_v13  ;;  %v11387_v13 = vor.u32 %v12844_v0, %v11384_v2  ;;  %v11343_v51 = vor.u32 %v12839_v40, %v11342_v63  ;;  %v11623_v2 = vor.u32 %v12909_v30, %v11622_v43  ;;  %v11582_v40 = vld [vmem:[%s18577_s3 + $0x2e0] sm:$0xf]  ;;  %v12804_v30 = vld [vmem:[%s18577_s3 + $0x14] sm:$0xf] }
 0x9df   : > { %6142 = vmatmul.bf16.gmra.mxu0 %v16378_v35  ;;  %11808 = vmatmul.msk.bf16.gmra.mxu1 %vm5669_vm5, %v16380_v52 }
 0x9e0   : > { %7697 = vst [vmem:[#allocation3 + $0x1c8] sm:$0xff] %v7534_v28  ;;  %6320 = vmatmul.bf16.gmra.mxu2 %v16378_v35  ;;  %11824 = vmatmul.msk.bf16.gmra.mxu3 %vm5669_vm5, %v16380_v52  ;;  %v11662_v28 = vld [vmem:[%s18577_s3 + $0x380] sm:$0xf] }
 0x9e1   : > { %6611 = vmatpush.bf16.msra.mxu2 %v11387_v13  ;;  %6434 = vmatpush.bf16.msra.mxu0 %v11343_v51  ;;  %v11624_v13 = vld [vmem:[%s18577_s3 + $0x358] sm:$0xf0]  ;;  %v12899_v51 = vld [vmem:[%s18577_s3 + $0x304] sm:$0xf0] }
 0x9e3   : > { %v6281_v19 = vpop.f32.mrf.mxu2  ;;  %v6370_v18 = vpop.f32.mrf.mxu3 }
 0x9e4   : > { %v6371_v59 = vadd.f32 %v6370_v18, %v6281_v19  ;;  %v6105_v1 = vpop.f32.mrf.mxu0  ;;  %v6194_v21 = vpop.f32.mrf.mxu1  ;;  %v11344_v19 = vld [vmem:[%s18577_s3 + $0x128] sm:$0xf0]  ;;  %v11663_v18 = vor.u32 %v12919_v41, %v11662_v28  ;;  %v12814_v41 = vld [vmem:[%s18577_s3 + $0x64] sm:$0xf] }
 0x9e5   : > { %v6195_v31 = vadd.f32 %v6194_v21, %v6105_v1  ;;  %v11664_v1 = vld [vmem:[%s18577_s3 + $0x3a8] sm:$0xf0] }
 0x9e6   : > { %v7539_v3 = vpack.c.bf16 %v6371_v59, %v6193_v48  ;;  %v11347_v48 = vor.u32 %v12834_v23, %v11344_v19  ;;  %v12914_v59 = vld [vmem:[%s18577_s3 + $0x384] sm:$0xf]  ;;  %6523 = vmatpush.bf16.msra.mxu1 %v11663_v18  ;;  %v11264_v23 = vld [vmem:[%s18577_s3 + $0x88] sm:$0xf0]  ;;  %v11583_v19 = vor.u32 %v12899_v51, %v11582_v40 }
 0x9e7   : > { %v11667_v21 = vor.u32 %v12914_v59, %v11664_v1  ;;  %v11267_v18 = vor.u32 %v12814_v41, %v11264_v23  ;;  %v11584_v59 = vld [vmem:[%s18577_s3 + $0x308] sm:$0xf0] }
 0x9e8   : > { %7698 = vst [vmem:[#allocation3 + $0x110] sm:$0xff] %v7539_v3  ;;  %v11302_v3 = vld [vmem:[%s18577_s3 + $0xb0] sm:$0xf]  ;;  %6612 = vmatpush.bf16.msra.mxu2 %v11347_v48  ;;  %v12894_v48 = vld [vmem:[%s18577_s3 + $0x2e4] sm:$0xf] }
 0x9e9   : > { %6701 = vmatpush.bf16.msra.mxu3 %v11667_v21  ;;  %v11303_v54 = vor.u32 %v12829_v58, %v11302_v3  ;;  %v11587_v1 = vor.u32 %v12894_v48, %v11584_v59  ;;  %v11222_v21 = vld [vmem:[%s18577_s3 + $0x10] sm:$0xf]  ;;  %v12809_v3 = vld [vmem:[%s18577_s3 + $0x34] sm:$0xf0] }
 0x9ea   : > { %6524 = vmatpush.bf16.msra.mxu1 %v11623_v2  ;;  %v11542_v58 = vld [vmem:[%s18577_s3 + $0x290] sm:$0xf] }
 0x9eb   : > { %v6283_v11 = vpop.f32.mrf.mxu2  ;;  %v6372_v44 = vpop.f32.mrf.mxu3  ;;  %6435 = vmatpush.bf16.msra.mxu0 %v11303_v54  ;;  %v12889_v54 = vld [vmem:[%s18577_s3 + $0x2b4] sm:$0xf0] }
 0x9ec   : > { %v6373_v34 = vadd.f32 %v6372_v44, %v6283_v11  ;;  %v6108_v37 = vpop.f32.mrf.mxu0  ;;  %v6197_v29 = vpop.f32.mrf.mxu1 }
 0x9ed   : > { %v6198_v0 = vadd.f32 %v6197_v29, %v6108_v37  ;;  %v11262_v37 = vld [vmem:[%s18577_s3 + $0x60] sm:$0xf]  ;;  %v12819_v29 = vld [vmem:[%s18577_s3 + $0x84] sm:$0xf0] }
 0x9ee   : > { %v7544_v16 = vpack.c.bf16 %v6373_v34, %v6195_v31  ;;  %v11307_v31 = vor.u32 %v12824_v27, %v11304_v7  ;;  %v12904_v34 = vld [vmem:[%s18577_s3 + $0x334] sm:$0xf]  ;;  %v11263_v28 = vor.u32 %v12819_v29, %v11262_v37  ;;  %6525 = vmatpush.bf16.msra.mxu1 %v11583_v19  ;;  %v11224_v27 = vld [vmem:[%s18577_s3 + $0x38] sm:$0xf0] }
 0x9ef   : > { %6147 = vmatmul.bf16.gmra.mxu0 %v16418_v42  ;;  %11809 = vmatmul.msk.bf16.gmra.mxu1 %vm5669_vm5, %v16420_v38 }
 0x9f0   : > { %7699 = vst [vmem:[#allocation3 + $0x150] sm:$0xff] %v7544_v16  ;;  %6325 = vmatmul.bf16.gmra.mxu2 %v16418_v42  ;;  %11825 = vmatmul.msk.bf16.gmra.mxu3 %vm5669_vm5, %v16420_v38  ;;  %v11627_v16 = vor.u32 %v12904_v34, %v11624_v13  ;;  %v12884_v34 = vld [vmem:[%s18577_s3 + $0x294] sm:$0xf]  ;;  %v11544_v13 = vld [vmem:[%s18577_s3 + $0x2b8] sm:$0xf0] }
 0x9f1   : > { %6613 = vmatpush.bf16.msra.mxu2 %v11307_v31  ;;  %6436 = vmatpush.bf16.msra.mxu0 %v11263_v28  ;;  %v11543_v31 = vor.u32 %v12889_v54, %v11542_v58 }
 0x9f2   : > { %6702 = vmatpush.bf16.msra.mxu3 %v11627_v16  ;;  %v11227_v16 = vor.u32 %v12804_v30, %v11224_v27 }
 0x9f3   : > { %v6286_v5 = vpop.f32.mrf.mxu2  ;;  %v6375_v25 = vpop.f32.mrf.mxu3  ;;  %6526 = vmatpush.bf16.msra.mxu1 %v11543_v31 }
 0x9f4   : > { %v6376_v11 = vadd.f32 %v6375_v25, %v6286_v5  ;;  %v6110_v44 = vpop.f32.mrf.mxu0  ;;  %v6199_v10 = vpop.f32.mrf.mxu1  ;;  %v11223_v25 = vor.u32 %v12809_v3, %v11222_v21 }
 0x9f5   : > { %6614 = vmatpush.bf16.msra.mxu2 %v11267_v18  ;;  %v6200_v7 = vadd.f32 %v6199_v10, %v6110_v44 }
 0x9f6   : > { %v7549_v63 = vpack.c.bf16 %v6376_v11, %v6198_v0  ;;  %6703 = vmatpush.bf16.msra.mxu3 %v11587_v1  ;;  %6437 = vmatpush.bf16.msra.mxu0 %v11223_v25 }
 0x9f8   : > { %7700 = vst [vmem:[#allocation3 + $0x190] sm:$0xff] %v7549_v63  ;;  %v11547_v63 = vor.u32 %v12884_v34, %v11544_v13 }
 0x9f9   : > { %6615 = vmatpush.bf16.msra.mxu2 %v11227_v16 }
 0x9fa   : > { %6704 = vmatpush.bf16.msra.mxu3 %v11547_v63 }
 0x9fb   : > { %v6288_v43 = vpop.f32.mrf.mxu2  ;;  %v6377_v5 = vpop.f32.mrf.mxu3 }
 0x9fc   : > { %v6378_v0 = vadd.f32 %v6377_v5, %v6288_v43  ;;  %v6113_v11 = vpop.f32.mrf.mxu0  ;;  %v6202_v2 = vpop.f32.mrf.mxu1 }
 0x9fd   : > { %v6203_v29 = vadd.f32 %v6202_v2, %v6113_v11 }
 0x9fe   : > { %v7554_v37 = vpack.c.bf16 %v6378_v0, %v6200_v7 }
 0x9ff   : > { %6152 = vmatmul.bf16.gmra.mxu0 %v16524_v24  ;;  %11810 = vmatmul.msk.bf16.gmra.mxu1 %vm5669_vm5, %v16526_v4 }
 0xa00   : > { %7701 = vst [vmem:[#allocation3 + $0x1d0] sm:$0xff] %v7554_v37  ;;  %6330 = vmatmul.bf16.gmra.mxu2 %v16524_v24  ;;  %11826 = vmatmul.msk.bf16.gmra.mxu3 %vm5669_vm5, %v16526_v4 }
 0xa03   : > { %v6291_v44 = vpop.f32.mrf.mxu2  ;;  %v6380_v10 = vpop.f32.mrf.mxu3 }
 0xa04   : > { %v6381_v40 = vadd.f32 %v6380_v10, %v6291_v44  ;;  %v6115_v28 = vpop.f32.mrf.mxu0  ;;  %v6204_v51 = vpop.f32.mrf.mxu1 }
 0xa05   : > { %v6205_v18 = vadd.f32 %v6204_v51, %v6115_v28 }
 0xa06   : > { %v7559_v41 = vpack.c.bf16 %v6381_v40, %v6203_v29 }
 0xa08   : > { %7702 = vst [vmem:[#allocation3 + $0x118] sm:$0xff] %v7559_v41 }
 0xa0b   : > { %v6293_v23 = vpop.f32.mrf.mxu2  ;;  %v6382_v19 = vpop.f32.mrf.mxu3 }
 0xa0c   : > { %v6383_v48 = vadd.f32 %v6382_v19, %v6293_v23  ;;  %v6118_v59 = vpop.f32.mrf.mxu0  ;;  %v6207_v1 = vpop.f32.mrf.mxu1 }
 0xa0d   : > { %v6208_v43 = vadd.f32 %v6207_v1, %v6118_v59 }
 0xa0e   : > { %v7564_v21 = vpack.c.bf16 %v6383_v48, %v6205_v18 }
 0xa0f   : > { %6157 = vmatmul.bf16.gmra.mxu0 %v16534_v26  ;;  %11811 = vmatmul.msk.bf16.gmra.mxu1 %vm5669_vm5, %v16536_v17 }
 0xa10   : > { %7703 = vst [vmem:[#allocation3 + $0x158] sm:$0xff] %v7564_v21  ;;  %6335 = vmatmul.bf16.gmra.mxu2 %v16534_v26  ;;  %11827 = vmatmul.msk.bf16.gmra.mxu3 %vm5669_vm5, %v16536_v17 }
 0xa13   : > { %v6296_v3 = vpop.f32.mrf.mxu2  ;;  %v6385_v58 = vpop.f32.mrf.mxu3 }
 0xa14   : > { %v6386_v5 = vadd.f32 %v6385_v58, %v6296_v3  ;;  %v6120_v25 = vpop.f32.mrf.mxu0  ;;  %v6209_v54 = vpop.f32.mrf.mxu1 }
 0xa15   : > { %v6210_v0 = vadd.f32 %v6209_v54, %v6120_v25 }
 0xa16   : > { %v7569_v30 = vpack.c.bf16 %v6386_v5, %v6208_v43 }
 0xa18   : > { %7704 = vst [vmem:[#allocation3 + $0x198] sm:$0xff] %v7569_v30 }
 0xa1b   : > { %v6298_v27 = vpop.f32.mrf.mxu2  ;;  %v6387_v7 = vpop.f32.mrf.mxu3 }
 0xa1c   : > { %v6388_v11 = vadd.f32 %v6387_v7, %v6298_v27  ;;  %v6123_v2 = vpop.f32.mrf.mxu0  ;;  %v6212_v31 = vpop.f32.mrf.mxu1 }
 0xa1d   : > { %v6213_v63 = vadd.f32 %v6212_v31, %v6123_v2 }
 0xa1e   : > { %v7574_v34 = vpack.c.bf16 %v6388_v11, %v6210_v0 }
 0xa1f   : > { %6438 = vmatmul.bf16.vlgmr.msra.gmra.mxu0 %v18624_v20  ;;  %11828 = vmatmul.msk.bf16.vlgmr.msra.gmra.mxu1 %vm5669_vm5, %v18625_v15 }
 0xa20   : > { %7705 = vst [vmem:[#allocation3 + $0x1d8] sm:$0xff] %v7574_v34  ;;  %6616 = vmatmul.bf16.vlgmr.msra.gmra.mxu2 %v18624_v20  ;;  %11844 = vmatmul.msk.bf16.vlgmr.msra.gmra.mxu3 %vm5669_vm5, %v18625_v15 }
 0xa23   : > { %v6301_v13 = vpop.f32.mrf.mxu2  ;;  %v6390_v16 = vpop.f32.mrf.mxu3 }
 0xa24   : > { %v6391_v37 = vadd.f32 %v6390_v16, %v6301_v13  ;;  %v6125_v44 = vpop.f32.mrf.mxu0  ;;  %v6214_v10 = vpop.f32.mrf.mxu1 }
 0xa25   : > { %v6215_v51 = vadd.f32 %v6214_v10, %v6125_v44 }
 0xa26   : > { %v7579_v29 = vpack.c.bf16 %v6391_v37, %v6213_v63 }
 0xa28   : > { %7706 = vst [vmem:[#allocation3 + $0x120] sm:$0xff] %v7579_v29 }
 0xa2b   : > { %v6303_v40 = vpop.f32.mrf.mxu2  ;;  %v6392_v28 = vpop.f32.mrf.mxu3 }
 0xa2c   : > { %v6393_v41 = vadd.f32 %v6392_v28, %v6303_v40  ;;  %v6128_v23 = vpop.f32.mrf.mxu0  ;;  %v6217_v19 = vpop.f32.mrf.mxu1 }
 0xa2d   : > { %v6218_v1 = vadd.f32 %v6217_v19, %v6128_v23 }
 0xa2e   : > { %v7584_v18 = vpack.c.bf16 %v6393_v41, %v6215_v51 }
 0xa2f   : > { %6443 = vmatmul.bf16.gmra.mxu0 %v18626_v6  ;;  %11829 = vmatmul.msk.bf16.gmra.mxu1 %vm5669_vm5, %v18627_v22 }
 0xa30   : > { %7707 = vst [vmem:[#allocation3 + $0x160] sm:$0xff] %v7584_v18  ;;  %6621 = vmatmul.bf16.gmra.mxu2 %v18626_v6  ;;  %11845 = vmatmul.msk.bf16.gmra.mxu3 %vm5669_vm5, %v18627_v22 }
 0xa33   : > { %v6306_v48 = vpop.f32.mrf.mxu2  ;;  %v6395_v59 = vpop.f32.mrf.mxu3 }
 0xa34   : > { %v6396_v21 = vadd.f32 %v6395_v59, %v6306_v48  ;;  %v6130_v3 = vpop.f32.mrf.mxu0  ;;  %v6219_v58 = vpop.f32.mrf.mxu1 }
 0xa35   : > { %v6220_v54 = vadd.f32 %v6219_v58, %v6130_v3 }
 0xa36   : > { %v7589_v43 = vpack.c.bf16 %v6396_v21, %v6218_v1 }
 0xa38   : > { %7708 = vst [vmem:[#allocation3 + $0x1a0] sm:$0xff] %v7589_v43 }
 0xa3b   : > { %v6308_v5 = vpop.f32.mrf.mxu2  ;;  %v6397_v25 = vpop.f32.mrf.mxu3 }
 0xa3c   : > { %v6398_v30 = vadd.f32 %v6397_v25, %v6308_v5  ;;  %v6133_v27 = vpop.f32.mrf.mxu0  ;;  %v6222_v7 = vpop.f32.mrf.mxu1 }
 0xa3d   : > { %v6223_v31 = vadd.f32 %v6222_v7, %v6133_v27 }
 0xa3e   : > { %v7594_v0 = vpack.c.bf16 %v6398_v30, %v6220_v54 }
 0xa3f   : > { %6448 = vmatmul.bf16.gmra.mxu0 %v18628_v14  ;;  %11830 = vmatmul.msk.bf16.gmra.mxu1 %vm5669_vm5, %v18629_v8 }
 0xa40   : > { %7709 = vst [vmem:[#allocation3 + $0x1e0] sm:$0xff] %v7594_v0  ;;  %6626 = vmatmul.bf16.gmra.mxu2 %v18628_v14  ;;  %11846 = vmatmul.msk.bf16.gmra.mxu3 %vm5669_vm5, %v18629_v8 }
 0xa43   : > { %v6311_v11 = vpop.f32.mrf.mxu2  ;;  %v6400_v2 = vpop.f32.mrf.mxu3 }
 0xa44   : > { %v6401_v34 = vadd.f32 %v6400_v2, %v6311_v11  ;;  %v6135_v13 = vpop.f32.mrf.mxu0  ;;  %v6224_v16 = vpop.f32.mrf.mxu1 }
 0xa45   : > { %v6225_v10 = vadd.f32 %v6224_v16, %v6135_v13 }
 0xa46   : > { %v7599_v63 = vpack.c.bf16 %v6401_v34, %v6223_v31 }
 0xa48   : > { %7710 = vst [vmem:[#allocation3 + $0x128] sm:$0xff] %v7599_v63 }
 0xa4b   : > { %v6313_v37 = vpop.f32.mrf.mxu2  ;;  %v6402_v44 = vpop.f32.mrf.mxu3 }
 0xa4c   : > { %v6403_v29 = vadd.f32 %v6402_v44, %v6313_v37  ;;  %v6138_v40 = vpop.f32.mrf.mxu0  ;;  %v6227_v28 = vpop.f32.mrf.mxu1 }
 0xa4d   : > { %v6228_v19 = vadd.f32 %v6227_v28, %v6138_v40 }
 0xa4e   : > { %v7604_v51 = vpack.c.bf16 %v6403_v29, %v6225_v10 }
 0xa4f   : > { %6453 = vmatmul.bf16.gmra.mxu0 %v18630_v55  ;;  %11831 = vmatmul.msk.bf16.gmra.mxu1 %vm5669_vm5, %v18631_v53 }
 0xa50   : > { %7711 = vst [vmem:[#allocation3 + $0x168] sm:$0xff] %v7604_v51  ;;  %6631 = vmatmul.bf16.gmra.mxu2 %v18630_v55  ;;  %11847 = vmatmul.msk.bf16.gmra.mxu3 %vm5669_vm5, %v18631_v53 }
 0xa53   : > { %v6316_v41 = vpop.f32.mrf.mxu2  ;;  %v6405_v23 = vpop.f32.mrf.mxu3 }
 0xa54   : > { %v6406_v18 = vadd.f32 %v6405_v23, %v6316_v41  ;;  %v6140_v48 = vpop.f32.mrf.mxu0  ;;  %v6229_v59 = vpop.f32.mrf.mxu1 }
 0xa55   : > { %v6230_v58 = vadd.f32 %v6229_v59, %v6140_v48 }
 0xa56   : > { %v7609_v1 = vpack.c.bf16 %v6406_v18, %v6228_v19 }
 0xa58   : > { %7712 = vst [vmem:[#allocation3 + $0x1a8] sm:$0xff] %v7609_v1 }
 0xa5b   : > { %v6318_v21 = vpop.f32.mrf.mxu2  ;;  %v6407_v3 = vpop.f32.mrf.mxu3 }
 0xa5c   : > { %v6408_v43 = vadd.f32 %v6407_v3, %v6318_v21  ;;  %v6143_v5 = vpop.f32.mrf.mxu0  ;;  %v6232_v25 = vpop.f32.mrf.mxu1 }
 0xa5d   : > { %v6233_v7 = vadd.f32 %v6232_v25, %v6143_v5 }
 0xa5e   : > { %v7614_v54 = vpack.c.bf16 %v6408_v43, %v6230_v58 }
 0xa5f   : > { %6458 = vmatmul.bf16.gmra.mxu0 %v18632_v36  ;;  %11832 = vmatmul.msk.bf16.gmra.mxu1 %vm5669_vm5, %v18633_v47 }
 0xa60   : > { %7713 = vst [vmem:[#allocation3 + $0x1e8] sm:$0xff] %v7614_v54  ;;  %6636 = vmatmul.bf16.gmra.mxu2 %v18632_v36  ;;  %11848 = vmatmul.msk.bf16.gmra.mxu3 %vm5669_vm5, %v18633_v47 }
 0xa63   : > { %v6321_v30 = vpop.f32.mrf.mxu2  ;;  %v6410_v27 = vpop.f32.mrf.mxu3 }
 0xa64   : > { %v6411_v0 = vadd.f32 %v6410_v27, %v6321_v30  ;;  %v6145_v11 = vpop.f32.mrf.mxu0  ;;  %v6234_v2 = vpop.f32.mrf.mxu1 }
 0xa65   : > { %v6235_v16 = vadd.f32 %v6234_v2, %v6145_v11 }
 0xa66   : > { %v7619_v31 = vpack.c.bf16 %v6411_v0, %v6233_v7 }
 0xa68   : > { %7714 = vst [vmem:[#allocation3 + $0x130] sm:$0xff] %v7619_v31 }
 0xa6b   : > { %v6323_v34 = vpop.f32.mrf.mxu2  ;;  %v6412_v13 = vpop.f32.mrf.mxu3 }
 0xa6c   : > { %v6413_v63 = vadd.f32 %v6412_v13, %v6323_v34  ;;  %v6148_v37 = vpop.f32.mrf.mxu0  ;;  %v6237_v44 = vpop.f32.mrf.mxu1 }
 0xa6d   : > { %v6238_v28 = vadd.f32 %v6237_v44, %v6148_v37 }
 0xa6e   : > { %v7624_v10 = vpack.c.bf16 %v6413_v63, %v6235_v16 }
 0xa6f   : > { %6463 = vmatmul.bf16.gmra.mxu0 %v18634_v56  ;;  %11833 = vmatmul.msk.bf16.gmra.mxu1 %vm5669_vm5, %v18635_v39 }
 0xa70   : > { %7715 = vst [vmem:[#allocation3 + $0x170] sm:$0xff] %v7624_v10  ;;  %6641 = vmatmul.bf16.gmra.mxu2 %v18634_v56  ;;  %11849 = vmatmul.msk.bf16.gmra.mxu3 %vm5669_vm5, %v18635_v39 }
 0xa73   : > { %v6326_v29 = vpop.f32.mrf.mxu2  ;;  %v6415_v40 = vpop.f32.mrf.mxu3 }
 0xa74   : > { %v6416_v51 = vadd.f32 %v6415_v40, %v6326_v29  ;;  %v6150_v41 = vpop.f32.mrf.mxu0  ;;  %v6239_v23 = vpop.f32.mrf.mxu1 }
 0xa75   : > { %v6240_v59 = vadd.f32 %v6239_v23, %v6150_v41 }
 0xa76   : > { %v7629_v19 = vpack.c.bf16 %v6416_v51, %v6238_v28 }
 0xa78   : > { %7716 = vst [vmem:[#allocation3 + $0x1b0] sm:$0xff] %v7629_v19 }
 0xa7b   : > { %v6328_v18 = vpop.f32.mrf.mxu2  ;;  %v6417_v48 = vpop.f32.mrf.mxu3 }
 0xa7c   : > { %v6418_v1 = vadd.f32 %v6417_v48, %v6328_v18  ;;  %v6153_v21 = vpop.f32.mrf.mxu0  ;;  %v6242_v3 = vpop.f32.mrf.mxu1 }
 0xa7d   : > { %v6243_v25 = vadd.f32 %v6242_v3, %v6153_v21 }
 0xa7e   : > { %v7634_v58 = vpack.c.bf16 %v6418_v1, %v6240_v59 }
 0xa7f   : > { %6468 = vmatmul.bf16.gmra.mxu0 %v16206_v50  ;;  %11834 = vmatmul.msk.bf16.gmra.mxu1 %vm5669_vm5, %v16208_v32 }
 0xa80   : > { %7717 = vst [vmem:[#allocation3 + $0x1f0] sm:$0xff] %v7634_v58  ;;  %6646 = vmatmul.bf16.gmra.mxu2 %v16206_v50  ;;  %11850 = vmatmul.msk.bf16.gmra.mxu3 %vm5669_vm5, %v16208_v32 }
 0xa83   : > { %v6331_v43 = vpop.f32.mrf.mxu2  ;;  %v6420_v5 = vpop.f32.mrf.mxu3 }
 0xa84   : > { %v6421_v54 = vadd.f32 %v6420_v5, %v6331_v43  ;;  %v6155_v30 = vpop.f32.mrf.mxu0  ;;  %v6244_v27 = vpop.f32.mrf.mxu1 }
 0xa85   : > { %v6245_v2 = vadd.f32 %v6244_v27, %v6155_v30  ;;  %v11512_v30 = vld [vmem:[%s18577_s3 + $0x270] sm:$0xf0] }
 0xa86   : > { %v7639_v7 = vpack.c.bf16 %v6421_v54, %v6243_v25  ;;  %v12875_v54 = vld [vmem:[%s18577_s3 + $0x24c] sm:$0xf] }
 0xa87   : > { %v11515_v27 = vor.u32 %v12875_v54, %v11512_v30 }
 0xa88   : > { %7718 = vst [vmem:[#allocation3 + $0x138] sm:$0xff] %v7639_v7  ;;  %v12935_v7 = vld [vmem:[%s18577_s3 + $0x42c] sm:$0xf] }
 0xa89   : > { %6964 = vmatpush.bf16.msrb.mxu2 %v11515_v27 }
 0xa8b   : > { %v6333_v0 = vpop.f32.mrf.mxu2  ;;  %v6422_v11 = vpop.f32.mrf.mxu3 }
 0xa8c   : > { %v6423_v31 = vadd.f32 %v6422_v11, %v6333_v0  ;;  %v6158_v34 = vpop.f32.mrf.mxu0  ;;  %v6247_v13 = vpop.f32.mrf.mxu1  ;;  %v11752_v0 = vld [vmem:[%s18577_s3 + $0x450] sm:$0xf0] }
 0xa8d   : > { %v6248_v44 = vadd.f32 %v6247_v13, %v6158_v34  ;;  %v11755_v11 = vor.u32 %v12935_v7, %v11752_v0 }
 0xa8e   : > { %v7644_v16 = vpack.c.bf16 %v6423_v31, %v6245_v2 }
 0xa8f   : > { %6473 = vmatmul.bf16.gmra.mxu0 %v16246_v49  ;;  %11835 = vmatmul.msk.bf16.gmra.mxu1 %vm5669_vm5, %v16248_v33 }
 0xa90   : > { %7719 = vst [vmem:[#allocation3 + $0x178] sm:$0xff] %v7644_v16  ;;  %6651 = vmatmul.bf16.gmra.mxu2 %v16246_v49  ;;  %11851 = vmatmul.msk.bf16.gmra.mxu3 %vm5669_vm5, %v16248_v33 }
 0xa91   : > { %7055 = vmatpush.bf16.msrb.mxu3 %v11755_v11 }
 0xa93   : > { %v6336_v63 = vpop.f32.mrf.mxu2  ;;  %v6425_v37 = vpop.f32.mrf.mxu3 }
 0xa94   : > { %v6426_v10 = vadd.f32 %v6425_v37, %v6336_v63  ;;  %v6160_v29 = vpop.f32.mrf.mxu0  ;;  %v6249_v40 = vpop.f32.mrf.mxu1 }
 0xa95   : > { %v6250_v23 = vadd.f32 %v6249_v40, %v6160_v29  ;;  %v11750_v40 = vld [vmem:[%s18577_s3 + $0x428] sm:$0xf] }
 0xa96   : > { %v7649_v28 = vpack.c.bf16 %v6426_v10, %v6248_v44  ;;  %v11510_v44 = vld [vmem:[%s18577_s3 + $0x248] sm:$0xf]  ;;  %v12880_v10 = vld [vmem:[%s18577_s3 + $0x26c] sm:$0xf0] }
 0xa97   : > { %v11511_v29 = vor.u32 %v12880_v10, %v11510_v44 }
 0xa98   : > { %7720 = vst [vmem:[#allocation3 + $0x1b8] sm:$0xff] %v7649_v28  ;;  %v12940_v28 = vld [vmem:[%s18577_s3 + $0x44c] sm:$0xf0] }
 0xa99   : > { %6786 = vmatpush.bf16.msrb.mxu0 %v11511_v29 }
 0xa9b   : > { %v6338_v51 = vpop.f32.mrf.mxu2  ;;  %v6427_v41 = vpop.f32.mrf.mxu3 }
 0xa9c   : > { %v6428_v19 = vadd.f32 %v6427_v41, %v6338_v51  ;;  %v6439_v18 = vpop.f32.mrf.mxu0  ;;  %v6528_v48 = vpop.f32.mrf.mxu1  ;;  %v11751_v51 = vor.u32 %v12940_v28, %v11750_v40 }
 0xa9d   : > { %v6529_v3 = vadd.f32 %v6528_v48, %v6439_v18 }
 0xa9e   : > { %v7654_v59 = vpack.c.bf16 %v6428_v19, %v6250_v23  ;;  %6877 = vmatpush.bf16.msrb.mxu1 %v11751_v51  ;;  %v11470_v51 = vld [vmem:[%s18577_s3 + $0x1f8] sm:$0xf] }
 0xa9f   : > { %6478 = vmatmul.bf16.gmra.mxu0 %v16290_v9  ;;  %11836 = vmatmul.msk.bf16.gmra.mxu1 %vm5669_vm5, %v16292_v62 }
 0xaa0   : > { %7721 = vst [vmem:[#allocation3 + $0x1f8] sm:$0xff] %v7654_v59  ;;  %6656 = vmatmul.bf16.gmra.mxu2 %v16290_v9  ;;  %11852 = vmatmul.msk.bf16.gmra.mxu3 %vm5669_vm5, %v16292_v62 }
 0xaa3   : > { %v6617_v1 = vpop.f32.mrf.mxu2  ;;  %v6706_v21 = vpop.f32.mrf.mxu3 }
 0xaa4   : > { %v6707_v58 = vadd.f32 %v6706_v21, %v6617_v1  ;;  %v6441_v43 = vpop.f32.mrf.mxu0  ;;  %v6530_v5 = vpop.f32.mrf.mxu1 }
 0xaa5   : > { %v6531_v34 = vadd.f32 %v6530_v5, %v6441_v43 }
 0xaa6   : > { %v7500_v25 = vpack.c.bf16 %v6707_v58, %v6529_v3 }
 0xaa8   : > { %7722 = vst [vmem:[#allocation3 + $0x200] sm:$0xff] %v7500_v25 }
 0xaab   : > { %v6619_v2 = vpop.f32.mrf.mxu2  ;;  %v6708_v31 = vpop.f32.mrf.mxu3 }
 0xaac   : > { %v6709_v13 = vadd.f32 %v6708_v31, %v6619_v2  ;;  %v6444_v16 = vpop.f32.mrf.mxu0  ;;  %v6533_v63 = vpop.f32.mrf.mxu1 }
 0xaad   : > { %v6534_v19 = vadd.f32 %v6533_v63, %v6444_v16 }
 0xaae   : > { %v7505_v37 = vpack.c.bf16 %v6709_v13, %v6531_v34  ;;  %v12865_v34 = vld [vmem:[%s18577_s3 + $0x1fc] sm:$0xf]  ;;  %v11472_v13 = vld [vmem:[%s18577_s3 + $0x220] sm:$0xf0] }
 0xaaf   : > { %6483 = vmatmul.bf16.gmra.mxu0 %v16318_v57  ;;  %11837 = vmatmul.msk.bf16.gmra.mxu1 %vm5669_vm5, %v16320_v60  ;;  %v11475_v16 = vor.u32 %v12865_v34, %v11472_v13 }
 0xab0   : > { %7723 = vst [vmem:[#allocation3 + $0x240] sm:$0xff] %v7505_v37  ;;  %6661 = vmatmul.bf16.gmra.mxu2 %v16318_v57  ;;  %11853 = vmatmul.msk.bf16.gmra.mxu3 %vm5669_vm5, %v16320_v60 }
 0xab1   : > { %6965 = vmatpush.bf16.msrb.mxu2 %v11475_v16 }
 0xab3   : > { %v6622_v41 = vpop.f32.mrf.mxu2  ;;  %v6711_v23 = vpop.f32.mrf.mxu3 }
 0xab4   : > { %v6712_v18 = vadd.f32 %v6711_v23, %v6622_v41  ;;  %v6446_v48 = vpop.f32.mrf.mxu0  ;;  %v6535_v59 = vpop.f32.mrf.mxu1  ;;  %v12870_v41 = vld [vmem:[%s18577_s3 + $0x21c] sm:$0xf0] }
 0xab5   : > { %v6536_v58 = vadd.f32 %v6535_v59, %v6446_v48  ;;  %v11471_v23 = vor.u32 %v12870_v41, %v11470_v51  ;;  %v11430_v51 = vld [vmem:[%s18577_s3 + $0x1a8] sm:$0xf] }
 0xab6   : > { %v7510_v1 = vpack.c.bf16 %v6712_v18, %v6534_v19 }
 0xab7   : > { %6787 = vmatpush.bf16.msrb.mxu0 %v11471_v23  ;;  %v12860_v23 = vld [vmem:[%s18577_s3 + $0x1cc] sm:$0xf0] }
 0xab8   : > { %7724 = vst [vmem:[#allocation3 + $0x280] sm:$0xff] %v7510_v1 }
 0xabb   : > { %v6624_v21 = vpop.f32.mrf.mxu2  ;;  %v6713_v3 = vpop.f32.mrf.mxu3 }
 0xabc   : > { %v6714_v43 = vadd.f32 %v6713_v3, %v6624_v21  ;;  %v6449_v5 = vpop.f32.mrf.mxu0  ;;  %v6538_v25 = vpop.f32.mrf.mxu1 }
 0xabd   : > { %v6539_v7 = vadd.f32 %v6538_v25, %v6449_v5 }
 0xabe   : > { %v7515_v54 = vpack.c.bf16 %v6714_v43, %v6536_v58  ;;  %v12925_v58 = vld [vmem:[%s18577_s3 + $0x3dc] sm:$0xf]  ;;  %v11712_v43 = vld [vmem:[%s18577_s3 + $0x400] sm:$0xf0] }
 0xabf   : > { %6488 = vmatmul.bf16.gmra.mxu0 %v16340_v61  ;;  %11838 = vmatmul.msk.bf16.gmra.mxu1 %vm5669_vm5, %v16342_v12  ;;  %v11715_v5 = vor.u32 %v12925_v58, %v11712_v43  ;;  %v11392_v58 = vld [vmem:[%s18577_s3 + $0x180] sm:$0xf0] }
 0xac0   : > { %7725 = vst [vmem:[#allocation3 + $0x2c0] sm:$0xff] %v7515_v54  ;;  %6666 = vmatmul.bf16.gmra.mxu2 %v16340_v61  ;;  %11854 = vmatmul.msk.bf16.gmra.mxu3 %vm5669_vm5, %v16342_v12 }
 0xac1   : > { %7056 = vmatpush.bf16.msrb.mxu3 %v11715_v5 }
 0xac3   : > { %v6627_v30 = vpop.f32.mrf.mxu2  ;;  %v6716_v27 = vpop.f32.mrf.mxu3 }
 0xac4   : > { %v6717_v0 = vadd.f32 %v6716_v27, %v6627_v30  ;;  %v6451_v11 = vpop.f32.mrf.mxu0  ;;  %v6540_v2 = vpop.f32.mrf.mxu1 }
 0xac5   : > { %v6541_v44 = vadd.f32 %v6540_v2, %v6451_v11  ;;  %v11710_v2 = vld [vmem:[%s18577_s3 + $0x3d8] sm:$0xf] }
 0xac6   : > { %v7520_v31 = vpack.c.bf16 %v6717_v0, %v6539_v7 }
 0xac8   : > { %7726 = vst [vmem:[#allocation3 + $0x208] sm:$0xff] %v7520_v31  ;;  %v12930_v31 = vld [vmem:[%s18577_s3 + $0x3fc] sm:$0xf0] }
 0xac9   : > { %v11711_v34 = vor.u32 %v12930_v31, %v11710_v2  ;;  %v12920_v31 = vld [vmem:[%s18577_s3 + $0x3ac] sm:$0xf0] }
 0xacb   : > { %v6629_v63 = vpop.f32.mrf.mxu2  ;;  %v6718_v37 = vpop.f32.mrf.mxu3  ;;  %6878 = vmatpush.bf16.msrb.mxu1 %v11711_v34  ;;  %v12835_v34 = vld [vmem:[%s18577_s3 + $0x10c] sm:$0xf] }
 0xacc   : > { %v6719_v10 = vadd.f32 %v6718_v37, %v6629_v63  ;;  %v6454_v29 = vpop.f32.mrf.mxu0  ;;  %v6543_v40 = vpop.f32.mrf.mxu1 }
 0xacd   : > { %v6544_v48 = vadd.f32 %v6543_v40, %v6454_v29  ;;  %v12855_v40 = vld [vmem:[%s18577_s3 + $0x1ac] sm:$0xf] }
 0xace   : > { %v7525_v28 = vpack.c.bf16 %v6719_v10, %v6541_v44 }
 0xacf   : > { %6493 = vmatmul.bf16.gmra.mxu0 %v16356_v45  ;;  %11839 = vmatmul.msk.bf16.gmra.mxu1 %vm5669_vm5, %v16358_v46 }
 0xad0   : > { %7727 = vst [vmem:[#allocation3 + $0x248] sm:$0xff] %v7525_v28  ;;  %6671 = vmatmul.bf16.gmra.mxu2 %v16356_v45  ;;  %11855 = vmatmul.msk.bf16.gmra.mxu3 %vm5669_vm5, %v16358_v46  ;;  %v11432_v28 = vld [vmem:[%s18577_s3 + $0x1d0] sm:$0xf0] }
 0xad1   : > { %v11435_v41 = vor.u32 %v12855_v40, %v11432_v28  ;;  %v12830_v40 = vld [vmem:[%s18577_s3 + $0xdc] sm:$0xf0]  ;;  %v11630_v28 = vld [vmem:[%s18577_s3 + $0x338] sm:$0xf] }
 0xad3   : > { %v6632_v19 = vpop.f32.mrf.mxu2  ;;  %v6721_v18 = vpop.f32.mrf.mxu3  ;;  %6966 = vmatpush.bf16.msrb.mxu2 %v11435_v41 }
 0xad4   : > { %v6722_v59 = vadd.f32 %v6721_v18, %v6632_v19  ;;  %v6456_v1 = vpop.f32.mrf.mxu0  ;;  %v6545_v21 = vpop.f32.mrf.mxu1  ;;  %v11431_v19 = vor.u32 %v12860_v23, %v11430_v51  ;;  %v11390_v18 = vld [vmem:[%s18577_s3 + $0x158] sm:$0xf] }
 0xad5   : > { %v6546_v30 = vadd.f32 %v6545_v21, %v6456_v1 }
 0xad6   : > { %v7530_v3 = vpack.c.bf16 %v6722_v59, %v6544_v48  ;;  %6788 = vmatpush.bf16.msrb.mxu0 %v11431_v19  ;;  %v12850_v48 = vld [vmem:[%s18577_s3 + $0x17c] sm:$0xf0]  ;;  %v12845_v59 = vld [vmem:[%s18577_s3 + $0x15c] sm:$0xf] }
 0xad7   : > { %v12910_v19 = vld [vmem:[%s18577_s3 + $0x35c] sm:$0xf0] }
 0xad8   : > { %7728 = vst [vmem:[#allocation3 + $0x288] sm:$0xff] %v7530_v3  ;;  %v11391_v3 = vor.u32 %v12850_v48, %v11390_v18  ;;  %v12825_v18 = vld [vmem:[%s18577_s3 + $0xbc] sm:$0xf]  ;;  %v11312_v48 = vld [vmem:[%s18577_s3 + $0xe0] sm:$0xf0] }
 0xada   : > { %6789 = vmatpush.bf16.msrb.mxu0 %v11391_v3 }
 0xadb   : > { %v6634_v25 = vpop.f32.mrf.mxu2  ;;  %v6723_v54 = vpop.f32.mrf.mxu3 }
 0xadc   : > { %v6724_v27 = vadd.f32 %v6723_v54, %v6634_v25  ;;  %v6459_v7 = vpop.f32.mrf.mxu0  ;;  %v6548_v0 = vpop.f32.mrf.mxu1 }
 0xadd   : > { %v6549_v63 = vadd.f32 %v6548_v0, %v6459_v7  ;;  %v11350_v7 = vld [vmem:[%s18577_s3 + $0x108] sm:$0xf]  ;;  %v12840_v0 = vld [vmem:[%s18577_s3 + $0x12c] sm:$0xf0] }
 0xade   : > { %v7535_v11 = vpack.c.bf16 %v6724_v27, %v6546_v30  ;;  %v11395_v30 = vor.u32 %v12845_v59, %v11392_v58  ;;  %v11351_v2 = vor.u32 %v12840_v0, %v11350_v7  ;;  %v11631_v58 = vor.u32 %v12910_v19, %v11630_v28  ;;  %v11590_v0 = vld [vmem:[%s18577_s3 + $0x2e8] sm:$0xf]  ;;  %v12805_v19 = vld [vmem:[%s18577_s3 + $0x1c] sm:$0xf] }
 0xadf   : > { %6498 = vmatmul.bf16.gmra.mxu0 %v16378_v35  ;;  %11840 = vmatmul.msk.bf16.gmra.mxu1 %vm5669_vm5, %v16380_v52 }
 0xae0   : > { %7729 = vst [vmem:[#allocation3 + $0x2c8] sm:$0xff] %v7535_v11  ;;  %6676 = vmatmul.bf16.gmra.mxu2 %v16378_v35  ;;  %11856 = vmatmul.msk.bf16.gmra.mxu3 %vm5669_vm5, %v16380_v52  ;;  %v11670_v11 = vld [vmem:[%s18577_s3 + $0x388] sm:$0xf] }
 0xae1   : > { %6967 = vmatpush.bf16.msrb.mxu2 %v11395_v30  ;;  %6790 = vmatpush.bf16.msrb.mxu0 %v11351_v2  ;;  %v11632_v30 = vld [vmem:[%s18577_s3 + $0x360] sm:$0xf0]  ;;  %v12900_v2 = vld [vmem:[%s18577_s3 + $0x30c] sm:$0xf0] }
 0xae3   : > { %v6637_v13 = vpop.f32.mrf.mxu2  ;;  %v6726_v16 = vpop.f32.mrf.mxu3 }
 0xae4   : > { %v6727_v37 = vadd.f32 %v6726_v16, %v6637_v13  ;;  %v6461_v44 = vpop.f32.mrf.mxu0  ;;  %v6550_v10 = vpop.f32.mrf.mxu1  ;;  %v11352_v13 = vld [vmem:[%s18577_s3 + $0x130] sm:$0xf0]  ;;  %v11671_v16 = vor.u32 %v12920_v31, %v11670_v11  ;;  %v12815_v31 = vld [vmem:[%s18577_s3 + $0x6c] sm:$0xf] }
 0xae5   : > { %v6551_v43 = vadd.f32 %v6550_v10, %v6461_v44  ;;  %v11672_v44 = vld [vmem:[%s18577_s3 + $0x3b0] sm:$0xf0] }
 0xae6   : > { %v7540_v29 = vpack.c.bf16 %v6727_v37, %v6549_v63  ;;  %v11355_v63 = vor.u32 %v12835_v34, %v11352_v13  ;;  %v12915_v37 = vld [vmem:[%s18577_s3 + $0x38c] sm:$0xf]  ;;  %6879 = vmatpush.bf16.msrb.mxu1 %v11671_v16  ;;  %v11272_v34 = vld [vmem:[%s18577_s3 + $0x90] sm:$0xf0]  ;;  %v11591_v13 = vor.u32 %v12900_v2, %v11590_v0 }
 0xae7   : > { %v11675_v10 = vor.u32 %v12915_v37, %v11672_v44  ;;  %v11275_v16 = vor.u32 %v12815_v31, %v11272_v34  ;;  %v11592_v37 = vld [vmem:[%s18577_s3 + $0x310] sm:$0xf0] }
 0xae8   : > { %7730 = vst [vmem:[#allocation3 + $0x210] sm:$0xff] %v7540_v29  ;;  %v11310_v29 = vld [vmem:[%s18577_s3 + $0xb8] sm:$0xf]  ;;  %6968 = vmatpush.bf16.msrb.mxu2 %v11355_v63  ;;  %v12895_v63 = vld [vmem:[%s18577_s3 + $0x2ec] sm:$0xf] }
 0xae9   : > { %7057 = vmatpush.bf16.msrb.mxu3 %v11675_v10  ;;  %v11311_v23 = vor.u32 %v12830_v40, %v11310_v29  ;;  %v11595_v44 = vor.u32 %v12895_v63, %v11592_v37  ;;  %v11230_v10 = vld [vmem:[%s18577_s3 + $0x18] sm:$0xf]  ;;  %v12810_v29 = vld [vmem:[%s18577_s3 + $0x3c] sm:$0xf0] }
 0xaea   : > { %6880 = vmatpush.bf16.msrb.mxu1 %v11631_v58  ;;  %v11550_v40 = vld [vmem:[%s18577_s3 + $0x298] sm:$0xf] }
 0xaeb   : > { %v6639_v1 = vpop.f32.mrf.mxu2  ;;  %v6728_v21 = vpop.f32.mrf.mxu3  ;;  %6791 = vmatpush.bf16.msrb.mxu0 %v11311_v23  ;;  %v12890_v23 = vld [vmem:[%s18577_s3 + $0x2bc] sm:$0xf0] }
 0xaec   : > { %v6729_v5 = vadd.f32 %v6728_v21, %v6639_v1  ;;  %v6464_v25 = vpop.f32.mrf.mxu0  ;;  %v6553_v54 = vpop.f32.mrf.mxu1 }
 0xaed   : > { %v6554_v59 = vadd.f32 %v6553_v54, %v6464_v25  ;;  %v11270_v25 = vld [vmem:[%s18577_s3 + $0x68] sm:$0xf]  ;;  %v12820_v54 = vld [vmem:[%s18577_s3 + $0x8c] sm:$0xf0] }
 0xaee   : > { %v7545_v27 = vpack.c.bf16 %v6729_v5, %v6551_v43  ;;  %v11315_v43 = vor.u32 %v12825_v18, %v11312_v48  ;;  %v12905_v5 = vld [vmem:[%s18577_s3 + $0x33c] sm:$0xf]  ;;  %v11271_v11 = vor.u32 %v12820_v54, %v11270_v25  ;;  %6881 = vmatpush.bf16.msrb.mxu1 %v11591_v13  ;;  %v11232_v18 = vld [vmem:[%s18577_s3 + $0x40] sm:$0xf0] }
 0xaef   : > { %6503 = vmatmul.bf16.gmra.mxu0 %v16418_v42  ;;  %11841 = vmatmul.msk.bf16.gmra.mxu1 %vm5669_vm5, %v16420_v38 }
 0xaf0   : > { %7731 = vst [vmem:[#allocation3 + $0x250] sm:$0xff] %v7545_v27  ;;  %6681 = vmatmul.bf16.gmra.mxu2 %v16418_v42  ;;  %11857 = vmatmul.msk.bf16.gmra.mxu3 %vm5669_vm5, %v16420_v38  ;;  %v11635_v27 = vor.u32 %v12905_v5, %v11632_v30  ;;  %v12885_v5 = vld [vmem:[%s18577_s3 + $0x29c] sm:$0xf]  ;;  %v11552_v30 = vld [vmem:[%s18577_s3 + $0x2c0] sm:$0xf0] }
 0xaf1   : > { %6969 = vmatpush.bf16.msrb.mxu2 %v11315_v43  ;;  %6792 = vmatpush.bf16.msrb.mxu0 %v11271_v11  ;;  %v11551_v43 = vor.u32 %v12890_v23, %v11550_v40 }
 0xaf2   : > { %7058 = vmatpush.bf16.msrb.mxu3 %v11635_v27  ;;  %v11235_v27 = vor.u32 %v12805_v19, %v11232_v18 }
 0xaf3   : > { %v6642_v51 = vpop.f32.mrf.mxu2  ;;  %v6731_v41 = vpop.f32.mrf.mxu3  ;;  %6882 = vmatpush.bf16.msrb.mxu1 %v11551_v43 }
 0xaf4   : > { %v6732_v1 = vadd.f32 %v6731_v41, %v6642_v51  ;;  %v6466_v21 = vpop.f32.mrf.mxu0  ;;  %v6555_v3 = vpop.f32.mrf.mxu1  ;;  %v11231_v41 = vor.u32 %v12810_v29, %v11230_v10 }
 0xaf5   : > { %6970 = vmatpush.bf16.msrb.mxu2 %v11275_v16  ;;  %v6556_v48 = vadd.f32 %v6555_v3, %v6466_v21 }
 0xaf6   : > { %v7550_v7 = vpack.c.bf16 %v6732_v1, %v6554_v59  ;;  %7059 = vmatpush.bf16.msrb.mxu3 %v11595_v44  ;;  %6793 = vmatpush.bf16.msrb.mxu0 %v11231_v41 }
 0xaf8   : > { %7732 = vst [vmem:[#allocation3 + $0x290] sm:$0xff] %v7550_v7  ;;  %v11555_v7 = vor.u32 %v12885_v5, %v11552_v30 }
 0xaf9   : > { %6971 = vmatpush.bf16.msrb.mxu2 %v11235_v27 }
 0xafa   : > { %7060 = vmatpush.bf16.msrb.mxu3 %v11555_v7 }
 0xafb   : > { %v6644_v28 = vpop.f32.mrf.mxu2  ;;  %v6733_v51 = vpop.f32.mrf.mxu3 }
 0xafc   : > { %v6734_v59 = vadd.f32 %v6733_v51, %v6644_v28  ;;  %v6469_v1 = vpop.f32.mrf.mxu0  ;;  %v6558_v58 = vpop.f32.mrf.mxu1 }
 0xafd   : > { %v6559_v54 = vadd.f32 %v6558_v58, %v6469_v1 }
 0xafe   : > { %v7555_v25 = vpack.c.bf16 %v6734_v59, %v6556_v48 }
 0xaff   : > { %6508 = vmatmul.bf16.gmra.mxu0 %v16524_v24  ;;  %11842 = vmatmul.msk.bf16.gmra.mxu1 %vm5669_vm5, %v16526_v4 }
 0xb00   : > { %7733 = vst [vmem:[#allocation3 + $0x2d0] sm:$0xff] %v7555_v25  ;;  %6686 = vmatmul.bf16.gmra.mxu2 %v16524_v24  ;;  %11858 = vmatmul.msk.bf16.gmra.mxu3 %vm5669_vm5, %v16526_v4 }
 0xb03   : > { %v6647_v21 = vpop.f32.mrf.mxu2  ;;  %v6736_v3 = vpop.f32.mrf.mxu3 }
 0xb04   : > { %v6737_v0 = vadd.f32 %v6736_v3, %v6647_v21  ;;  %v6471_v11 = vpop.f32.mrf.mxu0  ;;  %v6560_v2 = vpop.f32.mrf.mxu1 }
 0xb05   : > { %v6561_v16 = vadd.f32 %v6560_v2, %v6471_v11 }
 0xb06   : > { %v7560_v31 = vpack.c.bf16 %v6737_v0, %v6559_v54 }
 0xb08   : > { %7734 = vst [vmem:[#allocation3 + $0x218] sm:$0xff] %v7560_v31 }
 0xb0b   : > { %v6649_v34 = vpop.f32.mrf.mxu2  ;;  %v6738_v13 = vpop.f32.mrf.mxu3 }
 0xb0c   : > { %v6739_v63 = vadd.f32 %v6738_v13, %v6649_v34  ;;  %v6474_v37 = vpop.f32.mrf.mxu0  ;;  %v6563_v44 = vpop.f32.mrf.mxu1 }
 0xb0d   : > { %v6564_v28 = vadd.f32 %v6563_v44, %v6474_v37 }
 0xb0e   : > { %v7565_v10 = vpack.c.bf16 %v6739_v63, %v6561_v16 }
 0xb0f   : > { %6513 = vmatmul.bf16.gmra.mxu0 %v16534_v26  ;;  %11843 = vmatmul.msk.bf16.gmra.mxu1 %vm5669_vm5, %v16536_v17 }
 0xb10   : > { %7735 = vst [vmem:[#allocation3 + $0x258] sm:$0xff] %v7565_v10  ;;  %6691 = vmatmul.bf16.gmra.mxu2 %v16534_v26  ;;  %11859 = vmatmul.msk.bf16.gmra.mxu3 %vm5669_vm5, %v16536_v17 }
 0xb13   : > { %v6652_v29 = vpop.f32.mrf.mxu2  ;;  %v6741_v40 = vpop.f32.mrf.mxu3 }
 0xb14   : > { %v6742_v51 = vadd.f32 %v6741_v40, %v6652_v29  ;;  %v6476_v41 = vpop.f32.mrf.mxu0  ;;  %v6565_v23 = vpop.f32.mrf.mxu1 }
 0xb15   : > { %v6566_v59 = vadd.f32 %v6565_v23, %v6476_v41 }
 0xb16   : > { %v7570_v19 = vpack.c.bf16 %v6742_v51, %v6564_v28 }
 0xb18   : > { %7736 = vst [vmem:[#allocation3 + $0x298] sm:$0xff] %v7570_v19 }
 0xb1b   : > { %v6654_v18 = vpop.f32.mrf.mxu2  ;;  %v6743_v48 = vpop.f32.mrf.mxu3 }
 0xb1c   : > { %v6744_v1 = vadd.f32 %v6743_v48, %v6654_v18  ;;  %v6479_v58 = vpop.f32.mrf.mxu0  ;;  %v6568_v43 = vpop.f32.mrf.mxu1 }
 0xb1d   : > { %v6569_v7 = vadd.f32 %v6568_v43, %v6479_v58 }
 0xb1e   : > { %v7575_v5 = vpack.c.bf16 %v6744_v1, %v6566_v59 }
 0xb1f   : > { %6794 = vmatmul.bf16.vlgmr.msrb.gmra.mxu0 %v18624_v20  ;;  %11860 = vmatmul.msk.bf16.vlgmr.msrb.gmra.mxu1 %vm5669_vm5, %v18625_v15 }
 0xb20   : > { %7737 = vst [vmem:[#allocation3 + $0x2d8] sm:$0xff] %v7575_v5  ;;  %6972 = vmatmul.bf16.vlgmr.msrb.gmra.mxu2 %v18624_v20  ;;  %11876 = vmatmul.msk.bf16.vlgmr.msrb.gmra.mxu3 %vm5669_vm5, %v18625_v15 }
 0xb23   : > { %v6657_v30 = vpop.f32.mrf.mxu2  ;;  %v6746_v27 = vpop.f32.mrf.mxu3 }
 0xb24   : > { %v6747_v25 = vadd.f32 %v6746_v27, %v6657_v30  ;;  %v6481_v21 = vpop.f32.mrf.mxu0  ;;  %v6570_v3 = vpop.f32.mrf.mxu1 }
 0xb25   : > { %v6571_v2 = vadd.f32 %v6570_v3, %v6481_v21 }
 0xb26   : > { %v7580_v54 = vpack.c.bf16 %v6747_v25, %v6569_v7 }
 0xb28   : > { %7738 = vst [vmem:[#allocation3 + $0x220] sm:$0xff] %v7580_v54 }
 0xb2b   : > { %v6659_v0 = vpop.f32.mrf.mxu2  ;;  %v6748_v11 = vpop.f32.mrf.mxu3 }
 0xb2c   : > { %v6749_v31 = vadd.f32 %v6748_v11, %v6659_v0  ;;  %v6484_v34 = vpop.f32.mrf.mxu0  ;;  %v6573_v13 = vpop.f32.mrf.mxu1 }
 0xb2d   : > { %v6574_v44 = vadd.f32 %v6573_v13, %v6484_v34 }
 0xb2e   : > { %v7585_v16 = vpack.c.bf16 %v6749_v31, %v6571_v2 }
 0xb2f   : > { %6799 = vmatmul.bf16.gmra.mxu0 %v18626_v6  ;;  %11861 = vmatmul.msk.bf16.gmra.mxu1 %vm5669_vm5, %v18627_v22 }
 0xb30   : > { %7739 = vst [vmem:[#allocation3 + $0x260] sm:$0xff] %v7585_v16  ;;  %6977 = vmatmul.bf16.gmra.mxu2 %v18626_v6  ;;  %11877 = vmatmul.msk.bf16.gmra.mxu3 %vm5669_vm5, %v18627_v22 }
 0xb33   : > { %v6662_v63 = vpop.f32.mrf.mxu2  ;;  %v6751_v37 = vpop.f32.mrf.mxu3 }
 0xb34   : > { %v6752_v10 = vadd.f32 %v6751_v37, %v6662_v63  ;;  %v6486_v29 = vpop.f32.mrf.mxu0  ;;  %v6575_v40 = vpop.f32.mrf.mxu1 }
 0xb35   : > { %v6576_v23 = vadd.f32 %v6575_v40, %v6486_v29 }
 0xb36   : > { %v7590_v28 = vpack.c.bf16 %v6752_v10, %v6574_v44 }
 0xb38   : > { %7740 = vst [vmem:[#allocation3 + $0x2a0] sm:$0xff] %v7590_v28 }
 0xb3b   : > { %v6664_v51 = vpop.f32.mrf.mxu2  ;;  %v6753_v41 = vpop.f32.mrf.mxu3 }
 0xb3c   : > { %v6754_v19 = vadd.f32 %v6753_v41, %v6664_v51  ;;  %v6489_v18 = vpop.f32.mrf.mxu0  ;;  %v6578_v48 = vpop.f32.mrf.mxu1 }
 0xb3d   : > { %v6579_v43 = vadd.f32 %v6578_v48, %v6489_v18 }
 0xb3e   : > { %v7595_v59 = vpack.c.bf16 %v6754_v19, %v6576_v23 }
 0xb3f   : > { %6804 = vmatmul.bf16.gmra.mxu0 %v18628_v14  ;;  %11862 = vmatmul.msk.bf16.gmra.mxu1 %vm5669_vm5, %v18629_v8 }
 0xb40   : > { %7741 = vst [vmem:[#allocation3 + $0x2e0] sm:$0xff] %v7595_v59  ;;  %6982 = vmatmul.bf16.gmra.mxu2 %v18628_v14  ;;  %11878 = vmatmul.msk.bf16.gmra.mxu3 %vm5669_vm5, %v18629_v8 }
 0xb43   : > { %v6667_v1 = vpop.f32.mrf.mxu2  ;;  %v6756_v58 = vpop.f32.mrf.mxu3 }
 0xb44   : > { %v6757_v5 = vadd.f32 %v6756_v58, %v6667_v1  ;;  %v6491_v30 = vpop.f32.mrf.mxu0  ;;  %v6580_v27 = vpop.f32.mrf.mxu1 }
 0xb45   : > { %v6581_v3 = vadd.f32 %v6580_v27, %v6491_v30 }
 0xb46   : > { %v7600_v7 = vpack.c.bf16 %v6757_v5, %v6579_v43 }
 0xb48   : > { %7742 = vst [vmem:[#allocation3 + $0x228] sm:$0xff] %v7600_v7 }
 0xb4b   : > { %v6669_v25 = vpop.f32.mrf.mxu2  ;;  %v6758_v21 = vpop.f32.mrf.mxu3 }
 0xb4c   : > { %v6759_v54 = vadd.f32 %v6758_v21, %v6669_v25  ;;  %v6494_v0 = vpop.f32.mrf.mxu0  ;;  %v6583_v11 = vpop.f32.mrf.mxu1 }
 0xb4d   : > { %v6584_v13 = vadd.f32 %v6583_v11, %v6494_v0 }
 0xb4e   : > { %v7605_v2 = vpack.c.bf16 %v6759_v54, %v6581_v3 }
 0xb4f   : > { %6809 = vmatmul.bf16.gmra.mxu0 %v18630_v55  ;;  %11863 = vmatmul.msk.bf16.gmra.mxu1 %vm5669_vm5, %v18631_v53 }
 0xb50   : > { %7743 = vst [vmem:[#allocation3 + $0x268] sm:$0xff] %v7605_v2  ;;  %6987 = vmatmul.bf16.gmra.mxu2 %v18630_v55  ;;  %11879 = vmatmul.msk.bf16.gmra.mxu3 %vm5669_vm5, %v18631_v53 }
 0xb53   : > { %v6672_v31 = vpop.f32.mrf.mxu2  ;;  %v6761_v34 = vpop.f32.mrf.mxu3 }
 0xb54   : > { %v6762_v16 = vadd.f32 %v6761_v34, %v6672_v31  ;;  %v6496_v63 = vpop.f32.mrf.mxu0  ;;  %v6585_v37 = vpop.f32.mrf.mxu1 }
 0xb55   : > { %v6586_v40 = vadd.f32 %v6585_v37, %v6496_v63 }
 0xb56   : > { %v7610_v44 = vpack.c.bf16 %v6762_v16, %v6584_v13 }
 0xb58   : > { %7744 = vst [vmem:[#allocation3 + $0x2a8] sm:$0xff] %v7610_v44 }
 0xb5b   : > { %v6674_v10 = vpop.f32.mrf.mxu2  ;;  %v6763_v29 = vpop.f32.mrf.mxu3 }
 0xb5c   : > { %v6764_v28 = vadd.f32 %v6763_v29, %v6674_v10  ;;  %v6499_v51 = vpop.f32.mrf.mxu0  ;;  %v6588_v41 = vpop.f32.mrf.mxu1 }
 0xb5d   : > { %v6589_v48 = vadd.f32 %v6588_v41, %v6499_v51 }
 0xb5e   : > { %v7615_v23 = vpack.c.bf16 %v6764_v28, %v6586_v40 }
 0xb5f   : > { %6814 = vmatmul.bf16.gmra.mxu0 %v18632_v36  ;;  %11864 = vmatmul.msk.bf16.gmra.mxu1 %vm5669_vm5, %v18633_v47 }
 0xb60   : > { %7745 = vst [vmem:[#allocation3 + $0x2e8] sm:$0xff] %v7615_v23  ;;  %6992 = vmatmul.bf16.gmra.mxu2 %v18632_v36  ;;  %11880 = vmatmul.msk.bf16.gmra.mxu3 %vm5669_vm5, %v18633_v47 }
 0xb63   : > { %v6677_v19 = vpop.f32.mrf.mxu2  ;;  %v6766_v18 = vpop.f32.mrf.mxu3 }
 0xb64   : > { %v6767_v59 = vadd.f32 %v6766_v18, %v6677_v19  ;;  %v6501_v1 = vpop.f32.mrf.mxu0  ;;  %v6590_v58 = vpop.f32.mrf.mxu1 }
 0xb65   : > { %v6591_v27 = vadd.f32 %v6590_v58, %v6501_v1  ;;  %v12881_v1 = vld [vmem:[%s18577_s3 + $0x274] sm:$0xf0]  ;;  %v12876_v58 = vld [vmem:[%s18577_s3 + $0x254] sm:$0xf] }
 0xb66   : > { %v7620_v43 = vpack.c.bf16 %v6767_v59, %v6589_v48  ;;  %v11518_v59 = vld [vmem:[%s18577_s3 + $0x250] sm:$0xf] }
 0xb68   : > { %7746 = vst [vmem:[#allocation3 + $0x230] sm:$0xff] %v7620_v43 }
 0xb6b   : > { %v6679_v5 = vpop.f32.mrf.mxu2  ;;  %v6768_v30 = vpop.f32.mrf.mxu3 }
 0xb6c   : > { %v6769_v7 = vadd.f32 %v6768_v30, %v6679_v5  ;;  %v6504_v25 = vpop.f32.mrf.mxu0  ;;  %v6593_v21 = vpop.f32.mrf.mxu1  ;;  %v11519_v30 = vor.u32 %v12881_v1, %v11518_v59  ;;  %v11398_v59 = vld [vmem:[%s18577_s3 + $0x160] sm:$0xf]  ;;  %v12851_v1 = vld [vmem:[%s18577_s3 + $0x184] sm:$0xf0] }
 0xb6d   : > { %v6594_v11 = vadd.f32 %v6593_v21, %v6504_v25 }
 0xb6e   : > { %v7625_v3 = vpack.c.bf16 %v6769_v7, %v6591_v27  ;;  %v11520_v27 = vld [vmem:[%s18577_s3 + $0x278] sm:$0xf0]  ;;  %7142 = vmatpush.bf16.msra.mxu0 %v11519_v30 }
 0xb6f   : > { %6819 = vmatmul.bf16.gmra.mxu0 %v18634_v56  ;;  %11865 = vmatmul.msk.bf16.gmra.mxu1 %vm5669_vm5, %v18635_v39 }
 0xb70   : > { %7747 = vst [vmem:[#allocation3 + $0x270] sm:$0xff] %v7625_v3  ;;  %6997 = vmatmul.bf16.gmra.mxu2 %v18634_v56  ;;  %11881 = vmatmul.msk.bf16.gmra.mxu3 %vm5669_vm5, %v18635_v39 }
 0xb73   : > { %v6682_v54 = vpop.f32.mrf.mxu2  ;;  %v6771_v0 = vpop.f32.mrf.mxu3 }
 0xb74   : > { %v6772_v2 = vadd.f32 %v6771_v0, %v6682_v54  ;;  %v6506_v31 = vpop.f32.mrf.mxu0  ;;  %v6595_v34 = vpop.f32.mrf.mxu1  ;;  %v11523_v54 = vor.u32 %v12876_v58, %v11520_v27  ;;  %v12846_v58 = vld [vmem:[%s18577_s3 + $0x164] sm:$0xf]  ;;  %v11358_v27 = vld [vmem:[%s18577_s3 + $0x110] sm:$0xf] }
 0xb75   : > { %v6596_v37 = vadd.f32 %v6595_v34, %v6506_v31  ;;  %v12866_v31 = vld [vmem:[%s18577_s3 + $0x204] sm:$0xf] }
 0xb76   : > { %v7630_v13 = vpack.c.bf16 %v6772_v2, %v6594_v11  ;;  %7320 = vmatpush.bf16.msra.mxu2 %v11523_v54  ;;  %v11478_v11 = vld [vmem:[%s18577_s3 + $0x200] sm:$0xf]  ;;  %v12871_v2 = vld [vmem:[%s18577_s3 + $0x224] sm:$0xf0] }
 0xb77   : > { %v11479_v34 = vor.u32 %v12871_v2, %v11478_v11 }
 0xb78   : > { %7748 = vst [vmem:[#allocation3 + $0x2b0] sm:$0xff] %v7630_v13  ;;  %v11480_v13 = vld [vmem:[%s18577_s3 + $0x228] sm:$0xf0] }
 0xb79   : > { %7143 = vmatpush.bf16.msra.mxu0 %v11479_v34 }
 0xb7b   : > { %v6684_v16 = vpop.f32.mrf.mxu2  ;;  %v6773_v63 = vpop.f32.mrf.mxu3 }
 0xb7c   : > { %v6774_v44 = vadd.f32 %v6773_v63, %v6684_v16  ;;  %v6509_v10 = vpop.f32.mrf.mxu0  ;;  %v6598_v29 = vpop.f32.mrf.mxu1  ;;  %v11483_v16 = vor.u32 %v12866_v31, %v11480_v13  ;;  %v11438_v63 = vld [vmem:[%s18577_s3 + $0x1b0] sm:$0xf] }
 0xb7d   : > { %v6599_v41 = vadd.f32 %v6598_v29, %v6509_v10 }
 0xb7e   : > { %v7635_v40 = vpack.c.bf16 %v6774_v44, %v6596_v37  ;;  %7321 = vmatpush.bf16.msra.mxu2 %v11483_v16  ;;  %v12861_v37 = vld [vmem:[%s18577_s3 + $0x1d4] sm:$0xf0]  ;;  %v12856_v44 = vld [vmem:[%s18577_s3 + $0x1b4] sm:$0xf] }
 0xb7f   : > { %6824 = vmatmul.bf16.gmra.mxu0 %v16206_v50  ;;  %11866 = vmatmul.msk.bf16.gmra.mxu1 %vm5669_vm5, %v16208_v32 }
 0xb80   : > { %7749 = vst [vmem:[#allocation3 + $0x2f0] sm:$0xff] %v7635_v40  ;;  %7002 = vmatmul.bf16.gmra.mxu2 %v16206_v50  ;;  %11882 = vmatmul.msk.bf16.gmra.mxu3 %vm5669_vm5, %v16208_v32  ;;  %v11439_v40 = vor.u32 %v12861_v37, %v11438_v63  ;;  %v11318_v63 = vld [vmem:[%s18577_s3 + $0xc0] sm:$0xf]  ;;  %v12831_v37 = vld [vmem:[%s18577_s3 + $0xe4] sm:$0xf0] }
 0xb82   : > { %7144 = vmatpush.bf16.msra.mxu0 %v11439_v40 }
 0xb83   : > { %v6687_v28 = vpop.f32.mrf.mxu2  ;;  %v6776_v51 = vpop.f32.mrf.mxu3 }
 0xb84   : > { %v6777_v23 = vadd.f32 %v6776_v51, %v6687_v28  ;;  %v6511_v19 = vpop.f32.mrf.mxu0  ;;  %v6600_v18 = vpop.f32.mrf.mxu1  ;;  %v11440_v28 = vld [vmem:[%s18577_s3 + $0x1d8] sm:$0xf0] }
 0xb85   : > { %v6601_v7 = vadd.f32 %v6600_v18, %v6511_v19  ;;  %v11443_v18 = vor.u32 %v12856_v44, %v11440_v28  ;;  %v12826_v44 = vld [vmem:[%s18577_s3 + $0xc4] sm:$0xf]  ;;  %v11278_v28 = vld [vmem:[%s18577_s3 + $0x70] sm:$0xf] }
 0xb86   : > { %v7640_v48 = vpack.c.bf16 %v6777_v23, %v6599_v41 }
 0xb87   : > { %7322 = vmatpush.bf16.msra.mxu2 %v11443_v18 }
 0xb88   : > { %7750 = vst [vmem:[#allocation3 + $0x238] sm:$0xff] %v7640_v48 }
 0xb8b   : > { %v6689_v43 = vpop.f32.mrf.mxu2  ;;  %v6778_v5 = vpop.f32.mrf.mxu3 }
 0xb8c   : > { %v6779_v25 = vadd.f32 %v6778_v5, %v6689_v43  ;;  %v6514_v21 = vpop.f32.mrf.mxu0  ;;  %v6603_v3 = vpop.f32.mrf.mxu1  ;;  %v11399_v43 = vor.u32 %v12851_v1, %v11398_v59  ;;  %v11400_v5 = vld [vmem:[%s18577_s3 + $0x188] sm:$0xf0] }
 0xb8d   : > { %v6604_v51 = vadd.f32 %v6603_v3, %v6514_v21  ;;  %v11403_v30 = vor.u32 %v12846_v58, %v11400_v5 }
 0xb8e   : > { %v7645_v0 = vpack.c.bf16 %v6779_v25, %v6601_v7  ;;  %7145 = vmatpush.bf16.msra.mxu0 %v11399_v43  ;;  %v12841_v7 = vld [vmem:[%s18577_s3 + $0x134] sm:$0xf0]  ;;  %v12836_v25 = vld [vmem:[%s18577_s3 + $0x114] sm:$0xf] }
 0xb8f   : > { %6829 = vmatmul.bf16.gmra.mxu0 %v16246_v49  ;;  %11867 = vmatmul.msk.bf16.gmra.mxu1 %vm5669_vm5, %v16248_v33  ;;  %v11359_v54 = vor.u32 %v12841_v7, %v11358_v27  ;;  %v11238_v27 = vld [vmem:[%s18577_s3 + $0x20] sm:$0xf]  ;;  %v12811_v7 = vld [vmem:[%s18577_s3 + $0x44] sm:$0xf0] }
 0xb90   : > { %7751 = vst [vmem:[#allocation3 + $0x278] sm:$0xff] %v7645_v0  ;;  %7007 = vmatmul.bf16.gmra.mxu2 %v16246_v49  ;;  %11883 = vmatmul.msk.bf16.gmra.mxu3 %vm5669_vm5, %v16248_v33  ;;  %v11360_v0 = vld [vmem:[%s18577_s3 + $0x138] sm:$0xf0] }
 0xb91   : > { %7323 = vmatpush.bf16.msra.mxu2 %v11403_v30  ;;  %v11363_v13 = vor.u32 %v12836_v25, %v11360_v0  ;;  %v12806_v25 = vld [vmem:[%s18577_s3 + $0x24] sm:$0xf]  ;;  %v12936_v0 = vld [vmem:[%s18577_s3 + $0x434] sm:$0xf] }
 0xb92   : > { %7146 = vmatpush.bf16.msra.mxu0 %v11359_v54 }
 0xb93   : > { %v6692_v10 = vpop.f32.mrf.mxu2  ;;  %v6781_v29 = vpop.f32.mrf.mxu3 }
 0xb94   : > { %v6782_v41 = vadd.f32 %v6781_v29, %v6692_v10  ;;  %v6516_v23 = vpop.f32.mrf.mxu0  ;;  %v6605_v19 = vpop.f32.mrf.mxu1  ;;  %v11319_v10 = vor.u32 %v12831_v37, %v11318_v63  ;;  %v11320_v29 = vld [vmem:[%s18577_s3 + $0xe8] sm:$0xf0] }
 0xb95   : > { %v6606_v11 = vadd.f32 %v6605_v19, %v6516_v23  ;;  %7324 = vmatpush.bf16.msra.mxu2 %v11363_v13  ;;  %v11323_v40 = vor.u32 %v12826_v44, %v11320_v29  ;;  %v12941_v29 = vld [vmem:[%s18577_s3 + $0x454] sm:$0xf0] }
 0xb96   : > { %v7650_v48 = vpack.c.bf16 %v6782_v41, %v6604_v51  ;;  %7147 = vmatpush.bf16.msra.mxu0 %v11319_v10  ;;  %v12821_v51 = vld [vmem:[%s18577_s3 + $0x94] sm:$0xf0]  ;;  %v12816_v41 = vld [vmem:[%s18577_s3 + $0x74] sm:$0xf]  ;;  %v11758_v10 = vld [vmem:[%s18577_s3 + $0x430] sm:$0xf] }
 0xb97   : > { %v11279_v18 = vor.u32 %v12821_v51, %v11278_v28 }
 0xb98   : > { %7752 = vst [vmem:[#allocation3 + $0x2b8] sm:$0xff] %v7650_v48  ;;  %v11280_v48 = vld [vmem:[%s18577_s3 + $0x98] sm:$0xf0] }
 0xb99   : > { %7325 = vmatpush.bf16.msra.mxu2 %v11323_v40  ;;  %v11283_v5 = vor.u32 %v12816_v41, %v11280_v48  ;;  %v11759_v40 = vor.u32 %v12941_v29, %v11758_v10 }
 0xb9a   : > { %7148 = vmatpush.bf16.msra.mxu0 %v11279_v18 }
 0xb9b   : > { %v6694_v21 = vpop.f32.mrf.mxu2  ;;  %v6783_v3 = vpop.f32.mrf.mxu3  ;;  %7233 = vmatpush.bf16.msra.mxu1 %v11759_v40 }
 0xb9c   : > { %v6784_v2 = vadd.f32 %v6783_v3, %v6694_v21  ;;  %v6795_v31 = vpop.f32.mrf.mxu0  ;;  %v6884_v34 = vpop.f32.mrf.mxu1  ;;  %v11239_v21 = vor.u32 %v12811_v7, %v11238_v27  ;;  %v11240_v3 = vld [vmem:[%s18577_s3 + $0x48] sm:$0xf0] }
 0xb9d   : > { %v6885_v59 = vadd.f32 %v6884_v34, %v6795_v31  ;;  %7326 = vmatpush.bf16.msra.mxu2 %v11283_v5  ;;  %v11243_v54 = vor.u32 %v12806_v25, %v11240_v3 }
 0xb9e   : > { %v7655_v16 = vpack.c.bf16 %v6784_v2, %v6606_v11  ;;  %v11760_v11 = vld [vmem:[%s18577_s3 + $0x458] sm:$0xf0]  ;;  %7149 = vmatpush.bf16.msra.mxu0 %v11239_v21 }
 0xb9f   : > { %6834 = vmatmul.bf16.gmra.mxu0 %v16290_v9  ;;  %11868 = vmatmul.msk.bf16.gmra.mxu1 %vm5669_vm5, %v16292_v62  ;;  %v11763_v2 = vor.u32 %v12936_v0, %v11760_v11 }
 0xba0   : > { %7753 = vst [vmem:[#allocation3 + $0x2f8] sm:$0xff] %v7655_v16  ;;  %7012 = vmatmul.bf16.gmra.mxu2 %v16290_v9  ;;  %11884 = vmatmul.msk.bf16.gmra.mxu3 %vm5669_vm5, %v16292_v62 }
 0xba1   : > { %7327 = vmatpush.bf16.msra.mxu2 %v11243_v54  ;;  %7411 = vmatpush.bf16.msra.mxu3 %v11763_v2 }
 0xba3   : > { %v6973_v23 = vpop.f32.mrf.mxu2  ;;  %v7062_v19 = vpop.f32.mrf.mxu3 }
 0xba4   : > { %v7063_v1 = vadd.f32 %v7062_v19, %v6973_v23  ;;  %v6797_v58 = vpop.f32.mrf.mxu0  ;;  %v6886_v43 = vpop.f32.mrf.mxu1 }
 0xba5   : > { %v6887_v13 = vadd.f32 %v6886_v43, %v6797_v58 }
 0xba6   : > { %v7501_v30 = vpack.c.bf16 %v7063_v1, %v6885_v59 }
 0xba8   : > { %7754 = vst [vmem:[#allocation3 + $0x300] sm:$0xff] %v7501_v30 }
 0xbab   : > { %v6975_v31 = vpop.f32.mrf.mxu2  ;;  %v7064_v34 = vpop.f32.mrf.mxu3 }
 0xbac   : > { %v7065_v16 = vadd.f32 %v7064_v34, %v6975_v31  ;;  %v6800_v63 = vpop.f32.mrf.mxu0  ;;  %v6889_v37 = vpop.f32.mrf.mxu1 }
 0xbad   : > { %v6890_v41 = vadd.f32 %v6889_v37, %v6800_v63 }
 0xbae   : > { %v7506_v44 = vpack.c.bf16 %v7065_v16, %v6887_v13 }
 0xbaf   : > { %6839 = vmatmul.bf16.gmra.mxu0 %v16318_v57  ;;  %11869 = vmatmul.msk.bf16.gmra.mxu1 %vm5669_vm5, %v16320_v60  ;;  %v12334_v40 = vld [vmem:[#allocation3 + $0x300] sm:$0xf] }
 0xbb0   : > { %7755 = vst [vmem:[#allocation3 + $0x340] sm:$0xff] %v7506_v44  ;;  %7017 = vmatmul.bf16.gmra.mxu2 %v16318_v57  ;;  %11885 = vmatmul.msk.bf16.gmra.mxu3 %vm5669_vm5, %v16320_v60 }
 0xbb3   : > { %v6978_v28 = vpop.f32.mrf.mxu2  ;;  %v7067_v51 = vpop.f32.mrf.mxu3 }
 0xbb4   : > { %v7068_v23 = vadd.f32 %v7067_v51, %v6978_v28  ;;  %v6802_v19 = vpop.f32.mrf.mxu0  ;;  %v6891_v18 = vpop.f32.mrf.mxu1  ;;  %v13044_v28 = vld [vmem:[#allocation3 + $0x304] sm:$0xf] }
 0xbb5   : > { %v6892_v58 = vadd.f32 %v6891_v18, %v6802_v19 }
 0xbb6   : > { %v7511_v48 = vpack.c.bf16 %v7068_v23, %v6890_v41 }
 0xbb7   : > { %v13052_v37 = vld [vmem:[#allocation3 + $0x33c] sm:$0xf0]  ;;  %v12336_v44 = vld [vmem:[#allocation3 + $0x340] sm:$0xf0] }
 0xbb8   : > { %7756 = vst [vmem:[#allocation3 + $0x380] sm:$0xff] %v7511_v48  ;;  %v12335_v18 = vor.u32 %v13052_v37, %v12334_v40  ;;  %v12339_v48 = vor.u32 %v13044_v28, %v12336_v44  ;;  %v12144_v37 = vld [vmem:[#allocation3 + $0x1c0] sm:$0xf0] }
 0xbbb   : > { %v6980_v59 = vpop.f32.mrf.mxu2  ;;  %v7069_v1 = vpop.f32.mrf.mxu3 }
 0xbbc   : > { %v7070_v43 = vadd.f32 %v7069_v1, %v6980_v59  ;;  %v6805_v5 = vpop.f32.mrf.mxu0  ;;  %v6894_v30 = vpop.f32.mrf.mxu1  ;;  %v13036_v59 = vld [vmem:[#allocation3 + $0x2bc] sm:$0xf0]  ;;  %v12272_v1 = vld [vmem:[#allocation3 + $0x2c0] sm:$0xf0] }
 0xbbd   : > { %v6895_v21 = vadd.f32 %v6894_v30, %v6805_v5  ;;  %v13028_v5 = vld [vmem:[#allocation3 + $0x284] sm:$0xf] }
 0xbbe   : > { %v7516_v27 = vpack.c.bf16 %v7070_v43, %v6892_v58  ;;  %v12270_v43 = vld [vmem:[#allocation3 + $0x280] sm:$0xf] }
 0xbbf   : > { %6844 = vmatmul.bf16.gmra.mxu0 %v16340_v61  ;;  %11870 = vmatmul.msk.bf16.gmra.mxu1 %vm5669_vm5, %v16342_v12  ;;  %v12398_v2 = vld [vmem:[#allocation3 + $0x380] sm:$0xf]  ;;  %v13060_v34 = vld [vmem:[#allocation3 + $0x384] sm:$0xf]  ;;  %v12271_v30 = vor.u32 %v13036_v59, %v12270_v43 }
 0xbc0   : > { %7757 = vst [vmem:[#allocation3 + $0x3c0] sm:$0xff] %v7516_v27  ;;  %7022 = vmatmul.bf16.gmra.mxu2 %v16340_v61  ;;  %11886 = vmatmul.msk.bf16.gmra.mxu3 %vm5669_vm5, %v16342_v12  ;;  %v12275_v27 = vor.u32 %v13028_v5, %v12272_v1  ;;  %v12078_v1 = vld [vmem:[#allocation3 + $0x100] sm:$0xf] }
 0xbc3   : > { %v6983_v7 = vpop.f32.mrf.mxu2  ;;  %v7072_v25 = vpop.f32.mrf.mxu3 }
 0xbc4   : > { %v7073_v3 = vadd.f32 %v7072_v25, %v6983_v7  ;;  %v6807_v54 = vpop.f32.mrf.mxu0  ;;  %v6896_v0 = vpop.f32.mrf.mxu1  ;;  %v13020_v7 = vld [vmem:[#allocation3 + $0x23c] sm:$0xf0]  ;;  %v12208_v25 = vld [vmem:[#allocation3 + $0x240] sm:$0xf0] }
 0xbc5   : > { %v6897_v51 = vadd.f32 %v6896_v0, %v6807_v54  ;;  %v12206_v54 = vld [vmem:[#allocation3 + $0x200] sm:$0xf]  ;;  %v13012_v0 = vld [vmem:[#allocation3 + $0x204] sm:$0xf] }
 0xbc6   : > { %v7521_v11 = vpack.c.bf16 %v7073_v3, %v6895_v21 }
 0xbc7   : > { %v13068_v31 = vld [vmem:[#allocation3 + $0x3bc] sm:$0xf0]  ;;  %v12400_v13 = vld [vmem:[#allocation3 + $0x3c0] sm:$0xf0] }
 0xbc8   : > { %7758 = vst [vmem:[#allocation3 + $0x308] sm:$0xff] %v7521_v11  ;;  %v12399_v16 = vor.u32 %v13068_v31, %v12398_v2  ;;  %v12403_v63 = vor.u32 %v13060_v34, %v12400_v13  ;;  %v12207_v13 = vor.u32 %v13020_v7, %v12206_v54 }
 0xbca   : > { %8857 = vmatpush.bf16.msrb.mxu0 %v12399_v16  ;;  %8905 = vmatpush.bf16.msrb.mxu2 %v12403_v63  ;;  %v12211_v16 = vor.u32 %v13012_v0, %v12208_v25  ;;  %v13004_v63 = vld [vmem:[#allocation3 + $0x1bc] sm:$0xf0] }
 0xbcb   : > { %v6985_v10 = vpop.f32.mrf.mxu2  ;;  %v7074_v29 = vpop.f32.mrf.mxu3  ;;  %v12014_v0 = vld [vmem:[#allocation3 + $0x80] sm:$0xf] }
 0xbcc   : > { %v7075_v41 = vadd.f32 %v7074_v29, %v6985_v10  ;;  %v6810_v23 = vpop.f32.mrf.mxu0  ;;  %v6899_v19 = vpop.f32.mrf.mxu1  ;;  %v12142_v10 = vld [vmem:[#allocation3 + $0x180] sm:$0xf]  ;;  %v12996_v29 = vld [vmem:[#allocation3 + $0x184] sm:$0xf] }
 0xbcd   : > { %v6900_v11 = vadd.f32 %v6899_v19, %v6810_v23  ;;  %v12143_v40 = vor.u32 %v13004_v63, %v12142_v10  ;;  %v12147_v28 = vor.u32 %v12996_v29, %v12144_v37  ;;  %v12988_v23 = vld [vmem:[#allocation3 + $0x13c] sm:$0xf0]  ;;  %v12080_v19 = vld [vmem:[#allocation3 + $0x140] sm:$0xf0] }
 0xbce   : > { %v7526_v58 = vpack.c.bf16 %v7075_v41, %v6897_v51  ;;  %8858 = vmatpush.bf16.msrb.mxu0 %v12335_v18  ;;  %8906 = vmatpush.bf16.msrb.mxu2 %v12339_v48  ;;  %v12926_v51 = vld [vmem:[%s18577_s3 + $0x3e4] sm:$0xf]  ;;  %v11720_v41 = vld [vmem:[%s18577_s3 + $0x408] sm:$0xf0]  ;;  %v12079_v7 = vor.u32 %v12988_v23, %v12078_v1  ;;  %v11950_v29 = vld [vmem:[#allocation3] sm:$0xf] }
 0xbcf   : > { %6849 = vmatmul.bf16.gmra.mxu0 %v16356_v45  ;;  %11871 = vmatmul.msk.bf16.gmra.mxu1 %vm5669_vm5, %v16358_v46  ;;  %v11723_v18 = vor.u32 %v12926_v51, %v11720_v41  ;;  %v11952_v63 = vld [vmem:[#allocation3 + $0x40] sm:$0xf0] }
 0xbd0   : > { %7759 = vst [vmem:[#allocation3 + $0x348] sm:$0xff] %v7526_v58  ;;  %7027 = vmatmul.bf16.gmra.mxu2 %v16356_v45  ;;  %11887 = vmatmul.msk.bf16.gmra.mxu3 %vm5669_vm5, %v16358_v46  ;;  %v12980_v58 = vld [vmem:[#allocation3 + $0x104] sm:$0xf] }
 0xbd1   : > { %7412 = vmatpush.bf16.msra.mxu3 %v11723_v18  ;;  %v12083_v25 = vor.u32 %v12980_v58, %v12080_v19 }
 0xbd2   : > { %8859 = vmatpush.bf16.msrb.mxu0 %v12271_v30  ;;  %8907 = vmatpush.bf16.msrb.mxu2 %v12275_v27 }
 0xbd3   : > { %v6988_v21 = vpop.f32.mrf.mxu2  ;;  %v7077_v3 = vpop.f32.mrf.mxu3 }
 0xbd4   : > { %v7078_v2 = vadd.f32 %v7077_v3, %v6988_v21  ;;  %v6812_v31 = vpop.f32.mrf.mxu0  ;;  %v6901_v34 = vpop.f32.mrf.mxu1  ;;  %v12972_v21 = vld [vmem:[#allocation3 + $0xbc] sm:$0xf0]  ;;  %v12016_v3 = vld [vmem:[#allocation3 + $0xc0] sm:$0xf0] }
 0xbd5   : > { %v6902_v43 = vadd.f32 %v6901_v34, %v6812_v31  ;;  %v11718_v34 = vld [vmem:[%s18577_s3 + $0x3e0] sm:$0xf] }
 0xbd6   : > { %v7531_v44 = vpack.c.bf16 %v7078_v2, %v6900_v11  ;;  %8860 = vmatpush.bf16.msrb.mxu0 %v12207_v13  ;;  %8908 = vmatpush.bf16.msrb.mxu2 %v12211_v16  ;;  %v12964_v11 = vld [vmem:[#allocation3 + $0x84] sm:$0xf]  ;;  %v12015_v2 = vor.u32 %v12972_v21, %v12014_v0  ;;  %v12931_v13 = vld [vmem:[%s18577_s3 + $0x404] sm:$0xf0]  ;;  %v12956_v16 = vld [vmem:[#allocation3 + $0x3c] sm:$0xf0] }
 0xbd7   : > { %v12019_v31 = vor.u32 %v12964_v11, %v12016_v3  ;;  %v11719_v37 = vor.u32 %v12931_v13, %v11718_v34  ;;  %v11951_v19 = vor.u32 %v12956_v16, %v11950_v29  ;;  %v12916_v21 = vld [vmem:[%s18577_s3 + $0x394] sm:$0xf]  ;;  %v11638_v11 = vld [vmem:[%s18577_s3 + $0x340] sm:$0xf] }
 0xbd8   : > { %7760 = vst [vmem:[#allocation3 + $0x388] sm:$0xff] %v7531_v44 }
 0xbd9   : > { %7234 = vmatpush.bf16.msra.mxu1 %v11719_v37 }
 0xbda   : > { %8861 = vmatpush.bf16.msrb.mxu0 %v12143_v40  ;;  %8909 = vmatpush.bf16.msrb.mxu2 %v12147_v28  ;;  %v12948_v40 = vld [vmem:[#allocation3 + $0x4] sm:$0xf] }
 0xbdb   : > { %v6990_v48 = vpop.f32.mrf.mxu2  ;;  %v7079_v59 = vpop.f32.mrf.mxu3  ;;  %v11955_v18 = vor.u32 %v12948_v40, %v11952_v63  ;;  %v11640_v63 = vld [vmem:[%s18577_s3 + $0x368] sm:$0xf0] }
 0xbdc   : > { %v7080_v5 = vadd.f32 %v7079_v59, %v6990_v48  ;;  %v6815_v30 = vpop.f32.mrf.mxu0  ;;  %v6904_v27 = vpop.f32.mrf.mxu1 }
 0xbdd   : > { %v6905_v28 = vadd.f32 %v6904_v27, %v6815_v30  ;;  %v11678_v30 = vld [vmem:[%s18577_s3 + $0x390] sm:$0xf]  ;;  %v12921_v27 = vld [vmem:[%s18577_s3 + $0x3b4] sm:$0xf0] }
 0xbde   : > { %v7536_v54 = vpack.c.bf16 %v7080_v5, %v6902_v43  ;;  %8862 = vmatpush.bf16.msrb.mxu0 %v12079_v7  ;;  %8910 = vmatpush.bf16.msrb.mxu2 %v12083_v25  ;;  %v11679_v3 = vor.u32 %v12921_v27, %v11678_v30 }
 0xbdf   : > { %6854 = vmatmul.bf16.gmra.mxu0 %v16378_v35  ;;  %11872 = vmatmul.msk.bf16.gmra.mxu1 %vm5669_vm5, %v16380_v52 }
 0xbe0   : > { %7761 = vst [vmem:[#allocation3 + $0x3c8] sm:$0xff] %v7536_v54  ;;  %7032 = vmatmul.bf16.gmra.mxu2 %v16378_v35  ;;  %11888 = vmatmul.msk.bf16.gmra.mxu3 %vm5669_vm5, %v16380_v52  ;;  %v11680_v54 = vld [vmem:[%s18577_s3 + $0x3b8] sm:$0xf0] }
 0xbe1   : > { %v11683_v0 = vor.u32 %v12916_v21, %v11680_v54  ;;  %7235 = vmatpush.bf16.msra.mxu1 %v11679_v3 }
 0xbe2   : > { %8863 = vmatpush.bf16.msrb.mxu0 %v12015_v2  ;;  %8911 = vmatpush.bf16.msrb.mxu2 %v12019_v31  ;;  %v12911_v2 = vld [vmem:[%s18577_s3 + $0x364] sm:$0xf0]  ;;  %v12906_v31 = vld [vmem:[%s18577_s3 + $0x344] sm:$0xf] }
 0xbe3   : > { %v6993_v44 = vpop.f32.mrf.mxu2  ;;  %v7082_v10 = vpop.f32.mrf.mxu3  ;;  %7413 = vmatpush.bf16.msra.mxu3 %v11683_v0  ;;  %v11639_v16 = vor.u32 %v12911_v2, %v11638_v11  ;;  %v11643_v40 = vor.u32 %v12906_v31, %v11640_v63 }
 0xbe4   : > { %v7083_v51 = vadd.f32 %v7082_v10, %v6993_v44  ;;  %v6817_v41 = vpop.f32.mrf.mxu0  ;;  %v6906_v23 = vpop.f32.mrf.mxu1 }
 0xbe5   : > { %v6907_v58 = vadd.f32 %v6906_v23, %v6817_v41  ;;  %7236 = vmatpush.bf16.msra.mxu1 %v11639_v16  ;;  %v12901_v41 = vld [vmem:[%s18577_s3 + $0x314] sm:$0xf0]  ;;  %v12896_v23 = vld [vmem:[%s18577_s3 + $0x2f4] sm:$0xf] }
 0xbe6   : > { %v7541_v48 = vpack.c.bf16 %v7083_v51, %v6905_v28  ;;  %8864 = vmatpush.bf16.msrb.mxu0 %v11951_v19  ;;  %8912 = vmatpush.bf16.msrb.mxu2 %v11955_v18  ;;  %v11598_v51 = vld [vmem:[%s18577_s3 + $0x2f0] sm:$0xf]  ;;  %v11600_v18 = vld [vmem:[%s18577_s3 + $0x318] sm:$0xf0] }
 0xbe7   : > { %7414 = vmatpush.bf16.msra.mxu3 %v11643_v40  ;;  %v11599_v19 = vor.u32 %v12901_v41, %v11598_v51 }
 0xbe8   : > { %7762 = vst [vmem:[#allocation3 + $0x310] sm:$0xff] %v7541_v48  ;;  %v11603_v48 = vor.u32 %v12896_v23, %v11600_v18 }
 0xbe9   : > { %7237 = vmatpush.bf16.msra.mxu1 %v11599_v19 }
 0xbeb   : > { %v6995_v59 = vpop.f32.mrf.mxu2  ;;  %v7084_v1 = vpop.f32.mrf.mxu3  ;;  %7415 = vmatpush.bf16.msra.mxu3 %v11603_v48 }
 0xbec   : > { %v7085_v43 = vadd.f32 %v7084_v1, %v6995_v59  ;;  %v6820_v5 = vpop.f32.mrf.mxu0  ;;  %v6909_v7 = vpop.f32.mrf.mxu1  ;;  %v11558_v59 = vld [vmem:[%s18577_s3 + $0x2a0] sm:$0xf]  ;;  %v12891_v1 = vld [vmem:[%s18577_s3 + $0x2c4] sm:$0xf0] }
 0xbed   : > { %v6910_v37 = vadd.f32 %v6909_v7, %v6820_v5  ;;  %v11559_v7 = vor.u32 %v12891_v1, %v11558_v59 }
 0xbee   : > { %v7546_v25 = vpack.c.bf16 %v7085_v43, %v6907_v58  ;;  %v12886_v58 = vld [vmem:[%s18577_s3 + $0x2a4] sm:$0xf] }
 0xbef   : > { %6859 = vmatmul.bf16.gmra.mxu0 %v16418_v42  ;;  %11873 = vmatmul.msk.bf16.gmra.mxu1 %vm5669_vm5, %v16420_v38 }
 0xbf0   : > { %7763 = vst [vmem:[#allocation3 + $0x350] sm:$0xff] %v7546_v25  ;;  %7037 = vmatmul.bf16.gmra.mxu2 %v16418_v42  ;;  %11889 = vmatmul.msk.bf16.gmra.mxu3 %vm5669_vm5, %v16420_v38  ;;  %v11560_v25 = vld [vmem:[%s18577_s3 + $0x2c8] sm:$0xf0] }
 0xbf1   : > { %v11563_v54 = vor.u32 %v12886_v58, %v11560_v25  ;;  %7238 = vmatpush.bf16.msra.mxu1 %v11559_v7 }
 0xbf3   : > { %v6998_v34 = vpop.f32.mrf.mxu2  ;;  %v7087_v13 = vpop.f32.mrf.mxu3  ;;  %7416 = vmatpush.bf16.msra.mxu3 %v11563_v54  ;;  %v12406_v54 = vld [vmem:[#allocation3 + $0x388] sm:$0xf] }
 0xbf4   : > { %v7088_v44 = vadd.f32 %v7087_v13, %v6998_v34  ;;  %v6822_v10 = vpop.f32.mrf.mxu0  ;;  %v6911_v29 = vpop.f32.mrf.mxu1 }
 0xbf5   : > { %v6912_v30 = vadd.f32 %v6911_v29, %v6822_v10 }
 0xbf6   : > { %v7551_v28 = vpack.c.bf16 %v7088_v44, %v6910_v37 }
 0xbf8   : > { %7764 = vst [vmem:[#allocation3 + $0x390] sm:$0xff] %v7551_v28 }
 0xbfb   : > { %v7000_v43 = vpop.f32.mrf.mxu2  ;;  %v7089_v5 = vpop.f32.mrf.mxu3 }
 0xbfc   : > { %v7090_v27 = vadd.f32 %v7089_v5, %v7000_v43  ;;  %v6825_v21 = vpop.f32.mrf.mxu0  ;;  %v6914_v3 = vpop.f32.mrf.mxu1 }
 0xbfd   : > { %v6915_v31 = vadd.f32 %v6914_v3, %v6825_v21  ;;  %v12408_v21 = vld [vmem:[#allocation3 + $0x3c8] sm:$0xf0] }
 0xbfe   : > { %v7556_v0 = vpack.c.bf16 %v7090_v27, %v6912_v30  ;;  %v13069_v27 = vld [vmem:[#allocation3 + $0x3c4] sm:$0xf0] }
 0xbff   : > { %6864 = vmatmul.bf16.gmra.mxu0 %v16524_v24  ;;  %11874 = vmatmul.msk.bf16.gmra.mxu1 %vm5669_vm5, %v16526_v4 }
 0xc00   : > { %7765 = vst [vmem:[#allocation3 + $0x3d0] sm:$0xff] %v7556_v0  ;;  %7042 = vmatmul.bf16.gmra.mxu2 %v16524_v24  ;;  %11890 = vmatmul.msk.bf16.gmra.mxu3 %vm5669_vm5, %v16526_v4  ;;  %v13061_v0 = vld [vmem:[#allocation3 + $0x38c] sm:$0xf] }
 0xc03   : > { %v7003_v11 = vpop.f32.mrf.mxu2  ;;  %v7092_v2 = vpop.f32.mrf.mxu3 }
 0xc04   : > { %v7093_v34 = vadd.f32 %v7092_v2, %v7003_v11  ;;  %v6827_v13 = vpop.f32.mrf.mxu0  ;;  %v6916_v16 = vpop.f32.mrf.mxu1  ;;  %v12407_v11 = vor.u32 %v13069_v27, %v12406_v54  ;;  %v12411_v2 = vor.u32 %v13061_v0, %v12408_v21  ;;  %v13005_v0 = vld [vmem:[#allocation3 + $0x1c4] sm:$0xf0] }
 0xc05   : > { %v6917_v10 = vadd.f32 %v6916_v16, %v6827_v13  ;;  %v12342_v13 = vld [vmem:[#allocation3 + $0x308] sm:$0xf]  ;;  %v13045_v16 = vld [vmem:[#allocation3 + $0x30c] sm:$0xf] }
 0xc06   : > { %v7561_v63 = vpack.c.bf16 %v7093_v34, %v6915_v31  ;;  %v13053_v31 = vld [vmem:[#allocation3 + $0x344] sm:$0xf0]  ;;  %v12344_v34 = vld [vmem:[#allocation3 + $0x348] sm:$0xf0] }
 0xc08   : > { %7766 = vst [vmem:[#allocation3 + $0x318] sm:$0xff] %v7561_v63 }
 0xc0b   : > { %v7005_v37 = vpop.f32.mrf.mxu2  ;;  %v7094_v44 = vpop.f32.mrf.mxu3 }
 0xc0c   : > { %v7095_v29 = vadd.f32 %v7094_v44, %v7005_v37  ;;  %v6830_v40 = vpop.f32.mrf.mxu0  ;;  %v6919_v28 = vpop.f32.mrf.mxu1  ;;  %v12343_v44 = vor.u32 %v13053_v31, %v12342_v13  ;;  %v12150_v31 = vld [vmem:[#allocation3 + $0x188] sm:$0xf] }
 0xc0d   : > { %v6920_v19 = vadd.f32 %v6919_v28, %v6830_v40  ;;  %v12151_v13 = vor.u32 %v13005_v0, %v12150_v31 }
 0xc0e   : > { %v7566_v51 = vpack.c.bf16 %v7095_v29, %v6917_v10  ;;  %v12347_v10 = vor.u32 %v13045_v16, %v12344_v34  ;;  %v12997_v34 = vld [vmem:[#allocation3 + $0x18c] sm:$0xf] }
 0xc0f   : > { %6869 = vmatmul.bf16.gmra.mxu0 %v16534_v26  ;;  %11875 = vmatmul.msk.bf16.gmra.mxu1 %vm5669_vm5, %v16536_v17 }
 0xc10   : > { %7767 = vst [vmem:[#allocation3 + $0x358] sm:$0xff] %v7566_v51  ;;  %7047 = vmatmul.bf16.gmra.mxu2 %v16534_v26  ;;  %11891 = vmatmul.msk.bf16.gmra.mxu3 %vm5669_vm5, %v16536_v17 }
 0xc13   : > { %v7008_v41 = vpop.f32.mrf.mxu2  ;;  %v7097_v23 = vpop.f32.mrf.mxu3 }
 0xc14   : > { %v7098_v18 = vadd.f32 %v7097_v23, %v7008_v41  ;;  %v6832_v48 = vpop.f32.mrf.mxu0  ;;  %v6921_v59 = vpop.f32.mrf.mxu1  ;;  %v13037_v41 = vld [vmem:[#allocation3 + $0x2c4] sm:$0xf0]  ;;  %v12280_v23 = vld [vmem:[#allocation3 + $0x2c8] sm:$0xf0] }
 0xc15   : > { %v6922_v5 = vadd.f32 %v6921_v59, %v6832_v48  ;;  %v13021_v59 = vld [vmem:[#allocation3 + $0x244] sm:$0xf0] }
 0xc16   : > { %v7571_v1 = vpack.c.bf16 %v7098_v18, %v6920_v19  ;;  %v13029_v19 = vld [vmem:[#allocation3 + $0x28c] sm:$0xf] }
 0xc17   : > { %v12283_v48 = vor.u32 %v13029_v19, %v12280_v23  ;;  %v12973_v19 = vld [vmem:[#allocation3 + $0xc4] sm:$0xf0] }
 0xc18   : > { %7768 = vst [vmem:[#allocation3 + $0x398] sm:$0xff] %v7571_v1  ;;  %v12216_v1 = vld [vmem:[#allocation3 + $0x248] sm:$0xf0] }
 0xc1b   : > { %v7010_v58 = vpop.f32.mrf.mxu2  ;;  %v7099_v43 = vpop.f32.mrf.mxu3 }
 0xc1c   : > { %v7100_v7 = vadd.f32 %v7099_v43, %v7010_v58  ;;  %v6835_v25 = vpop.f32.mrf.mxu0  ;;  %v6924_v30 = vpop.f32.mrf.mxu1  ;;  %v12214_v58 = vld [vmem:[#allocation3 + $0x208] sm:$0xf]  ;;  %v13013_v43 = vld [vmem:[#allocation3 + $0x20c] sm:$0xf] }
 0xc1d   : > { %v6925_v29 = vadd.f32 %v6924_v30, %v6835_v25  ;;  %v12215_v25 = vor.u32 %v13021_v59, %v12214_v58  ;;  %v12219_v30 = vor.u32 %v13013_v43, %v12216_v1  ;;  %v12957_v58 = vld [vmem:[#allocation3 + $0x44] sm:$0xf0]  ;;  %v11960_v43 = vld [vmem:[#allocation3 + $0x48] sm:$0xf0] }
 0xc1e   : > { %v7576_v3 = vpack.c.bf16 %v7100_v7, %v6922_v5 }
 0xc1f   : > { %7150 = vmatmul.bf16.vlgmr.msra.gmra.mxu0 %v18624_v20  ;;  %11892 = vmatmul.msk.bf16.vlgmr.msra.gmra.mxu1 %vm5669_vm5, %v18625_v15 }
 0xc20   : > { %7769 = vst [vmem:[#allocation3 + $0x3d8] sm:$0xff] %v7576_v3  ;;  %7328 = vmatmul.bf16.vlgmr.msra.gmra.mxu2 %v18624_v20  ;;  %11908 = vmatmul.msk.bf16.vlgmr.msra.gmra.mxu3 %vm5669_vm5, %v18625_v15  ;;  %v12278_v15 = vld [vmem:[#allocation3 + $0x288] sm:$0xf] }
 0xc21   : > { %8953 = vmatpush.bf16.msra.mxu0 %v12407_v11  ;;  %9001 = vmatpush.bf16.msra.mxu2 %v12411_v2  ;;  %v12279_v18 = vor.u32 %v13037_v41, %v12278_v15  ;;  %v12152_v11 = vld [vmem:[#allocation3 + $0x1c8] sm:$0xf0] }
 0xc22   : > { %v12155_v16 = vor.u32 %v12997_v34, %v12152_v11 }
 0xc23   : > { %v7013_v63 = vpop.f32.mrf.mxu2  ;;  %v7102_v37 = vpop.f32.mrf.mxu3 }
 0xc24   : > { %v7103_v40 = vadd.f32 %v7102_v37, %v7013_v63  ;;  %v6837_v28 = vpop.f32.mrf.mxu0  ;;  %v6926_v51 = vpop.f32.mrf.mxu1  ;;  %v12989_v63 = vld [vmem:[#allocation3 + $0x144] sm:$0xf0]  ;;  %v12088_v37 = vld [vmem:[#allocation3 + $0x148] sm:$0xf0] }
 0xc25   : > { %8954 = vmatpush.bf16.msra.mxu0 %v12343_v44  ;;  %9002 = vmatpush.bf16.msra.mxu2 %v12347_v10  ;;  %v6927_v27 = vadd.f32 %v6926_v51, %v6837_v28  ;;  %v12086_v44 = vld [vmem:[#allocation3 + $0x108] sm:$0xf]  ;;  %v12981_v10 = vld [vmem:[#allocation3 + $0x10c] sm:$0xf] }
 0xc26   : > { %v7581_v20 = vpack.c.bf16 %v7103_v40, %v6925_v29  ;;  %v12087_v28 = vor.u32 %v12989_v63, %v12086_v44  ;;  %v12091_v51 = vor.u32 %v12981_v10, %v12088_v37 }
 0xc28   : > { %7770 = vst [vmem:[#allocation3 + $0x320] sm:$0xff] %v7581_v20 }
 0xc29   : > { %8955 = vmatpush.bf16.msra.mxu0 %v12279_v18  ;;  %9003 = vmatpush.bf16.msra.mxu2 %v12283_v48  ;;  %v12024_v18 = vld [vmem:[#allocation3 + $0xc8] sm:$0xf0] }
 0xc2a   : > { %v12965_v48 = vld [vmem:[#allocation3 + $0x8c] sm:$0xf] }
 0xc2b   : > { %v7015_v5 = vpop.f32.mrf.mxu2  ;;  %v7104_v7 = vpop.f32.mrf.mxu3  ;;  %v12027_v1 = vor.u32 %v12965_v48, %v12024_v18 }
 0xc2c   : > { %v7105_v21 = vadd.f32 %v7104_v7, %v7015_v5  ;;  %v6840_v3 = vpop.f32.mrf.mxu0  ;;  %v6929_v54 = vpop.f32.mrf.mxu1  ;;  %v11958_v5 = vld [vmem:[#allocation3 + $0x8] sm:$0xf]  ;;  %v12949_v7 = vld [vmem:[#allocation3 + $0xc] sm:$0xf] }
 0xc2d   : > { %8956 = vmatpush.bf16.msra.mxu0 %v12215_v25  ;;  %9004 = vmatpush.bf16.msra.mxu2 %v12219_v30  ;;  %v6930_v41 = vadd.f32 %v6929_v54, %v6840_v3 }
 0xc2e   : > { %v7586_v2 = vpack.c.bf16 %v7105_v21, %v6927_v27  ;;  %v11959_v27 = vor.u32 %v12957_v58, %v11958_v5  ;;  %v11963_v21 = vor.u32 %v12949_v7, %v11960_v43 }
 0xc2f   : > { %7155 = vmatmul.bf16.gmra.mxu0 %v18626_v6  ;;  %11893 = vmatmul.msk.bf16.gmra.mxu1 %vm5669_vm5, %v18627_v22 }
 0xc30   : > { %7771 = vst [vmem:[#allocation3 + $0x360] sm:$0xff] %v7586_v2  ;;  %7333 = vmatmul.bf16.gmra.mxu2 %v18626_v6  ;;  %11909 = vmatmul.msk.bf16.gmra.mxu3 %vm5669_vm5, %v18627_v22  ;;  %v12022_v22 = vld [vmem:[#allocation3 + $0x88] sm:$0xf] }
 0xc31   : > { %8957 = vmatpush.bf16.msra.mxu0 %v12151_v13  ;;  %9005 = vmatpush.bf16.msra.mxu2 %v12155_v16  ;;  %v12023_v59 = vor.u32 %v12973_v19, %v12022_v22 }
 0xc33   : > { %v7018_v29 = vpop.f32.mrf.mxu2  ;;  %v7107_v40 = vpop.f32.mrf.mxu3 }
 0xc34   : > { %v7108_v23 = vadd.f32 %v7107_v40, %v7018_v29  ;;  %v6842_v20 = vpop.f32.mrf.mxu0  ;;  %v6931_v15 = vpop.f32.mrf.mxu1 }
 0xc35   : > { %8958 = vmatpush.bf16.msra.mxu0 %v12087_v28  ;;  %9006 = vmatpush.bf16.msra.mxu2 %v12091_v51  ;;  %v6932_v3 = vadd.f32 %v6931_v15, %v6842_v20 }
 0xc36   : > { %v7591_v6 = vpack.c.bf16 %v7108_v23, %v6930_v41 }
 0xc38   : > { %7772 = vst [vmem:[#allocation3 + $0x3a0] sm:$0xff] %v7591_v6 }
 0xc39   : > { %8959 = vmatpush.bf16.msra.mxu0 %v12023_v59  ;;  %9007 = vmatpush.bf16.msra.mxu2 %v12027_v1 }
 0xc3b   : > { %v7020_v25 = vpop.f32.mrf.mxu2  ;;  %v7109_v30 = vpop.f32.mrf.mxu3 }
 0xc3c   : > { %v7110_v54 = vadd.f32 %v7109_v30, %v7020_v25  ;;  %v6845_v0 = vpop.f32.mrf.mxu0  ;;  %v6934_v11 = vpop.f32.mrf.mxu1 }
 0xc3d   : > { %8960 = vmatpush.bf16.msra.mxu0 %v11959_v27  ;;  %9008 = vmatpush.bf16.msra.mxu2 %v11963_v21  ;;  %v6935_v13 = vadd.f32 %v6934_v11, %v6845_v0 }
 0xc3e   : > { %v7596_v2 = vpack.c.bf16 %v7110_v54, %v6932_v3 }
 0xc3f   : > { %7160 = vmatmul.bf16.gmra.mxu0 %v18628_v14  ;;  %11894 = vmatmul.msk.bf16.gmra.mxu1 %vm5669_vm5, %v18629_v8 }
 0xc40   : > { %7773 = vst [vmem:[#allocation3 + $0x3e0] sm:$0xff] %v7596_v2  ;;  %7338 = vmatmul.bf16.gmra.mxu2 %v18628_v14  ;;  %11910 = vmatmul.msk.bf16.gmra.mxu3 %vm5669_vm5, %v18629_v8 }
 0xc43   : > { %v7023_v31 = vpop.f32.mrf.mxu2  ;;  %v7112_v34 = vpop.f32.mrf.mxu3 }
 0xc44   : > { %v7113_v16 = vadd.f32 %v7112_v34, %v7023_v31  ;;  %v6847_v63 = vpop.f32.mrf.mxu0  ;;  %v6936_v37 = vpop.f32.mrf.mxu1 }
 0xc45   : > { %v6937_v40 = vadd.f32 %v6936_v37, %v6847_v63 }
 0xc46   : > { %v7601_v44 = vpack.c.bf16 %v7113_v16, %v6935_v13 }
 0xc48   : > { %7774 = vst [vmem:[#allocation3 + $0x328] sm:$0xff] %v7601_v44 }
 0xc4b   : > { %v7025_v10 = vpop.f32.mrf.mxu2  ;;  %v7114_v29 = vpop.f32.mrf.mxu3 }
 0xc4c   : > { %v7115_v28 = vadd.f32 %v7114_v29, %v7025_v10  ;;  %v6850_v51 = vpop.f32.mrf.mxu0  ;;  %v6939_v41 = vpop.f32.mrf.mxu1 }
 0xc4d   : > { %v6940_v20 = vadd.f32 %v6939_v41, %v6850_v51 }
 0xc4e   : > { %v7606_v23 = vpack.c.bf16 %v7115_v28, %v6937_v40 }
 0xc4f   : > { %7165 = vmatmul.bf16.gmra.mxu0 %v18630_v55  ;;  %11895 = vmatmul.msk.bf16.gmra.mxu1 %vm5669_vm5, %v18631_v53 }
 0xc50   : > { %7775 = vst [vmem:[#allocation3 + $0x368] sm:$0xff] %v7606_v23  ;;  %7343 = vmatmul.bf16.gmra.mxu2 %v18630_v55  ;;  %11911 = vmatmul.msk.bf16.gmra.mxu3 %vm5669_vm5, %v18631_v53 }
 0xc53   : > { %v7028_v14 = vpop.f32.mrf.mxu2  ;;  %v7117_v8 = vpop.f32.mrf.mxu3 }
 0xc54   : > { %v7118_v15 = vadd.f32 %v7117_v8, %v7028_v14  ;;  %v6852_v19 = vpop.f32.mrf.mxu0  ;;  %v6941_v18 = vpop.f32.mrf.mxu1 }
 0xc55   : > { %v6942_v59 = vadd.f32 %v6941_v18, %v6852_v19 }
 0xc56   : > { %v7611_v6 = vpack.c.bf16 %v7118_v15, %v6940_v20 }
 0xc58   : > { %7776 = vst [vmem:[#allocation3 + $0x3a8] sm:$0xff] %v7611_v6 }
 0xc5b   : > { %v7030_v22 = vpop.f32.mrf.mxu2  ;;  %v7119_v48 = vpop.f32.mrf.mxu3 }
 0xc5c   : > { %v7120_v1 = vadd.f32 %v7119_v48, %v7030_v22  ;;  %v6855_v58 = vpop.f32.mrf.mxu0  ;;  %v6944_v43 = vpop.f32.mrf.mxu1 }
 0xc5d   : > { %v6945_v7 = vadd.f32 %v6944_v43, %v6855_v58 }
 0xc5e   : > { %v7616_v5 = vpack.c.bf16 %v7120_v1, %v6942_v59 }
 0xc5f   : > { %7170 = vmatmul.bf16.gmra.mxu0 %v18632_v36  ;;  %11896 = vmatmul.msk.bf16.gmra.mxu1 %vm5669_vm5, %v18633_v47 }
 0xc60   : > { %7777 = vst [vmem:[#allocation3 + $0x3e8] sm:$0xff] %v7616_v5  ;;  %7348 = vmatmul.bf16.gmra.mxu2 %v18632_v36  ;;  %11912 = vmatmul.msk.bf16.gmra.mxu3 %vm5669_vm5, %v18633_v47 }
 0xc63   : > { %v7033_v55 = vpop.f32.mrf.mxu2  ;;  %v7122_v53 = vpop.f32.mrf.mxu3 }
 0xc64   : > { %v7123_v25 = vadd.f32 %v7122_v53, %v7033_v55  ;;  %v6857_v30 = vpop.f32.mrf.mxu0  ;;  %v6946_v27 = vpop.f32.mrf.mxu1 }
 0xc65   : > { %v6947_v0 = vadd.f32 %v6946_v27, %v6857_v30 }
 0xc66   : > { %v7621_v21 = vpack.c.bf16 %v7123_v25, %v6945_v7 }
 0xc68   : > { %7778 = vst [vmem:[#allocation3 + $0x330] sm:$0xff] %v7621_v21 }
 0xc6b   : > { %v7035_v3 = vpop.f32.mrf.mxu2  ;;  %v7124_v54 = vpop.f32.mrf.mxu3 }
 0xc6c   : > { %v7125_v11 = vadd.f32 %v7124_v54, %v7035_v3  ;;  %v6860_v2 = vpop.f32.mrf.mxu0  ;;  %v6949_v31 = vpop.f32.mrf.mxu1 }
 0xc6d   : > { %v6950_v13 = vadd.f32 %v6949_v31, %v6860_v2 }
 0xc6e   : > { %v7626_v34 = vpack.c.bf16 %v7125_v11, %v6947_v0 }
 0xc6f   : > { %7175 = vmatmul.bf16.gmra.mxu0 %v18634_v56  ;;  %11897 = vmatmul.msk.bf16.gmra.mxu1 %vm5669_vm5, %v18635_v39 }
 0xc70   : > { %7779 = vst [vmem:[#allocation3 + $0x370] sm:$0xff] %v7626_v34  ;;  %7353 = vmatmul.bf16.gmra.mxu2 %v18634_v56  ;;  %11913 = vmatmul.msk.bf16.gmra.mxu3 %vm5669_vm5, %v18635_v39 }
 0xc73   : > { %v7038_v36 = vpop.f32.mrf.mxu2  ;;  %v7127_v47 = vpop.f32.mrf.mxu3 }
 0xc74   : > { %v7128_v16 = vadd.f32 %v7127_v47, %v7038_v36  ;;  %v6862_v63 = vpop.f32.mrf.mxu0  ;;  %v6951_v37 = vpop.f32.mrf.mxu1 }
 0xc75   : > { %v6952_v40 = vadd.f32 %v6951_v37, %v6862_v63 }
 0xc76   : > { %v7631_v44 = vpack.c.bf16 %v7128_v16, %v6950_v13 }
 0xc78   : > { %7780 = vst [vmem:[#allocation3 + $0x3b0] sm:$0xff] %v7631_v44 }
 0xc7b   : > { %v7040_v10 = vpop.f32.mrf.mxu2  ;;  %v7129_v29 = vpop.f32.mrf.mxu3 }
 0xc7c   : > { %v7130_v28 = vadd.f32 %v7129_v29, %v7040_v10  ;;  %v6865_v51 = vpop.f32.mrf.mxu0  ;;  %v6954_v41 = vpop.f32.mrf.mxu1 }
 0xc7d   : > { %v6955_v14 = vadd.f32 %v6954_v41, %v6865_v51 }
 0xc7e   : > { %v7636_v23 = vpack.c.bf16 %v7130_v28, %v6952_v40 }
 0xc7f   : > { %7180 = vmatmul.bf16.gmra.mxu0 %v16206_v50  ;;  %11898 = vmatmul.msk.bf16.gmra.mxu1 %vm5669_vm5, %v16208_v32 }
 0xc80   : > { %7781 = vst [vmem:[#allocation3 + $0x3f0] sm:$0xff] %v7636_v23  ;;  %7358 = vmatmul.bf16.gmra.mxu2 %v16206_v50  ;;  %11914 = vmatmul.msk.bf16.gmra.mxu3 %vm5669_vm5, %v16208_v32 }
 0xc83   : > { %v7043_v56 = vpop.f32.mrf.mxu2  ;;  %v7132_v39 = vpop.f32.mrf.mxu3 }
 0xc84   : > { %v7133_v8 = vadd.f32 %v7132_v39, %v7043_v56  ;;  %v6867_v20 = vpop.f32.mrf.mxu0  ;;  %v6956_v15 = vpop.f32.mrf.mxu1 }
 0xc85   : > { %v6957_v22 = vadd.f32 %v6956_v15, %v6867_v20 }
 0xc86   : > { %v7641_v19 = vpack.c.bf16 %v7133_v8, %v6955_v14 }
 0xc88   : > { %7782 = vst [vmem:[#allocation3 + $0x338] sm:$0xff] %v7641_v19 }
 0xc8b   : > { %v7045_v18 = vpop.f32.mrf.mxu2  ;;  %v7134_v6 = vpop.f32.mrf.mxu3 }
 0xc8c   : > { %v7135_v48 = vadd.f32 %v7134_v6, %v7045_v18  ;;  %v6870_v59 = vpop.f32.mrf.mxu0  ;;  %v6959_v1 = vpop.f32.mrf.mxu1 }
 0xc8d   : > { %v6960_v43 = vadd.f32 %v6959_v1, %v6870_v59 }
 0xc8e   : > { %v7646_v58 = vpack.c.bf16 %v7135_v48, %v6957_v22 }
 0xc8f   : > { %7185 = vmatmul.bf16.gmra.mxu0 %v16246_v49  ;;  %11899 = vmatmul.msk.bf16.gmra.mxu1 %vm5669_vm5, %v16248_v33 }
 0xc90   : > { %7783 = vst [vmem:[#allocation3 + $0x378] sm:$0xff] %v7646_v58  ;;  %7363 = vmatmul.bf16.gmra.mxu2 %v16246_v49  ;;  %11915 = vmatmul.msk.bf16.gmra.mxu3 %vm5669_vm5, %v16248_v33 }
 0xc93   : > { %v7048_v50 = vpop.f32.mrf.mxu2  ;;  %v7137_v32 = vpop.f32.mrf.mxu3 }
 0xc94   : > { %v7138_v5 = vadd.f32 %v7137_v32, %v7048_v50  ;;  %v6872_v55 = vpop.f32.mrf.mxu0  ;;  %v6961_v53 = vpop.f32.mrf.mxu1 }
 0xc95   : > { %v6962_v27 = vadd.f32 %v6961_v53, %v6872_v55 }
 0xc96   : > { %v7651_v7 = vpack.c.bf16 %v7138_v5, %v6960_v43 }
 0xc98   : > { %7784 = vst [vmem:[#allocation3 + $0x3b8] sm:$0xff] %v7651_v7 }
 0xc9b   : > { %v7050_v25 = vpop.f32.mrf.mxu2  ;;  %v7139_v30 = vpop.f32.mrf.mxu3 }
 0xc9c   : > { %v7140_v21 = vadd.f32 %v7139_v30, %v7050_v25  ;;  %v7151_v3 = vpop.f32.mrf.mxu0  ;;  %v7240_v54 = vpop.f32.mrf.mxu1 }
 0xc9d   : > { %v7241_v11 = vadd.f32 %v7240_v54, %v7151_v3 }
 0xc9e   : > { %v7656_v0 = vpack.c.bf16 %v7140_v21, %v6962_v27 }
 0xc9f   : > { %7190 = vmatmul.bf16.gmra.mxu0 %v16290_v9  ;;  %11900 = vmatmul.msk.bf16.gmra.mxu1 %vm5669_vm5, %v16292_v62 }
 0xca0   : > { %7785 = vst [vmem:[#allocation3 + $0x3f8] sm:$0xff] %v7656_v0  ;;  %7368 = vmatmul.bf16.gmra.mxu2 %v16290_v9  ;;  %11916 = vmatmul.msk.bf16.gmra.mxu3 %vm5669_vm5, %v16292_v62 }
 0xca3   : > { %v7329_v49 = vpop.f32.mrf.mxu2  ;;  %v7418_v33 = vpop.f32.mrf.mxu3 }
 0xca4   : > { %v7419_v2 = vadd.f32 %v7418_v33, %v7329_v49  ;;  %v7153_v31 = vpop.f32.mrf.mxu0  ;;  %v7242_v34 = vpop.f32.mrf.mxu1 }
 0xca5   : > { %v7243_v16 = vadd.f32 %v7242_v34, %v7153_v31 }
 0xca6   : > { %v7502_v36 = vpack.c.bf16 %v7419_v2, %v7241_v11 }
 0xca8   : > { %7786 = vst [vmem:[#allocation3 + $0x400] sm:$0xff] %v7502_v36 }
 0xcab   : > { %v7331_v47 = vpop.f32.mrf.mxu2  ;;  %v7420_v13 = vpop.f32.mrf.mxu3 }
 0xcac   : > { %v7421_v63 = vadd.f32 %v7420_v13, %v7331_v47  ;;  %v7156_v37 = vpop.f32.mrf.mxu0  ;;  %v7245_v44 = vpop.f32.mrf.mxu1 }
 0xcad   : > { %v7246_v29 = vadd.f32 %v7245_v44, %v7156_v37 }
 0xcae   : > { %v7507_v10 = vpack.c.bf16 %v7421_v63, %v7243_v16 }
 0xcaf   : > { %7195 = vmatmul.bf16.gmra.mxu0 %v16318_v57  ;;  %11901 = vmatmul.msk.bf16.gmra.mxu1 %vm5669_vm5, %v16320_v60  ;;  %v12462_v53 = vld [vmem:[#allocation3 + $0x400] sm:$0xf]  ;;  %v13076_v7 = vld [vmem:[#allocation3 + $0x404] sm:$0xf] }
 0xcb0   : > { %7787 = vst [vmem:[#allocation3 + $0x440] sm:$0xff] %v7507_v10  ;;  %7373 = vmatmul.bf16.gmra.mxu2 %v16318_v57  ;;  %11917 = vmatmul.msk.bf16.gmra.mxu3 %vm5669_vm5, %v16320_v60 }
 0xcb3   : > { %v7334_v9 = vpop.f32.mrf.mxu2  ;;  %v7423_v62 = vpop.f32.mrf.mxu3 }
 0xcb4   : > { %v7424_v40 = vadd.f32 %v7423_v62, %v7334_v9  ;;  %v7158_v28 = vpop.f32.mrf.mxu0  ;;  %v7247_v51 = vpop.f32.mrf.mxu1 }
 0xcb5   : > { %v7248_v39 = vadd.f32 %v7247_v51, %v7158_v28 }
 0xcb6   : > { %v7512_v41 = vpack.c.bf16 %v7424_v40, %v7246_v29 }
 0xcb7   : > { %v13084_v5 = vld [vmem:[#allocation3 + $0x43c] sm:$0xf0]  ;;  %v12464_v55 = vld [vmem:[#allocation3 + $0x440] sm:$0xf0] }
 0xcb8   : > { %7788 = vst [vmem:[#allocation3 + $0x480] sm:$0xff] %v7512_v41  ;;  %v12463_v3 = vor.u32 %v13084_v5, %v12462_v53  ;;  %v12467_v54 = vor.u32 %v13076_v7, %v12464_v55 }
 0xcbb   : > { %v7336_v23 = vpop.f32.mrf.mxu2  ;;  %v7425_v56 = vpop.f32.mrf.mxu3 }
 0xcbc   : > { %v7426_v14 = vadd.f32 %v7425_v56, %v7336_v23  ;;  %v7161_v8 = vpop.f32.mrf.mxu0  ;;  %v7250_v20 = vpop.f32.mrf.mxu1 }
 0xcbd   : > { %v7251_v19 = vadd.f32 %v7250_v20, %v7161_v8 }
 0xcbe   : > { %v7517_v15 = vpack.c.bf16 %v7426_v14, %v7248_v39 }
 0xcbf   : > { %7200 = vmatmul.bf16.gmra.mxu0 %v16340_v61  ;;  %11902 = vmatmul.msk.bf16.gmra.mxu1 %vm5669_vm5, %v16342_v12  ;;  %v12526_v59 = vld [vmem:[#allocation3 + $0x480] sm:$0xf]  ;;  %v13092_v58 = vld [vmem:[#allocation3 + $0x484] sm:$0xf] }
 0xcc0   : > { %7789 = vst [vmem:[#allocation3 + $0x4c0] sm:$0xff] %v7517_v15  ;;  %7378 = vmatmul.bf16.gmra.mxu2 %v16340_v61  ;;  %11918 = vmatmul.msk.bf16.gmra.mxu3 %vm5669_vm5, %v16342_v12 }
 0xcc3   : > { %v7339_v57 = vpop.f32.mrf.mxu2  ;;  %v7428_v60 = vpop.f32.mrf.mxu3 }
 0xcc4   : > { %v7429_v18 = vadd.f32 %v7428_v60, %v7339_v57  ;;  %v7163_v6 = vpop.f32.mrf.mxu0  ;;  %v7252_v22 = vpop.f32.mrf.mxu1 }
 0xcc5   : > { %v7253_v25 = vadd.f32 %v7252_v22, %v7163_v6 }
 0xcc6   : > { %v7522_v48 = vpack.c.bf16 %v7429_v18, %v7251_v19 }
 0xcc7   : > { %v13100_v1 = vld [vmem:[#allocation3 + $0x4bc] sm:$0xf0]  ;;  %v12528_v50 = vld [vmem:[#allocation3 + $0x4c0] sm:$0xf0] }
 0xcc8   : > { %7790 = vst [vmem:[#allocation3 + $0x408] sm:$0xff] %v7522_v48  ;;  %v12527_v32 = vor.u32 %v13100_v1, %v12526_v59  ;;  %v12531_v43 = vor.u32 %v13092_v58, %v12528_v50 }
 0xcca   : > { %8887 = vmatpush.bf16.msrb.mxu1 %v12527_v32  ;;  %8935 = vmatpush.bf16.msrb.mxu3 %v12531_v43 }
 0xccb   : > { %v7341_v61 = vpop.f32.mrf.mxu2  ;;  %v7430_v12 = vpop.f32.mrf.mxu3 }
 0xccc   : > { %v7431_v30 = vadd.f32 %v7430_v12, %v7341_v61  ;;  %v7166_v27 = vpop.f32.mrf.mxu0  ;;  %v7255_v21 = vpop.f32.mrf.mxu1 }
 0xccd   : > { %v7256_v11 = vadd.f32 %v7255_v21, %v7166_v27 }
 0xcce   : > { %v7527_v0 = vpack.c.bf16 %v7431_v30, %v7253_v25  ;;  %8888 = vmatpush.bf16.msrb.mxu1 %v12463_v3  ;;  %8936 = vmatpush.bf16.msrb.mxu3 %v12467_v54 }
 0xccf   : > { %7205 = vmatmul.bf16.gmra.mxu0 %v16356_v45  ;;  %11903 = vmatmul.msk.bf16.gmra.mxu1 %vm5669_vm5, %v16358_v46  ;;  %v12470_v15 = vld [vmem:[#allocation3 + $0x408] sm:$0xf]  ;;  %v13077_v57 = vld [vmem:[#allocation3 + $0x40c] sm:$0xf] }
 0xcd0   : > { %7791 = vst [vmem:[#allocation3 + $0x448] sm:$0xff] %v7527_v0  ;;  %7383 = vmatmul.bf16.gmra.mxu2 %v16356_v45  ;;  %11919 = vmatmul.msk.bf16.gmra.mxu3 %vm5669_vm5, %v16358_v46 }
 0xcd3   : > { %v7344_v49 = vpop.f32.mrf.mxu2  ;;  %v7433_v33 = vpop.f32.mrf.mxu3 }
 0xcd4   : > { %v7434_v2 = vadd.f32 %v7433_v33, %v7344_v49  ;;  %v7168_v31 = vpop.f32.mrf.mxu0  ;;  %v7257_v34 = vpop.f32.mrf.mxu1 }
 0xcd5   : > { %v7258_v16 = vadd.f32 %v7257_v34, %v7168_v31 }
 0xcd6   : > { %v7532_v36 = vpack.c.bf16 %v7434_v2, %v7256_v11 }
 0xcd7   : > { %v13085_v8 = vld [vmem:[#allocation3 + $0x444] sm:$0xf0]  ;;  %v12472_v20 = vld [vmem:[#allocation3 + $0x448] sm:$0xf0] }
 0xcd8   : > { %7792 = vst [vmem:[#allocation3 + $0x488] sm:$0xff] %v7532_v36  ;;  %v12471_v22 = vor.u32 %v13085_v8, %v12470_v15  ;;  %v12475_v48 = vor.u32 %v13077_v57, %v12472_v20  ;;  %v12414_v20 = vld [vmem:[#allocation3 + $0x390] sm:$0xf]  ;;  %v13062_v57 = vld [vmem:[#allocation3 + $0x394] sm:$0xf] }
 0xcdb   : > { %v7346_v47 = vpop.f32.mrf.mxu2  ;;  %v7435_v13 = vpop.f32.mrf.mxu3 }
 0xcdc   : > { %v7436_v63 = vadd.f32 %v7435_v13, %v7346_v47  ;;  %v7171_v37 = vpop.f32.mrf.mxu0  ;;  %v7260_v44 = vpop.f32.mrf.mxu1 }
 0xcdd   : > { %v7261_v9 = vadd.f32 %v7260_v44, %v7171_v37 }
 0xcde   : > { %v7537_v10 = vpack.c.bf16 %v7436_v63, %v7258_v16 }
 0xcdf   : > { %7210 = vmatmul.bf16.gmra.mxu0 %v16378_v35  ;;  %11904 = vmatmul.msk.bf16.gmra.mxu1 %vm5669_vm5, %v16380_v52  ;;  %v12534_v51 = vld [vmem:[#allocation3 + $0x488] sm:$0xf]  ;;  %v13093_v23 = vld [vmem:[#allocation3 + $0x48c] sm:$0xf] }
 0xce0   : > { %7793 = vst [vmem:[#allocation3 + $0x4c8] sm:$0xff] %v7537_v10  ;;  %7388 = vmatmul.bf16.gmra.mxu2 %v16378_v35  ;;  %11920 = vmatmul.msk.bf16.gmra.mxu3 %vm5669_vm5, %v16380_v52  ;;  %v11926_v10 = vld [vmem:[%s18578_s4] sm:$0xf] }
 0xce3   : > { %v7349_v45 = vpop.f32.mrf.mxu2  ;;  %v7438_v46 = vpop.f32.mrf.mxu3 }
 0xce4   : > { %v7439_v62 = vadd.f32 %v7438_v46, %v7349_v45  ;;  %v7173_v29 = vpop.f32.mrf.mxu0  ;;  %v7262_v40 = vpop.f32.mrf.mxu1  ;;  %v12943_v45 = vld [vmem:[%s18578_s4 + $0x4] sm:$0xf0] }
 0xce5   : > { %v7263_v60 = vadd.f32 %v7262_v40, %v7173_v29 }
 0xce6   : > { %v7542_v28 = vpack.c.bf16 %v7439_v62, %v7261_v9  ;;  %v17444_v62 = vor.u32 %v12943_v45, %v11926_v10 }
 0xce7   : > { %v13101_v41 = vld [vmem:[#allocation3 + $0x4c4] sm:$0xf0]  ;;  %v12536_v56 = vld [vmem:[#allocation3 + $0x4c8] sm:$0xf0] }
 0xce8   : > { %7794 = vst [vmem:[#allocation3 + $0x410] sm:$0xff] %v7542_v28  ;;  %v12535_v39 = vor.u32 %v13101_v41, %v12534_v51  ;;  %v12539_v14 = vor.u32 %v13093_v23, %v12536_v56  ;;  %v13070_v23 = vld [vmem:[#allocation3 + $0x3cc] sm:$0xf0] }
 0xcea   : > { %8983 = vmatpush.bf16.msra.mxu1 %v12535_v39  ;;  %9031 = vmatpush.bf16.msra.mxu3 %v12539_v14  ;;  %v12416_v39 = vld [vmem:[#allocation3 + $0x3d0] sm:$0xf0] }
 0xceb   : > { %v7351_v35 = vpop.f32.mrf.mxu2  ;;  %v7440_v52 = vpop.f32.mrf.mxu3 }
 0xcec   : > { %v7441_v19 = vadd.f32 %v7440_v52, %v7351_v35  ;;  %v7176_v18 = vpop.f32.mrf.mxu0  ;;  %v7265_v6 = vpop.f32.mrf.mxu1  ;;  %v12415_v52 = vor.u32 %v13070_v23, %v12414_v20  ;;  %v12094_v20 = vld [vmem:[#allocation3 + $0x110] sm:$0xf] }
 0xced   : > { %v7266_v50 = vadd.f32 %v7265_v6, %v7176_v18  ;;  %v13054_v6 = vld [vmem:[#allocation3 + $0x34c] sm:$0xf0] }
 0xcee   : > { %v7547_v59 = vpack.c.bf16 %v7441_v19, %v7263_v60  ;;  %8984 = vmatpush.bf16.msra.mxu1 %v12471_v22  ;;  %9032 = vmatpush.bf16.msra.mxu3 %v12475_v48  ;;  %v12419_v19 = vor.u32 %v13062_v57, %v12416_v39  ;;  %v12352_v48 = vld [vmem:[#allocation3 + $0x350] sm:$0xf0] }
 0xcef   : > { %7215 = vmatmul.bf16.gmra.mxu0 %v16418_v42  ;;  %11905 = vmatmul.msk.bf16.gmra.mxu1 %vm5669_vm5, %v16420_v38  ;;  %v12982_v57 = vld [vmem:[#allocation3 + $0x114] sm:$0xf] }
 0xcf0   : > { %7795 = vst [vmem:[#allocation3 + $0x450] sm:$0xff] %v7547_v59  ;;  %7393 = vmatmul.bf16.gmra.mxu2 %v16418_v42  ;;  %11921 = vmatmul.msk.bf16.gmra.mxu3 %vm5669_vm5, %v16420_v38 }
 0xcf3   : > { %v7354_v1 = vpop.f32.mrf.mxu2  ;;  %v7443_v58 = vpop.f32.mrf.mxu3 }
 0xcf4   : > { %v7444_v32 = vadd.f32 %v7443_v58, %v7354_v1  ;;  %v7178_v43 = vpop.f32.mrf.mxu0  ;;  %v7267_v5 = vpop.f32.mrf.mxu1  ;;  %v12350_v1 = vld [vmem:[#allocation3 + $0x310] sm:$0xf] }
 0xcf5   : > { %v7268_v53 = vadd.f32 %v7267_v5, %v7178_v43  ;;  %v12478_v58 = vld [vmem:[#allocation3 + $0x410] sm:$0xf]  ;;  %v12351_v43 = vor.u32 %v13054_v6, %v12350_v1 }
 0xcf6   : > { %v7552_v55 = vpack.c.bf16 %v7444_v32, %v7266_v50 }
 0xcf7   : > { %v13086_v22 = vld [vmem:[#allocation3 + $0x44c] sm:$0xf0]  ;;  %v12480_v59 = vld [vmem:[#allocation3 + $0x450] sm:$0xf0] }
 0xcf8   : > { %7796 = vst [vmem:[#allocation3 + $0x490] sm:$0xff] %v7552_v55  ;;  %v12479_v5 = vor.u32 %v13086_v22, %v12478_v58  ;;  %v13046_v55 = vld [vmem:[#allocation3 + $0x314] sm:$0xf]  ;;  %v12030_v58 = vld [vmem:[#allocation3 + $0x90] sm:$0xf] }
 0xcfb   : > { %v7356_v61 = vpop.f32.mrf.mxu2  ;;  %v7445_v12 = vpop.f32.mrf.mxu3 }
 0xcfc   : > { %v7446_v7 = vadd.f32 %v7445_v12, %v7356_v61  ;;  %v7181_v25 = vpop.f32.mrf.mxu0  ;;  %v7270_v30 = vpop.f32.mrf.mxu1  ;;  %v13078_v61 = vld [vmem:[#allocation3 + $0x414] sm:$0xf] }
 0xcfd   : > { %v7271_v21 = vadd.f32 %v7270_v30, %v7181_v25  ;;  %v12483_v25 = vor.u32 %v13078_v61, %v12480_v59  ;;  %v12032_v59 = vld [vmem:[#allocation3 + $0xd0] sm:$0xf0] }
 0xcfe   : > { %v7557_v27 = vpack.c.bf16 %v7446_v7, %v7268_v53  ;;  %v12355_v7 = vor.u32 %v13046_v55, %v12352_v48  ;;  %v12974_v48 = vld [vmem:[#allocation3 + $0xcc] sm:$0xf0]  ;;  %v12947_v55 = vld [vmem:[%s18578_s4 + $0x24] sm:$0xf0] }
 0xcff   : > { %7220 = vmatmul.bf16.gmra.mxu0 %v16524_v24  ;;  %11906 = vmatmul.msk.bf16.gmra.mxu1 %vm5669_vm5, %v16526_v4  ;;  %v12542_v35 = vld [vmem:[#allocation3 + $0x490] sm:$0xf]  ;;  %v13094_v60 = vld [vmem:[#allocation3 + $0x494] sm:$0xf] }
 0xd00   : > { %7797 = vst [vmem:[#allocation3 + $0x4d0] sm:$0xff] %v7557_v27  ;;  %7398 = vmatmul.bf16.gmra.mxu2 %v16524_v24  ;;  %11922 = vmatmul.msk.bf16.gmra.mxu3 %vm5669_vm5, %v16526_v4 }
 0xd03   : > { %v7359_v42 = vpop.f32.mrf.mxu2  ;;  %v7448_v38 = vpop.f32.mrf.mxu3 }
 0xd04   : > { %v7449_v3 = vadd.f32 %v7448_v38, %v7359_v42  ;;  %v7183_v54 = vpop.f32.mrf.mxu0  ;;  %v7272_v0 = vpop.f32.mrf.mxu1  ;;  %v13038_v42 = vld [vmem:[#allocation3 + $0x2cc] sm:$0xf0]  ;;  %v7984_v38 = vld [vmem:[%s18579_s5] sm:$0xff] }
 0xd05   : > { %v7273_v2 = vadd.f32 %v7272_v0, %v7183_v54  ;;  %v12286_v54 = vld [vmem:[#allocation3 + $0x290] sm:$0xf]  ;;  %7992 = vperm.xlu2 %13124, %v7984_v38   ;;  %v12950_v38 = vld [vmem:[#allocation3 + $0x14] sm:$0xf] }
 0xd06   : > { %v7562_v49 = vpack.c.bf16 %v7449_v3, %v7271_v21  ;;  %v12288_v21 = vld [vmem:[#allocation3 + $0x2d0] sm:$0xf0]  ;;  %v13022_v0 = vld [vmem:[#allocation3 + $0x24c] sm:$0xf0] }
 0xd07   : > { %v13102_v56 = vld [vmem:[#allocation3 + $0x4cc] sm:$0xf0]  ;;  %v12544_v14 = vld [vmem:[#allocation3 + $0x4d0] sm:$0xf0] }
 0xd08   : > { %7798 = vst [vmem:[#allocation3 + $0x418] sm:$0xff] %v7562_v49  ;;  %v12543_v15 = vor.u32 %v13102_v56, %v12542_v35  ;;  %v12547_v18 = vor.u32 %v13094_v60, %v12544_v14  ;;  %v12287_v49 = vor.u32 %v13038_v42, %v12286_v54  ;;  %v12998_v56 = vld [vmem:[#allocation3 + $0x194] sm:$0xf]  ;;  %v12990_v14 = vld [vmem:[#allocation3 + $0x14c] sm:$0xf0] }
 0xd0b   : > { %v7361_v33 = vpop.f32.mrf.mxu2  ;;  %v7450_v11 = vpop.f32.mrf.mxu3 }
 0xd0c   : > { %v7451_v31 = vadd.f32 %v7450_v11, %v7361_v33  ;;  %v7186_v34 = vpop.f32.mrf.mxu0  ;;  %v7275_v36 = vpop.f32.mrf.mxu1  ;;  %v13030_v33 = vld [vmem:[#allocation3 + $0x294] sm:$0xf]  ;;  %v11934_v11 = vld [vmem:[%s18578_s4 + $0x10] sm:$0xf] }
 0xd0d   : > { %v7276_v13 = vadd.f32 %v7275_v36, %v7186_v34  ;;  %v12944_v34 = vld [vmem:[%s18578_s4 + $0x14] sm:$0xf]  ;;  %v11936_v36 = vld [vmem:[%s18578_s4 + $0x18] sm:$0xf0] }
 0xd0e   : > { %v7567_v47 = vpack.c.bf16 %v7451_v31, %v7273_v2  ;;  %v12945_v2 = vld [vmem:[%s18578_s4 + $0x14] sm:$0xf0]  ;;  %v12291_v31 = vor.u32 %v13030_v33, %v12288_v21 }
 0xd0f   : > { %7225 = vmatmul.bf16.gmra.mxu0 %v16534_v26  ;;  %11907 = vmatmul.msk.bf16.gmra.mxu1 %vm5669_vm5, %v16536_v17 }
 0xd10   : > { %7799 = vst [vmem:[#allocation3 + $0x458] sm:$0xff] %v7567_v47  ;;  %7403 = vmatmul.bf16.gmra.mxu2 %v16534_v26  ;;  %11923 = vmatmul.msk.bf16.gmra.mxu3 %vm5669_vm5, %v16536_v17  ;;  %v12942_v26 = vld [vmem:[%s18578_s4 + $0x4] sm:$0xf]  ;;  %v11928_v17 = vld [vmem:[%s18578_s4 + $0x8] sm:$0xf0] }
 0xd11   : > { %v17446_v29 = vor.u32 %v12942_v26, %v11928_v17  ;;  %v12224_v47 = vld [vmem:[#allocation3 + $0x250] sm:$0xf0] }
 0xd13   : > { %v7364_v24 = vpop.f32.mrf.mxu2  ;;  %v7453_v4 = vpop.f32.mrf.mxu3 }
 0xd14   : > { %v7454_v16 = vadd.f32 %v7453_v4, %v7364_v24  ;;  %v7188_v63 = vpop.f32.mrf.mxu0  ;;  %v7277_v37 = vpop.f32.mrf.mxu1  ;;  %v12222_v24 = vld [vmem:[#allocation3 + $0x210] sm:$0xf] }
 0xd15   : > { %v7278_v40 = vadd.f32 %v7277_v37, %v7188_v63  ;;  %v13014_v63 = vld [vmem:[#allocation3 + $0x214] sm:$0xf]  ;;  %v17469_v37 = vor.u32 %v12945_v2, %v11934_v11  ;;  %v7988_v2 = vld [vmem:[%s18579_s5 + $0x20] sm:$0xff] }
 0xd16   : > { %v7572_v44 = vpack.c.bf16 %v7454_v16, %v7276_v13  ;;  %v12223_v16 = vor.u32 %v13022_v0, %v12222_v24  ;;  %v12227_v26 = vor.u32 %v13014_v63, %v12224_v47 }
 0xd18   : > { %7800 = vst [vmem:[#allocation3 + $0x498] sm:$0xff] %v7572_v44  ;;  %v17471_v44 = vor.u32 %v12944_v34, %v11936_v36 }
 0xd1b   : > { %v7366_v46 = vpop.f32.mrf.mxu2  ;;  %v7455_v9 = vpop.f32.mrf.mxu3 }
 0xd1c   : > { %v7456_v28 = vadd.f32 %v7455_v9, %v7366_v46  ;;  %v7191_v51 = vpop.f32.mrf.mxu0  ;;  %v7280_v41 = vpop.f32.mrf.mxu1  ;;  %v13006_v9 = vld [vmem:[#allocation3 + $0x1cc] sm:$0xf0] }
 0xd1d   : > { %v7281_v12 = vadd.f32 %v7280_v41, %v7191_v51  ;;  %v12158_v51 = vld [vmem:[#allocation3 + $0x190] sm:$0xf]  ;;  %v7985_v41 = vld [vmem:[%s18579_s5 + $0x8] sm:$0xff] }
 0xd1e   : > { %v7577_v8 = vpack.c.bf16 %v7456_v28, %v7278_v40  ;;  %v12160_v40 = vld [vmem:[#allocation3 + $0x1d0] sm:$0xf0]  ;;  %v12159_v23 = vor.u32 %v13006_v9, %v12158_v51  ;;  %7997 = vperm.xlu2 %13124, %v7985_v41   ;;  %v13071_v9 = vld [vmem:[#allocation3 + $0x3d4] sm:$0xf0] }
 0xd1f   : > { %8865 = vmatmul.bf16.vlgmr.msrb.gmra.mxu0 %v17444_v62  ;;  %12588 = vmatmul.msk.bf16.vlgmr.msrb.gmra.mxu1 %vm8847_vm6, %v17446_v29  ;;  %v12163_v39 = vor.u32 %v12998_v56, %v12160_v40  ;;  %v12550_v56 = vld [vmem:[#allocation3 + $0x498] sm:$0xf] }
 0xd20   : > { %7801 = vst [vmem:[#allocation3 + $0x4d8] sm:$0xff] %v7577_v8  ;;  %8913 = vmatmul.bf16.vlgmr.msrb.gmra.mxu2 %v17444_v62  ;;  %12591 = vmatmul.msk.bf16.vlgmr.msrb.gmra.mxu3 %vm8847_vm6, %v17446_v29  ;;  %v12096_v8 = vld [vmem:[#allocation3 + $0x150] sm:$0xf0] }
 0xd21   : > { %9049 = vmatpush.bf16.msrb.mxu0 %v12415_v52  ;;  %9079 = vmatpush.bf16.msrb.mxu1 %v12543_v15  ;;  %v12095_v15 = vor.u32 %v12990_v14, %v12094_v20  ;;  %v13095_v20 = vld [vmem:[#allocation3 + $0x49c] sm:$0xf] }
 0xd22   : > { %9097 = vmatpush.bf16.msrb.mxu2 %v12419_v19  ;;  %9127 = vmatpush.bf16.msrb.mxu3 %v12547_v18  ;;  %v12099_v18 = vor.u32 %v12982_v57, %v12096_v8  ;;  %v13063_v8 = vld [vmem:[#allocation3 + $0x39c] sm:$0xf]  ;;  %v13087_v57 = vld [vmem:[#allocation3 + $0x454] sm:$0xf0] }
 0xd23   : > { %v7369_v50 = vpop.f32.mrf.mxu2  ;;  %v7458_v32 = vpop.f32.mrf.mxu3 }
 0xd24   : > { %v7459_v53 = vadd.f32 %v7458_v32, %v7369_v50  ;;  %v7193_v30 = vpop.f32.mrf.mxu0  ;;  %v7282_v27 = vpop.f32.mrf.mxu1  ;;  %v12958_v50 = vld [vmem:[#allocation3 + $0x4c] sm:$0xf0]  ;;  %v12031_v32 = vor.u32 %v12974_v48, %v12030_v58  ;;  %v13047_v58 = vld [vmem:[#allocation3 + $0x31c] sm:$0xf] }
 0xd25   : > { %9050 = vmatpush.bf16.msrb.mxu0 %v12351_v43  ;;  %9080 = vmatpush.bf16.msrb.mxu1 %v12479_v5  ;;  %v7283_v10 = vadd.f32 %v7282_v27, %v7193_v30  ;;  %v12966_v43 = vld [vmem:[#allocation3 + $0x94] sm:$0xf]  ;;  %v11942_v5 = vld [vmem:[%s18578_s4 + $0x20] sm:$0xf] }
 0xd26   : > { %v7582_v3 = vpack.c.bf16 %v7459_v53, %v7281_v12  ;;  %9098 = vmatpush.bf16.msrb.mxu2 %v12355_v7  ;;  %9128 = vmatpush.bf16.msrb.mxu3 %v12483_v25  ;;  %v12035_v61 = vor.u32 %v12966_v43, %v12032_v59  ;;  %v12946_v12 = vld [vmem:[%s18578_s4 + $0x24] sm:$0xf]  ;;  %v11944_v53 = vld [vmem:[%s18578_s4 + $0x28] sm:$0xf0]  ;;  %v11968_v7 = vld [vmem:[#allocation3 + $0x50] sm:$0xf0]  ;;  %v17494_v21 = vor.u32 %v12947_v55, %v11942_v5 }
 0xd27   : > { %v11966_v25 = vld [vmem:[#allocation3 + $0x10] sm:$0xf]  ;;  %8012 = vperm.xlu2 %13124, %v7988_v2   ;;  %v13103_v40 = vld [vmem:[#allocation3 + $0x4d4] sm:$0xf0]  ;;  %v12552_v51 = vld [vmem:[#allocation3 + $0x4d8] sm:$0xf0] }
 0xd28   : > { %7802 = vst [vmem:[#allocation3 + $0x420] sm:$0xff] %v7582_v3  ;;  %v11967_v42 = vor.u32 %v12958_v50, %v11966_v25  ;;  %v17496_v3 = vor.u32 %v12946_v12, %v11944_v53  ;;  %v12551_v14 = vor.u32 %v13103_v40, %v12550_v56  ;;  %v13079_v50 = vld [vmem:[#allocation3 + $0x41c] sm:$0xf]  ;;  %v13039_v53 = vld [vmem:[#allocation3 + $0x2d4] sm:$0xf0] }
 0xd29   : > { %9051 = vmatpush.bf16.msrb.mxu0 %v12287_v49  ;;  %v11971_v49 = vor.u32 %v12950_v38, %v11968_v7  ;;  %v12296_v7 = vld [vmem:[#allocation3 + $0x2d8] sm:$0xf0]  ;;  %v12102_v40 = vld [vmem:[#allocation3 + $0x118] sm:$0xf] }
 0xd2a   : > { %9099 = vmatpush.bf16.msrb.mxu2 %v12291_v31 }
 0xd2b   : > { %v7371_v4 = vpop.f32.mrf.mxu2  ;;  %v7460_v13 = vpop.f32.mrf.mxu3 }
 0xd2c   : > { %v7461_v45 = vadd.f32 %v7460_v13, %v7371_v4  ;;  %v7196_v17 = vpop.f32.mrf.mxu0  ;;  %v7285_v46 = vpop.f32.mrf.mxu1 }
 0xd2d   : > { %9052 = vmatpush.bf16.msrb.mxu0 %v12223_v16  ;;  %v7286_v60 = vadd.f32 %v7285_v46, %v7196_v17 }
 0xd2e   : > { %v7587_v28 = vpack.c.bf16 %v7461_v45, %v7283_v10  ;;  %9100 = vmatpush.bf16.msrb.mxu2 %v12227_v26 }
 0xd2f   : > { %8870 = vmatmul.bf16.gmra.mxu0 %v17469_v37  ;;  %12589 = vmatmul.msk.bf16.gmra.mxu1 %vm8847_vm6, %v17471_v44 }
 0xd30   : > { %7803 = vst [vmem:[#allocation3 + $0x460] sm:$0xff] %v7587_v28  ;;  %8918 = vmatmul.bf16.gmra.mxu2 %v17469_v37  ;;  %12592 = vmatmul.msk.bf16.gmra.mxu3 %vm8847_vm6, %v17471_v44  ;;  %v12424_v28 = vld [vmem:[#allocation3 + $0x3d8] sm:$0xf0] }
 0xd31   : > { %9053 = vmatpush.bf16.msrb.mxu0 %v12159_v23  ;;  %v12422_v23 = vld [vmem:[#allocation3 + $0x398] sm:$0xf] }
 0xd32   : > { %9101 = vmatpush.bf16.msrb.mxu2 %v12163_v39  ;;  %v12423_v39 = vor.u32 %v13071_v9, %v12422_v23  ;;  %v12104_v9 = vld [vmem:[#allocation3 + $0x158] sm:$0xf0] }
 0xd33   : > { %v7374_v35 = vpop.f32.mrf.mxu2  ;;  %v7463_v52 = vpop.f32.mrf.mxu3  ;;  %v12983_v23 = vld [vmem:[#allocation3 + $0x11c] sm:$0xf] }
 0xd34   : > { %v7464_v19 = vadd.f32 %v7463_v52, %v7374_v35  ;;  %v7198_v6 = vpop.f32.mrf.mxu0  ;;  %v7287_v22 = vpop.f32.mrf.mxu1  ;;  %v12427_v35 = vor.u32 %v13063_v8, %v12424_v28  ;;  %v12555_v52 = vor.u32 %v13095_v20, %v12552_v51 }
 0xd35   : > { %9054 = vmatpush.bf16.msrb.mxu0 %v12095_v15  ;;  %v7288_v54 = vadd.f32 %v7287_v22, %v7198_v6  ;;  %v13055_v15 = vld [vmem:[#allocation3 + $0x354] sm:$0xf0] }
 0xd36   : > { %v7592_v1 = vpack.c.bf16 %v7464_v19, %v7286_v60  ;;  %9102 = vmatpush.bf16.msrb.mxu2 %v12099_v18  ;;  %v12360_v60 = vld [vmem:[#allocation3 + $0x358] sm:$0xf0]  ;;  %v12358_v18 = vld [vmem:[#allocation3 + $0x318] sm:$0xf] }
 0xd37   : > { %v12488_v19 = vld [vmem:[#allocation3 + $0x458] sm:$0xf0]  ;;  %v12486_v6 = vld [vmem:[#allocation3 + $0x418] sm:$0xf]  ;;  %v12359_v59 = vor.u32 %v13055_v15, %v12358_v18  ;;  %v12363_v5 = vor.u32 %v13047_v58, %v12360_v60 }
 0xd38   : > { %7804 = vst [vmem:[#allocation3 + $0x4a0] sm:$0xff] %v7592_v1  ;;  %v12487_v1 = vor.u32 %v13087_v57, %v12486_v6  ;;  %v12491_v55 = vor.u32 %v13079_v50, %v12488_v19  ;;  %v12038_v57 = vld [vmem:[#allocation3 + $0x98] sm:$0xf]  ;;  %v12967_v19 = vld [vmem:[#allocation3 + $0x9c] sm:$0xf] }
 0xd39   : > { %9055 = vmatpush.bf16.msrb.mxu0 %v12031_v32  ;;  %v12959_v6 = vld [vmem:[#allocation3 + $0x54] sm:$0xf0]  ;;  %v12951_v50 = vld [vmem:[#allocation3 + $0x1c] sm:$0xf] }
 0xd3a   : > { %9103 = vmatpush.bf16.msrb.mxu2 %v12035_v61 }
 0xd3b   : > { %v7376_v30 = vpop.f32.mrf.mxu2  ;;  %v7465_v27 = vpop.f32.mrf.mxu3 }
 0xd3c   : > { %v7466_v0 = vadd.f32 %v7465_v27, %v7376_v30  ;;  %v7201_v33 = vpop.f32.mrf.mxu0  ;;  %v7290_v11 = vpop.f32.mrf.mxu1  ;;  %v12294_v30 = vld [vmem:[#allocation3 + $0x298] sm:$0xf] }
 0xd3d   : > { %9056 = vmatpush.bf16.msrb.mxu0 %v11967_v42  ;;  %v7291_v47 = vadd.f32 %v7290_v11, %v7201_v33  ;;  %v12295_v27 = vor.u32 %v13039_v53, %v12294_v30  ;;  %v13031_v42 = vld [vmem:[#allocation3 + $0x29c] sm:$0xf] }
 0xd3e   : > { %v7597_v31 = vpack.c.bf16 %v7466_v0, %v7288_v54  ;;  %9104 = vmatpush.bf16.msrb.mxu2 %v11971_v49  ;;  %v12299_v38 = vor.u32 %v13031_v42, %v12296_v7  ;;  %v13023_v54 = vld [vmem:[#allocation3 + $0x254] sm:$0xf0]  ;;  %v12232_v0 = vld [vmem:[#allocation3 + $0x258] sm:$0xf0] }
 0xd3f   : > { %8875 = vmatmul.bf16.gmra.mxu0 %v17494_v21  ;;  %12590 = vmatmul.msk.bf16.gmra.mxu1 %vm8847_vm6, %v17496_v3  ;;  %v12230_v49 = vld [vmem:[#allocation3 + $0x218] sm:$0xf] }
 0xd40   : > { %7805 = vst [vmem:[#allocation3 + $0x4e0] sm:$0xff] %v7597_v31  ;;  %8923 = vmatmul.bf16.gmra.mxu2 %v17494_v21  ;;  %12593 = vmatmul.msk.bf16.gmra.mxu3 %vm8847_vm6, %v17496_v3  ;;  %v12231_v2 = vor.u32 %v13023_v54, %v12230_v49  ;;  %v13015_v31 = vld [vmem:[#allocation3 + $0x21c] sm:$0xf] }
 0xd43   : > { %v7379_v34 = vpop.f32.mrf.mxu2  ;;  %v7468_v36 = vpop.f32.mrf.mxu3 }
 0xd44   : > { %v7469_v24 = vadd.f32 %v7468_v36, %v7379_v34  ;;  %v7203_v4 = vpop.f32.mrf.mxu0  ;;  %v7292_v13 = vpop.f32.mrf.mxu1 }
 0xd45   : > { %v7293_v45 = vadd.f32 %v7292_v13, %v7203_v4  ;;  %v13007_v13 = vld [vmem:[#allocation3 + $0x1d4] sm:$0xf0] }
 0xd46   : > { %v7602_v16 = vpack.c.bf16 %v7469_v24, %v7291_v47  ;;  %v12235_v47 = vor.u32 %v13015_v31, %v12232_v0  ;;  %v13072_v31 = vld [vmem:[#allocation3 + $0x3dc] sm:$0xf0] }
 0xd48   : > { %7806 = vst [vmem:[#allocation3 + $0x428] sm:$0xff] %v7602_v16  ;;  %v12168_v16 = vld [vmem:[#allocation3 + $0x1d8] sm:$0xf0] }
 0xd4b   : > { %v7381_v63 = vpop.f32.mrf.mxu2  ;;  %v7470_v10 = vpop.f32.mrf.mxu3 }
 0xd4c   : > { %v7471_v26 = vadd.f32 %v7470_v10, %v7381_v63  ;;  %v7206_v17 = vpop.f32.mrf.mxu0  ;;  %v7295_v46 = vpop.f32.mrf.mxu1  ;;  %v12166_v10 = vld [vmem:[#allocation3 + $0x198] sm:$0xf] }
 0xd4d   : > { %v7296_v32 = vadd.f32 %v7295_v46, %v7206_v17  ;;  %v12991_v46 = vld [vmem:[#allocation3 + $0x154] sm:$0xf0] }
 0xd4e   : > { %v7607_v41 = vpack.c.bf16 %v7471_v26, %v7293_v45  ;;  %v12167_v45 = vor.u32 %v13007_v13, %v12166_v10  ;;  %v12999_v26 = vld [vmem:[#allocation3 + $0x19c] sm:$0xf]  ;;  %v12558_v13 = vld [vmem:[#allocation3 + $0x4a0] sm:$0xf]  ;;  %v13064_v10 = vld [vmem:[#allocation3 + $0x3a4] sm:$0xf] }
 0xd4f   : > { %8961 = vmatmul.bf16.vlgmr.msra.gmra.mxu0 %v17444_v62  ;;  %12594 = vmatmul.msk.bf16.vlgmr.msra.gmra.mxu1 %vm8847_vm6, %v17446_v29  ;;  %v12171_v17 = vor.u32 %v12999_v26, %v12168_v16 }
 0xd50   : > { %7807 = vst [vmem:[#allocation3 + $0x468] sm:$0xff] %v7607_v41  ;;  %9009 = vmatmul.bf16.vlgmr.msra.gmra.mxu2 %v17444_v62  ;;  %12597 = vmatmul.msk.bf16.vlgmr.msra.gmra.mxu3 %vm8847_vm6, %v17446_v29  ;;  %v12103_v41 = vor.u32 %v12991_v46, %v12102_v40  ;;  %v13056_v46 = vld [vmem:[#allocation3 + $0x35c] sm:$0xf0]  ;;  %v12368_v40 = vld [vmem:[#allocation3 + $0x360] sm:$0xf0] }
 0xd51   : > { %9145 = vmatpush.bf16.msra.mxu0 %v12423_v39  ;;  %9175 = vmatpush.bf16.msra.mxu1 %v12551_v14  ;;  %v12107_v14 = vor.u32 %v12983_v23, %v12104_v9  ;;  %v13088_v9 = vld [vmem:[#allocation3 + $0x45c] sm:$0xf0] }
 0xd52   : > { %9193 = vmatpush.bf16.msra.mxu2 %v12427_v35  ;;  %9223 = vmatpush.bf16.msra.mxu3 %v12555_v52  ;;  %v12975_v35 = vld [vmem:[#allocation3 + $0xd4] sm:$0xf0]  ;;  %v12040_v52 = vld [vmem:[#allocation3 + $0xd8] sm:$0xf0] }
 0xd53   : > { %v7384_v22 = vpop.f32.mrf.mxu2  ;;  %v7473_v48 = vpop.f32.mrf.mxu3  ;;  %v12039_v60 = vor.u32 %v12975_v35, %v12038_v57  ;;  %v12043_v18 = vor.u32 %v12967_v19, %v12040_v52 }
 0xd54   : > { %v7474_v43 = vadd.f32 %v7473_v48, %v7384_v22  ;;  %v7208_v61 = vpop.f32.mrf.mxu0  ;;  %v7297_v12 = vpop.f32.mrf.mxu1  ;;  %v11976_v22 = vld [vmem:[#allocation3 + $0x58] sm:$0xf0]  ;;  %v11974_v48 = vld [vmem:[#allocation3 + $0x18] sm:$0xf] }
 0xd55   : > { %9146 = vmatpush.bf16.msra.mxu0 %v12359_v59  ;;  %9176 = vmatpush.bf16.msra.mxu1 %v12487_v1  ;;  %v7298_v34 = vadd.f32 %v7297_v12, %v7208_v61  ;;  %v11975_v58 = vor.u32 %v12959_v6, %v11974_v48  ;;  %v12304_v6 = vld [vmem:[#allocation3 + $0x2e0] sm:$0xf0]  ;;  %v12302_v48 = vld [vmem:[#allocation3 + $0x2a0] sm:$0xf] }
 0xd56   : > { %v7612_v25 = vpack.c.bf16 %v7474_v43, %v7296_v32  ;;  %9194 = vmatpush.bf16.msra.mxu2 %v12363_v5  ;;  %9224 = vmatpush.bf16.msra.mxu3 %v12491_v55  ;;  %v11979_v5 = vor.u32 %v12951_v50, %v11976_v22  ;;  %v13024_v50 = vld [vmem:[#allocation3 + $0x25c] sm:$0xf0] }
 0xd58   : > { %7808 = vst [vmem:[#allocation3 + $0x4a8] sm:$0xff] %v7612_v25 }
 0xd59   : > { %9147 = vmatpush.bf16.msra.mxu0 %v12295_v27 }
 0xd5a   : > { %9195 = vmatpush.bf16.msra.mxu2 %v12299_v38 }
 0xd5b   : > { %v7386_v33 = vpop.f32.mrf.mxu2  ;;  %v7475_v11 = vpop.f32.mrf.mxu3 }
 0xd5c   : > { %v7476_v36 = vadd.f32 %v7475_v11, %v7386_v33  ;;  %v7211_v24 = vpop.f32.mrf.mxu0  ;;  %v7300_v4 = vpop.f32.mrf.mxu1 }
 0xd5d   : > { %9148 = vmatpush.bf16.msra.mxu0 %v12231_v2  ;;  %v7301_v56 = vadd.f32 %v7300_v4, %v7211_v24  ;;  %v12430_v4 = vld [vmem:[#allocation3 + $0x3a0] sm:$0xf] }
 0xd5e   : > { %v7617_v63 = vpack.c.bf16 %v7476_v36, %v7298_v34  ;;  %9196 = vmatpush.bf16.msra.mxu2 %v12235_v47  ;;  %v13104_v34 = vld [vmem:[#allocation3 + $0x4dc] sm:$0xf0]  ;;  %v12432_v36 = vld [vmem:[#allocation3 + $0x3e0] sm:$0xf0]  ;;  %v12431_v16 = vor.u32 %v13072_v31, %v12430_v4 }
 0xd5f   : > { %8966 = vmatmul.bf16.gmra.mxu0 %v17469_v37  ;;  %12595 = vmatmul.msk.bf16.gmra.mxu1 %vm8847_vm6, %v17471_v44  ;;  %v12560_v47 = vld [vmem:[#allocation3 + $0x4e0] sm:$0xf0]  ;;  %v12435_v26 = vor.u32 %v13064_v10, %v12432_v36 }
 0xd60   : > { %7809 = vst [vmem:[#allocation3 + $0x4e8] sm:$0xff] %v7617_v63  ;;  %9014 = vmatmul.bf16.gmra.mxu2 %v17469_v37  ;;  %12598 = vmatmul.msk.bf16.gmra.mxu3 %vm8847_vm6, %v17471_v44  ;;  %v12559_v63 = vor.u32 %v13104_v34, %v12558_v13  ;;  %v12112_v31 = vld [vmem:[#allocation3 + $0x160] sm:$0xf0]  ;;  %v12110_v34 = vld [vmem:[#allocation3 + $0x120] sm:$0xf] }
 0xd61   : > { %9149 = vmatpush.bf16.msra.mxu0 %v12167_v45  ;;  %v13096_v45 = vld [vmem:[#allocation3 + $0x4a4] sm:$0xf] }
 0xd62   : > { %9197 = vmatpush.bf16.msra.mxu2 %v12171_v17  ;;  %v12563_v17 = vor.u32 %v13096_v45, %v12560_v47  ;;  %v12984_v4 = vld [vmem:[#allocation3 + $0x124] sm:$0xf] }
 0xd63   : > { %v7389_v28 = vpop.f32.mrf.mxu2  ;;  %v7478_v51 = vpop.f32.mrf.mxu3 }
 0xd64   : > { %v7479_v39 = vadd.f32 %v7478_v51, %v7389_v28  ;;  %v7213_v8 = vpop.f32.mrf.mxu0  ;;  %v7302_v20 = vpop.f32.mrf.mxu1  ;;  %v12496_v28 = vld [vmem:[#allocation3 + $0x460] sm:$0xf0]  ;;  %v12366_v51 = vld [vmem:[#allocation3 + $0x320] sm:$0xf] }
 0xd65   : > { %9150 = vmatpush.bf16.msra.mxu0 %v12103_v41  ;;  %v7303_v32 = vadd.f32 %v7302_v20, %v7213_v8  ;;  %v12494_v41 = vld [vmem:[#allocation3 + $0x420] sm:$0xf]  ;;  %v13048_v8 = vld [vmem:[#allocation3 + $0x324] sm:$0xf] }
 0xd66   : > { %v7622_v15 = vpack.c.bf16 %v7479_v39, %v7301_v56  ;;  %9198 = vmatpush.bf16.msra.mxu2 %v12107_v14  ;;  %v12367_v39 = vor.u32 %v13056_v46, %v12366_v51  ;;  %v12495_v14 = vor.u32 %v13088_v9, %v12494_v41  ;;  %v13080_v20 = vld [vmem:[#allocation3 + $0x424] sm:$0xf]  ;;  %v12046_v9 = vld [vmem:[#allocation3 + $0xa0] sm:$0xf] }
 0xd67   : > { %v12499_v57 = vor.u32 %v13080_v20, %v12496_v28  ;;  %v12968_v28 = vld [vmem:[#allocation3 + $0xa4] sm:$0xf]  ;;  %v12960_v41 = vld [vmem:[#allocation3 + $0x5c] sm:$0xf0] }
 0xd68   : > { %7810 = vst [vmem:[#allocation3 + $0x430] sm:$0xff] %v7622_v15  ;;  %v12371_v15 = vor.u32 %v13048_v8, %v12368_v40 }
 0xd69   : > { %9151 = vmatpush.bf16.msra.mxu0 %v12039_v60 }
 0xd6a   : > { %9199 = vmatpush.bf16.msra.mxu2 %v12043_v18  ;;  %v13040_v18 = vld [vmem:[#allocation3 + $0x2dc] sm:$0xf0] }
 0xd6b   : > { %v7391_v59 = vpop.f32.mrf.mxu2  ;;  %v7480_v1 = vpop.f32.mrf.mxu3 }
 0xd6c   : > { %v7481_v43 = vadd.f32 %v7480_v1, %v7391_v59  ;;  %v7216_v55 = vpop.f32.mrf.mxu0  ;;  %v7305_v61 = vpop.f32.mrf.mxu1  ;;  %v12303_v59 = vor.u32 %v13040_v18, %v12302_v48  ;;  %v13032_v1 = vld [vmem:[#allocation3 + $0x2a4] sm:$0xf] }
 0xd6d   : > { %9152 = vmatpush.bf16.msra.mxu0 %v11975_v58  ;;  %v7306_v25 = vadd.f32 %v7305_v61, %v7216_v55  ;;  %v12307_v58 = vor.u32 %v13032_v1, %v12304_v6 }
 0xd6e   : > { %v7627_v12 = vpack.c.bf16 %v7481_v43, %v7303_v32  ;;  %9200 = vmatpush.bf16.msra.mxu2 %v11979_v5  ;;  %v12240_v32 = vld [vmem:[#allocation3 + $0x260] sm:$0xf0]  ;;  %v12238_v43 = vld [vmem:[#allocation3 + $0x220] sm:$0xf] }
 0xd6f   : > { %8971 = vmatmul.bf16.gmra.mxu0 %v17494_v21  ;;  %12596 = vmatmul.msk.bf16.gmra.mxu1 %vm8847_vm6, %v17496_v3  ;;  %v12239_v61 = vor.u32 %v13024_v50, %v12238_v43 }
 0xd70   : > { %7811 = vst [vmem:[#allocation3 + $0x470] sm:$0xff] %v7627_v12  ;;  %9019 = vmatmul.bf16.gmra.mxu2 %v17494_v21  ;;  %12599 = vmatmul.msk.bf16.gmra.mxu3 %vm8847_vm6, %v17496_v3  ;;  %v13016_v12 = vld [vmem:[#allocation3 + $0x224] sm:$0xf] }
 0xd73   : > { %v7394_v53 = vpop.f32.mrf.mxu2  ;;  %v7483_v7 = vpop.f32.mrf.mxu3 }
 0xd74   : > { %v7484_v30 = vadd.f32 %v7483_v7, %v7394_v53  ;;  %v7218_v27 = vpop.f32.mrf.mxu0  ;;  %v7307_v42 = vpop.f32.mrf.mxu1 }
 0xd75   : > { %v7308_v49 = vadd.f32 %v7307_v42, %v7218_v27  ;;  %v13008_v42 = vld [vmem:[#allocation3 + $0x1dc] sm:$0xf0] }
 0xd76   : > { %v7632_v38 = vpack.c.bf16 %v7484_v30, %v7306_v25  ;;  %v12243_v25 = vor.u32 %v13016_v12, %v12240_v32 }
 0xd78   : > { %7812 = vst [vmem:[#allocation3 + $0x4b0] sm:$0xff] %v7632_v38  ;;  %v12176_v38 = vld [vmem:[#allocation3 + $0x1e0] sm:$0xf0] }
 0xd7b   : > { %v7396_v54 = vpop.f32.mrf.mxu2  ;;  %v7485_v0 = vpop.f32.mrf.mxu3 }
 0xd7c   : > { %v7486_v33 = vadd.f32 %v7485_v0, %v7396_v54  ;;  %v7221_v11 = vpop.f32.mrf.mxu0  ;;  %v7310_v2 = vpop.f32.mrf.mxu1  ;;  %v12174_v0 = vld [vmem:[#allocation3 + $0x1a0] sm:$0xf] }
 0xd7d   : > { %v7311_v35 = vadd.f32 %v7310_v2, %v7221_v11  ;;  %v12992_v2 = vld [vmem:[#allocation3 + $0x15c] sm:$0xf0] }
 0xd7e   : > { %v7637_v24 = vpack.c.bf16 %v7486_v33, %v7308_v49  ;;  %v12175_v49 = vor.u32 %v13008_v42, %v12174_v0  ;;  %v13000_v33 = vld [vmem:[#allocation3 + $0x1a4] sm:$0xf]  ;;  %v13105_v42 = vld [vmem:[#allocation3 + $0x4e4] sm:$0xf0] }
 0xd7f   : > { %9057 = vmatmul.bf16.vlgmr.msrb.gmra.mxu0 %v17444_v62  ;;  %12600 = vmatmul.msk.bf16.vlgmr.msrb.gmra.mxu1 %vm8847_vm6, %v17446_v29  ;;  %v12179_v11 = vor.u32 %v13000_v33, %v12176_v38  ;;  %v12440_v38 = vld [vmem:[#allocation3 + $0x3e8] sm:$0xf0]  ;;  %v12438_v33 = vld [vmem:[#allocation3 + $0x3a8] sm:$0xf] }
 0xd80   : > { %7813 = vst [vmem:[#allocation3 + $0x4f0] sm:$0xff] %v7637_v24  ;;  %9105 = vmatmul.bf16.vlgmr.msrb.gmra.mxu2 %v17444_v62  ;;  %12603 = vmatmul.msk.bf16.vlgmr.msrb.gmra.mxu3 %vm8847_vm6, %v17446_v29  ;;  %v12111_v24 = vor.u32 %v12992_v2, %v12110_v34  ;;  %v13065_v2 = vld [vmem:[#allocation3 + $0x3ac] sm:$0xf]  ;;  %v17555_v34 = vpop.permute.xlu0 %8002 }
 0xd81   : > { %9241 = vmatpush.bf16.msrb.mxu0 %v12431_v16  ;;  %9271 = vmatpush.bf16.msrb.mxu1 %v12559_v63  ;;  %v12115_v63 = vor.u32 %v12984_v4, %v12112_v31  ;;  %v13097_v4 = vld [vmem:[#allocation3 + $0x4ac] sm:$0xf] }
 0xd82   : > { %9289 = vmatpush.bf16.msrb.mxu2 %v12435_v26  ;;  %9319 = vmatpush.bf16.msrb.mxu3 %v12563_v17  ;;  %v12976_v26 = vld [vmem:[#allocation3 + $0xdc] sm:$0xf0]  ;;  %v12048_v17 = vld [vmem:[#allocation3 + $0xe0] sm:$0xf0] }
 0xd83   : > { %v7399_v23 = vpop.f32.mrf.mxu2  ;;  %v7488_v56 = vpop.f32.mrf.mxu3  ;;  %v12047_v40 = vor.u32 %v12976_v26, %v12046_v9  ;;  %v12051_v51 = vor.u32 %v12968_v28, %v12048_v17  ;;  %v12376_v17 = vld [vmem:[#allocation3 + $0x368] sm:$0xf0]  ;;  %v12374_v9 = vld [vmem:[#allocation3 + $0x328] sm:$0xf] }
 0xd84   : > { %v7489_v52 = vadd.f32 %v7488_v56, %v7399_v23  ;;  %v7223_v60 = vpop.f32.mrf.mxu0  ;;  %v7312_v19 = vpop.f32.mrf.mxu1  ;;  %v11984_v23 = vld [vmem:[#allocation3 + $0x60] sm:$0xf0]  ;;  %v11982_v56 = vld [vmem:[#allocation3 + $0x20] sm:$0xf] }
 0xd85   : > { %9242 = vmatpush.bf16.msrb.mxu0 %v12367_v39  ;;  %9272 = vmatpush.bf16.msrb.mxu1 %v12495_v14  ;;  %v7313_v53 = vadd.f32 %v7312_v19, %v7223_v60  ;;  %v17537_v39 = vpop.permute.xlu2 %7992  ;;  %v11983_v20 = vor.u32 %v12960_v41, %v11982_v56  ;;  %v13049_v56 = vld [vmem:[#allocation3 + $0x32c] sm:$0xf] }
 0xd86   : > { %v7642_v22 = vpack.c.bf16 %v7489_v52, %v7311_v35  ;;  %9290 = vmatpush.bf16.msrb.mxu2 %v12371_v15  ;;  %9320 = vmatpush.bf16.msrb.mxu3 %v12499_v57  ;;  %v12952_v35 = vld [vmem:[#allocation3 + $0x24] sm:$0xf] }
 0xd87   : > { %v11987_v57 = vor.u32 %v12952_v35, %v11984_v23 }
 0xd88   : > { %7814 = vst [vmem:[#allocation3 + $0x438] sm:$0xff] %v7642_v22 }
 0xd89   : > { %9243 = vmatpush.bf16.msrb.mxu0 %v12303_v59 }
 0xd8a   : > { %9291 = vmatpush.bf16.msrb.mxu2 %v12307_v58 }
 0xd8b   : > { %v7401_v5 = vpop.f32.mrf.mxu2  ;;  %v7490_v55 = vpop.f32.mrf.mxu3 }
 0xd8c   : > { %v7491_v7 = vadd.f32 %v7490_v55, %v7401_v5  ;;  %v7226_v30 = vpop.f32.mrf.mxu0  ;;  %v7315_v27 = vpop.f32.mrf.mxu1 }
 0xd8d   : > { %9244 = vmatpush.bf16.msrb.mxu0 %v12239_v61  ;;  %v7316_v13 = vadd.f32 %v7315_v27, %v7226_v30  ;;  %v17547_v32 = vpop.permute.xlu2 %7997  ;;  %v13073_v27 = vld [vmem:[#allocation3 + $0x3e4] sm:$0xf0] }
 0xd8e   : > { %v7647_v54 = vpack.c.bf16 %v7491_v7, %v7313_v53  ;;  %9292 = vmatpush.bf16.msrb.mxu2 %v12243_v25 }
 0xd8f   : > { %9062 = vmatmul.bf16.gmra.mxu0 %v17469_v37  ;;  %12601 = vmatmul.msk.bf16.gmra.mxu1 %vm8847_vm6, %v17471_v44 }
 0xd90   : > { %7815 = vst [vmem:[#allocation3 + $0x478] sm:$0xff] %v7647_v54  ;;  %9110 = vmatmul.bf16.gmra.mxu2 %v17469_v37  ;;  %12604 = vmatmul.msk.bf16.gmra.mxu3 %vm8847_vm6, %v17471_v44 }
 0xd91   : > { %9245 = vmatpush.bf16.msrb.mxu0 %v12175_v49  ;;  %v12568_v49 = vld [vmem:[#allocation3 + $0x4e8] sm:$0xf0] }
 0xd92   : > { %9293 = vmatpush.bf16.msrb.mxu2 %v12179_v11  ;;  %v12566_v11 = vld [vmem:[#allocation3 + $0x4a8] sm:$0xf] }
 0xd93   : > { %v7404_v36 = vpop.f32.mrf.mxu2  ;;  %v7493_v47 = vpop.f32.mrf.mxu3 }
 0xd94   : > { %v7494_v16 = vadd.f32 %v7493_v47, %v7404_v36  ;;  %v7228_v10 = vpop.f32.mrf.mxu0  ;;  %v7317_v45 = vpop.f32.mrf.mxu1  ;;  %v12439_v36 = vor.u32 %v13073_v27, %v12438_v33  ;;  %v12567_v47 = vor.u32 %v13105_v42, %v12566_v11  ;;  %v13017_v27 = vld [vmem:[#allocation3 + $0x22c] sm:$0xf]  ;;  %v13009_v11 = vld [vmem:[#allocation3 + $0x1e4] sm:$0xf0] }
 0xd95   : > { %9246 = vmatpush.bf16.msrb.mxu0 %v12111_v24  ;;  %v7318_v52 = vadd.f32 %v7317_v45, %v7228_v10  ;;  %v12443_v24 = vor.u32 %v13065_v2, %v12440_v38  ;;  %v13089_v10 = vld [vmem:[#allocation3 + $0x464] sm:$0xf0]  ;;  %v12184_v2 = vld [vmem:[#allocation3 + $0x1e8] sm:$0xf0] }
 0xd96   : > { %v7652_v46 = vpack.c.bf16 %v7494_v16, %v7316_v13  ;;  %9294 = vmatpush.bf16.msrb.mxu2 %v12115_v63  ;;  %v12571_v16 = vor.u32 %v13097_v4, %v12568_v49  ;;  %v13057_v63 = vld [vmem:[#allocation3 + $0x364] sm:$0xf0]  ;;  %v17580_v4 = vpop.permute.xlu2 %8012 }
 0xd97   : > { %v12375_v41 = vor.u32 %v13057_v63, %v12374_v9 }
 0xd98   : > { %7816 = vst [vmem:[#allocation3 + $0x4b8] sm:$0xff] %v7652_v46  ;;  %v12504_v46 = vld [vmem:[#allocation3 + $0x468] sm:$0xf0] }
 0xd99   : > { %9247 = vmatpush.bf16.msrb.mxu0 %v12047_v40  ;;  %v12502_v40 = vld [vmem:[#allocation3 + $0x428] sm:$0xf] }
 0xd9a   : > { %9295 = vmatpush.bf16.msrb.mxu2 %v12051_v51  ;;  %v12503_v23 = vor.u32 %v13089_v10, %v12502_v40  ;;  %v12993_v10 = vld [vmem:[#allocation3 + $0x164] sm:$0xf0] }
 0xd9b   : > { %v7406_v14 = vpop.f32.mrf.mxu2  ;;  %v7495_v8 = vpop.f32.mrf.mxu3 }
 0xd9c   : > { %v7496_v15 = vadd.f32 %v7495_v8, %v7406_v14  ;;  %v8866_v60 = vpop.f32.mrf.mxu0  ;;  %v8890_v19 = vpop.f32.mrf.mxu1  ;;  %v13081_v14 = vld [vmem:[#allocation3 + $0x42c] sm:$0xf] }
 0xd9d   : > { %9248 = vmatpush.bf16.msrb.mxu0 %v11983_v20  ;;  %v8867_v6 = vadd.f32 %v8866_v60, %v17537_v39 }
 0xd9e   : > { %v7657_v18 = vpack.c.bf16 %v7496_v15, %v7318_v52  ;;  %9296 = vmatpush.bf16.msrb.mxu2 %v11987_v57  ;;  %v12379_v52 = vor.u32 %v13049_v56, %v12376_v17  ;;  %v12507_v15 = vor.u32 %v13081_v14, %v12504_v46  ;;  %v12118_v17 = vld [vmem:[#allocation3 + $0x128] sm:$0xf] }
 0xd9f   : > { %9067 = vmatmul.bf16.gmra.mxu0 %v17494_v21  ;;  %12602 = vmatmul.msk.bf16.gmra.mxu1 %vm8847_vm6, %v17496_v3  ;;  %v8891_v22 = vadd.f32 %v8890_v19, %v8867_v6  ;;  %v13041_v19 = vld [vmem:[#allocation3 + $0x2e4] sm:$0xf0]  ;;  %v12119_v40 = vor.u32 %v12993_v10, %v12118_v17 }
 0xda0   : > { %7817 = vst [vmem:[#allocation3 + $0x4f8] sm:$0xff] %v7657_v18  ;;  %9115 = vmatmul.bf16.gmra.mxu2 %v17494_v21  ;;  %12605 = vmatmul.msk.bf16.gmra.mxu3 %vm8847_vm6, %v17496_v3  ;;  %v12312_v18 = vld [vmem:[#allocation3 + $0x2e8] sm:$0xf0] }
 0xda1   : > { %v9625_v5 = vmax.f32 %v8891_v22, 0.0  ;;  %v12310_v22 = vld [vmem:[#allocation3 + $0x2a8] sm:$0xf] }
 0xda3   : > { %v8914_v48 = vpop.f32.mrf.mxu2  ;;  %v8938_v59 = vpop.f32.mrf.mxu3 }
 0xda4   : > { %v8915_v1 = vadd.f32 %v8914_v48, %v17537_v39  ;;  %v8868_v58 = vpop.f32.mrf.mxu0  ;;  %v8892_v50 = vpop.f32.mrf.mxu1 }
 0xda5   : > { %v8869_v61 = vadd.f32 %v8868_v58, %v17547_v32  ;;  %v17569_v48 = vpop.permute.xlu1 %8007 }
 0xda6   : > { %v8939_v43 = vadd.f32 %v8938_v59, %v8915_v1  ;;  %v12311_v59 = vor.u32 %v13041_v19, %v12310_v22  ;;  %v13033_v1 = vld [vmem:[#allocation3 + $0x2ac] sm:$0xf] }
 0xda7   : > { %v8893_v54 = vadd.f32 %v8892_v50, %v8869_v61  ;;  %v12248_v61 = vld [vmem:[#allocation3 + $0x268] sm:$0xf0] }
 0xda8   : > { %v9626_v55 = vmax.f32 %v8939_v43, 0.0 }
 0xda9   : > { %v9641_v45 = vmax.f32 %v8893_v54, 0.0 }
 0xdaa   : > { %v17550_v12 = vmax.f32 %v9625_v5, %v9626_v55  ;;  %v12315_v5 = vor.u32 %v13033_v1, %v12312_v18  ;;  %v13025_v55 = vld [vmem:[#allocation3 + $0x264] sm:$0xf0]  ;;  %v12969_v18 = vld [vmem:[#allocation3 + $0xac] sm:$0xf] }
 0xdab   : > { %v8916_v53 = vpop.f32.mrf.mxu2  ;;  %v8940_v7 = vpop.f32.mrf.mxu3 }
 0xdac   : > { %9727 = vrot.lane.b32.xlu1 %v17550_v12, %s13230_s14  ;;  %v8871_v25 = vpop.f32.mrf.mxu0  ;;  %v8895_v30 = vpop.f32.mrf.mxu1  ;;  %v8917_v0 = vadd.f32 %v8916_v53, %v17547_v32 }
 0xdad   : > { %v8872_v13 = vadd.f32 %v8871_v25, %v17555_v34 }
 0xdae   : > { %v8941_v31 = vadd.f32 %v8940_v7, %v8917_v0  ;;  %v12246_v7 = vld [vmem:[#allocation3 + $0x228] sm:$0xf]  ;;  %v12251_v0 = vor.u32 %v13017_v27, %v12248_v61 }
 0xdaf   : > { %9153 = vmatmul.bf16.vlgmr.msra.gmra.mxu0 %v17444_v62  ;;  %12606 = vmatmul.msk.bf16.vlgmr.msra.gmra.mxu1 %vm8847_vm6, %v17446_v29  ;;  %v8896_v20 = vadd.f32 %v8895_v30, %v8872_v13  ;;  %v12247_v30 = vor.u32 %v13025_v55, %v12246_v7  ;;  %v12953_v7 = vld [vmem:[#allocation3 + $0x2c] sm:$0xf] }
 0xdb0   : > { %9201 = vmatmul.bf16.vlgmr.msra.gmra.mxu2 %v17444_v62  ;;  %12609 = vmatmul.msk.bf16.vlgmr.msra.gmra.mxu3 %vm8847_vm6, %v17446_v29  ;;  %v9642_v26 = vmax.f32 %v8941_v31, 0.0 }
 0xdb1   : > { %9337 = vmatpush.bf16.msra.mxu0 %v12439_v36  ;;  %9367 = vmatpush.bf16.msra.mxu1 %v12567_v47  ;;  %v9657_v58 = vmax.f32 %v8896_v20, 0.0  ;;  %v12182_v36 = vld [vmem:[#allocation3 + $0x1a8] sm:$0xf] }
 0xdb2   : > { %9385 = vmatpush.bf16.msra.mxu2 %v12443_v24  ;;  %9415 = vmatpush.bf16.msra.mxu3 %v12571_v16  ;;  %v17564_v28 = vmax.f32 %v9641_v45, %v9642_v26  ;;  %v12183_v47 = vor.u32 %v13009_v11, %v12182_v36  ;;  %v13001_v24 = vld [vmem:[#allocation3 + $0x1ac] sm:$0xf] }
 0xdb3   : > { %v8919_v51 = vpop.f32.mrf.mxu2  ;;  %v8943_v8 = vpop.f32.mrf.mxu3  ;;  %v12187_v63 = vor.u32 %v13001_v24, %v12184_v2  ;;  %v12120_v26 = vld [vmem:[#allocation3 + $0x168] sm:$0xf0] }
 0xdb4   : > { %v8920_v35 = vadd.f32 %v8919_v51, %v17555_v34  ;;  %v8873_v57 = vpop.f32.mrf.mxu0  ;;  %v8897_v60 = vpop.f32.mrf.mxu1  ;;  %9729 = vrot.lane.b32.xlu2 %v17564_v28, %s13230_s14  ;;  %v12985_v51 = vld [vmem:[#allocation3 + $0x12c] sm:$0xf] }
 0xdb5   : > { %9338 = vmatpush.bf16.msra.mxu0 %v12375_v41  ;;  %9368 = vmatpush.bf16.msra.mxu1 %v12503_v23  ;;  %v8874_v50 = vadd.f32 %v8873_v57, %v17569_v48  ;;  %v12123_v23 = vor.u32 %v12985_v51, %v12120_v26 }
 0xdb6   : > { %9386 = vmatpush.bf16.msra.mxu2 %v12379_v52  ;;  %9416 = vmatpush.bf16.msra.mxu3 %v12507_v15  ;;  %v8944_v6 = vadd.f32 %v8943_v8, %v8920_v35  ;;  %v12977_v8 = vld [vmem:[#allocation3 + $0xe4] sm:$0xf0]  ;;  %v12056_v52 = vld [vmem:[#allocation3 + $0xe8] sm:$0xf0] }
 0xdb7   : > { %v8898_v38 = vadd.f32 %v8897_v60, %v8874_v50  ;;  %v12054_v15 = vld [vmem:[#allocation3 + $0xa8] sm:$0xf]  ;;  %v17591_v60 = vpop.permute.xlu0 %8017  ;;  %v12059_v22 = vor.u32 %v12969_v18, %v12056_v52  ;;  %v11992_v50 = vld [vmem:[#allocation3 + $0x68] sm:$0xf0] }
 0xdb8   : > { %v9658_v43 = vmax.f32 %v8944_v6, 0.0  ;;  %v12055_v19 = vor.u32 %v12977_v8, %v12054_v15  ;;  %v13106_v8 = vld [vmem:[#allocation3 + $0x4ec] sm:$0xf0] }
 0xdb9   : > { %9339 = vmatpush.bf16.msra.mxu0 %v12311_v59  ;;  %v9673_v13 = vmax.f32 %v8898_v38, 0.0  ;;  %v12961_v59 = vld [vmem:[#allocation3 + $0x64] sm:$0xf0]  ;;  %v12446_v15 = vld [vmem:[#allocation3 + $0x3b0] sm:$0xf] }
 0xdba   : > { %v17572_v53 = vmax.f32 %v9657_v58, %v9658_v43  ;;  %9387 = vmatpush.bf16.msra.mxu2 %v12315_v5  ;;  %v11990_v43 = vld [vmem:[#allocation3 + $0x28] sm:$0xf] }
 0xdbb   : > { %v8921_v25 = vpop.f32.mrf.mxu2  ;;  %v8945_v42 = vpop.f32.mrf.mxu3  ;;  %v11991_v61 = vor.u32 %v12961_v59, %v11990_v43  ;;  %v13098_v59 = vld [vmem:[#allocation3 + $0x4b4] sm:$0xf] }
 0xdbc   : > { %v8922_v54 = vadd.f32 %v8921_v25, %v17569_v48  ;;  %9731 = vrot.lane.b32.xlu0 %v17572_v53, %s13230_s14  ;;  %v8876_v49 = vpop.f32.mrf.mxu0  ;;  %v8900_v33 = vpop.f32.mrf.mxu1 }
 0xdbd   : > { %9340 = vmatpush.bf16.msra.mxu0 %v12247_v30  ;;  %v8877_v45 = vadd.f32 %v8876_v49, %v17580_v4 }
 0xdbe   : > { %9388 = vmatpush.bf16.msra.mxu2 %v12251_v0  ;;  %v8946_v31 = vadd.f32 %v8945_v42, %v8922_v54  ;;  %v11995_v42 = vor.u32 %v12953_v7, %v11992_v50  ;;  %v12384_v7 = vld [vmem:[#allocation3 + $0x370] sm:$0xf0] }
 0xdbf   : > { %9158 = vmatmul.bf16.gmra.mxu0 %v17469_v37  ;;  %12607 = vmatmul.msk.bf16.gmra.mxu1 %vm8847_vm6, %v17471_v44  ;;  %v8901_v20 = vadd.f32 %v8900_v33, %v8877_v45 }
 0xdc0   : > { %v9674_v16 = vmax.f32 %v8946_v31, 0.0  ;;  %9206 = vmatmul.bf16.gmra.mxu2 %v17469_v37  ;;  %12610 = vmatmul.msk.bf16.gmra.mxu3 %vm8847_vm6, %v17471_v44 }
 0xdc1   : > { %9341 = vmatpush.bf16.msra.mxu0 %v12183_v47  ;;  %v9689_v1 = vmax.f32 %v8901_v20, 0.0  ;;  %v12448_v20 = vld [vmem:[#allocation3 + $0x3f0] sm:$0xf0] }
 0xdc2   : > { %9389 = vmatpush.bf16.msra.mxu2 %v12187_v63  ;;  %v17586_v46 = vmax.f32 %v9673_v13, %v9674_v16 }
 0xdc3   : > { %v8924_v9 = vpop.f32.mrf.mxu2  ;;  %v8948_v41 = vpop.f32.mrf.mxu3 }
 0xdc4   : > { %9733 = vrot.lane.b32.xlu1 %v17586_v46, %s13230_s14  ;;  %v8878_v56 = vpop.f32.mrf.mxu0  ;;  %v8902_v14 = vpop.f32.mrf.mxu1  ;;  %v8925_v35 = vadd.f32 %v8924_v9, %v17580_v4 }
 0xdc5   : > { %9342 = vmatpush.bf16.msra.mxu0 %v12119_v40  ;;  %v8879_v6 = vadd.f32 %v8878_v56, %v17591_v60 }
 0xdc6   : > { %9390 = vmatpush.bf16.msra.mxu2 %v12123_v23  ;;  %v8949_v57 = vadd.f32 %v8948_v41, %v8925_v35  ;;  %v12576_v35 = vld [vmem:[#allocation3 + $0x4f0] sm:$0xf0] }
 0xdc7   : > { %v8903_v30 = vadd.f32 %v8902_v14, %v8879_v6  ;;  %v13074_v14 = vld [vmem:[#allocation3 + $0x3ec] sm:$0xf0]  ;;  %v12579_v43 = vor.u32 %v13098_v59, %v12576_v35 }
 0xdc8   : > { %v9690_v58 = vmax.f32 %v8949_v57, 0.0  ;;  %v12574_v57 = vld [vmem:[#allocation3 + $0x4b0] sm:$0xf]  ;;  %v12447_v18 = vor.u32 %v13074_v14, %v12446_v15 }
 0xdc9   : > { %9343 = vmatpush.bf16.msra.mxu0 %v12055_v19  ;;  %v9705_v49 = vmax.f32 %v8903_v30, 0.0  ;;  %v13066_v19 = vld [vmem:[#allocation3 + $0x3b4] sm:$0xf]  ;;  %v12575_v6 = vor.u32 %v13106_v8, %v12574_v57  ;;  %v12382_v30 = vld [vmem:[#allocation3 + $0x330] sm:$0xf] }
 0xdca   : > { %9391 = vmatpush.bf16.msra.mxu2 %v12059_v22  ;;  %v17594_v5 = vmax.f32 %v9689_v1, %v9690_v58  ;;  %v12451_v22 = vor.u32 %v13066_v19, %v12448_v20  ;;  %v13026_v14 = vld [vmem:[#allocation3 + $0x26c] sm:$0xf0]  ;;  %v12256_v8 = vld [vmem:[#allocation3 + $0x270] sm:$0xf0] }
 0xdcb   : > { %v8926_v55 = vpop.f32.mrf.mxu2  ;;  %v8950_v25 = vpop.f32.mrf.mxu3  ;;  %v12254_v35 = vld [vmem:[#allocation3 + $0x230] sm:$0xf]  ;;  %v13018_v57 = vld [vmem:[#allocation3 + $0x234] sm:$0xf] }
 0xdcc   : > { %v8927_v27 = vadd.f32 %v8926_v55, %v17591_v60  ;;  %v8962_v38 = vpop.f32.mrf.mxu0  ;;  %v8986_v54 = vpop.f32.mrf.mxu1  ;;  %9735 = vrot.lane.b32.xlu2 %v17594_v5, %s13230_s14  ;;  %v13058_v55 = vld [vmem:[#allocation3 + $0x36c] sm:$0xf0]  ;;  %v12255_v15 = vor.u32 %v13026_v14, %v12254_v35 }
 0xdcd   : > { %9344 = vmatpush.bf16.msra.mxu0 %v11991_v61  ;;  %v8963_v11 = vadd.f32 %v8962_v38, %v17537_v39  ;;  %v13090_v61 = vld [vmem:[#allocation3 + $0x46c] sm:$0xf0] }
 0xdce   : > { %9392 = vmatpush.bf16.msra.mxu2 %v11995_v42  ;;  %v8951_v0 = vadd.f32 %v8950_v25, %v8927_v27  ;;  %v12512_v25 = vld [vmem:[#allocation3 + $0x470] sm:$0xf0]  ;;  %v12510_v27 = vld [vmem:[#allocation3 + $0x430] sm:$0xf] }
 0xdcf   : > { %9163 = vmatmul.bf16.gmra.mxu0 %v17494_v21  ;;  %12608 = vmatmul.msk.bf16.gmra.mxu1 %vm8847_vm6, %v17496_v3  ;;  %v8987_v47 = vadd.f32 %v8986_v54, %v8963_v11  ;;  %v12383_v54 = vor.u32 %v13058_v55, %v12382_v30  ;;  %v12190_v55 = vld [vmem:[#allocation3 + $0x1b0] sm:$0xf] }
 0xdd0   : > { %v9706_v33 = vmax.f32 %v8951_v0, 0.0  ;;  %9211 = vmatmul.bf16.gmra.mxu2 %v17494_v21  ;;  %12611 = vmatmul.msk.bf16.gmra.mxu3 %vm8847_vm6, %v17496_v3  ;;  %v12511_v0 = vor.u32 %v13090_v61, %v12510_v27  ;;  %v12962_v35 = vld [vmem:[#allocation3 + $0x6c] sm:$0xf0] }
 0xdd1   : > { %v9627_v10 = vmax.f32 %v8987_v47, 0.0 }
 0xdd2   : > { %v17606_v2 = vmax.f32 %v9705_v49, %v9706_v33  ;;  %v13050_v49 = vld [vmem:[#allocation3 + $0x334] sm:$0xf] }
 0xdd3   : > { %v9010_v31 = vpop.f32.mrf.mxu2  ;;  %v9034_v36 = vpop.f32.mrf.mxu3  ;;  %v13082_v33 = vld [vmem:[#allocation3 + $0x434] sm:$0xf]  ;;  %v12387_v47 = vor.u32 %v13050_v49, %v12384_v7  ;;  %v12126_v49 = vld [vmem:[#allocation3 + $0x130] sm:$0xf] }
 0xdd4   : > { %v9011_v24 = vadd.f32 %v9010_v31, %v17537_v39  ;;  %9737 = vrot.lane.b32.xlu0 %v17606_v2, %s13230_s14  ;;  %v8964_v13 = vpop.f32.mrf.mxu0  ;;  %v8988_v16 = vpop.f32.mrf.mxu1  ;;  %v13002_v7 = vld [vmem:[#allocation3 + $0x1b4] sm:$0xf] }
 0xdd5   : > { %v8965_v45 = vadd.f32 %v8964_v13, %v17547_v32 }
 0xdd6   : > { %v9035_v63 = vadd.f32 %v9034_v36, %v9011_v24  ;;  %v12515_v24 = vor.u32 %v13082_v33, %v12512_v25 }
 0xdd7   : > { %v8989_v51 = vadd.f32 %v8988_v16, %v8965_v45 }
 0xdd8   : > { %v9628_v26 = vmax.f32 %v9035_v63, 0.0  ;;  %v13042_v63 = vld [vmem:[#allocation3 + $0x2ec] sm:$0xf0] }
 0xdd9   : > { %v9643_v1 = vmax.f32 %v8989_v51, 0.0 }
 0xdda   : > { %v17612_v17 = vmax.f32 %v9627_v10, %v9628_v26  ;;  %v12320_v10 = vld [vmem:[#allocation3 + $0x2f0] sm:$0xf0]  ;;  %v12318_v26 = vld [vmem:[#allocation3 + $0x2b0] sm:$0xf] }
 0xddb   : > { %v9012_v9 = vpop.f32.mrf.mxu2  ;;  %v9036_v40 = vpop.f32.mrf.mxu3 }
 0xddc   : > { %v9013_v41 = vadd.f32 %v9012_v9, %v17547_v32  ;;  %9801 = vrot.lane.b32.xlu1 %v17612_v17, %s13230_s14  ;;  %v8967_v23 = vpop.f32.mrf.mxu0  ;;  %v8991_v56 = vpop.f32.mrf.mxu1  ;;  %v12319_v9 = vor.u32 %v13042_v63, %v12318_v26  ;;  %v12064_v26 = vld [vmem:[#allocation3 + $0xf0] sm:$0xf0] }
 0xddd   : > { %v8968_v58 = vadd.f32 %v8967_v23, %v17555_v34 }
 0xdde   : > { %v9037_v52 = vadd.f32 %v9036_v40, %v9013_v41  ;;  %v13034_v40 = vld [vmem:[#allocation3 + $0x2b4] sm:$0xf] }
 0xddf   : > { %9249 = vmatmul.bf16.vlgmr.msrb.gmra.mxu0 %v17444_v62  ;;  %12612 = vmatmul.msk.bf16.vlgmr.msrb.gmra.mxu1 %vm8847_vm6, %v17446_v29  ;;  %v8992_v31 = vadd.f32 %v8991_v56, %v8968_v58  ;;  %v12323_v56 = vor.u32 %v13034_v40, %v12320_v10  ;;  %v13010_v58 = vld [vmem:[#allocation3 + $0x1ec] sm:$0xf0] }
 0xde0   : > { %v9644_v50 = vmax.f32 %v9037_v52, 0.0  ;;  %9297 = vmatmul.bf16.vlgmr.msrb.gmra.mxu2 %v17444_v62  ;;  %12615 = vmatmul.msk.bf16.vlgmr.msrb.gmra.mxu3 %vm8847_vm6, %v17446_v29  ;;  %v12191_v61 = vor.u32 %v13010_v58, %v12190_v55  ;;  %v12062_v40 = vld [vmem:[#allocation3 + $0xb0] sm:$0xf] }
 0xde1   : > { %9433 = vmatpush.bf16.msrb.mxu0 %v12447_v18  ;;  %9463 = vmatpush.bf16.msrb.mxu1 %v12575_v6  ;;  %v9659_v51 = vmax.f32 %v8992_v31, 0.0 }
 0xde2   : > { %9481 = vmatpush.bf16.msrb.mxu2 %v12451_v22  ;;  %9511 = vmatpush.bf16.msrb.mxu3 %v12579_v43  ;;  %v17624_v42 = vmax.f32 %v9643_v1, %v9644_v50  ;;  %v12259_v22 = vor.u32 %v13018_v57, %v12256_v8  ;;  %v12192_v50 = vld [vmem:[#allocation3 + $0x1f0] sm:$0xf0]  ;;  %v11998_v57 = vld [vmem:[#allocation3 + $0x30] sm:$0xf] }
 0xde3   : > { %v9015_v38 = vpop.f32.mrf.mxu2  ;;  %v9039_v11 = vpop.f32.mrf.mxu3 }
 0xde4   : > { %v9016_v36 = vadd.f32 %v9015_v38, %v17555_v34  ;;  %v8969_v13 = vpop.f32.mrf.mxu0  ;;  %v8993_v16 = vpop.f32.mrf.mxu1  ;;  %9803 = vrot.lane.b32.xlu2 %v17624_v42, %s13230_s14  ;;  %v12195_v38 = vor.u32 %v13002_v7, %v12192_v50 }
 0xde5   : > { %9434 = vmatpush.bf16.msrb.mxu0 %v12383_v54  ;;  %9464 = vmatpush.bf16.msrb.mxu1 %v12511_v0  ;;  %v8970_v41 = vadd.f32 %v8969_v13, %v17569_v48  ;;  %v12994_v54 = vld [vmem:[#allocation3 + $0x16c] sm:$0xf0]  ;;  %v12128_v0 = vld [vmem:[#allocation3 + $0x170] sm:$0xf0] }
 0xde6   : > { %9482 = vmatpush.bf16.msrb.mxu2 %v12387_v47  ;;  %9512 = vmatpush.bf16.msrb.mxu3 %v12515_v24  ;;  %v9040_v45 = vadd.f32 %v9039_v11, %v9016_v36  ;;  %v12127_v31 = vor.u32 %v12994_v54, %v12126_v49  ;;  %v12986_v36 = vld [vmem:[#allocation3 + $0x134] sm:$0xf] }
 0xde7   : > { %v8994_v18 = vadd.f32 %v8993_v16, %v8970_v41  ;;  %v12131_v16 = vor.u32 %v12986_v36, %v12128_v0  ;;  %v12970_v41 = vld [vmem:[#allocation3 + $0xb4] sm:$0xf] }
 0xde8   : > { %v9660_v23 = vmax.f32 %v9040_v45, 0.0  ;;  %v12978_v45 = vld [vmem:[#allocation3 + $0xec] sm:$0xf0]  ;;  %v12067_v8 = vor.u32 %v12970_v41, %v12064_v26  ;;  %v12456_v41 = vld [vmem:[#allocation3 + $0x3f8] sm:$0xf0] }
 0xde9   : > { %9435 = vmatpush.bf16.msrb.mxu0 %v12319_v9  ;;  %v9675_v25 = vmax.f32 %v8994_v18, 0.0  ;;  %v11999_v18 = vor.u32 %v12962_v35, %v11998_v57  ;;  %v13067_v35 = vld [vmem:[#allocation3 + $0x3bc] sm:$0xf] }
 0xdea   : > { %v17630_v20 = vmax.f32 %v9659_v51, %v9660_v23  ;;  %9483 = vmatpush.bf16.msrb.mxu2 %v12323_v56  ;;  %v12063_v51 = vor.u32 %v12978_v45, %v12062_v40  ;;  %v13075_v40 = vld [vmem:[#allocation3 + $0x3f4] sm:$0xf0] }
 0xdeb   : > { %v9017_v52 = vpop.f32.mrf.mxu2  ;;  %v9041_v19 = vpop.f32.mrf.mxu3 }
 0xdec   : > { %v9018_v6 = vadd.f32 %v9017_v52, %v17569_v48  ;;  %9805 = vrot.lane.b32.xlu0 %v17630_v20, %s13230_s14  ;;  %v8972_v59 = vpop.f32.mrf.mxu0  ;;  %v8996_v1 = vpop.f32.mrf.mxu1  ;;  %v12000_v52 = vld [vmem:[#allocation3 + $0x70] sm:$0xf0] }
 0xded   : > { %9436 = vmatpush.bf16.msrb.mxu0 %v12255_v15  ;;  %v8973_v30 = vadd.f32 %v8972_v59, %v17580_v4 }
 0xdee   : > { %9484 = vmatpush.bf16.msrb.mxu2 %v12259_v22  ;;  %v9042_v43 = vadd.f32 %v9041_v19, %v9018_v6  ;;  %v12954_v6 = vld [vmem:[#allocation3 + $0x34] sm:$0xf] }
 0xdef   : > { %9254 = vmatmul.bf16.gmra.mxu0 %v17469_v37  ;;  %12613 = vmatmul.msk.bf16.gmra.mxu1 %vm8847_vm6, %v17471_v44  ;;  %v8997_v24 = vadd.f32 %v8996_v1, %v8973_v30  ;;  %v12003_v58 = vor.u32 %v12954_v6, %v12000_v52 }
 0xdf0   : > { %v9676_v27 = vmax.f32 %v9042_v43, 0.0  ;;  %9302 = vmatmul.bf16.gmra.mxu2 %v17469_v37  ;;  %12616 = vmatmul.msk.bf16.gmra.mxu3 %vm8847_vm6, %v17471_v44 }
 0xdf1   : > { %9437 = vmatpush.bf16.msrb.mxu0 %v12191_v61  ;;  %v9691_v23 = vmax.f32 %v8997_v24, 0.0 }
 0xdf2   : > { %9485 = vmatpush.bf16.msrb.mxu2 %v12195_v38  ;;  %v17642_v33 = vmax.f32 %v9675_v25, %v9676_v27 }
 0xdf3   : > { %v9020_v11 = vpop.f32.mrf.mxu2  ;;  %v9044_v47 = vpop.f32.mrf.mxu3 }
 0xdf4   : > { %v9021_v13 = vadd.f32 %v9020_v11, %v17580_v4  ;;  %9807 = vrot.lane.b32.xlu1 %v17642_v33, %s13230_s14  ;;  %v8974_v63 = vpop.f32.mrf.mxu0  ;;  %v8998_v10 = vpop.f32.mrf.mxu1 }
 0xdf5   : > { %9438 = vmatpush.bf16.msrb.mxu0 %v12127_v31  ;;  %v8975_v56 = vadd.f32 %v8974_v63, %v17591_v60 }
 0xdf6   : > { %9486 = vmatpush.bf16.msrb.mxu2 %v12131_v16  ;;  %v9045_v9 = vadd.f32 %v9044_v47, %v9021_v13 }
 0xdf7   : > { %v8999_v59 = vadd.f32 %v8998_v10, %v8975_v56 }
 0xdf8   : > { %v9692_v14 = vmax.f32 %v9045_v9, 0.0 }
 0xdf9   : > { %9439 = vmatpush.bf16.msrb.mxu0 %v12063_v51  ;;  %v9707_v61 = vmax.f32 %v8999_v59, 0.0  ;;  %v13107_v51 = vld [vmem:[#allocation3 + $0x4f4] sm:$0xf0] }
 0xdfa   : > { %v17648_v15 = vmax.f32 %v9691_v23, %v9692_v14  ;;  %9487 = vmatpush.bf16.msrb.mxu2 %v12067_v8  ;;  %v12584_v23 = vld [vmem:[#allocation3 + $0x4f8] sm:$0xf0]  ;;  %v12454_v14 = vld [vmem:[#allocation3 + $0x3b8] sm:$0xf] }
 0xdfb   : > { %v9022_v19 = vpop.f32.mrf.mxu2  ;;  %v9046_v22 = vpop.f32.mrf.mxu3  ;;  %v12582_v8 = vld [vmem:[#allocation3 + $0x4b8] sm:$0xf]  ;;  %v12455_v52 = vor.u32 %v13075_v40, %v12454_v14 }
 0xdfc   : > { %v9023_v1 = vadd.f32 %v9022_v19, %v17591_v60  ;;  %v9058_v50 = vpop.f32.mrf.mxu0  ;;  %v9082_v43 = vpop.f32.mrf.mxu1  ;;  %9809 = vrot.lane.b32.xlu2 %v17648_v15, %s13230_s14  ;;  %v12583_v57 = vor.u32 %v13107_v51, %v12582_v8  ;;  %v12459_v19 = vor.u32 %v13067_v35, %v12456_v41  ;;  %v12326_v40 = vld [vmem:[#allocation3 + $0x2b8] sm:$0xf]  ;;  %v13035_v41 = vld [vmem:[#allocation3 + $0x2bc] sm:$0xf] }
 0xdfd   : > { %9440 = vmatpush.bf16.msrb.mxu0 %v11999_v18  ;;  %v9059_v25 = vadd.f32 %v9058_v50, %v17537_v39  ;;  %v13099_v18 = vld [vmem:[#allocation3 + $0x4bc] sm:$0xf]  ;;  %v13059_v50 = vld [vmem:[#allocation3 + $0x374] sm:$0xf0] }
 0xdfe   : > { %9488 = vmatpush.bf16.msrb.mxu2 %v12003_v58  ;;  %v9047_v55 = vadd.f32 %v9046_v22, %v9023_v1  ;;  %v12587_v1 = vor.u32 %v13099_v18, %v12584_v23  ;;  %v13091_v58 = vld [vmem:[#allocation3 + $0x474] sm:$0xf0]  ;;  %v12264_v35 = vld [vmem:[#allocation3 + $0x278] sm:$0xf0] }
 0xdff   : > { %9259 = vmatmul.bf16.gmra.mxu0 %v17494_v21  ;;  %12614 = vmatmul.msk.bf16.gmra.mxu1 %vm8847_vm6, %v17496_v3  ;;  %v9083_v54 = vadd.f32 %v9082_v43, %v9059_v25  ;;  %v12520_v43 = vld [vmem:[#allocation3 + $0x478] sm:$0xf0]  ;;  %v12390_v25 = vld [vmem:[#allocation3 + $0x338] sm:$0xf] }
 0xe00   : > { %v9708_v7 = vmax.f32 %v9047_v55, 0.0  ;;  %9307 = vmatmul.bf16.gmra.mxu2 %v17494_v21  ;;  %12617 = vmatmul.msk.bf16.gmra.mxu3 %vm8847_vm6, %v17496_v3  ;;  %v12392_v55 = vld [vmem:[#allocation3 + $0x378] sm:$0xf0]  ;;  %v13027_v8 = vld [vmem:[#allocation3 + $0x274] sm:$0xf0] }
 0xe01   : > { %v9629_v36 = vmax.f32 %v9083_v54, 0.0  ;;  %v13083_v54 = vld [vmem:[#allocation3 + $0x43c] sm:$0xf] }
 0xe02   : > { %v17660_v30 = vmax.f32 %v9707_v61, %v9708_v7  ;;  %v12518_v61 = vld [vmem:[#allocation3 + $0x438] sm:$0xf] }
 0xe03   : > { %v9106_v27 = vpop.f32.mrf.mxu2  ;;  %v9130_v38 = vpop.f32.mrf.mxu3 }
 0xe04   : > { %v9107_v0 = vadd.f32 %v9106_v27, %v17537_v39  ;;  %9811 = vrot.lane.b32.xlu0 %v17660_v30, %s13230_s14  ;;  %v9060_v49 = vpop.f32.mrf.mxu0  ;;  %v9084_v11 = vpop.f32.mrf.mxu1 }
 0xe05   : > { %v9061_v47 = vadd.f32 %v9060_v49, %v17547_v32  ;;  %v13051_v49 = vld [vmem:[#allocation3 + $0x33c] sm:$0xf] }
 0xe06   : > { %v9131_v31 = vadd.f32 %v9130_v38, %v9107_v0  ;;  %v12519_v38 = vor.u32 %v13091_v58, %v12518_v61  ;;  %v12391_v0 = vor.u32 %v13059_v50, %v12390_v25  ;;  %v12200_v61 = vld [vmem:[#allocation3 + $0x1f8] sm:$0xf0] }
 0xe07   : > { %v9085_v10 = vadd.f32 %v9084_v11, %v9061_v47  ;;  %v12523_v47 = vor.u32 %v13083_v54, %v12520_v43 }
 0xe08   : > { %v9630_v24 = vmax.f32 %v9131_v31, 0.0 }
 0xe09   : > { %v9645_v6 = vmax.f32 %v9085_v10, 0.0  ;;  %v13043_v10 = vld [vmem:[#allocation3 + $0x2f4] sm:$0xf0] }
 0xe0a   : > { %v17666_v13 = vmax.f32 %v9629_v36, %v9630_v24  ;;  %v12395_v24 = vor.u32 %v13051_v49, %v12392_v55  ;;  %v12327_v51 = vor.u32 %v13043_v10, %v12326_v40  ;;  %v13011_v55 = vld [vmem:[#allocation3 + $0x1f4] sm:$0xf0]  ;;  %v13003_v49 = vld [vmem:[#allocation3 + $0x1bc] sm:$0xf] }
 0xe0b   : > { %v9108_v16 = vpop.f32.mrf.mxu2  ;;  %v9132_v63 = vpop.f32.mrf.mxu3 }
 0xe0c   : > { %v9109_v45 = vadd.f32 %v9108_v16, %v17547_v32  ;;  %9874 = vrot.lane.b32.xlu1 %v17666_v13, %s13230_s14  ;;  %v9063_v26 = vpop.f32.mrf.mxu0  ;;  %v9087_v9 = vpop.f32.mrf.mxu1 }
 0xe0d   : > { %v9064_v22 = vadd.f32 %v9063_v26, %v17555_v34 }
 0xe0e   : > { %v9133_v56 = vadd.f32 %v9132_v63, %v9109_v45  ;;  %v12328_v45 = vld [vmem:[#allocation3 + $0x2f8] sm:$0xf0] }
 0xe0f   : > { %9345 = vmatmul.bf16.vlgmr.msra.gmra.mxu0 %v17444_v62  ;;  %12618 = vmatmul.msk.bf16.vlgmr.msra.gmra.mxu1 %vm8847_vm6, %v17446_v29  ;;  %v9088_v31 = vadd.f32 %v9087_v9, %v9064_v22  ;;  %v9730_v9 = vpop.permute.xlu2 %9729  ;;  %v12331_v14 = vor.u32 %v13035_v41, %v12328_v45  ;;  %v13019_v22 = vld [vmem:[#allocation3 + $0x23c] sm:$0xf] }
 0xe10   : > { %v9646_v59 = vmax.f32 %v9133_v56, 0.0  ;;  %9393 = vmatmul.bf16.vlgmr.msra.gmra.mxu2 %v17444_v62  ;;  %12621 = vmatmul.msk.bf16.vlgmr.msra.gmra.mxu3 %vm8847_vm6, %v17446_v29  ;;  %v12267_v58 = vor.u32 %v13019_v22, %v12264_v35 }
 0xe11   : > { %9529 = vmatpush.bf16.msra.mxu0 %v12455_v52  ;;  %9559 = vmatpush.bf16.msra.mxu1 %v12583_v57  ;;  %v9661_v23 = vmax.f32 %v9088_v31, 0.0  ;;  %v17686_v57 = vmax.f32 %v17564_v28, %v9730_v9  ;;  %v12203_v31 = vor.u32 %v13003_v49, %v12200_v61 }
 0xe12   : > { %9577 = vmatpush.bf16.msra.mxu2 %v12459_v19  ;;  %9607 = vmatpush.bf16.msra.mxu3 %v12587_v1  ;;  %v17678_v7 = vmax.f32 %v9645_v6, %v9646_v59  ;;  %v12262_v19 = vld [vmem:[#allocation3 + $0x238] sm:$0xf] }
 0xe13   : > { %v9111_v27 = vpop.f32.mrf.mxu2  ;;  %v9135_v11 = vpop.f32.mrf.mxu3  ;;  %v12263_v6 = vor.u32 %v13027_v8, %v12262_v19  ;;  %v12072_v8 = vld [vmem:[#allocation3 + $0xf8] sm:$0xf0]  ;;  %v12070_v19 = vld [vmem:[#allocation3 + $0xb8] sm:$0xf] }
 0xe14   : > { %v9112_v36 = vadd.f32 %v9111_v27, %v17555_v34  ;;  %9876 = vrot.lane.b32.xlu2 %v17678_v7, %s13230_s14  ;;  %v9065_v16 = vpop.f32.mrf.mxu0  ;;  %v9089_v63 = vpop.f32.mrf.mxu1  ;;  %v12198_v27 = vld [vmem:[#allocation3 + $0x1b8] sm:$0xf] }
 0xe15   : > { %9560 = vmatpush.bf16.msra.mxu1 %v12519_v38  ;;  %9530 = vmatpush.bf16.msra.mxu0 %v12391_v0  ;;  %v9066_v28 = vadd.f32 %v9065_v16, %v17569_v48  ;;  %v12199_v0 = vor.u32 %v13011_v55, %v12198_v27  ;;  %v12955_v27 = vld [vmem:[#allocation3 + $0x3c] sm:$0xf] }
 0xe16   : > { %9608 = vmatpush.bf16.msra.mxu3 %v12523_v47  ;;  %9578 = vmatpush.bf16.msra.mxu2 %v12395_v24  ;;  %v9136_v26 = vadd.f32 %v9135_v11, %v9112_v36  ;;  %v12995_v36 = vld [vmem:[#allocation3 + $0x174] sm:$0xf0] }
 0xe17   : > { %v9090_v47 = vadd.f32 %v9089_v63, %v9066_v28  ;;  %v12134_v24 = vld [vmem:[#allocation3 + $0x138] sm:$0xf] }
 0xe18   : > { %v9662_v56 = vmax.f32 %v9136_v26, 0.0  ;;  %v12135_v45 = vor.u32 %v12995_v36, %v12134_v24  ;;  %v12987_v26 = vld [vmem:[#allocation3 + $0x13c] sm:$0xf]  ;;  %v12006_v28 = vld [vmem:[#allocation3 + $0x38] sm:$0xf] }
 0xe19   : > { %9531 = vmatpush.bf16.msra.mxu0 %v12327_v51  ;;  %v9677_v63 = vmax.f32 %v9090_v47, 0.0 }
 0xe1a   : > { %v17683_v52 = vmax.f32 %v9661_v23, %v9662_v56  ;;  %9579 = vmatpush.bf16.msra.mxu2 %v12331_v14  ;;  %v12979_v14 = vld [vmem:[#allocation3 + $0xf4] sm:$0xf0] }
 0xe1b   : > { %v9113_v18 = vpop.f32.mrf.mxu2  ;;  %v9137_v59 = vpop.f32.mrf.mxu3 }
 0xe1c   : > { %v9114_v1 = vadd.f32 %v9113_v18, %v17569_v48  ;;  %9878 = vrot.lane.b32.xlu0 %v17683_v52, %s13230_s14  ;;  %9749 = vrot.lane.b32.xlu2 %v17686_v57, %s13231_s15  ;;  %v9068_v50 = vpop.f32.mrf.mxu0  ;;  %v9092_v43 = vpop.f32.mrf.mxu1  ;;  %v12071_v18 = vor.u32 %v12979_v14, %v12070_v19 }
 0xe1d   : > { %9532 = vmatpush.bf16.msra.mxu0 %v12263_v6  ;;  %v9069_v11 = vadd.f32 %v9068_v50, %v17580_v4  ;;  %v12971_v6 = vld [vmem:[#allocation3 + $0xbc] sm:$0xf]  ;;  %v12963_v50 = vld [vmem:[#allocation3 + $0x74] sm:$0xf0] }
 0xe1e   : > { %9580 = vmatpush.bf16.msra.mxu2 %v12267_v58  ;;  %v9728_v25 = vpop.permute.xlu1 %9727  ;;  %v9138_v38 = vadd.f32 %v9137_v59, %v9114_v1  ;;  %v12075_v58 = vor.u32 %v12971_v6, %v12072_v8 }
 0xe1f   : > { %v17695_v54 = vmax.f32 %v17550_v12, %v9728_v25  ;;  %9350 = vmatmul.bf16.gmra.mxu0 %v17469_v37  ;;  %12619 = vmatmul.msk.bf16.gmra.mxu1 %vm8847_vm6, %v17471_v44  ;;  %v12136_v12 = vld [vmem:[#allocation3 + $0x178] sm:$0xf0]  ;;  %v9093_v51 = vadd.f32 %v9092_v43, %v9069_v11  ;;  %v12007_v25 = vor.u32 %v12963_v50, %v12006_v28 }
 0xe20   : > { %9398 = vmatmul.bf16.gmra.mxu2 %v17469_v37  ;;  %12622 = vmatmul.msk.bf16.gmra.mxu3 %vm8847_vm6, %v17471_v44  ;;  %v9678_v16 = vmax.f32 %v9138_v38, 0.0  ;;  %v12139_v9 = vor.u32 %v12987_v26, %v12136_v12  ;;  %v12008_v43 = vld [vmem:[#allocation3 + $0x78] sm:$0xf0] }
 0xe21   : > { %9533 = vmatpush.bf16.msra.mxu0 %v12199_v0  ;;  %9747 = vrot.lane.b32.xlu1 %v17695_v54, %s13231_s15  ;;  %v9693_v59 = vmax.f32 %v9093_v51, 0.0  ;;  %v12011_v49 = vor.u32 %v12955_v27, %v12008_v43 }
 0xe22   : > { %9581 = vmatpush.bf16.msra.mxu2 %v12203_v31  ;;  %v17707_v22 = vmax.f32 %v9677_v63, %v9678_v16 }
 0xe23   : > { %v9116_v10 = vpop.f32.mrf.mxu2  ;;  %v9140_v40 = vpop.f32.mrf.mxu3 }
 0xe24   : > { %v9117_v41 = vadd.f32 %v9116_v10, %v17580_v4  ;;  %v9070_v23 = vpop.f32.mrf.mxu0  ;;  %v9094_v56 = vpop.f32.mrf.mxu1 }
 0xe25   : > { %9534 = vmatpush.bf16.msra.mxu0 %v12135_v45  ;;  %v9071_v36 = vadd.f32 %v9070_v23, %v17591_v60 }
 0xe26   : > { %9582 = vmatpush.bf16.msra.mxu2 %v12139_v9  ;;  %v9141_v35 = vadd.f32 %v9140_v40, %v9117_v41  ;;  %v9736_v16 = vpop.permute.xlu2 %9735 }
 0xe27   : > { %v9095_v10 = vadd.f32 %v9094_v56, %v9071_v36  ;;  %v17729_v45 = vmax.f32 %v17594_v5, %v9736_v16 }
 0xe28   : > { %v9694_v1 = vmax.f32 %v9141_v35, 0.0 }
 0xe29   : > { %9535 = vmatpush.bf16.msra.mxu0 %v12071_v18  ;;  %9880 = vrot.lane.b32.xlu1 %v17707_v22, %s13230_s14  ;;  %v9709_v23 = vmax.f32 %v9095_v10, 0.0 }
 0xe2a   : > { %v17711_v55 = vmax.f32 %v9693_v59, %v9694_v1  ;;  %9583 = vmatpush.bf16.msra.mxu2 %v12075_v58 }
 0xe2b   : > { %v9118_v61 = vpop.f32.mrf.mxu2  ;;  %v9142_v38 = vpop.f32.mrf.mxu3 }
 0xe2c   : > { %v9119_v0 = vadd.f32 %v9118_v61, %v17591_v60  ;;  %9882 = vrot.lane.b32.xlu2 %v17711_v55, %s13230_s14  ;;  %v9154_v11 = vpop.f32.mrf.mxu0  ;;  %v9178_v31 = vpop.f32.mrf.mxu1 }
 0xe2d   : > { %9536 = vmatpush.bf16.msra.mxu0 %v12007_v25  ;;  %v9155_v14 = vadd.f32 %v9154_v11, %v17537_v39 }
 0xe2e   : > { %9584 = vmatpush.bf16.msra.mxu2 %v12011_v49  ;;  %v9732_v47 = vpop.permute.xlu0 %9731  ;;  %v9143_v12 = vadd.f32 %v9142_v38, %v9119_v0 }
 0xe2f   : > { %v17718_v24 = vmax.f32 %v17572_v53, %v9732_v47  ;;  %9355 = vmatmul.bf16.gmra.mxu0 %v17494_v21  ;;  %12620 = vmatmul.msk.bf16.gmra.mxu1 %vm8847_vm6, %v17496_v3  ;;  %v9179_v19 = vadd.f32 %v9178_v31, %v9155_v14 }
 0xe30   : > { %9403 = vmatmul.bf16.gmra.mxu2 %v17494_v21  ;;  %12623 = vmatmul.msk.bf16.gmra.mxu3 %vm8847_vm6, %v17496_v3  ;;  %v9710_v53 = vmax.f32 %v9143_v12, 0.0 }
 0xe31   : > { %9751 = vrot.lane.b32.xlu0 %v17718_v24, %s13231_s15  ;;  %v9631_v43 = vmax.f32 %v9179_v19, 0.0 }
 0xe32   : > { %v17738_v5 = vmax.f32 %v9709_v23, %v9710_v53 }
 0xe33   : > { %v9202_v26 = vpop.f32.mrf.mxu2  ;;  %v9226_v40 = vpop.f32.mrf.mxu3 }
 0xe34   : > { %v9203_v51 = vadd.f32 %v9202_v26, %v17537_v39  ;;  %9755 = vrot.lane.b32.xlu2 %v17729_v45, %s13231_s15  ;;  %v9156_v41 = vpop.f32.mrf.mxu0  ;;  %v9180_v9 = vpop.f32.mrf.mxu1 }
 0xe35   : > { %v9157_v35 = vadd.f32 %v9156_v41, %v17547_v32 }
 0xe36   : > { %v9734_v56 = vpop.permute.xlu1 %9733  ;;  %v9227_v63 = vadd.f32 %v9226_v40, %v9203_v51 }
 0xe37   : > { %v17736_v8 = vmax.f32 %v17586_v46, %v9734_v56  ;;  %v9181_v1 = vadd.f32 %v9180_v9, %v9157_v35 }
 0xe38   : > { %v9632_v18 = vmax.f32 %v9227_v63, 0.0 }
 0xe39   : > { %9884 = vrot.lane.b32.xlu0 %v17738_v5, %s13230_s14  ;;  %9753 = vrot.lane.b32.xlu1 %v17736_v8, %s13231_s15  ;;  %v9647_v25 = vmax.f32 %v9181_v1, 0.0 }
 0xe3a   : > { %v17746_v61 = vmax.f32 %v9631_v43, %v9632_v18 }
 0xe3b   : > { %v9204_v6 = vpop.f32.mrf.mxu2  ;;  %v9228_v59 = vpop.f32.mrf.mxu3 }
 0xe3c   : > { %v9205_v58 = vadd.f32 %v9204_v6, %v17547_v32  ;;  %v9159_v50 = vpop.f32.mrf.mxu0  ;;  %v9183_v46 = vpop.f32.mrf.mxu1 }
 0xe3d   : > { %v9160_v47 = vadd.f32 %v9159_v50, %v17555_v34 }
 0xe3e   : > { %v9229_v28 = vadd.f32 %v9228_v59, %v9205_v58  ;;  %v9804_v53 = vpop.permute.xlu2 %9803 }
 0xe3f   : > { %9441 = vmatmul.bf16.vlgmr.msrb.gmra.mxu0 %v17444_v62  ;;  %12624 = vmatmul.msk.bf16.vlgmr.msrb.gmra.mxu1 %vm8847_vm6, %v17446_v29  ;;  %v9184_v26 = vadd.f32 %v9183_v46, %v9160_v47  ;;  %v17768_v40 = vmax.f32 %v17624_v42, %v9804_v53 }
 0xe40   : > { %v9648_v27 = vmax.f32 %v9229_v28, 0.0  ;;  %9489 = vmatmul.bf16.vlgmr.msrb.gmra.mxu2 %v17444_v62  ;;  %12627 = vmatmul.msk.bf16.vlgmr.msrb.gmra.mxu3 %vm8847_vm6, %v17446_v29 }
 0xe41   : > { %9947 = vrot.lane.b32.xlu1 %v17746_v61, %s13230_s14 }
 0xe42   : > { %v17756_v38 = vmax.f32 %v9647_v25, %v9648_v27 }
 0xe43   : > { %v9207_v0 = vpop.f32.mrf.mxu2  ;;  %v9231_v49 = vpop.f32.mrf.mxu3 }
 0xe44   : > { %v9208_v11 = vadd.f32 %v9207_v0, %v17555_v34  ;;  %9949 = vrot.lane.b32.xlu2 %v17756_v38, %s13230_s14  ;;  %v9161_v31 = vpop.f32.mrf.mxu0  ;;  %v9185_v36 = vpop.f32.mrf.mxu1 }
 0xe45   : > { %v9162_v63 = vadd.f32 %v9161_v31, %v17569_v48 }
 0xe46   : > { %v9738_v12 = vpop.permute.xlu0 %9737  ;;  %v9232_v16 = vadd.f32 %v9231_v49, %v9208_v11 }
 0xe47   : > { %v17763_v10 = vmax.f32 %v17606_v2, %v9738_v12  ;;  %v9663_v2 = vmax.f32 %v9184_v26, 0.0  ;;  %v9186_v59 = vadd.f32 %v9185_v36, %v9162_v63 }
 0xe48   : > { %v9664_v51 = vmax.f32 %v9232_v16, 0.0 }
 0xe49   : > { %9757 = vrot.lane.b32.xlu0 %v17763_v10, %s13231_s15  ;;  %v9679_v25 = vmax.f32 %v9186_v59, 0.0 }
 0xe4a   : > { %v17774_v19 = vmax.f32 %v9663_v2, %v9664_v51 }
 0xe4b   : > { %v9209_v41 = vpop.f32.mrf.mxu2  ;;  %v9233_v9 = vpop.f32.mrf.mxu3 }
 0xe4c   : > { %v9210_v23 = vadd.f32 %v9209_v41, %v17569_v48  ;;  %9821 = vrot.lane.b32.xlu2 %v17768_v40, %s13231_s15  ;;  %v9164_v14 = vpop.f32.mrf.mxu0  ;;  %v9188_v56 = vpop.f32.mrf.mxu1 }
 0xe4d   : > { %v9165_v6 = vadd.f32 %v9164_v14, %v17580_v4 }
 0xe4e   : > { %v9802_v35 = vpop.permute.xlu1 %9801  ;;  %v9234_v18 = vadd.f32 %v9233_v9, %v9210_v23 }
 0xe4f   : > { %v17777_v42 = vmax.f32 %v17612_v17, %v9802_v35  ;;  %9446 = vmatmul.bf16.gmra.mxu0 %v17469_v37  ;;  %12625 = vmatmul.msk.bf16.gmra.mxu1 %vm8847_vm6, %v17471_v44  ;;  %v9189_v50 = vadd.f32 %v9188_v56, %v9165_v6 }
 0xe50   : > { %9494 = vmatmul.bf16.gmra.mxu2 %v17469_v37  ;;  %12628 = vmatmul.msk.bf16.gmra.mxu3 %vm8847_vm6, %v17471_v44  ;;  %v9680_v17 = vmax.f32 %v9234_v18, 0.0 }
 0xe51   : > { %9951 = vrot.lane.b32.xlu0 %v17774_v19, %s13230_s14  ;;  %9819 = vrot.lane.b32.xlu1 %v17777_v42, %s13231_s15  ;;  %v9695_v49 = vmax.f32 %v9189_v50, 0.0 }
 0xe52   : > { %v17791_v0 = vmax.f32 %v9679_v25, %v9680_v17 }
 0xe53   : > { %v9212_v1 = vpop.f32.mrf.mxu2  ;;  %v9236_v58 = vpop.f32.mrf.mxu3 }
 0xe54   : > { %v9213_v46 = vadd.f32 %v9212_v1, %v17580_v4  ;;  %v9166_v43 = vpop.f32.mrf.mxu0  ;;  %v9190_v28 = vpop.f32.mrf.mxu1 }
 0xe55   : > { %v9167_v26 = vadd.f32 %v9166_v43, %v17591_v60 }
 0xe56   : > { %v9237_v27 = vadd.f32 %v9236_v58, %v9213_v46  ;;  %v9810_v23 = vpop.permute.xlu2 %9809 }
 0xe57   : > { %v9191_v14 = vadd.f32 %v9190_v28, %v9167_v26  ;;  %v17813_v56 = vmax.f32 %v17648_v15, %v9810_v23 }
 0xe58   : > { %v9696_v11 = vmax.f32 %v9237_v27, 0.0 }
 0xe59   : > { %9953 = vrot.lane.b32.xlu1 %v17791_v0, %s13230_s14  ;;  %v9711_v59 = vmax.f32 %v9191_v14, 0.0 }
 0xe5a   : > { %v17795_v31 = vmax.f32 %v9695_v49, %v9696_v11 }
 0xe5b   : > { %v9214_v36 = vpop.f32.mrf.mxu2  ;;  %v9238_v47 = vpop.f32.mrf.mxu3 }
 0xe5c   : > { %v9215_v12 = vadd.f32 %v9214_v36, %v17591_v60  ;;  %9955 = vrot.lane.b32.xlu2 %v17795_v31, %s13230_s14  ;;  %v9250_v16 = vpop.f32.mrf.mxu0  ;;  %v9274_v53 = vpop.f32.mrf.mxu1 }
 0xe5d   : > { %v9251_v17 = vadd.f32 %v9250_v16, %v17537_v39 }
 0xe5e   : > { %v9806_v51 = vpop.permute.xlu0 %9805  ;;  %v9239_v41 = vadd.f32 %v9238_v47, %v9215_v12 }
 0xe5f   : > { %v17802_v9 = vmax.f32 %v17630_v20, %v9806_v51  ;;  %9451 = vmatmul.bf16.gmra.mxu0 %v17494_v21  ;;  %12626 = vmatmul.msk.bf16.gmra.mxu1 %vm8847_vm6, %v17496_v3  ;;  %v9275_v43 = vadd.f32 %v9274_v53, %v9251_v17 }
 0xe60   : > { %9499 = vmatmul.bf16.gmra.mxu2 %v17494_v21  ;;  %12629 = vmatmul.msk.bf16.gmra.mxu3 %vm8847_vm6, %v17496_v3  ;;  %v9712_v20 = vmax.f32 %v9239_v41, 0.0 }
 0xe61   : > { %9823 = vrot.lane.b32.xlu0 %v17802_v9, %s13231_s15  ;;  %v9633_v47 = vmax.f32 %v9275_v43, 0.0 }
 0xe62   : > { %v17822_v15 = vmax.f32 %v9711_v59, %v9712_v20 }
 0xe63   : > { %v9298_v2 = vpop.f32.mrf.mxu2  ;;  %v9322_v63 = vpop.f32.mrf.mxu3 }
 0xe64   : > { %v9299_v35 = vadd.f32 %v9298_v2, %v17537_v39  ;;  %9827 = vrot.lane.b32.xlu2 %v17813_v56, %s13231_s15  ;;  %v9252_v18 = vpop.f32.mrf.mxu0  ;;  %v9276_v6 = vpop.f32.mrf.mxu1 }
 0xe65   : > { %v9253_v46 = vadd.f32 %v9252_v18, %v17547_v32 }
 0xe66   : > { %v9808_v1 = vpop.permute.xlu1 %9807  ;;  %v9323_v58 = vadd.f32 %v9322_v63, %v9299_v35 }
 0xe67   : > { %v17820_v50 = vmax.f32 %v17642_v33, %v9808_v1  ;;  %v9277_v49 = vadd.f32 %v9276_v6, %v9253_v46 }
 0xe68   : > { %v9634_v28 = vmax.f32 %v9323_v58, 0.0 }
 0xe69   : > { %9957 = vrot.lane.b32.xlu0 %v17822_v15, %s13230_s14  ;;  %9825 = vrot.lane.b32.xlu1 %v17820_v50, %s13231_s15  ;;  %v9649_v53 = vmax.f32 %v9277_v49, 0.0 }
 0xe6a   : > { %v17830_v16 = vmax.f32 %v9633_v47, %v9634_v28 }
 0xe6b   : > { %v9300_v25 = vpop.f32.mrf.mxu2  ;;  %v9324_v27 = vpop.f32.mrf.mxu3 }
 0xe6c   : > { %v9301_v11 = vadd.f32 %v9300_v25, %v17547_v32  ;;  %v9255_v36 = vpop.f32.mrf.mxu0  ;;  %v9279_v33 = vpop.f32.mrf.mxu1 }
 0xe6d   : > { %v9256_v63 = vadd.f32 %v9255_v36, %v17555_v34 }
 0xe6e   : > { %v9325_v12 = vadd.f32 %v9324_v27, %v9301_v11  ;;  %v9877_v35 = vpop.permute.xlu2 %9876 }
 0xe6f   : > { %9537 = vmatmul.bf16.vlgmr.msra.gmra.mxu0 %v17444_v62  ;;  %12630 = vmatmul.msk.bf16.vlgmr.msra.gmra.mxu1 %vm8847_vm6, %v17446_v29  ;;  %v9280_v6 = vadd.f32 %v9279_v33, %v9256_v63  ;;  %v17852_v59 = vmax.f32 %v17678_v7, %v9877_v35 }
 0xe70   : > { %v9650_v26 = vmax.f32 %v9325_v12, 0.0  ;;  %9585 = vmatmul.bf16.vlgmr.msra.gmra.mxu2 %v17444_v62  ;;  %12633 = vmatmul.msk.bf16.vlgmr.msra.gmra.mxu3 %vm8847_vm6, %v17446_v29 }
 0xe71   : > { %10020 = vrot.lane.b32.xlu1 %v17830_v16, %s13230_s14  ;;  %v9665_v25 = vmax.f32 %v9280_v6, 0.0 }
 0xe72   : > { %v17840_v51 = vmax.f32 %v9649_v53, %v9650_v26 }
 0xe73   : > { %v9303_v41 = vpop.f32.mrf.mxu2  ;;  %v9327_v23 = vpop.f32.mrf.mxu3 }
 0xe74   : > { %v9304_v14 = vadd.f32 %v9303_v41, %v17555_v34  ;;  %10022 = vrot.lane.b32.xlu2 %v17840_v51, %s13230_s14  ;;  %v9257_v20 = vpop.f32.mrf.mxu0  ;;  %v9281_v2 = vpop.f32.mrf.mxu1 }
 0xe76   : > { %v9812_v62 = vpop.permute.xlu0 %9811  ;;  %v9328_v18 = vadd.f32 %v9327_v23, %v9304_v14 }
 0xe77   : > { %v17847_v29 = vmax.f32 %v17660_v30, %v9812_v62  ;;  %v9258_v30 = vadd.f32 %v9257_v20, %v17569_v48 }
 0xe78   : > { %v9666_v17 = vmax.f32 %v9328_v18, 0.0 }
 0xe79   : > { %9829 = vrot.lane.b32.xlu0 %v17847_v29, %s13231_s15  ;;  %v9282_v33 = vadd.f32 %v9281_v2, %v9258_v30 }
 0xe7a   : > { %v17858_v49 = vmax.f32 %v9665_v25, %v9666_v17 }
 0xe7b   : > { %v9305_v1 = vpop.f32.mrf.mxu2  ;;  %v9329_v58 = vpop.f32.mrf.mxu3  ;;  %v9681_v14 = vmax.f32 %v9282_v33, 0.0 }
 0xe7c   : > { %v9306_v46 = vadd.f32 %v9305_v1, %v17569_v48  ;;  %9894 = vrot.lane.b32.xlu2 %v17852_v59, %s13231_s15  ;;  %v9260_v43 = vpop.f32.mrf.mxu0  ;;  %v9284_v28 = vpop.f32.mrf.mxu1 }
 0xe7d   : > { %v9261_v36 = vadd.f32 %v9260_v43, %v17580_v4 }
 0xe7e   : > { %v9875_v27 = vpop.permute.xlu1 %9874  ;;  %v9330_v11 = vadd.f32 %v9329_v58, %v9306_v46  ;;  %v9750_v46 = vpop.permute.xlu2 %9749 }
 0xe7f   : > { %v17861_v7 = vmax.f32 %v17666_v13, %v9875_v27  ;;  %9542 = vmatmul.bf16.gmra.mxu0 %v17469_v37  ;;  %12631 = vmatmul.msk.bf16.gmra.mxu1 %vm8847_vm6, %v17471_v44  ;;  %v9285_v53 = vadd.f32 %v9284_v28, %v9261_v36  ;;  %v17897_v30 = vmax.f32 %v17686_v57, %v9750_v46 }
 0xe80   : > { %9590 = vmatmul.bf16.gmra.mxu2 %v17469_v37  ;;  %12634 = vmatmul.msk.bf16.gmra.mxu3 %vm8847_vm6, %v17471_v44  ;;  %v9682_v13 = vmax.f32 %v9330_v11, 0.0 }
 0xe81   : > { %10024 = vrot.lane.b32.xlu0 %v17858_v49, %s13230_s14  ;;  %9892 = vrot.lane.b32.xlu1 %v17861_v7, %s13231_s15  ;;  %v9697_v44 = vmax.f32 %v9285_v53, 0.0 }
 0xe82   : > { %v17875_v20 = vmax.f32 %v9681_v14, %v9682_v13 }
 0xe83   : > { %v9308_v47 = vpop.f32.mrf.mxu2  ;;  %v9332_v12 = vpop.f32.mrf.mxu3 }
 0xe84   : > { %v9309_v26 = vadd.f32 %v9308_v47, %v17580_v4  ;;  %v9262_v41 = vpop.f32.mrf.mxu0  ;;  %v9286_v23 = vpop.f32.mrf.mxu1 }
 0xe85   : > { %v9263_v1 = vadd.f32 %v9262_v41, %v17591_v60 }
 0xe86   : > { %v9333_v37 = vadd.f32 %v9332_v12, %v9309_v26  ;;  %v9883_v47 = vpop.permute.xlu2 %9882 }
 0xe87   : > { %v9287_v25 = vadd.f32 %v9286_v23, %v9263_v1 }
 0xe88   : > { %v9698_v2 = vmax.f32 %v9333_v37, 0.0 }
 0xe89   : > { %10026 = vrot.lane.b32.xlu1 %v17875_v20, %s13230_s14 }
 0xe8a   : > { %v17879_v63 = vmax.f32 %v9697_v44, %v9698_v2 }
 0xe8b   : > { %v9310_v62 = vpop.f32.mrf.mxu2  ;;  %v9334_v35 = vpop.f32.mrf.mxu3 }
 0xe8c   : > { %v9311_v18 = vadd.f32 %v9310_v62, %v17591_v60  ;;  %10028 = vrot.lane.b32.xlu2 %v17879_v63, %s13230_s14  ;;  %v9346_v6 = vpop.f32.mrf.mxu0  ;;  %v9370_v17 = vpop.f32.mrf.mxu1 }
 0xe8d   : > { %v9347_v26 = vadd.f32 %v9346_v6, %v17537_v39 }
 0xe8e   : > { %v9879_v58 = vpop.permute.xlu0 %9878  ;;  %v9335_v43 = vadd.f32 %v9334_v35, %v9311_v18 }
 0xe8f   : > { %v17886_v28 = vmax.f32 %v17683_v52, %v9879_v58  ;;  %9547 = vmatmul.bf16.gmra.mxu0 %v17494_v21  ;;  %12632 = vmatmul.msk.bf16.gmra.mxu1 %vm8847_vm6, %v17496_v3  ;;  %v9371_v1 = vadd.f32 %v9370_v17, %v9347_v26 }
 0xe90   : > { %9595 = vmatmul.bf16.gmra.mxu2 %v17494_v21  ;;  %12635 = vmatmul.msk.bf16.gmra.mxu3 %vm8847_vm6, %v17496_v3  ;;  %v9714_v27 = vmax.f32 %v9335_v43, 0.0  ;;  %v9713_v3 = vmax.f32 %v9287_v25, 0.0 }
 0xe91   : > { %9896 = vrot.lane.b32.xlu0 %v17886_v28, %s13231_s15  ;;  %v9635_v43 = vmax.f32 %v9371_v1, 0.0 }
 0xe92   : > { %v17906_v57 = vmax.f32 %v9713_v3, %v9714_v27  ;;  %v9756_v3 = vpop.permute.xlu2 %9755 }
 0xe93   : > { %v9394_v52 = vpop.f32.mrf.mxu2  ;;  %v9748_v11 = vpop.permute.xlu1 %9747 }
 0xe94   : > { %v17900_v36 = vmax.f32 %v17695_v54, %v9748_v11  ;;  %9767 = vrot.lane.b32.xlu2 %v17897_v30, %s13232_s16  ;;  %v9348_v21 = vpop.f32.mrf.mxu0  ;;  %v9418_v33 = vpop.f32.mrf.mxu3  ;;  %v9395_v12 = vadd.f32 %v9394_v52, %v17537_v39  ;;  %v17913_v54 = vmax.f32 %v17711_v55, %v9883_v47  ;;  %v17939_v47 = vmax.f32 %v17729_v45, %v9756_v3 }
 0xe95   : > { %v9372_v13 = vpop.f32.mrf.mxu1  ;;  %v9349_v53 = vadd.f32 %v9348_v21, %v17547_v32 }
 0xe96   : > { %9765 = vrot.lane.b32.xlu1 %v17900_v36, %s13232_s16  ;;  %v9419_v14 = vadd.f32 %v9418_v33, %v9395_v12 }
 0xe97   : > { %v9373_v37 = vadd.f32 %v9372_v13, %v9349_v53 }
 0xe98   : > { %v9636_v6 = vmax.f32 %v9419_v14, 0.0 }
 0xe99   : > { %10030 = vrot.lane.b32.xlu0 %v17906_v57, %s13230_s14  ;;  %v9651_v58 = vmax.f32 %v9373_v37, 0.0 }
 0xe9a   : > { %v17926_v52 = vmax.f32 %v9635_v43, %v9636_v6 }
 0xe9b   : > { %v9396_v41 = vpop.f32.mrf.mxu2  ;;  %v9881_v23 = vpop.permute.xlu1 %9880 }
 0xe9c   : > { %v9397_v44 = vadd.f32 %v9396_v41, %v17547_v32  ;;  %v17918_v2 = vmax.f32 %v17707_v22, %v9881_v23  ;;  %9900 = vrot.lane.b32.xlu2 %v17913_v54, %s13231_s15  ;;  %v9351_v62 = vpop.f32.mrf.mxu0  ;;  %v9420_v35 = vpop.f32.mrf.mxu3 }
 0xe9d   : > { %v9375_v18 = vpop.f32.mrf.mxu1 }
 0xe9e   : > { %v9421_v55 = vadd.f32 %v9420_v35, %v9397_v44  ;;  %9898 = vrot.lane.b32.xlu1 %v17918_v2, %s13231_s15 }
 0xea0   : > { %v9652_v46 = vmax.f32 %v9421_v55, 0.0 }
 0xea2   : > { %v17924_v25 = vmax.f32 %v9651_v58, %v9652_v46 }
 0xea3   : > { %v9399_v27 = vpop.f32.mrf.mxu2  ;;  %v9752_v22 = vpop.permute.xlu0 %9751 }
 0xea4   : > { %v17929_v11 = vmax.f32 %v17718_v24, %v9752_v22  ;;  %10095 = vrot.lane.b32.xlu2 %v17924_v25, %s13230_s14  ;;  %v9353_v17 = vpop.f32.mrf.mxu0  ;;  %v9423_v21 = vpop.f32.mrf.mxu3  ;;  %v9400_v13 = vadd.f32 %v9399_v27, %v17555_v34  ;;  %v9352_v24 = vadd.f32 %v9351_v62, %v17555_v34 }
 0xea5   : > { %v9377_v33 = vpop.f32.mrf.mxu1  ;;  %v9950_v62 = vpop.permute.xlu2 %9949  ;;  %v9354_v58 = vadd.f32 %v9353_v17, %v17569_v48 }
 0xea6   : > { %9769 = vrot.lane.b32.xlu0 %v17929_v11, %s13232_s16  ;;  %10093 = vrot.lane.b32.xlu1 %v17926_v52, %s13230_s14  ;;  %v9424_v26 = vadd.f32 %v9423_v21, %v9400_v13  ;;  %v9376_v45 = vadd.f32 %v9375_v18, %v9352_v24  ;;  %v17957_v6 = vmax.f32 %v17756_v38, %v9950_v62 }
 0xea7   : > { %v9378_v17 = vadd.f32 %v9377_v33, %v9354_v58 }
 0xeab   : > { %v9401_v12 = vpop.f32.mrf.mxu2  ;;  %v9885_v53 = vpop.permute.xlu0 %9884 }
 0xeac   : > { %v17943_v41 = vmax.f32 %v17738_v5, %v9885_v53  ;;  %v9754_v23 = vpop.permute.xlu1 %9753  ;;  %9773 = vrot.lane.b32.xlu2 %v17939_v47, %s13232_s16  ;;  %v9356_v14 = vpop.f32.mrf.mxu0  ;;  %v9668_v5 = vmax.f32 %v9424_v26, 0.0  ;;  %v9402_v55 = vadd.f32 %v9401_v12, %v17569_v48 }
 0xead   : > { %v17948_v37 = vmax.f32 %v17736_v8, %v9754_v23  ;;  %v9425_v44 = vpop.f32.mrf.mxu3  ;;  %v9380_v35 = vpop.f32.mrf.mxu1  ;;  %v9357_v1 = vadd.f32 %v9356_v14, %v17580_v4  ;;  %v9667_v8 = vmax.f32 %v9376_v45, 0.0 }
 0xeae   : > { %9902 = vrot.lane.b32.xlu0 %v17943_v41, %s13231_s15  ;;  %v9426_v3 = vadd.f32 %v9425_v44, %v9402_v55  ;;  %v9822_v23 = vpop.permute.xlu2 %9821  ;;  %v9683_v44 = vmax.f32 %v9378_v17, 0.0 }
 0xeaf   : > { %9771 = vrot.lane.b32.xlu1 %v17948_v37, %s13232_s16  ;;  %v17960_v18 = vmax.f32 %v9667_v8, %v9668_v5  ;;  %v9381_v43 = vadd.f32 %v9380_v35, %v9357_v1 }
 0xeb0   : > { %v9684_v14 = vmax.f32 %v9426_v3, 0.0 }
 0xeb1   : > { %v9699_v53 = vmax.f32 %v9381_v43, 0.0 }
 0xeb2   : > { %v17979_v33 = vmax.f32 %v9683_v44, %v9684_v14 }
 0xeb3   : > { %v9404_v46 = vpop.f32.mrf.mxu2 }
 0xeb4   : > { %v9405_v27 = vadd.f32 %v9404_v46, %v17580_v4  ;;  %v9948_v22 = vpop.permute.xlu1 %9947  ;;  %9967 = vrot.lane.b32.xlu2 %v17957_v6, %s13231_s15  ;;  %v9358_v21 = vpop.f32.mrf.mxu0 }
 0xeb5   : > { %v17966_v13 = vmax.f32 %v17746_v61, %v9948_v22  ;;  %v9428_v38 = vpop.f32.mrf.mxu3  ;;  %v9382_v24 = vpop.f32.mrf.mxu1  ;;  %v9359_v46 = vadd.f32 %v9358_v21, %v17591_v60 }
 0xeb6   : > { %v9429_v12 = vadd.f32 %v9428_v38, %v9405_v27  ;;  %10097 = vrot.lane.b32.xlu0 %v17960_v18, %s13230_s14  ;;  %v9956_v58 = vpop.permute.xlu2 %9955 }
 0xeb7   : > { %9965 = vrot.lane.b32.xlu1 %v17966_v13, %s13231_s15 }
 0xeb8   : > { %v9700_v26 = vmax.f32 %v9429_v12, 0.0 }
 0xeba   : > { %v17972_v35 = vmax.f32 %v9699_v53, %v9700_v26 }
 0xebb   : > { %v9406_v45 = vpop.f32.mrf.mxu2  ;;  %v9758_v61 = vpop.permute.xlu0 %9757 }
 0xebc   : > { %v17975_v62 = vmax.f32 %v17763_v10, %v9758_v61  ;;  %10101 = vrot.lane.b32.xlu2 %v17972_v35, %s13230_s14  ;;  %v9442_v5 = vpop.f32.mrf.mxu0  ;;  %v9407_v8 = vadd.f32 %v9406_v45, %v17591_v60  ;;  %v9383_v45 = vadd.f32 %v9382_v24, %v9359_v46 }
 0xebd   : > { %v9430_v1 = vpop.f32.mrf.mxu3  ;;  %v9466_v55 = vpop.f32.mrf.mxu1  ;;  %v9443_v10 = vadd.f32 %v9442_v5, %v17537_v39 }
 0xebe   : > { %9775 = vrot.lane.b32.xlu0 %v17975_v62, %s13232_s16  ;;  %v9431_v22 = vadd.f32 %v9430_v1, %v9407_v8  ;;  %v18000_v8 = vpop.permute.xlu2 %9827 }
 0xebf   : > { %10099 = vrot.lane.b32.xlu1 %v17979_v33, %s13230_s14  ;;  %v9467_v53 = vadd.f32 %v9466_v55, %v9443_v10 }
 0xec1   : > { %v9637_v61 = vmax.f32 %v9467_v53, 0.0 }
 0xec3   : > { %v9952_v43 = vpop.permute.xlu0 %9951  ;;  %v9820_v27 = vpop.permute.xlu1 %9819 }
 0xec4   : > { %v17989_v3 = vmax.f32 %v17774_v19, %v9952_v43  ;;  %v17992_v38 = vmax.f32 %v17777_v42, %v9820_v27  ;;  %v9490_v12 = vpop.f32.mrf.mxu2  ;;  %v9444_v17 = vpop.f32.mrf.mxu0  ;;  %v9716_v19 = vmax.f32 %v9431_v22, 0.0  ;;  %v9715_v42 = vmax.f32 %v9383_v45, 0.0 }
 0xec5   : > { %v9491_v26 = vadd.f32 %v9490_v12, %v17537_v39  ;;  %v9514_v14 = vpop.f32.mrf.mxu3  ;;  %v9468_v44 = vpop.f32.mrf.mxu1  ;;  %v9445_v1 = vadd.f32 %v9444_v17, %v17547_v32 }
 0xec6   : > { %9969 = vrot.lane.b32.xlu0 %v17989_v3, %s13231_s15  ;;  %v18004_v43 = vmax.f32 %v9715_v42, %v9716_v19 }
 0xec7   : > { %v9515_v21 = vadd.f32 %v9514_v14, %v9491_v26  ;;  %9837 = vrot.lane.b32.xlu1 %v17992_v38, %s13232_s16  ;;  %v9469_v17 = vadd.f32 %v9468_v44, %v9445_v1 }
 0xec9   : > { %v9638_v5 = vmax.f32 %v9515_v21, 0.0  ;;  %v9653_v45 = vmax.f32 %v9469_v17, 0.0  ;;  %v18018_v21 = vmax.f32 %v17768_v40, %v9822_v23  ;;  %v18031_v17 = vmax.f32 %v17795_v31, %v9956_v58 }
 0xecb   : > { %v18002_v55 = vmax.f32 %v9637_v61, %v9638_v5  ;;  %v9954_v10 = vpop.permute.xlu1 %9953 }
 0xecc   : > { %v18007_v24 = vmax.f32 %v17791_v0, %v9954_v10  ;;  %v9492_v46 = vpop.f32.mrf.mxu2  ;;  %v9447_v27 = vpop.f32.mrf.mxu0 }
 0xecd   : > { %v9493_v12 = vadd.f32 %v9492_v46, %v17547_v32  ;;  %10166 = vrot.lane.b32.xlu2 %v18002_v55, %s13230_s14  ;;  %v9516_v22 = vpop.f32.mrf.mxu3  ;;  %v9471_v53 = vpop.f32.mrf.mxu1  ;;  %v9448_v0 = vadd.f32 %v9447_v27, %v17555_v34 }
 0xece   : > { %10103 = vrot.lane.b32.xlu0 %v18004_v43, %s13230_s14  ;;  %v18020_v19 = vpop.permute.xlu2 %10022 }
 0xecf   : > { %v9517_v26 = vadd.f32 %v9516_v22, %v9493_v12  ;;  %9971 = vrot.lane.b32.xlu1 %v18007_v24, %s13231_s15  ;;  %v9472_v42 = vadd.f32 %v9471_v53, %v9448_v0 }
 0xed1   : > { %v9654_v14 = vmax.f32 %v9517_v26, 0.0  ;;  %v9669_v23 = vmax.f32 %v9472_v42, 0.0 }
 0xed3   : > { %v18022_v61 = vmax.f32 %v9653_v45, %v9654_v14  ;;  %v9824_v27 = vpop.permute.xlu0 %9823 }
 0xed4   : > { %v9495_v5 = vpop.f32.mrf.mxu2  ;;  %v9449_v44 = vpop.f32.mrf.mxu0  ;;  %v18036_v26 = vmax.f32 %v17802_v9, %v9824_v27 }
 0xed5   : > { %v9496_v1 = vadd.f32 %v9495_v5, %v17555_v34  ;;  %9839 = vrot.lane.b32.xlu2 %v18018_v21, %s13232_s16  ;;  %v9519_v10 = vpop.f32.mrf.mxu3  ;;  %v9473_v46 = vpop.f32.mrf.mxu1  ;;  %v9450_v12 = vadd.f32 %v9449_v44, %v17569_v48 }
 0xed6   : > { %10168 = vrot.lane.b32.xlu0 %v18022_v61, %s13230_s14  ;;  %v18043_v31 = vpop.permute.xlu2 %9894 }
 0xed7   : > { %v9520_v40 = vadd.f32 %v9519_v10, %v9496_v1  ;;  %v9474_v45 = vadd.f32 %v9473_v46, %v9450_v12 }
 0xed9   : > { %v9670_v22 = vmax.f32 %v9520_v40, 0.0  ;;  %v9685_v1 = vmax.f32 %v9474_v45, 0.0 }
 0xedb   : > { %v18033_v53 = vmax.f32 %v9669_v23, %v9670_v22  ;;  %v9826_v58 = vpop.permute.xlu1 %9825  ;;  %v9958_v10 = vpop.permute.xlu0 %9957 }
 0xedc   : > { %v9497_v0 = vpop.f32.mrf.mxu2  ;;  %v9452_v14 = vpop.f32.mrf.mxu0  ;;  %v18054_v40 = vmax.f32 %v17820_v50, %v9826_v58  ;;  %v18059_v12 = vmax.f32 %v17822_v15, %v9958_v10 }
 0xedd   : > { %18636 = vst [vmem:[#allocation8_spill] sm:$0xff] %v18033_v53  ;;  %v9498_v5 = vadd.f32 %v9497_v0, %v17569_v48  ;;  %10170 = vrot.lane.b32.xlu1 %v18033_v53, %s13230_s14  ;;  %9973 = vrot.lane.b32.xlu2 %v18031_v17, %s13231_s15  ;;  %v9521_v44 = vpop.f32.mrf.mxu3  ;;  %v9476_v42 = vpop.f32.mrf.mxu1  ;;  %v9453_v27 = vadd.f32 %v9452_v14, %v17580_v4 }
 0xede   : > { %9841 = vrot.lane.b32.xlu0 %v18036_v26, %s13232_s16 }
 0xedf   : > { %v9522_v9 = vadd.f32 %v9521_v44, %v9498_v5  ;;  %v9477_v44 = vadd.f32 %v9476_v42, %v9453_v27 }
 0xee1   : > { %v9686_v46 = vmax.f32 %v9522_v9, 0.0  ;;  %v9701_v10 = vmax.f32 %v9477_v44, 0.0 }
 0xee3   : > { %v18056_v23 = vmax.f32 %v9685_v1, %v9686_v46  ;;  %v10021_v58 = vpop.permute.xlu1 %10020  ;;  %v18075_v46 = vmax.f32 %v17813_v56, %v18000_v8 }
 0xee4   : > { %v9500_v22 = vpop.f32.mrf.mxu2  ;;  %v9454_v0 = vpop.f32.mrf.mxu0  ;;  %v18078_v42 = vmax.f32 %v17830_v16, %v10021_v58 }
 0xee5   : > { %18638 = vst [vmem:[#allocation4_spill] sm:$0xff] %v18056_v23  ;;  %v9501_v45 = vadd.f32 %v9500_v22, %v17580_v4  ;;  %9843 = vrot.lane.b32.xlu1 %v18054_v40, %s13232_s16  ;;  %10172 = vrot.lane.b32.xlu2 %v18056_v23, %s13230_s14  ;;  %v9524_v14 = vpop.f32.mrf.mxu3  ;;  %v9478_v5 = vpop.f32.mrf.mxu1  ;;  %v9455_v9 = vadd.f32 %v9454_v0, %v17591_v60 }
 0xee6   : > { %v18066_v50 = vpop.permute.xlu2 %10028  ;;  %9975 = vrot.lane.b32.xlu0 %v18059_v12, %s13231_s15 }
 0xee7   : > { %v9525_v15 = vadd.f32 %v9524_v14, %v9501_v45  ;;  %v9479_v53 = vadd.f32 %v9478_v5, %v9455_v9  ;;  %v18100_v9 = vmax.f32 %v17840_v51, %v18020_v19 }
 0xee9   : > { %v9702_v1 = vmax.f32 %v9525_v15, 0.0  ;;  %v9717_v44 = vmax.f32 %v9479_v53, 0.0 }
 0xeeb   : > { %v18080_v27 = vmax.f32 %v9701_v10, %v9702_v1  ;;  %v9830_v16 = vpop.permute.xlu0 %9829 }
 0xeec   : > { %v9502_v22 = vpop.f32.mrf.mxu2  ;;  %v9538_v23 = vpop.f32.mrf.mxu0  ;;  %v18105_v10 = vmax.f32 %v17847_v29, %v9830_v16 }
 0xeed   : > { %18639 = vst [vmem:[#allocation5_spill] sm:$0xff] %v18080_v27  ;;  %v9503_v45 = vadd.f32 %v9502_v22, %v17591_v60  ;;  %10038 = vrot.lane.b32.xlu1 %v18078_v42, %s13231_s15  ;;  %9845 = vrot.lane.b32.xlu2 %v18075_v46, %s13232_s16  ;;  %v9526_v0 = vpop.f32.mrf.mxu3  ;;  %v9562_v14 = vpop.f32.mrf.mxu1  ;;  %v9539_v58 = vadd.f32 %v9538_v23, %v17537_v39 }
 0xeee   : > { %v9768_v56 = vpop.permute.xlu2 %9767  ;;  %10174 = vrot.lane.b32.xlu0 %v18080_v27, %s13230_s14 }
 0xeef   : > { %v9527_v8 = vadd.f32 %v9526_v0, %v9503_v45  ;;  %v9778_v5 = vmax.f32 %v17897_v30, %v9768_v56  ;;  %v9563_v45 = vadd.f32 %v9562_v14, %v9539_v58 }
 0xef1   : > { %v9718_v15 = vmax.f32 %v9527_v8, 0.0  ;;  %9785 = vst [vmem:[%s18090_s23 + $0x10] sm:$0xff] %v9778_v5  ;;  %v9639_v0 = vmax.f32 %v9563_v45, 0.0 }
 0xef2   : > { %9786 = vst [vmem:[%s18090_s23 + $0x18] sm:$0xff] %v9778_v5 }
 0xef3   : > { %v18102_v1 = vmax.f32 %v9717_v44, %v9718_v15  ;;  %v9893_v51 = vpop.permute.xlu1 %9892  ;;  %v10025_v56 = vpop.permute.xlu0 %10024 }
 0xef4   : > { %v9586_v22 = vpop.f32.mrf.mxu2  ;;  %v9540_v27 = vpop.f32.mrf.mxu0  ;;  %v18118_v16 = vmax.f32 %v17861_v7, %v9893_v51  ;;  %v18123_v5 = vmax.f32 %v17858_v49, %v10025_v56 }
 0xef5   : > { %v9587_v30 = vadd.f32 %v9586_v22, %v17537_v39  ;;  %10176 = vrot.lane.b32.xlu1 %v18102_v1, %s13230_s14  ;;  %10040 = vrot.lane.b32.xlu2 %v18100_v9, %s13231_s15  ;;  %v9610_v53 = vpop.f32.mrf.mxu3  ;;  %v9564_v23 = vpop.f32.mrf.mxu1  ;;  %v9541_v39 = vadd.f32 %v9540_v27, %v17547_v32 }
 0xef6   : > { %v18112_v19 = vpop.permute.xlu2 %9900  ;;  %9847 = vrot.lane.b32.xlu0 %v18105_v10, %s13232_s16 }
 0xef7   : > { %v9611_v29 = vadd.f32 %v9610_v53, %v9587_v30  ;;  %v9565_v45 = vadd.f32 %v9564_v23, %v9541_v39 }
 0xef9   : > { %v9640_v14 = vmax.f32 %v9611_v29, 0.0  ;;  %v18137_v29 = vmax.f32 %v17852_v59, %v18043_v31 }
 0xefb   : > { %v18120_v8 = vmax.f32 %v9639_v0, %v9640_v14  ;;  %v10027_v30 = vpop.permute.xlu1 %10026 }
 0xefc   : > { %v9588_v44 = vpop.f32.mrf.mxu2  ;;  %v9543_v15 = vpop.f32.mrf.mxu0  ;;  %v18140_v0 = vmax.f32 %v17875_v20, %v10027_v30 }
 0xefd   : > { %v9589_v58 = vadd.f32 %v9588_v44, %v17547_v32  ;;  %9910 = vrot.lane.b32.xlu1 %v18118_v16, %s13232_s16  ;;  %10239 = vrot.lane.b32.xlu2 %v18120_v8, %s13230_s14  ;;  %v9612_v22 = vpop.f32.mrf.mxu3  ;;  %v9567_v27 = vpop.f32.mrf.mxu1  ;;  %v9544_v53 = vadd.f32 %v9543_v15, %v17555_v34  ;;  %v9655_v32 = vmax.f32 %v9565_v45, 0.0 }
 0xefe   : > { %v18130_v7 = vpop.permute.xlu2 %10095  ;;  %10042 = vrot.lane.b32.xlu0 %v18123_v5, %s13231_s15 }
 0xeff   : > { %v9613_v49 = vadd.f32 %v9612_v22, %v9589_v58  ;;  %v9568_v39 = vadd.f32 %v9567_v27, %v9544_v53  ;;  %v18158_v53 = vmax.f32 %v17879_v63, %v18066_v50 }
 0xf01   : > { %v9656_v51 = vmax.f32 %v9613_v49, 0.0  ;;  %v9671_v45 = vmax.f32 %v9568_v39, 0.0 }
 0xf03   : > { %v18142_v56 = vmax.f32 %v9655_v32, %v9656_v51  ;;  %v9897_v44 = vpop.permute.xlu0 %9896 }
 0xf04   : > { %v9591_v23 = vpop.f32.mrf.mxu2  ;;  %v9545_v14 = vpop.f32.mrf.mxu0  ;;  %v18164_v32 = vmax.f32 %v17886_v28, %v9897_v44 }
 0xf05   : > { %v9592_v58 = vadd.f32 %v9591_v23, %v17555_v34  ;;  %10044 = vrot.lane.b32.xlu1 %v18140_v0, %s13231_s15  ;;  %9912 = vrot.lane.b32.xlu2 %v18137_v29, %s13232_s16  ;;  %v9615_v59 = vpop.f32.mrf.mxu3  ;;  %v9569_v31 = vpop.f32.mrf.mxu1  ;;  %v9546_v34 = vadd.f32 %v9545_v14, %v17569_v48 }
 0xf06   : > { %v9774_v20 = vpop.permute.xlu2 %9773  ;;  %10241 = vrot.lane.b32.xlu0 %v18142_v56, %s13230_s14 }
 0xf07   : > { %v9616_v15 = vadd.f32 %v9615_v59, %v9592_v58  ;;  %v9781_v22 = vmax.f32 %v17939_v47, %v9774_v20  ;;  %v9570_v39 = vadd.f32 %v9569_v31, %v9546_v34 }
 0xf08   : > { %v9766_v27 = vpop.permute.xlu1 %9765 }
 0xf09   : > { %v9672_v49 = vmax.f32 %v9616_v15, 0.0  ;;  %9791 = vst [vmem:[%s18090_s23 + $0x40] sm:$0xff] %v9781_v22  ;;  %v9777_v30 = vmax.f32 %v17900_v36, %v9766_v27  ;;  %v9687_v58 = vmax.f32 %v9570_v39, 0.0 }
 0xf0a   : > { %9792 = vst [vmem:[%s18090_s23 + $0x48] sm:$0xff] %v9781_v22 }
 0xf0b   : > { %v18160_v51 = vmax.f32 %v9671_v45, %v9672_v49  ;;  %9783 = vst [vmem:[%s18090_s23] sm:$0xff] %v9777_v30  ;;  %v10031_v36 = vpop.permute.xlu0 %10030 }
 0xf0c   : > { %9784 = vst [vmem:[%s18090_s23 + $0x8] sm:$0xff] %v9777_v30  ;;  %v9593_v47 = vpop.f32.mrf.mxu2  ;;  %v9548_v23 = vpop.f32.mrf.mxu0  ;;  %v18181_v15 = vmax.f32 %v17906_v57, %v10031_v36 }
 0xf0d   : > { %v9594_v14 = vadd.f32 %v9593_v47, %v17569_v48  ;;  %10243 = vrot.lane.b32.xlu1 %v18160_v51, %s13230_s14  ;;  %10046 = vrot.lane.b32.xlu2 %v18158_v53, %s13231_s15  ;;  %v9617_v63 = vpop.f32.mrf.mxu3  ;;  %v9572_v28 = vpop.f32.mrf.mxu1  ;;  %v9549_v48 = vadd.f32 %v9548_v23, %v17580_v4 }
 0xf0e   : > { %9914 = vrot.lane.b32.xlu0 %v18164_v32, %s13232_s16  ;;  %v9968_v27 = vpop.permute.xlu2 %9967 }
 0xf0f   : > { %v9618_v50 = vadd.f32 %v9617_v63, %v9594_v14  ;;  %v9573_v34 = vadd.f32 %v9572_v28, %v9549_v48 }
 0xf10   : > { %v9899_v44 = vpop.permute.xlu1 %9898 }
 0xf11   : > { %v9688_v59 = vmax.f32 %v9618_v50, 0.0  ;;  %v18175_v20 = vmax.f32 %v17918_v2, %v9899_v44  ;;  %v9703_v63 = vmax.f32 %v9573_v34, 0.0  ;;  %v18197_v50 = vmax.f32 %v17913_v54, %v18112_v19 }
 0xf13   : > { %v18178_v31 = vmax.f32 %v9687_v58, %v9688_v59 }
 0xf14   : > { %v9596_v22 = vpop.f32.mrf.mxu2  ;;  %v9550_v49 = vpop.f32.mrf.mxu0 }
 0xf15   : > { %v9597_v45 = vadd.f32 %v9596_v22, %v17580_v4  ;;  %9916 = vrot.lane.b32.xlu1 %v18175_v20, %s13232_s16  ;;  %10245 = vrot.lane.b32.xlu2 %v18178_v31, %s13230_s14  ;;  %v9620_v2 = vpop.f32.mrf.mxu3  ;;  %v9551_v23 = vadd.f32 %v9550_v49, %v17591_v60  ;;  %v9574_v36 = vpop.f32.mrf.mxu1 }
 0xf16   : > { %10048 = vrot.lane.b32.xlu0 %v18181_v15, %s13231_s15  ;;  %v10102_v54 = vpop.permute.xlu2 %10101 }
 0xf17   : > { %v9621_v57 = vadd.f32 %v9620_v2, %v9597_v45  ;;  %v9575_v58 = vadd.f32 %v9574_v36, %v9551_v23 }
 0xf18   : > { %v9770_v30 = vpop.permute.xlu0 %9769  ;;  %v10094_v47 = vpop.permute.xlu1 %10093 }
 0xf19   : > { %v9704_v4 = vmax.f32 %v9621_v57, 0.0  ;;  %v9779_v39 = vmax.f32 %v17929_v11, %v9770_v30  ;;  %v18193_v14 = vmax.f32 %v17926_v52, %v10094_v47  ;;  %v9719_v48 = vmax.f32 %v9575_v58, 0.0 }
 0xf1a   : > { %v18232_v57 = vmax.f32 %v17957_v6, %v9968_v27  ;;  %v18250_v27 = vmax.f32 %v17972_v35, %v10102_v54 }
 0xf1b   : > { %9787 = vst [vmem:[%s18090_s23 + $0x20] sm:$0xff] %v9779_v39  ;;  %v18200_v28 = vmax.f32 %v9703_v63, %v9704_v4 }
 0xf1c   : > { %9788 = vst [vmem:[%s18090_s23 + $0x28] sm:$0xff] %v9779_v39  ;;  %v9598_v44 = vpop.f32.mrf.mxu2 }
 0xf1d   : > { %v9599_v59 = vadd.f32 %v9598_v44, %v17591_v60  ;;  %10111 = vrot.lane.b32.xlu1 %v18193_v14, %s13231_s15  ;;  %9918 = vrot.lane.b32.xlu2 %v18197_v50, %s13232_s16  ;;  %v9622_v52 = vpop.f32.mrf.mxu3  ;;  %v18213_v60 = vmax.f32 %v17924_v25, %v18130_v7 }
 0xf1e   : > { %10247 = vrot.lane.b32.xlu0 %v18200_v28, %s13230_s14 }
 0xf1f   : > { %v9623_v11 = vadd.f32 %v9622_v52, %v9599_v59 }
 0xf20   : > { %v9903_v19 = vpop.permute.xlu0 %9902 }
 0xf21   : > { %v9720_v22 = vmax.f32 %v9623_v11, 0.0  ;;  %v9772_v45 = vpop.permute.xlu1 %9771  ;;  %v18218_v49 = vmax.f32 %v17943_v41, %v9903_v19 }
 0xf22   : > { %v9780_v2 = vmax.f32 %v17948_v37, %v9772_v45 }
 0xf23   : > { %v18215_v34 = vmax.f32 %v9719_v48, %v9720_v22 }
 0xf24   : > { %9789 = vst [vmem:[%s18090_s23 + $0x30] sm:$0xff] %v9780_v2 }
 0xf25   : > { %9790 = vst [vmem:[%s18090_s23 + $0x38] sm:$0xff] %v9780_v2  ;;  %10249 = vrot.lane.b32.xlu1 %v18215_v34, %s13230_s14  ;;  %10113 = vrot.lane.b32.xlu2 %v18213_v60, %s13231_s15 }
 0xf26   : > { %9920 = vrot.lane.b32.xlu0 %v18218_v49, %s13232_s16 }
 0xf27   : > { %v10167_v37 = vpop.permute.xlu2 %10166 }
 0xf28   : > { %v10098_v25 = vpop.permute.xlu0 %10097 }
 0xf29   : > { %v9966_v7 = vpop.permute.xlu1 %9965  ;;  %v18235_v30 = vmax.f32 %v17960_v18, %v10098_v25 }
 0xf2a   : > { %v18229_v41 = vmax.f32 %v17966_v13, %v9966_v7 }
 0xf2d   : > { %9983 = vrot.lane.b32.xlu1 %v18229_v41, %s13232_s16  ;;  %9985 = vrot.lane.b32.xlu2 %v18232_v57, %s13232_s16 }
 0xf2e   : > { %10115 = vrot.lane.b32.xlu0 %v18235_v30, %s13231_s15 }
 0xf2f   : > { %v9840_v47 = vpop.permute.xlu2 %9839 }
 0xf30   : > { %v9850_v13 = vmax.f32 %v18018_v21, %v9840_v47  ;;  %v9776_v23 = vpop.permute.xlu0 %9775  ;;  %v18640_v47 = vld [vmem:[#allocation8_spill] sm:$0xff] }
 0xf31   : > { %v9782_v4 = vmax.f32 %v17975_v62, %v9776_v23  ;;  %v10100_v6 = vpop.permute.xlu1 %10099  ;;  %v18642_v23 = vld [vmem:[#allocation4_spill] sm:$0xff] }
 0xf32   : > { %12638 = vst [vmem:[%s18090_s23 + $0x70] sm:$0xff] %v9850_v13  ;;  %v18247_v18 = vmax.f32 %v17979_v33, %v10100_v6 }
 0xf33   : > { %12639 = vst [vmem:[%s18090_s23 + $0x78] sm:$0xff] %v9850_v13  ;;  %v18641_v13 = vld [vmem:[#allocation5_spill] sm:$0xff] }
 0xf34   : > { %9793 = vst [vmem:[%s18090_s23 + $0x50] sm:$0xff] %v9782_v4 }
 0xf35   : > { %9794 = vst [vmem:[%s18090_s23 + $0x58] sm:$0xff] %v9782_v4  ;;  %10117 = vrot.lane.b32.xlu1 %v18247_v18, %s13231_s15  ;;  %10119 = vrot.lane.b32.xlu2 %v18250_v27, %s13231_s15 }
 0xf37   : > { %v9974_v62 = vpop.permute.xlu2 %9973 }
 0xf38   : > { %v9970_v21 = vpop.permute.xlu0 %9969  ;;  %v18264_v35 = vmax.f32 %v18031_v17, %v9974_v62 }
 0xf39   : > { %v18260_v39 = vmax.f32 %v17989_v3, %v9970_v21  ;;  %v9838_v63 = vpop.permute.xlu1 %9837 }
 0xf3a   : > { %v9849_v33 = vmax.f32 %v17992_v38, %v9838_v63 }
 0xf3b   : > { %9987 = vrot.lane.b32.xlu0 %v18260_v39, %s13232_s16 }
 0xf3c   : > { %12636 = vst [vmem:[%s18090_s23 + $0x60] sm:$0xff] %v9849_v33 }
 0xf3d   : > { %12637 = vst [vmem:[%s18090_s23 + $0x68] sm:$0xff] %v9849_v33  ;;  %9991 = vrot.lane.b32.xlu2 %v18264_v35, %s13232_s16 }
 0xf3f   : > { %v10173_v36 = vpop.permute.xlu2 %10172 }
 0xf40   : > { %v10104_v44 = vpop.permute.xlu0 %10103  ;;  %v18330_v4 = vmax.f32 %v18642_v23, %v10173_v36 }
 0xf41   : > { %v18273_v3 = vmax.f32 %v18004_v43, %v10104_v44  ;;  %v9972_v58 = vpop.permute.xlu1 %9971  ;;  %v18287_v43 = vmax.f32 %v18002_v55, %v10167_v37 }
 0xf42   : > { %v18276_v38 = vmax.f32 %v18007_v24, %v9972_v58 }
 0xf43   : > { %10121 = vrot.lane.b32.xlu0 %v18273_v3, %s13231_s15 }
 0xf44   : > { %9989 = vrot.lane.b32.xlu1 %v18276_v38, %s13232_s16 }
 0xf47   : > { %v9846_v17 = vpop.permute.xlu2 %9845 }
 0xf48   : > { %v9853_v59 = vmax.f32 %v18075_v46, %v9846_v17  ;;  %v10169_v52 = vpop.permute.xlu0 %10168 }
 0xf49   : > { %v18284_v54 = vmax.f32 %v18022_v61, %v10169_v52 }
 0xf4a   : > { %12644 = vst [vmem:[%s18090_s23 + $0xa0] sm:$0xff] %v9853_v59 }
 0xf4b   : > { %12645 = vst [vmem:[%s18090_s23 + $0xa8] sm:$0xff] %v9853_v59  ;;  %10186 = vrot.lane.b32.xlu2 %v18284_v54, %s13231_s15 }
 0xf4c   : > { %10184 = vrot.lane.b32.xlu1 %v18287_v43, %s13231_s15 }
 0xf4f   : > { %v10171_v24 = vpop.permute.xlu1 %10170  ;;  %v10041_v11 = vpop.permute.xlu2 %10040 }
 0xf50   : > { %v9842_v46 = vpop.permute.xlu0 %9841  ;;  %v18296_v19 = vmax.f32 %v18100_v9, %v10041_v11 }
 0xf51   : > { %v9851_v61 = vmax.f32 %v18036_v26, %v9842_v46 }
 0xf53   : > { %12640 = vst [vmem:[%s18090_s23 + $0x80] sm:$0xff] %v9851_v61  ;;  %10058 = vrot.lane.b32.xlu2 %v18296_v19, %s13232_s16 }
 0xf54   : > { %12641 = vst [vmem:[%s18090_s23 + $0x88] sm:$0xff] %v9851_v61 }
 0xf57   : > { %v9844_v55 = vpop.permute.xlu1 %9843  ;;  %v10240_v48 = vpop.permute.xlu2 %10239 }
 0xf58   : > { %v9852_v22 = vmax.f32 %v18054_v40, %v9844_v55  ;;  %v9976_v45 = vpop.permute.xlu0 %9975  ;;  %v18316_v40 = vmax.f32 %v18640_v47, %v10171_v24 }
 0xf59   : > { %v18305_v2 = vmax.f32 %v18059_v12, %v9976_v45 }
 0xf5a   : > { %12642 = vst [vmem:[%s18090_s23 + $0x90] sm:$0xff] %v9852_v22 }
 0xf5b   : > { %12643 = vst [vmem:[%s18090_s23 + $0x98] sm:$0xff] %v9852_v22  ;;  %9993 = vrot.lane.b32.xlu0 %v18305_v2, %s13232_s16 }
 0xf5f   : > { %v10039_v26 = vpop.permute.xlu1 %10038  ;;  %v9913_v9 = vpop.permute.xlu2 %9912 }
 0xf60   : > { %v18312_v37 = vmax.f32 %v18078_v42, %v10039_v26  ;;  %v9923_v25 = vmax.f32 %v18137_v29, %v9913_v9  ;;  %v10175_v7 = vpop.permute.xlu0 %10174 }
 0xf61   : > { %v18319_v12 = vmax.f32 %v18641_v13, %v10175_v7 }
 0xf62   : > { %12650 = vst [vmem:[%s18090_s23 + $0xd0] sm:$0xff] %v9923_v25  ;;  %10056 = vrot.lane.b32.xlu1 %v18312_v37, %s13232_s16 }
 0xf63   : > { %12651 = vst [vmem:[%s18090_s23 + $0xd8] sm:$0xff] %v9923_v25  ;;  %10188 = vrot.lane.b32.xlu0 %v18316_v40, %s13231_s15  ;;  %10192 = vrot.lane.b32.xlu2 %v18319_v12, %s13231_s15 }
 0xf67   : > { %v10177_v42 = vpop.permute.xlu1 %10176  ;;  %v10047_v29 = vpop.permute.xlu2 %10046 }
 0xf68   : > { %v9848_v6 = vpop.permute.xlu0 %9847  ;;  %v18333_v62 = vmax.f32 %v18158_v53, %v10047_v29 }
 0xf69   : > { %v9854_v21 = vmax.f32 %v18105_v10, %v9848_v6 }
 0xf6a   : > { %10190 = vrot.lane.b32.xlu1 %v18330_v4, %s13231_s15 }
 0xf6b   : > { %12646 = vst [vmem:[%s18090_s23 + $0xb0] sm:$0xff] %v9854_v21  ;;  %10064 = vrot.lane.b32.xlu2 %v18333_v62, %s13232_s16 }
 0xf6c   : > { %12647 = vst [vmem:[%s18090_s23 + $0xb8] sm:$0xff] %v9854_v21 }
 0xf6f   : > { %v9911_v63 = vpop.permute.xlu1 %9910  ;;  %v10246_v33 = vpop.permute.xlu2 %10245 }
 0xf70   : > { %v9922_v36 = vmax.f32 %v18118_v16, %v9911_v63  ;;  %v10043_v44 = vpop.permute.xlu0 %10042  ;;  %v18355_v16 = vmax.f32 %v18102_v1, %v10177_v42  ;;  %v18369_v1 = vmax.f32 %v18120_v8, %v10240_v48 }
 0xf71   : > { %v18344_v53 = vmax.f32 %v18123_v5, %v10043_v44 }
 0xf72   : > { %12648 = vst [vmem:[%s18090_s23 + $0xc0] sm:$0xff] %v9922_v36 }
 0xf73   : > { %12649 = vst [vmem:[%s18090_s23 + $0xc8] sm:$0xff] %v9922_v36  ;;  %10060 = vrot.lane.b32.xlu0 %v18344_v53, %s13232_s16 }
 0xf77   : > { %v10045_v10 = vpop.permute.xlu1 %10044  ;;  %v9919_v58 = vpop.permute.xlu2 %9918 }
 0xf78   : > { %v18351_v17 = vmax.f32 %v18140_v0, %v10045_v10  ;;  %v9926_v59 = vmax.f32 %v18197_v50, %v9919_v58  ;;  %v10242_v52 = vpop.permute.xlu0 %10241 }
 0xf79   : > { %v18358_v5 = vmax.f32 %v18142_v56, %v10242_v52 }
 0xf7a   : > { %12656 = vst [vmem:[%s18090_s23 + $0x100] sm:$0xff] %v9926_v59  ;;  %10062 = vrot.lane.b32.xlu1 %v18351_v17, %s13232_s16 }
 0xf7b   : > { %12657 = vst [vmem:[%s18090_s23 + $0x108] sm:$0xff] %v9926_v59  ;;  %10194 = vrot.lane.b32.xlu0 %v18355_v16, %s13231_s15  ;;  %10259 = vrot.lane.b32.xlu2 %v18358_v5, %s13231_s15 }
 0xf7f   : > { %v10244_v0 = vpop.permute.xlu1 %10243  ;;  %v10114_v50 = vpop.permute.xlu2 %10113 }
 0xf80   : > { %v9915_v56 = vpop.permute.xlu0 %9914  ;;  %v18372_v24 = vmax.f32 %v18213_v60, %v10114_v50 }
 0xf81   : > { %v9924_v11 = vmax.f32 %v18164_v32, %v9915_v56 }
 0xf82   : > { %10257 = vrot.lane.b32.xlu1 %v18369_v1, %s13231_s15 }
 0xf83   : > { %12652 = vst [vmem:[%s18090_s23 + $0xe0] sm:$0xff] %v9924_v11  ;;  %10131 = vrot.lane.b32.xlu2 %v18372_v24, %s13232_s16 }
 0xf84   : > { %12653 = vst [vmem:[%s18090_s23 + $0xe8] sm:$0xff] %v9924_v11 }
 0xf87   : > { %v9917_v46 = vpop.permute.xlu1 %9916  ;;  %v9986_v61 = vpop.permute.xlu2 %9985 }
 0xf88   : > { %v9925_v8 = vmax.f32 %v18175_v20, %v9917_v46  ;;  %v9996_v55 = vmax.f32 %v18232_v57, %v9986_v61  ;;  %v10049_v48 = vpop.permute.xlu0 %10048  ;;  %v18396_v57 = vmax.f32 %v18160_v51, %v10244_v0  ;;  %v18408_v51 = vmax.f32 %v18178_v31, %v10246_v33 }
 0xf89   : > { %v18384_v60 = vmax.f32 %v18181_v15, %v10049_v48 }
 0xf8a   : > { %12654 = vst [vmem:[%s18090_s23 + $0xf0] sm:$0xff] %v9925_v8 }
 0xf8b   : > { %12655 = vst [vmem:[%s18090_s23 + $0xf8] sm:$0xff] %v9925_v8  ;;  %10066 = vrot.lane.b32.xlu0 %v18384_v60, %s13232_s16 }
 0xf8c   : > { %12662 = vst [vmem:[%s18090_s23 + $0x130] sm:$0xff] %v9996_v55 }
 0xf8d   : > { %12663 = vst [vmem:[%s18090_s23 + $0x138] sm:$0xff] %v9996_v55 }
 0xf8f   : > { %v10112_v32 = vpop.permute.xlu1 %10111  ;;  %v10120_v22 = vpop.permute.xlu2 %10119 }
 0xf90   : > { %v18393_v45 = vmax.f32 %v18193_v14, %v10112_v32  ;;  %v10248_v20 = vpop.permute.xlu0 %10247  ;;  %v18412_v25 = vmax.f32 %v18250_v27, %v10120_v22 }
 0xf91   : > { %v18399_v15 = vmax.f32 %v18200_v28, %v10248_v20 }
 0xf92   : > { %10129 = vrot.lane.b32.xlu1 %v18393_v45, %s13232_s16 }
 0xf93   : > { %10261 = vrot.lane.b32.xlu0 %v18396_v57, %s13231_s15  ;;  %10265 = vrot.lane.b32.xlu2 %v18399_v15, %s13231_s15 }
 0xf97   : > { %v10250_v14 = vpop.permute.xlu1 %10249  ;;  %v9992_v26 = vpop.permute.xlu2 %9991 }
 0xf98   : > { %v9999_v28 = vmax.f32 %v18264_v35, %v9992_v26  ;;  %v9921_v9 = vpop.permute.xlu0 %9920 }
 0xf99   : > { %v9927_v7 = vmax.f32 %v18218_v49, %v9921_v9 }
 0xf9a   : > { %12668 = vst [vmem:[%s18090_s23 + $0x160] sm:$0xff] %v9999_v28  ;;  %10263 = vrot.lane.b32.xlu1 %v18408_v51, %s13231_s15 }
 0xf9b   : > { %12669 = vst [vmem:[%s18090_s23 + $0x168] sm:$0xff] %v9999_v28  ;;  %10137 = vrot.lane.b32.xlu2 %v18412_v25, %s13232_s16 }
 0xf9c   : > { %12658 = vst [vmem:[%s18090_s23 + $0x110] sm:$0xff] %v9927_v7 }
 0xf9d   : > { %12659 = vst [vmem:[%s18090_s23 + $0x118] sm:$0xff] %v9927_v7 }
 0xf9f   : > { %v9984_v31 = vpop.permute.xlu1 %9983 }
 0xfa0   : > { %v9995_v47 = vmax.f32 %v18229_v41, %v9984_v31  ;;  %v10116_v35 = vpop.permute.xlu0 %10115 }
 0xfa1   : > { %v18425_v13 = vmax.f32 %v18235_v30, %v10116_v35  ;;  %v18440_v30 = vmax.f32 %v18215_v34, %v10250_v14 }
 0xfa2   : > { %12660 = vst [vmem:[%s18090_s23 + $0x120] sm:$0xff] %v9995_v47 }
 0xfa3   : > { %12661 = vst [vmem:[%s18090_s23 + $0x128] sm:$0xff] %v9995_v47  ;;  %10133 = vrot.lane.b32.xlu0 %v18425_v13, %s13232_s16 }
 0xfa5   : > { %v10187_v49 = vpop.permute.xlu2 %10186 }
 0xfa6   : > { %v18432_v27 = vmax.f32 %v18284_v54, %v10187_v49 }
 0xfa7   : > { %v10118_v42 = vpop.permute.xlu1 %10117 }
 0xfa8   : > { %v18435_v41 = vmax.f32 %v18247_v18, %v10118_v42  ;;  %10204 = vrot.lane.b32.xlu2 %v18432_v27, %s13232_s16 }
 0xfaa   : > { %10135 = vrot.lane.b32.xlu1 %v18435_v41, %s13232_s16 }
 0xfab   : > { %10267 = vrot.lane.b32.xlu0 %v18440_v30, %s13231_s15 }
 0xfad   : > { %v9988_v54 = vpop.permute.xlu0 %9987  ;;  %v10059_v29 = vpop.permute.xlu2 %10058 }
 0xfae   : > { %v9997_v23 = vmax.f32 %v18260_v39, %v9988_v54  ;;  %v10069_v18 = vmax.f32 %v18296_v19, %v10059_v29 }
 0xfb0   : > { %12664 = vst [vmem:[%s18090_s23 + $0x140] sm:$0xff] %v9997_v23 }
 0xfb1   : > { %12665 = vst [vmem:[%s18090_s23 + $0x148] sm:$0xff] %v9997_v23 }
 0xfb2   : > { %12674 = vst [vmem:[%s18090_s23 + $0x190] sm:$0xff] %v10069_v18 }
 0xfb3   : > { %12675 = vst [vmem:[%s18090_s23 + $0x198] sm:$0xff] %v10069_v18 }
 0xfb5   : > { %v10122_v34 = vpop.permute.xlu0 %10121 }
 0xfb6   : > { %v9990_v6 = vpop.permute.xlu1 %9989  ;;  %v18453_v21 = vmax.f32 %v18273_v3, %v10122_v34 }
 0xfb7   : > { %v9998_v63 = vmax.f32 %v18276_v38, %v9990_v6 }
 0xfb8   : > { %10139 = vrot.lane.b32.xlu0 %v18453_v21, %s13232_s16 }
 0xfb9   : > { %12666 = vst [vmem:[%s18090_s23 + $0x150] sm:$0xff] %v9998_v63 }
 0xfba   : > { %12667 = vst [vmem:[%s18090_s23 + $0x158] sm:$0xff] %v9998_v63 }
 0xfbd   : > { %v10193_v39 = vpop.permute.xlu2 %10192 }
 0xfbe   : > { %v10185_v19 = vpop.permute.xlu1 %10184  ;;  %v18461_v33 = vmax.f32 %v18319_v12, %v10193_v39 }
 0xfbf   : > { %v18464_v36 = vmax.f32 %v18287_v43, %v10185_v19 }
 0xfc0   : > { %10210 = vrot.lane.b32.xlu2 %v18461_v33, %s13232_s16 }
 0xfc1   : > { %10202 = vrot.lane.b32.xlu1 %v18464_v36, %s13232_s16 }
 0xfc5   : > { %v10065_v3 = vpop.permute.xlu2 %10064 }
 0xfc6   : > { %v10072_v38 = vmax.f32 %v18333_v62, %v10065_v3 }
 0xfc8   : > { %12680 = vst [vmem:[%s18090_s23 + $0x1c0] sm:$0xff] %v10072_v38 }
 0xfc9   : > { %12681 = vst [vmem:[%s18090_s23 + $0x1c8] sm:$0xff] %v10072_v38 }
 0xfcd   : > { %v9994_v44 = vpop.permute.xlu0 %9993 }
 0xfce   : > { %v10000_v12 = vmax.f32 %v18305_v2, %v9994_v44 }
 0xfd0   : > { %12670 = vst [vmem:[%s18090_s23 + $0x170] sm:$0xff] %v10000_v12 }
 0xfd1   : > { %12671 = vst [vmem:[%s18090_s23 + $0x178] sm:$0xff] %v10000_v12 }
 0xfd4   : > { %v10057_v43 = vpop.permute.xlu1 %10056 }
 0xfd5   : > { %v10068_v10 = vmax.f32 %v18312_v37, %v10057_v43  ;;  %v10189_v58 = vpop.permute.xlu0 %10188  ;;  %v10260_v59 = vpop.permute.xlu2 %10259 }
 0xfd6   : > { %v18478_v52 = vmax.f32 %v18316_v40, %v10189_v58  ;;  %v18481_v62 = vmax.f32 %v18358_v5, %v10260_v59 }
 0xfd7   : > { %12672 = vst [vmem:[%s18090_s23 + $0x180] sm:$0xff] %v10068_v10 }
 0xfd8   : > { %12673 = vst [vmem:[%s18090_s23 + $0x188] sm:$0xff] %v10068_v10  ;;  %10206 = vrot.lane.b32.xlu0 %v18478_v52, %s13232_s16  ;;  %10277 = vrot.lane.b32.xlu2 %v18481_v62, %s13232_s16 }
 0xfdc   : > { %v10191_v2 = vpop.permute.xlu1 %10190 }
 0xfdd   : > { %v18490_v37 = vmax.f32 %v18330_v4, %v10191_v2  ;;  %v10132_v0 = vpop.permute.xlu2 %10131 }
 0xfde   : > { %v10142_v40 = vmax.f32 %v18372_v24, %v10132_v0 }
 0xfdf   : > { %10208 = vrot.lane.b32.xlu1 %v18490_v37, %s13232_s16 }
 0xfe0   : > { %12686 = vst [vmem:[%s18090_s23 + $0x1f0] sm:$0xff] %v10142_v40 }
 0xfe1   : > { %12687 = vst [vmem:[%s18090_s23 + $0x1f8] sm:$0xff] %v10142_v40 }
 0xfe5   : > { %v10061_v5 = vpop.permute.xlu0 %10060 }
 0xfe6   : > { %v10070_v50 = vmax.f32 %v18344_v53, %v10061_v5 }
 0xfe8   : > { %12676 = vst [vmem:[%s18090_s23 + $0x1a0] sm:$0xff] %v10070_v50 }
 0xfe9   : > { %12677 = vst [vmem:[%s18090_s23 + $0x1a8] sm:$0xff] %v10070_v50 }
 0xfec   : > { %v10063_v56 = vpop.permute.xlu1 %10062 }
 0xfed   : > { %v10071_v4 = vmax.f32 %v18351_v17, %v10063_v56  ;;  %v10195_v11 = vpop.permute.xlu0 %10194  ;;  %v10266_v46 = vpop.permute.xlu2 %10265 }
 0xfee   : > { %v18502_v24 = vmax.f32 %v18355_v16, %v10195_v11  ;;  %v10273_v61 = vmax.f32 %v18399_v15, %v10266_v46 }
 0xfef   : > { %12678 = vst [vmem:[%s18090_s23 + $0x1b0] sm:$0xff] %v10071_v4 }
 0xff0   : > { %12679 = vst [vmem:[%s18090_s23 + $0x1b8] sm:$0xff] %v10071_v4  ;;  %10212 = vrot.lane.b32.xlu0 %v18502_v24, %s13232_s16  ;;  %10283 = vrot.lane.b32.xlu2 %v10273_v61, %s13232_s16 }
 0xff4   : > { %v10258_v53 = vpop.permute.xlu1 %10257 }
 0xff5   : > { %v18511_v17 = vmax.f32 %v18369_v1, %v10258_v53  ;;  %v10138_v8 = vpop.permute.xlu2 %10137 }
 0xff6   : > { %v10145_v16 = vmax.f32 %v18412_v25, %v10138_v8 }
 0xff7   : > { %10275 = vrot.lane.b32.xlu1 %v18511_v17, %s13232_s16 }
 0xff8   : > { %12692 = vst [vmem:[%s18090_s23 + $0x220] sm:$0xff] %v10145_v16 }
 0xff9   : > { %12693 = vst [vmem:[%s18090_s23 + $0x228] sm:$0xff] %v10145_v16 }
 0xffd   : > { %v10067_v55 = vpop.permute.xlu0 %10066 }
 0xffe   : > { %v10073_v48 = vmax.f32 %v18384_v60, %v10067_v55 }
0x1000   : > { %12682 = vst [vmem:[%s18090_s23 + $0x1d0] sm:$0xff] %v10073_v48 }
0x1001   : > { %12683 = vst [vmem:[%s18090_s23 + $0x1d8] sm:$0xff] %v10073_v48 }
0x1002   : > { %v10205_v32 = vpop.permute.xlu2 %10204 }
0x1003   : > { %v10215_v1 = vmax.f32 %v18432_v27, %v10205_v32 }
0x1004   : > { %v10130_v22 = vpop.permute.xlu1 %10129 }
0x1005   : > { %12698 = vst [vmem:[%s18090_s23 + $0x250] sm:$0xff] %v10215_v1  ;;  %v10141_v20 = vmax.f32 %v18393_v45, %v10130_v22  ;;  %v10262_v15 = vpop.permute.xlu0 %10261 }
0x1006   : > { %12699 = vst [vmem:[%s18090_s23 + $0x258] sm:$0xff] %v10215_v1  ;;  %v10271_v14 = vmax.f32 %v18396_v57, %v10262_v15 }
0x1007   : > { %12684 = vst [vmem:[%s18090_s23 + $0x1e0] sm:$0xff] %v10141_v20 }
0x1008   : > { %12685 = vst [vmem:[%s18090_s23 + $0x1e8] sm:$0xff] %v10141_v20  ;;  %10279 = vrot.lane.b32.xlu0 %v10271_v14, %s13232_s16 }
0x100c   : > { %v10264_v60 = vpop.permute.xlu1 %10263 }
0x100d   : > { %v10272_v26 = vmax.f32 %v18408_v51, %v10264_v60 }
0x100f   : > { %10281 = vrot.lane.b32.xlu1 %v10272_v26, %s13232_s16 }
0x1015   : > { %v10134_v28 = vpop.permute.xlu0 %10133 }
0x1016   : > { %v10143_v45 = vmax.f32 %v18425_v13, %v10134_v28 }
0x1018   : > { %12688 = vst [vmem:[%s18090_s23 + $0x200] sm:$0xff] %v10143_v45 }
0x1019   : > { %12689 = vst [vmem:[%s18090_s23 + $0x208] sm:$0xff] %v10143_v45 }
0x101a   : > { %v10211_v57 = vpop.permute.xlu2 %10210 }
0x101b   : > { %v10218_v9 = vmax.f32 %v18461_v33, %v10211_v57 }
0x101c   : > { %v10136_v25 = vpop.permute.xlu1 %10135 }
0x101d   : > { %12704 = vst [vmem:[%s18090_s23 + $0x280] sm:$0xff] %v10218_v9  ;;  %v10144_v7 = vmax.f32 %v18435_v41, %v10136_v25  ;;  %v10268_v31 = vpop.permute.xlu0 %10267 }
0x101e   : > { %12705 = vst [vmem:[%s18090_s23 + $0x288] sm:$0xff] %v10218_v9  ;;  %v10274_v51 = vmax.f32 %v18440_v30, %v10268_v31 }
0x101f   : > { %12690 = vst [vmem:[%s18090_s23 + $0x210] sm:$0xff] %v10144_v7 }
0x1020   : > { %12691 = vst [vmem:[%s18090_s23 + $0x218] sm:$0xff] %v10144_v7  ;;  %10285 = vrot.lane.b32.xlu0 %v10274_v51, %s13232_s16 }
0x102a   : > { %v10140_v47 = vpop.permute.xlu0 %10139 }
0x102b   : > { %v10146_v35 = vmax.f32 %v18453_v21, %v10140_v47 }
0x102d   : > { %12694 = vst [vmem:[%s18090_s23 + $0x230] sm:$0xff] %v10146_v35 }
0x102e   : > { %12695 = vst [vmem:[%s18090_s23 + $0x238] sm:$0xff] %v10146_v35 }
0x1032   : > { %v10278_v13 = vpop.permute.xlu2 %10277 }
0x1033   : > { %v10203_v49 = vpop.permute.xlu1 %10202  ;;  %v10288_v27 = vmax.f32 %v18481_v62, %v10278_v13 }
0x1034   : > { %v10214_v42 = vmax.f32 %v18464_v36, %v10203_v49 }
0x1035   : > { %12710 = vst [vmem:[%s18090_s23 + $0x2b0] sm:$0xff] %v10288_v27 }
0x1036   : > { %12696 = vst [vmem:[%s18090_s23 + $0x240] sm:$0xff] %v10214_v42 }
0x1037   : > { %12697 = vst [vmem:[%s18090_s23 + $0x248] sm:$0xff] %v10214_v42 }
0x1038   : > { %12711 = vst [vmem:[%s18090_s23 + $0x2b8] sm:$0xff] %v10288_v27 }
0x104a   : > { %v10207_v41 = vpop.permute.xlu0 %10206  ;;  %v10284_v30 = vpop.permute.xlu2 %10283 }
0x104b   : > { %v10216_v54 = vmax.f32 %v18478_v52, %v10207_v41  ;;  %v10291_v29 = vmax.f32 %v10273_v61, %v10284_v30 }
0x104d   : > { %12700 = vst [vmem:[%s18090_s23 + $0x260] sm:$0xff] %v10216_v54 }
0x104e   : > { %12701 = vst [vmem:[%s18090_s23 + $0x268] sm:$0xff] %v10216_v54 }
0x104f   : > { %12716 = vst [vmem:[%s18090_s23 + $0x2e0] sm:$0xff] %v10291_v29 }
0x1050   : > { %12717 = vst [vmem:[%s18090_s23 + $0x2e8] sm:$0xff] %v10291_v29 }
0x1051   : > { %v10209_v23 = vpop.permute.xlu1 %10208 }
0x1052   : > { %v10217_v18 = vmax.f32 %v18490_v37, %v10209_v23 }
0x1054   : > { %12702 = vst [vmem:[%s18090_s23 + $0x270] sm:$0xff] %v10217_v18 }
0x1055   : > { %12703 = vst [vmem:[%s18090_s23 + $0x278] sm:$0xff] %v10217_v18 }
0x1062   : > { %v10213_v34 = vpop.permute.xlu0 %10212 }
0x1063   : > { %v10219_v6 = vmax.f32 %v18502_v24, %v10213_v34 }
0x1065   : > { %12706 = vst [vmem:[%s18090_s23 + $0x290] sm:$0xff] %v10219_v6 }
0x1066   : > { %12707 = vst [vmem:[%s18090_s23 + $0x298] sm:$0xff] %v10219_v6 }
0x1069   : > { %v10276_v21 = vpop.permute.xlu1 %10275 }
0x106a   : > { %v10287_v63 = vmax.f32 %v18511_v17, %v10276_v21 }
0x106c   : > { %12708 = vst [vmem:[%s18090_s23 + $0x2a0] sm:$0xff] %v10287_v63 }
0x106d   : > { %12709 = vst [vmem:[%s18090_s23 + $0x2a8] sm:$0xff] %v10287_v63 }
0x107a   : > { %v10280_v39 = vpop.permute.xlu0 %10279 }
0x107b   : > { %v10289_v19 = vmax.f32 %v10271_v14, %v10280_v39 }
0x107d   : > { %12712 = vst [vmem:[%s18090_s23 + $0x2c0] sm:$0xff] %v10289_v19 }
0x107e   : > { %12713 = vst [vmem:[%s18090_s23 + $0x2c8] sm:$0xff] %v10289_v19 }
0x1081   : > { %v10282_v33 = vpop.permute.xlu1 %10281 }
0x1082   : > { %v10290_v36 = vmax.f32 %v10272_v26, %v10282_v33 }
0x1084   : > { %12714 = vst [vmem:[%s18090_s23 + $0x2d0] sm:$0xff] %v10290_v36 }
0x1085   : > { %12715 = vst [vmem:[%s18090_s23 + $0x2d8] sm:$0xff] %v10290_v36 }
0x1092   : > { %v10286_v3 = vpop.permute.xlu0 %10285 }
0x1093   : > { %v10292_v38 = vmax.f32 %v10274_v51, %v10286_v3 }
0x1095   : > { %12718 = vst [vmem:[%s18090_s23 + $0x2f0] sm:$0xff] %v10292_v38 }
0x1096   : > { %12719 = vst [vmem:[%s18090_s23 + $0x2f8] sm:$0xff] %v10292_v38 }
0x1097 PF: > { %s16_s21 = sadd.s32 1, %s13227_s21  }
0x1098   : > { %p13_p5 = scmp.ge.s32.totalorder %s16_s21, 4  }
0x109a   :  { %15 = sbr.rel (!%p13_p5) target bundleno = 1 (0x1), region = 81 }

</bundles_post_ra>
